<compile_context>
chip_gen: v5e
topology: v5e:2x2
jax: 0.10.0
libtpu: 0.0.40
codegen_flags: <defaults>
</compile_context>

<pallas_src>
import functools

import jax
import jax.numpy as jnp
from jax.experimental import pallas as pl
from jax.experimental.pallas import tpu as pltpu


def _round_up(x, m):
    return (x + m - 1) // m * m


def _pick_tile(n, target, step):
    t = min(target, n)
    while n % t:
        t -= step
    return t


def _vmem_limit_bytes():
    """Generation-aware VMEM budget: ~48 MiB on v7x (64 MiB physical), up to
    96 MiB on v5e/v6e (128 MiB physical)."""
    try:
        cap = pltpu.get_tpu_info().vmem_capacity_bytes
    except Exception:  # conservative default if the query is unavailable
        cap = 64 * 1024 * 1024
    return int(min(max(cap - 16 * 1024 * 1024, 32 * 1024 * 1024),
                   96 * 1024 * 1024))


# ----------------------------------------------------------------------------
# Fused multi-layer LSTM kernel (all layers, all time steps, one batch chunk)
# ----------------------------------------------------------------------------
def _decoder_lstm_kernel(num_layers, T, Bc, Hp, unroll, x_ref, *refs):
    """PyTorch gate order (i, f, g, o). Rows of x_ref / scratch are (t*Bc + b)."""
    w_ih = refs[0:num_layers]
    w_hh = refs[num_layers:2 * num_layers]
    bias = refs[2 * num_layers:3 * num_layers]
    out_ref = refs[3 * num_layers]
    gates_sc, hseq_sc, h_sc, c_sc = refs[3 * num_layers + 1:]

    x_in = x_ref[0]                                      # (T*Bc, E_pad) bf16

    for layer in range(num_layers):
        wih = w_ih[layer][...]                           # (D_in_pad, 4*Hp) bf16
        whh = w_hh[layer][...]                           # (Hp, 4*Hp)       bf16
        b = bias[layer][...]                             # (1, 4*Hp)        f32

        # bf16 already -> no cast for the layer>0 input.
        inp = x_in if layer == 0 else hseq_sc[...]

        # Input projection for ALL time steps as one MXU-dense matmul, with the
        # combined (b_ih + b_hh) bias folded in once (not per step).
        # TODO(synk): for very large Bc*T*Hp on v7x this f32 gate buffer could be
        # tiled over T or held in bf16; with Bc capped at 128 it fits comfortably.
        gates_sc[...] = (
            jnp.dot(inp, wih, preferred_element_type=jnp.float32) + b)

        h_sc[...] = jnp.zeros_like(h_sc)
        c_sc[...] = jnp.zeros_like(c_sc)

        def step(t, carry, whh=whh):
            row = pl.multiple_of(t * Bc, Bc)
            g = gates_sc[pl.ds(row, Bc), :] + jnp.dot(
                h_sc[...], whh, preferred_element_type=jnp.float32)
            # Hp is a multiple of 128 -> gate slices are lane-aligned views.
            i_g = jax.nn.sigmoid(g[:, 0 * Hp:1 * Hp])
            f_g = jax.nn.sigmoid(g[:, 1 * Hp:2 * Hp])
            g_g = jnp.tanh(g[:, 2 * Hp:3 * Hp])
            o_g = jax.nn.sigmoid(g[:, 3 * Hp:4 * Hp])
            c_new = f_g * c_sc[...] + i_g * g_g          # f32 elementwise (v5e-safe)
            h_new = (o_g * jnp.tanh(c_new)).astype(jnp.bfloat16)
            c_sc[...] = c_new
            h_sc[...] = h_new
            hseq_sc[pl.ds(row, Bc), :] = h_new
            return carry

        jax.lax.fori_loop(0, T, step, 0, unroll=unroll)

    out_ref[0] = hseq_sc[...]


def _lstm_forward(x_chunks, w_ih_list, w_hh_list, bias_list, *, T, Bc, Hp,
                  single_buffer_weights=True):
    """x_chunks: (C, T*Bc, E_pad) bf16 -> last-layer hidden (C, T*Bc, Hp) bf16."""
    C, rows, E_pad = x_chunks.shape
    assert rows == T * Bc
    L = len(w_ih_list)

    unroll = T <= 16   # fully unroll short recurrences; avoid vreg spills on long ones
    kernel = functools.partial(_decoder_lstm_kernel, L, T, Bc, Hp, unroll)

    def const_spec(shape):
        # Grid-invariant operand: its block never changes across grid steps, so
        # single-buffer it (default double-buffering would just duplicate VMEM).
        if single_buffer_weights:
            return pl.BlockSpec(shape, lambda c: (0, 0),
                                pipeline_mode=pl.Buffered(1))
        return pl.BlockSpec(shape, lambda c: (0, 0))

    in_specs = [pl.BlockSpec((1, T * Bc, E_pad), lambda c: (c, 0, 0))]
    for w in w_ih_list:
        in_specs.append(const_spec((w.shape[0], 4 * Hp)))
    for _ in w_hh_list:
        in_specs.append(const_spec((Hp, 4 * Hp)))
    for _ in bias_list:
        in_specs.append(const_spec((1, 4 * Hp)))

    return pl.pallas_call(
        kernel,
        out_shape=jax.ShapeDtypeStruct((C, T * Bc, Hp), jnp.bfloat16),
        grid=(C,),
        in_specs=in_specs,
        out_specs=pl.BlockSpec((1, T * Bc, Hp), lambda c: (c, 0, 0)),
        scratch_shapes=[
            pltpu.VMEM((T * Bc, 4 * Hp), jnp.float32),   # precomputed gates (f32)
            pltpu.VMEM((T * Bc, Hp), jnp.bfloat16),      # per-layer h sequence (bf16)
            pltpu.VMEM((Bc, Hp), jnp.bfloat16),          # h state (matmul-operand dtype)
            pltpu.VMEM((Bc, Hp), jnp.float32),           # c state (f32, v5e-safe VPU)
        ],
        compiler_params=pltpu.CompilerParams(
            dimension_semantics=("parallel",),           # batch chunks -> 2 TCs on v7x
            vmem_limit_bytes=_vmem_limit_bytes()),
    )(x_chunks, *w_ih_list, *w_hh_list, *bias_list)


# ----------------------------------------------------------------------------
# Tiled final Linear (W-resident: vocab tile outer, row tile inner)
# ----------------------------------------------------------------------------
def _linear_kernel(h_ref, w_ref, b_ref, out_ref):
    out_ref[...] = (
        jnp.dot(h_ref[...], w_ref[...], preferred_element_type=jnp.float32)
        + b_ref[...])


def _linear(h, w, b):
    """h: (Np, Hp) bf16, w: (Hp, Vp) bf16, b: (1, Vp) f32 -> (Np, Vp) f32."""
    Np, Hp = h.shape
    Vp = w.shape[1]
    bn = Np if Np <= 512 else 256          # caller pads rows to a multiple of bn
    assert Np % bn == 0
    bv = _pick_tile(Vp, 512, 128)          # lane-dense vocab column tiles
    return pl.pallas_call(
        _linear_kernel,
        out_shape=jax.ShapeDtypeStruct((Np, Vp), jnp.float32),
        grid=(Vp // bv, Np // bn),         # vocab OUTER, rows INNER -> W tile resident,
        in_specs=[                         # the big (Hp, Vp) weight streams from HBM once
            pl.BlockSpec((bn, Hp), lambda j, i: (i, 0)),
            pl.BlockSpec((Hp, bv), lambda j, i: (0, j)),
            pl.BlockSpec((1, bv), lambda j, i: (0, j)),
        ],
        out_specs=pl.BlockSpec((bn, bv), lambda j, i: (i, j)),
        compiler_params=pltpu.CompilerParams(
            dimension_semantics=("parallel", "parallel"),
            vmem_limit_bytes=_vmem_limit_bytes()),
    )(h, w, b)


# ----------------------------------------------------------------------------
# DecoderRNN (parameters + forward glue)
# ----------------------------------------------------------------------------
class DecoderRNNPallas:
    _BC_MAX = 128    # MXU-native M rows for the recurrent matmul (fills v5e's
                     # 128-row MXU exactly; still a full-throughput tile on v6e/v7x)

    def __init__(self, embed_size, hidden_size, vocab_size, num_layers, key,
                 max_seq_length=20):
        self.embed_size = embed_size
        self.hidden_size = hidden_size
        self.vocab_size = vocab_size
        self.num_layers = num_layers
        self.max_seq_length = max_seq_length

        keys = jax.random.split(key, 2 + 4 * num_layers + 2)
        k = iter(keys)
        scale = 0.1
        # nn.Embedding(vocab_size, embed_size)
        self.embed_w = scale * jax.random.normal(next(k), (vocab_size, embed_size),
                                                 jnp.float32)
        # nn.LSTM(embed_size, hidden_size, num_layers, batch_first=True)
        # stored transposed: w_ih (D_in, 4H), w_hh (H, 4H), bias = b_ih + b_hh (1, 4H)
        self.w_ih, self.w_hh, self.bias = [], [], []
        for layer in range(num_layers):
            d_in = embed_size if layer == 0 else hidden_size
            self.w_ih.append(scale * jax.random.normal(next(k), (d_in, 4 * hidden_size),
                                                       jnp.float32))
            self.w_hh.append(scale * jax.random.normal(next(k), (hidden_size, 4 * hidden_size),
                                                       jnp.float32))
            b_ih = scale * jax.random.normal(next(k), (4 * hidden_size,), jnp.float32)
            b_hh = scale * jax.random.normal(next(k), (4 * hidden_size,), jnp.float32)
            self.bias.append((b_ih + b_hh)[None, :])
        # nn.Linear(hidden_size, vocab_size)
        self.lin_w = scale * jax.random.normal(next(k), (hidden_size, vocab_size),
                                               jnp.float32)
        self.lin_b = scale * jax.random.normal(next(k), (vocab_size,), jnp.float32)[None, :]

        # ---- padded / bf16 kernel-side parameters (built once) --------------
        H = hidden_size
        self.Ep = _round_up(embed_size, 128)
        self.Hp = _round_up(hidden_size, 128)
        self.Vp = _round_up(vocab_size, 128)

        def pad_gate_cols(w):                      # (D, 4H) -> (D, 4Hp), gate-blocked
            D = w.shape[0]
            w4 = w.reshape(D, 4, H)
            w4 = jnp.pad(w4, ((0, 0), (0, 0), (0, self.Hp - H)))
            return w4.reshape(D, 4 * self.Hp)

        self.w_ih_p, self.w_hh_p, self.bias_p = [], [], []
        for layer in range(num_layers):
            d_in = embed_size if layer == 0 else hidden_size
            d_in_p = self.Ep if layer == 0 else self.Hp
            wih = jnp.pad(pad_gate_cols(self.w_ih[layer]), ((0, d_in_p - d_in), (0, 0)))
            whh = jnp.pad(pad_gate_cols(self.w_hh[layer]), ((0, self.Hp - H), (0, 0)))
            self.w_ih_p.append(wih.astype(jnp.bfloat16))
            self.w_hh_p.append(whh.astype(jnp.bfloat16))
            self.bias_p.append(pad_gate_cols(self.bias[layer]))   # stays f32
        self.lin_w_p = jnp.pad(self.lin_w, ((0, self.Hp - H),
                                            (0, self.Vp - vocab_size))).astype(jnp.bfloat16)
        self.lin_b_p = jnp.pad(self.lin_b, ((0, 0), (0, self.Vp - vocab_size)))   # f32

    @staticmethod
    def _packed_indices(lengths):
        """Row order of pack_padded_sequence(batch_first=True).data.

        lengths: python list of ints, sorted descending (PyTorch enforce_sorted).
        """
        T = max(lengths)
        t_idx, b_idx = [], []
        for t in range(T):
            for b, L in enumerate(lengths):
                if L > t:
                    t_idx.append(t)
                    b_idx.append(b)
        return t_idx, b_idx

    def forward(self, features, captions, lengths):
        """features: (B, E) f32; captions: (B, T_cap) int32; lengths: list[int] desc."""
        B = features.shape[0]
        E, V = self.embed_size, self.vocab_size
        Ep, Hp, Vp = self.Ep, self.Hp, self.Vp

        assert all(lengths[i] >= lengths[i + 1] for i in range(len(lengths) - 1)), \
            "lengths must be sorted descending (pack_padded_sequence enforce_sorted=True)"

        # Embedding lookup + <image feature, caption embeddings> concat (XLA glue).
        emb = jnp.take(self.embed_w, captions, axis=0)                 # (B, T_cap, E)
        x = jnp.concatenate([features[:, None, :], emb], axis=1)       # (B, T, E)
        T = x.shape[1]
        assert max(lengths) <= T

        # Batch-chunk size: as many rows as possible (up to 128) per chunk so the
        # serialized h @ W_hh matmul feeds the MXU; larger batches split into
        # 128-row chunks (C >= 2 "parallel" grid steps -> both v7x TCs busy).
        Bp8 = _round_up(B, 8)
        Bc = Bp8 if Bp8 <= self._BC_MAX else self._BC_MAX
        Bp = _round_up(B, Bc)
        C = Bp // Bc

        # Time-major, padded, chunk-major rows ordered (t, b_in_chunk).
        x = jnp.transpose(x, (1, 0, 2))                                # (T, B, E)
        x = jnp.pad(x, ((0, 0), (0, Bp - B), (0, Ep - E)))
        x = (x.reshape(T, C, Bc, Ep).transpose(1, 0, 2, 3)
              .reshape(C, T * Bc, Ep).astype(jnp.bfloat16))

        # Fused multi-layer LSTM: all time steps + all layers in one kernel call.
        try:
            h = _lstm_forward(x, self.w_ih_p, self.w_hh_p, self.bias_p,
                              T=T, Bc=Bc, Hp=Hp, single_buffer_weights=True)
        except Exception:
            # Fallback if pipeline_mode=pl.Buffered(1) is unsupported in this jax.
            h = _lstm_forward(x, self.w_ih_p, self.w_hh_p, self.bias_p,
                              T=T, Bc=Bc, Hp=Hp, single_buffer_weights=False)

        # pack_padded_sequence(batch_first=True) row order, expressed directly in
        # the kernel's chunk-row layout (row = c*T*Bc + t*Bc + b%Bc). Gather the
        # SMALL bf16 hidden rows (not f32 logits) and run the final Linear only
        # on the packed sum(lengths) rows -- no logits transpose, no padded-row work.
        # TODO(synk): lengths are consumed host-side; a new lengths pattern re-traces
        # only this gather + the linear row count (the LSTM kernel is length-agnostic).
        t_idx, b_idx = self._packed_indices(lengths)
        rows = [(b // Bc) * (T * Bc) + t * Bc + (b % Bc)
                for t, b in zip(t_idx, b_idx)]
        n_packed = len(rows)
        h_packed = jnp.take(h.reshape(C * T * Bc, Hp),
                            jnp.asarray(rows, jnp.int32), axis=0)      # (n_packed, Hp) bf16

        Np = _round_up(n_packed, 8)
        if Np > 512:
            Np = _round_up(n_packed, 256)
        h_packed = jnp.pad(h_packed, ((0, Np - n_packed), (0, 0)))

        logits = _linear(h_packed, self.lin_w_p, self.lin_b_p)         # (Np, Vp) f32
        return logits[:n_packed, :V]


# ----------------------------------------------------------------------------
# Pure-JAX reference (same bf16-matmul / f32-accumulate policy as the kernels)
# ----------------------------------------------------------------------------
def _reference_forward(model, features, captions, lengths):
    emb = jnp.take(model.embed_w, captions, axis=0)
    x = jnp.concatenate([features[:, None, :], emb], axis=1)       # (B, T, E)
    x = jnp.transpose(x, (1, 0, 2))                                # (T, B, E)
    H = model.hidden_size

    for layer in range(model.num_layers):
        w_ih = model.w_ih[layer].astype(jnp.bfloat16)
        w_hh = model.w_hh[layer].astype(jnp.bfloat16)
        bias = model.bias[layer]
        B = x.shape[1]

        def step(carry, x_t, w_ih=w_ih, w_hh=w_hh, bias=bias):
            h, c = carry
            g = (jnp.dot(x_t.astype(jnp.bfloat16), w_ih, preferred_element_type=jnp.float32)
                 + jnp.dot(h.astype(jnp.bfloat16), w_hh, preferred_element_type=jnp.float32)
                 + bias)
            i = jax.nn.sigmoid(g[:, 0 * H:1 * H])
            f = jax.nn.sigmoid(g[:, 1 * H:2 * H])
            gg = jnp.tanh(g[:, 2 * H:3 * H])
            o = jax.nn.sigmoid(g[:, 3 * H:4 * H])
            c = f * c + i * gg
            h = o * jnp.tanh(c)
            return (h, c), h

        init = (jnp.zeros((B, H), jnp.float32), jnp.zeros((B, H), jnp.float32))
        _, x = jax.lax.scan(step, init, x)                         # (T, B, H)

    t_idx, b_idx = model._packed_indices(lengths)
    packed_h = x[jnp.array(t_idx), jnp.array(b_idx)]
    return (jnp.dot(packed_h.astype(jnp.bfloat16),
                    model.lin_w.astype(jnp.bfloat16),
                    preferred_element_type=jnp.float32) + model.lin_b)


# ----------------------------------------------------------------------------
if __name__ == "__main__":
    key = jax.random.PRNGKey(0)
    k_param, k_feat, k_cap = jax.random.split(key, 3)

    embed_size = 32
    hidden_size = 32
    vocab_size = 40
    num_layers = 2
    batch = 2
    cap_len = 7                      # captions length; total seq = cap_len + 1 = 8
    lengths = [8, 5]                 # sorted descending, as pack_padded_sequence requires

    model = DecoderRNNPallas(embed_size, hidden_size, vocab_size, num_layers, k_param)

    features = jax.random.normal(k_feat, (batch, embed_size), jnp.float32)
    captions = jax.random.randint(k_cap, (batch, cap_len), 0, vocab_size, jnp.int32)

    out = model.forward(features, captions, lengths)
    out = jax.block_until_ready(out)

    ref = _reference_forward(model, features, captions, lengths)
    assert out.shape == (sum(lengths), vocab_size), out.shape
    assert jnp.allclose(out, ref, atol=5e-3, rtol=5e-3), "mismatch vs reference"

    print("KERNEL_OK")
</pallas_src>

<mosaic_0001>
module attributes {stable_mosaic.version = 11 : i64} {
  func.func @_decoder_lstm_kernel(%arg0: i32, %arg1: memref<1x64x128xbf16, #tpu.memory_space<vmem>>, %arg2: memref<128x512xbf16, #tpu.memory_space<vmem>>, %arg3: memref<128x512xbf16, #tpu.memory_space<vmem>>, %arg4: memref<128x512xbf16, #tpu.memory_space<vmem>>, %arg5: memref<128x512xbf16, #tpu.memory_space<vmem>>, %arg6: memref<1x512xf32, #tpu.memory_space<vmem>>, %arg7: memref<1x512xf32, #tpu.memory_space<vmem>>, %arg8: memref<1x64x128xbf16, #tpu.memory_space<vmem>>, %arg9: memref<64x512xf32, #tpu.memory_space<vmem>>, %arg10: memref<64x128xbf16, #tpu.memory_space<vmem>>, %arg11: memref<8x128xbf16, #tpu.memory_space<vmem>>, %arg12: memref<8x128xf32, #tpu.memory_space<vmem>>) attributes {dimension_semantics = [#tpu.dimension_semantics<parallel>], iteration_bounds = array<i64: 1>, scalar_prefetch = 0 : i64, scratch_operands = 4 : i64, tpu.core_type = #tpu.core_type<tc>, window_params = [{transform_indices = @transform_0, window_bounds = array<i64: 1, 64, 128>}, {pipeline_mode = #tpu.pipeline_mode<synchronous>, transform_indices = @transform_1, window_bounds = array<i64: 128, 512>}, {pipeline_mode = #tpu.pipeline_mode<synchronous>, transform_indices = @transform_2, window_bounds = array<i64: 128, 512>}, {pipeline_mode = #tpu.pipeline_mode<synchronous>, transform_indices = @transform_3, window_bounds = array<i64: 128, 512>}, {pipeline_mode = #tpu.pipeline_mode<synchronous>, transform_indices = @transform_4, window_bounds = array<i64: 128, 512>}, {pipeline_mode = #tpu.pipeline_mode<synchronous>, transform_indices = @transform_5, window_bounds = array<i64: 1, 512>}, {pipeline_mode = #tpu.pipeline_mode<synchronous>, transform_indices = @transform_6, window_bounds = array<i64: 1, 512>}, {transform_indices = @transform_7, window_bounds = array<i64: 1, 64, 128>}]} {
    %c0 = arith.constant 0 : index
    %c0_0 = arith.constant 0 : index
    %c0_1 = arith.constant 0 : index
    %0 = vector.load %arg1[%c0, %c0_0, %c0_1] : memref<1x64x128xbf16, #tpu.memory_space<vmem>>, vector<1x64x128xbf16>
    %1 = vector.shape_cast %0 : vector<1x64x128xbf16> to vector<64x128xbf16>
    %c0_2 = arith.constant 0 : index
    %c0_3 = arith.constant 0 : index
    %2 = vector.load %arg2[%c0_2, %c0_3] : memref<128x512xbf16, #tpu.memory_space<vmem>>, vector<128x512xbf16>
    %c0_4 = arith.constant 0 : index
    %c0_5 = arith.constant 0 : index
    %3 = vector.load %arg4[%c0_4, %c0_5] : memref<128x512xbf16, #tpu.memory_space<vmem>>, vector<128x512xbf16>
    %c0_6 = arith.constant 0 : index
    %c0_7 = arith.constant 0 : index
    %4 = vector.load %arg6[%c0_6, %c0_7] : memref<1x512xf32, #tpu.memory_space<vmem>>, vector<1x512xf32>
    %cst = arith.constant dense<0.000000e+00> : vector<64x512xf32>
    %5 = tpu.matmul %1, %2, %cst {dimension_numbers = #tpu.dot_dimension_numbers<[1], [0], [0], [1], [0, 0, 1, 1], [], []>} : vector<64x128xbf16>, vector<128x512xbf16>, vector<64x512xf32> -> vector<64x512xf32>
    %6 = vector.broadcast %4 : vector<1x512xf32> to vector<64x512xf32>
    %7 = arith.addf %5, %6 : vector<64x512xf32>
    %c0_8 = arith.constant 0 : index
    %c0_9 = arith.constant 0 : index
    %8 = vector.load %arg9[%c0_8, %c0_9] : memref<64x512xf32, #tpu.memory_space<vmem>>, vector<64x512xf32>
    tpu.vector_store %arg9[%c0_8, %c0_9], %7 {strides = array<i32>} : memref<64x512xf32, #tpu.memory_space<vmem>>, vector<64x512xf32>,
    %cst_10 = arith.constant 0.000000e+00 : bf16
    %9 = vector.broadcast %cst_10 : bf16 to vector<8x128xbf16>
    %c0_11 = arith.constant 0 : index
    %c0_12 = arith.constant 0 : index
    %10 = vector.load %arg11[%c0_11, %c0_12] : memref<8x128xbf16, #tpu.memory_space<vmem>>, vector<8x128xbf16>
    tpu.vector_store %arg11[%c0_11, %c0_12], %9 {strides = array<i32>} : memref<8x128xbf16, #tpu.memory_space<vmem>>, vector<8x128xbf16>,
    %cst_13 = arith.constant 0.000000e+00 : f32
    %11 = vector.broadcast %cst_13 : f32 to vector<8x128xf32>
    %c0_14 = arith.constant 0 : index
    %c0_15 = arith.constant 0 : index
    %12 = vector.load %arg12[%c0_14, %c0_15] : memref<8x128xf32, #tpu.memory_space<vmem>>, vector<8x128xf32>
    tpu.vector_store %arg12[%c0_14, %c0_15], %11 {strides = array<i32>} : memref<8x128xf32, #tpu.memory_space<vmem>>, vector<8x128xf32>,
    %c0_i32 = arith.constant 0 : i32
    %c8_i32 = arith.constant 8 : i32
    %13 = arith.muli %c0_i32, %c8_i32 : i32
    %14 = tpu.assume_multiple %13, 8 : i32
    %15 = arith.index_cast %14 : i32 to index
    %c0_16 = arith.constant 0 : index
    %16 = vector.load %arg9[%15, %c0_16] : memref<64x512xf32, #tpu.memory_space<vmem>>, vector<8x512xf32>
    %c0_17 = arith.constant 0 : index
    %c0_18 = arith.constant 0 : index
    %17 = vector.load %arg11[%c0_17, %c0_18] : memref<8x128xbf16, #tpu.memory_space<vmem>>, vector<8x128xbf16>
    %cst_19 = arith.constant dense<0.000000e+00> : vector<8x512xf32>
    %18 = tpu.matmul %17, %3, %cst_19 {dimension_numbers = #tpu.dot_dimension_numbers<[1], [0], [0], [1], [0, 0, 1, 1], [], []>} : vector<8x128xbf16>, vector<128x512xbf16>, vector<8x512xf32> -> vector<8x512xf32>
    %19 = arith.addf %16, %18 : vector<8x512xf32>
    %20 = vector.extract_strided_slice %19 {offsets = [0, 0], sizes = [8, 128], strides = [1, 1]} : vector<8x512xf32> to vector<8x128xf32>
    %21 = arith.negf %20 : vector<8x128xf32>
    %22 = math.exp %21 : vector<8x128xf32>
    %cst_20 = arith.constant 1.000000e+00 : f32
    %23 = vector.broadcast %cst_20 : f32 to vector<8x128xf32>
    %24 = arith.addf %23, %22 : vector<8x128xf32>
    %25 = arith.divf %23, %24 : vector<8x128xf32>
    %26 = vector.extract_strided_slice %19 {offsets = [0, 128], sizes = [8, 128], strides = [1, 1]} : vector<8x512xf32> to vector<8x128xf32>
    %27 = arith.negf %26 : vector<8x128xf32>
    %28 = math.exp %27 : vector<8x128xf32>
    %cst_21 = arith.constant 1.000000e+00 : f32
    %29 = vector.broadcast %cst_21 : f32 to vector<8x128xf32>
    %30 = arith.addf %29, %28 : vector<8x128xf32>
    %31 = arith.divf %29, %30 : vector<8x128xf32>
    %32 = vector.extract_strided_slice %19 {offsets = [0, 256], sizes = [8, 128], strides = [1, 1]} : vector<8x512xf32> to vector<8x128xf32>
    %33 = math.tanh %32 : vector<8x128xf32>
    %34 = vector.extract_strided_slice %19 {offsets = [0, 384], sizes = [8, 128], strides = [1, 1]} : vector<8x512xf32> to vector<8x128xf32>
    %35 = arith.negf %34 : vector<8x128xf32>
    %36 = math.exp %35 : vector<8x128xf32>
    %cst_22 = arith.constant 1.000000e+00 : f32
    %37 = vector.broadcast %cst_22 : f32 to vector<8x128xf32>
    %38 = arith.addf %37, %36 : vector<8x128xf32>
    %39 = arith.divf %37, %38 : vector<8x128xf32>
    %c0_23 = arith.constant 0 : index
    %c0_24 = arith.constant 0 : index
    %40 = vector.load %arg12[%c0_23, %c0_24] : memref<8x128xf32, #tpu.memory_space<vmem>>, vector<8x128xf32>
    %41 = arith.mulf %31, %40 : vector<8x128xf32>
    %42 = arith.mulf %25, %33 : vector<8x128xf32>
    %43 = arith.addf %41, %42 : vector<8x128xf32>
    %44 = math.tanh %43 : vector<8x128xf32>
    %45 = arith.mulf %39, %44 : vector<8x128xf32>
    %46 = arith.truncf %45 : vector<8x128xf32> to vector<8x128xbf16>
    %c0_25 = arith.constant 0 : index
    %c0_26 = arith.constant 0 : index
    %47 = vector.load %arg12[%c0_25, %c0_26] : memref<8x128xf32, #tpu.memory_space<vmem>>, vector<8x128xf32>
    tpu.vector_store %arg12[%c0_25, %c0_26], %43 {strides = array<i32>} : memref<8x128xf32, #tpu.memory_space<vmem>>, vector<8x128xf32>,
    %c0_27 = arith.constant 0 : index
    %c0_28 = arith.constant 0 : index
    %48 = vector.load %arg11[%c0_27, %c0_28] : memref<8x128xbf16, #tpu.memory_space<vmem>>, vector<8x128xbf16>
    tpu.vector_store %arg11[%c0_27, %c0_28], %46 {strides = array<i32>} : memref<8x128xbf16, #tpu.memory_space<vmem>>, vector<8x128xbf16>,
    %49 = arith.index_cast %14 : i32 to index
    %c0_29 = arith.constant 0 : index
    %50 = vector.load %arg10[%49, %c0_29] : memref<64x128xbf16, #tpu.memory_space<vmem>>, vector<8x128xbf16>
    tpu.vector_store %arg10[%49, %c0_29], %46 {strides = array<i32>} : memref<64x128xbf16, #tpu.memory_space<vmem>>, vector<8x128xbf16>,
    %c1_i32 = arith.constant 1 : i32
    %c8_i32_30 = arith.constant 8 : i32
    %51 = arith.muli %c1_i32, %c8_i32_30 : i32
    %52 = tpu.assume_multiple %51, 8 : i32
    %53 = arith.index_cast %52 : i32 to index
    %c0_31 = arith.constant 0 : index
    %54 = vector.load %arg9[%53, %c0_31] : memref<64x512xf32, #tpu.memory_space<vmem>>, vector<8x512xf32>
    %c0_32 = arith.constant 0 : index
    %c0_33 = arith.constant 0 : index
    %55 = vector.load %arg11[%c0_32, %c0_33] : memref<8x128xbf16, #tpu.memory_space<vmem>>, vector<8x128xbf16>
    %cst_34 = arith.constant dense<0.000000e+00> : vector<8x512xf32>
    %56 = tpu.matmul %55, %3, %cst_34 {dimension_numbers = #tpu.dot_dimension_numbers<[1], [0], [0], [1], [0, 0, 1, 1], [], []>} : vector<8x128xbf16>, vector<128x512xbf16>, vector<8x512xf32> -> vector<8x512xf32>
    %57 = arith.addf %54, %56 : vector<8x512xf32>
    %58 = vector.extract_strided_slice %57 {offsets = [0, 0], sizes = [8, 128], strides = [1, 1]} : vector<8x512xf32> to vector<8x128xf32>
    %59 = arith.negf %58 : vector<8x128xf32>
    %60 = math.exp %59 : vector<8x128xf32>
    %cst_35 = arith.constant 1.000000e+00 : f32
    %61 = vector.broadcast %cst_35 : f32 to vector<8x128xf32>
    %62 = arith.addf %61, %60 : vector<8x128xf32>
    %63 = arith.divf %61, %62 : vector<8x128xf32>
    %64 = vector.extract_strided_slice %57 {offsets = [0, 128], sizes = [8, 128], strides = [1, 1]} : vector<8x512xf32> to vector<8x128xf32>
    %65 = arith.negf %64 : vector<8x128xf32>
    %66 = math.exp %65 : vector<8x128xf32>
    %cst_36 = arith.constant 1.000000e+00 : f32
    %67 = vector.broadcast %cst_36 : f32 to vector<8x128xf32>
    %68 = arith.addf %67, %66 : vector<8x128xf32>
    %69 = arith.divf %67, %68 : vector<8x128xf32>
    %70 = vector.extract_strided_slice %57 {offsets = [0, 256], sizes = [8, 128], strides = [1, 1]} : vector<8x512xf32> to vector<8x128xf32>
    %71 = math.tanh %70 : vector<8x128xf32>
    %72 = vector.extract_strided_slice %57 {offsets = [0, 384], sizes = [8, 128], strides = [1, 1]} : vector<8x512xf32> to vector<8x128xf32>
    %73 = arith.negf %72 : vector<8x128xf32>
    %74 = math.exp %73 : vector<8x128xf32>
    %cst_37 = arith.constant 1.000000e+00 : f32
    %75 = vector.broadcast %cst_37 : f32 to vector<8x128xf32>
    %76 = arith.addf %75, %74 : vector<8x128xf32>
    %77 = arith.divf %75, %76 : vector<8x128xf32>
    %c0_38 = arith.constant 0 : index
    %c0_39 = arith.constant 0 : index
    %78 = vector.load %arg12[%c0_38, %c0_39] : memref<8x128xf32, #tpu.memory_space<vmem>>, vector<8x128xf32>
    %79 = arith.mulf %69, %78 : vector<8x128xf32>
    %80 = arith.mulf %63, %71 : vector<8x128xf32>
    %81 = arith.addf %79, %80 : vector<8x128xf32>
    %82 = math.tanh %81 : vector<8x128xf32>
    %83 = arith.mulf %77, %82 : vector<8x128xf32>
    %84 = arith.truncf %83 : vector<8x128xf32> to vector<8x128xbf16>
    %c0_40 = arith.constant 0 : index
    %c0_41 = arith.constant 0 : index
    %85 = vector.load %arg12[%c0_40, %c0_41] : memref<8x128xf32, #tpu.memory_space<vmem>>, vector<8x128xf32>
    tpu.vector_store %arg12[%c0_40, %c0_41], %81 {strides = array<i32>} : memref<8x128xf32, #tpu.memory_space<vmem>>, vector<8x128xf32>,
    %c0_42 = arith.constant 0 : index
    %c0_43 = arith.constant 0 : index
    %86 = vector.load %arg11[%c0_42, %c0_43] : memref<8x128xbf16, #tpu.memory_space<vmem>>, vector<8x128xbf16>
    tpu.vector_store %arg11[%c0_42, %c0_43], %84 {strides = array<i32>} : memref<8x128xbf16, #tpu.memory_space<vmem>>, vector<8x128xbf16>,
    %87 = arith.index_cast %52 : i32 to index
    %c0_44 = arith.constant 0 : index
    %88 = vector.load %arg10[%87, %c0_44] : memref<64x128xbf16, #tpu.memory_space<vmem>>, vector<8x128xbf16>
    tpu.vector_store %arg10[%87, %c0_44], %84 {strides = array<i32>} : memref<64x128xbf16, #tpu.memory_space<vmem>>, vector<8x128xbf16>,
    %c2_i32 = arith.constant 2 : i32
    %c8_i32_45 = arith.constant 8 : i32
    %89 = arith.muli %c2_i32, %c8_i32_45 : i32
    %90 = tpu.assume_multiple %89, 8 : i32
    %91 = arith.index_cast %90 : i32 to index
    %c0_46 = arith.constant 0 : index
    %92 = vector.load %arg9[%91, %c0_46] : memref<64x512xf32, #tpu.memory_space<vmem>>, vector<8x512xf32>
    %c0_47 = arith.constant 0 : index
    %c0_48 = arith.constant 0 : index
    %93 = vector.load %arg11[%c0_47, %c0_48] : memref<8x128xbf16, #tpu.memory_space<vmem>>, vector<8x128xbf16>
    %cst_49 = arith.constant dense<0.000000e+00> : vector<8x512xf32>
    %94 = tpu.matmul %93, %3, %cst_49 {dimension_numbers = #tpu.dot_dimension_numbers<[1], [0], [0], [1], [0, 0, 1, 1], [], []>} : vector<8x128xbf16>, vector<128x512xbf16>, vector<8x512xf32> -> vector<8x512xf32>
    %95 = arith.addf %92, %94 : vector<8x512xf32>
    %96 = vector.extract_strided_slice %95 {offsets = [0, 0], sizes = [8, 128], strides = [1, 1]} : vector<8x512xf32> to vector<8x128xf32>
    %97 = arith.negf %96 : vector<8x128xf32>
    %98 = math.exp %97 : vector<8x128xf32>
    %cst_50 = arith.constant 1.000000e+00 : f32
    %99 = vector.broadcast %cst_50 : f32 to vector<8x128xf32>
    %100 = arith.addf %99, %98 : vector<8x128xf32>
    %101 = arith.divf %99, %100 : vector<8x128xf32>
    %102 = vector.extract_strided_slice %95 {offsets = [0, 128], sizes = [8, 128], strides = [1, 1]} : vector<8x512xf32> to vector<8x128xf32>
    %103 = arith.negf %102 : vector<8x128xf32>
    %104 = math.exp %103 : vector<8x128xf32>
    %cst_51 = arith.constant 1.000000e+00 : f32
    %105 = vector.broadcast %cst_51 : f32 to vector<8x128xf32>
    %106 = arith.addf %105, %104 : vector<8x128xf32>
    %107 = arith.divf %105, %106 : vector<8x128xf32>
    %108 = vector.extract_strided_slice %95 {offsets = [0, 256], sizes = [8, 128], strides = [1, 1]} : vector<8x512xf32> to vector<8x128xf32>
    %109 = math.tanh %108 : vector<8x128xf32>
    %110 = vector.extract_strided_slice %95 {offsets = [0, 384], sizes = [8, 128], strides = [1, 1]} : vector<8x512xf32> to vector<8x128xf32>
    %111 = arith.negf %110 : vector<8x128xf32>
    %112 = math.exp %111 : vector<8x128xf32>
    %cst_52 = arith.constant 1.000000e+00 : f32
    %113 = vector.broadcast %cst_52 : f32 to vector<8x128xf32>
    %114 = arith.addf %113, %112 : vector<8x128xf32>
    %115 = arith.divf %113, %114 : vector<8x128xf32>
    %c0_53 = arith.constant 0 : index
    %c0_54 = arith.constant 0 : index
    %116 = vector.load %arg12[%c0_53, %c0_54] : memref<8x128xf32, #tpu.memory_space<vmem>>, vector<8x128xf32>
    %117 = arith.mulf %107, %116 : vector<8x128xf32>
    %118 = arith.mulf %101, %109 : vector<8x128xf32>
    %119 = arith.addf %117, %118 : vector<8x128xf32>
    %120 = math.tanh %119 : vector<8x128xf32>
    %121 = arith.mulf %115, %120 : vector<8x128xf32>
    %122 = arith.truncf %121 : vector<8x128xf32> to vector<8x128xbf16>
    %c0_55 = arith.constant 0 : index
    %c0_56 = arith.constant 0 : index
    %123 = vector.load %arg12[%c0_55, %c0_56] : memref<8x128xf32, #tpu.memory_space<vmem>>, vector<8x128xf32>
    tpu.vector_store %arg12[%c0_55, %c0_56], %119 {strides = array<i32>} : memref<8x128xf32, #tpu.memory_space<vmem>>, vector<8x128xf32>,
    %c0_57 = arith.constant 0 : index
    %c0_58 = arith.constant 0 : index
    %124 = vector.load %arg11[%c0_57, %c0_58] : memref<8x128xbf16, #tpu.memory_space<vmem>>, vector<8x128xbf16>
    tpu.vector_store %arg11[%c0_57, %c0_58], %122 {strides = array<i32>} : memref<8x128xbf16, #tpu.memory_space<vmem>>, vector<8x128xbf16>,
    %125 = arith.index_cast %90 : i32 to index
    %c0_59 = arith.constant 0 : index
    %126 = vector.load %arg10[%125, %c0_59] : memref<64x128xbf16, #tpu.memory_space<vmem>>, vector<8x128xbf16>
    tpu.vector_store %arg10[%125, %c0_59], %122 {strides = array<i32>} : memref<64x128xbf16, #tpu.memory_space<vmem>>, vector<8x128xbf16>,
    %c3_i32 = arith.constant 3 : i32
    %c8_i32_60 = arith.constant 8 : i32
    %127 = arith.muli %c3_i32, %c8_i32_60 : i32
    %128 = tpu.assume_multiple %127, 8 : i32
    %129 = arith.index_cast %128 : i32 to index
    %c0_61 = arith.constant 0 : index
    %130 = vector.load %arg9[%129, %c0_61] : memref<64x512xf32, #tpu.memory_space<vmem>>, vector<8x512xf32>
    %c0_62 = arith.constant 0 : index
    %c0_63 = arith.constant 0 : index
    %131 = vector.load %arg11[%c0_62, %c0_63] : memref<8x128xbf16, #tpu.memory_space<vmem>>, vector<8x128xbf16>
    %cst_64 = arith.constant dense<0.000000e+00> : vector<8x512xf32>
    %132 = tpu.matmul %131, %3, %cst_64 {dimension_numbers = #tpu.dot_dimension_numbers<[1], [0], [0], [1], [0, 0, 1, 1], [], []>} : vector<8x128xbf16>, vector<128x512xbf16>, vector<8x512xf32> -> vector<8x512xf32>
    %133 = arith.addf %130, %132 : vector<8x512xf32>
    %134 = vector.extract_strided_slice %133 {offsets = [0, 0], sizes = [8, 128], strides = [1, 1]} : vector<8x512xf32> to vector<8x128xf32>
    %135 = arith.negf %134 : vector<8x128xf32>
    %136 = math.exp %135 : vector<8x128xf32>
    %cst_65 = arith.constant 1.000000e+00 : f32
    %137 = vector.broadcast %cst_65 : f32 to vector<8x128xf32>
    %138 = arith.addf %137, %136 : vector<8x128xf32>
    %139 = arith.divf %137, %138 : vector<8x128xf32>
    %140 = vector.extract_strided_slice %133 {offsets = [0, 128], sizes = [8, 128], strides = [1, 1]} : vector<8x512xf32> to vector<8x128xf32>
    %141 = arith.negf %140 : vector<8x128xf32>
    %142 = math.exp %141 : vector<8x128xf32>
    %cst_66 = arith.constant 1.000000e+00 : f32
    %143 = vector.broadcast %cst_66 : f32 to vector<8x128xf32>
    %144 = arith.addf %143, %142 : vector<8x128xf32>
    %145 = arith.divf %143, %144 : vector<8x128xf32>
    %146 = vector.extract_strided_slice %133 {offsets = [0, 256], sizes = [8, 128], strides = [1, 1]} : vector<8x512xf32> to vector<8x128xf32>
    %147 = math.tanh %146 : vector<8x128xf32>
    %148 = vector.extract_strided_slice %133 {offsets = [0, 384], sizes = [8, 128], strides = [1, 1]} : vector<8x512xf32> to vector<8x128xf32>
    %149 = arith.negf %148 : vector<8x128xf32>
    %150 = math.exp %149 : vector<8x128xf32>
    %cst_67 = arith.constant 1.000000e+00 : f32
    %151 = vector.broadcast %cst_67 : f32 to vector<8x128xf32>
    %152 = arith.addf %151, %150 : vector<8x128xf32>
    %153 = arith.divf %151, %152 : vector<8x128xf32>
    %c0_68 = arith.constant 0 : index
    %c0_69 = arith.constant 0 : index
    %154 = vector.load %arg12[%c0_68, %c0_69] : memref<8x128xf32, #tpu.memory_space<vmem>>, vector<8x128xf32>
    %155 = arith.mulf %145, %154 : vector<8x128xf32>
    %156 = arith.mulf %139, %147 : vector<8x128xf32>
    %157 = arith.addf %155, %156 : vector<8x128xf32>
    %158 = math.tanh %157 : vector<8x128xf32>
    %159 = arith.mulf %153, %158 : vector<8x128xf32>
    %160 = arith.truncf %159 : vector<8x128xf32> to vector<8x128xbf16>
    %c0_70 = arith.constant 0 : index
    %c0_71 = arith.constant 0 : index
    %161 = vector.load %arg12[%c0_70, %c0_71] : memref<8x128xf32, #tpu.memory_space<vmem>>, vector<8x128xf32>
    tpu.vector_store %arg12[%c0_70, %c0_71], %157 {strides = array<i32>} : memref<8x128xf32, #tpu.memory_space<vmem>>, vector<8x128xf32>,
    %c0_72 = arith.constant 0 : index
    %c0_73 = arith.constant 0 : index
    %162 = vector.load %arg11[%c0_72, %c0_73] : memref<8x128xbf16, #tpu.memory_space<vmem>>, vector<8x128xbf16>
    tpu.vector_store %arg11[%c0_72, %c0_73], %160 {strides = array<i32>} : memref<8x128xbf16, #tpu.memory_space<vmem>>, vector<8x128xbf16>,
    %163 = arith.index_cast %128 : i32 to index
    %c0_74 = arith.constant 0 : index
    %164 = vector.load %arg10[%163, %c0_74] : memref<64x128xbf16, #tpu.memory_space<vmem>>, vector<8x128xbf16>
    tpu.vector_store %arg10[%163, %c0_74], %160 {strides = array<i32>} : memref<64x128xbf16, #tpu.memory_space<vmem>>, vector<8x128xbf16>,
    %c4_i32 = arith.constant 4 : i32
    %c8_i32_75 = arith.constant 8 : i32
    %165 = arith.muli %c4_i32, %c8_i32_75 : i32
    %166 = tpu.assume_multiple %165, 8 : i32
    %167 = arith.index_cast %166 : i32 to index
    %c0_76 = arith.constant 0 : index
    %168 = vector.load %arg9[%167, %c0_76] : memref<64x512xf32, #tpu.memory_space<vmem>>, vector<8x512xf32>
    %c0_77 = arith.constant 0 : index
    %c0_78 = arith.constant 0 : index
    %169 = vector.load %arg11[%c0_77, %c0_78] : memref<8x128xbf16, #tpu.memory_space<vmem>>, vector<8x128xbf16>
    %cst_79 = arith.constant dense<0.000000e+00> : vector<8x512xf32>
    %170 = tpu.matmul %169, %3, %cst_79 {dimension_numbers = #tpu.dot_dimension_numbers<[1], [0], [0], [1], [0, 0, 1, 1], [], []>} : vector<8x128xbf16>, vector<128x512xbf16>, vector<8x512xf32> -> vector<8x512xf32>
    %171 = arith.addf %168, %170 : vector<8x512xf32>
    %172 = vector.extract_strided_slice %171 {offsets = [0, 0], sizes = [8, 128], strides = [1, 1]} : vector<8x512xf32> to vector<8x128xf32>
    %173 = arith.negf %172 : vector<8x128xf32>
    %174 = math.exp %173 : vector<8x128xf32>
    %cst_80 = arith.constant 1.000000e+00 : f32
    %175 = vector.broadcast %cst_80 : f32 to vector<8x128xf32>
    %176 = arith.addf %175, %174 : vector<8x128xf32>
    %177 = arith.divf %175, %176 : vector<8x128xf32>
    %178 = vector.extract_strided_slice %171 {offsets = [0, 128], sizes = [8, 128], strides = [1, 1]} : vector<8x512xf32> to vector<8x128xf32>
    %179 = arith.negf %178 : vector<8x128xf32>
    %180 = math.exp %179 : vector<8x128xf32>
    %cst_81 = arith.constant 1.000000e+00 : f32
    %181 = vector.broadcast %cst_81 : f32 to vector<8x128xf32>
    %182 = arith.addf %181, %180 : vector<8x128xf32>
    %183 = arith.divf %181, %182 : vector<8x128xf32>
    %184 = vector.extract_strided_slice %171 {offsets = [0, 256], sizes = [8, 128], strides = [1, 1]} : vector<8x512xf32> to vector<8x128xf32>
    %185 = math.tanh %184 : vector<8x128xf32>
    %186 = vector.extract_strided_slice %171 {offsets = [0, 384], sizes = [8, 128], strides = [1, 1]} : vector<8x512xf32> to vector<8x128xf32>
    %187 = arith.negf %186 : vector<8x128xf32>
    %188 = math.exp %187 : vector<8x128xf32>
    %cst_82 = arith.constant 1.000000e+00 : f32
    %189 = vector.broadcast %cst_82 : f32 to vector<8x128xf32>
    %190 = arith.addf %189, %188 : vector<8x128xf32>
    %191 = arith.divf %189, %190 : vector<8x128xf32>
    %c0_83 = arith.constant 0 : index
    %c0_84 = arith.constant 0 : index
    %192 = vector.load %arg12[%c0_83, %c0_84] : memref<8x128xf32, #tpu.memory_space<vmem>>, vector<8x128xf32>
    %193 = arith.mulf %183, %192 : vector<8x128xf32>
    %194 = arith.mulf %177, %185 : vector<8x128xf32>
    %195 = arith.addf %193, %194 : vector<8x128xf32>
    %196 = math.tanh %195 : vector<8x128xf32>
    %197 = arith.mulf %191, %196 : vector<8x128xf32>
    %198 = arith.truncf %197 : vector<8x128xf32> to vector<8x128xbf16>
    %c0_85 = arith.constant 0 : index
    %c0_86 = arith.constant 0 : index
    %199 = vector.load %arg12[%c0_85, %c0_86] : memref<8x128xf32, #tpu.memory_space<vmem>>, vector<8x128xf32>
    tpu.vector_store %arg12[%c0_85, %c0_86], %195 {strides = array<i32>} : memref<8x128xf32, #tpu.memory_space<vmem>>, vector<8x128xf32>,
    %c0_87 = arith.constant 0 : index
    %c0_88 = arith.constant 0 : index
    %200 = vector.load %arg11[%c0_87, %c0_88] : memref<8x128xbf16, #tpu.memory_space<vmem>>, vector<8x128xbf16>
    tpu.vector_store %arg11[%c0_87, %c0_88], %198 {strides = array<i32>} : memref<8x128xbf16, #tpu.memory_space<vmem>>, vector<8x128xbf16>,
    %201 = arith.index_cast %166 : i32 to index
    %c0_89 = arith.constant 0 : index
    %202 = vector.load %arg10[%201, %c0_89] : memref<64x128xbf16, #tpu.memory_space<vmem>>, vector<8x128xbf16>
    tpu.vector_store %arg10[%201, %c0_89], %198 {strides = array<i32>} : memref<64x128xbf16, #tpu.memory_space<vmem>>, vector<8x128xbf16>,
    %c5_i32 = arith.constant 5 : i32
    %c8_i32_90 = arith.constant 8 : i32
    %203 = arith.muli %c5_i32, %c8_i32_90 : i32
    %204 = tpu.assume_multiple %203, 8 : i32
    %205 = arith.index_cast %204 : i32 to index
    %c0_91 = arith.constant 0 : index
    %206 = vector.load %arg9[%205, %c0_91] : memref<64x512xf32, #tpu.memory_space<vmem>>, vector<8x512xf32>
    %c0_92 = arith.constant 0 : index
    %c0_93 = arith.constant 0 : index
    %207 = vector.load %arg11[%c0_92, %c0_93] : memref<8x128xbf16, #tpu.memory_space<vmem>>, vector<8x128xbf16>
    %cst_94 = arith.constant dense<0.000000e+00> : vector<8x512xf32>
    %208 = tpu.matmul %207, %3, %cst_94 {dimension_numbers = #tpu.dot_dimension_numbers<[1], [0], [0], [1], [0, 0, 1, 1], [], []>} : vector<8x128xbf16>, vector<128x512xbf16>, vector<8x512xf32> -> vector<8x512xf32>
    %209 = arith.addf %206, %208 : vector<8x512xf32>
    %210 = vector.extract_strided_slice %209 {offsets = [0, 0], sizes = [8, 128], strides = [1, 1]} : vector<8x512xf32> to vector<8x128xf32>
    %211 = arith.negf %210 : vector<8x128xf32>
    %212 = math.exp %211 : vector<8x128xf32>
    %cst_95 = arith.constant 1.000000e+00 : f32
    %213 = vector.broadcast %cst_95 : f32 to vector<8x128xf32>
    %214 = arith.addf %213, %212 : vector<8x128xf32>
    %215 = arith.divf %213, %214 : vector<8x128xf32>
    %216 = vector.extract_strided_slice %209 {offsets = [0, 128], sizes = [8, 128], strides = [1, 1]} : vector<8x512xf32> to vector<8x128xf32>
    %217 = arith.negf %216 : vector<8x128xf32>
    %218 = math.exp %217 : vector<8x128xf32>
    %cst_96 = arith.constant 1.000000e+00 : f32
    %219 = vector.broadcast %cst_96 : f32 to vector<8x128xf32>
    %220 = arith.addf %219, %218 : vector<8x128xf32>
    %221 = arith.divf %219, %220 : vector<8x128xf32>
    %222 = vector.extract_strided_slice %209 {offsets = [0, 256], sizes = [8, 128], strides = [1, 1]} : vector<8x512xf32> to vector<8x128xf32>
    %223 = math.tanh %222 : vector<8x128xf32>
    %224 = vector.extract_strided_slice %209 {offsets = [0, 384], sizes = [8, 128], strides = [1, 1]} : vector<8x512xf32> to vector<8x128xf32>
    %225 = arith.negf %224 : vector<8x128xf32>
    %226 = math.exp %225 : vector<8x128xf32>
    %cst_97 = arith.constant 1.000000e+00 : f32
    %227 = vector.broadcast %cst_97 : f32 to vector<8x128xf32>
    %228 = arith.addf %227, %226 : vector<8x128xf32>
    %229 = arith.divf %227, %228 : vector<8x128xf32>
    %c0_98 = arith.constant 0 : index
    %c0_99 = arith.constant 0 : index
    %230 = vector.load %arg12[%c0_98, %c0_99] : memref<8x128xf32, #tpu.memory_space<vmem>>, vector<8x128xf32>
    %231 = arith.mulf %221, %230 : vector<8x128xf32>
    %232 = arith.mulf %215, %223 : vector<8x128xf32>
    %233 = arith.addf %231, %232 : vector<8x128xf32>
    %234 = math.tanh %233 : vector<8x128xf32>
    %235 = arith.mulf %229, %234 : vector<8x128xf32>
    %236 = arith.truncf %235 : vector<8x128xf32> to vector<8x128xbf16>
    %c0_100 = arith.constant 0 : index
    %c0_101 = arith.constant 0 : index
    %237 = vector.load %arg12[%c0_100, %c0_101] : memref<8x128xf32, #tpu.memory_space<vmem>>, vector<8x128xf32>
    tpu.vector_store %arg12[%c0_100, %c0_101], %233 {strides = array<i32>} : memref<8x128xf32, #tpu.memory_space<vmem>>, vector<8x128xf32>,
    %c0_102 = arith.constant 0 : index
    %c0_103 = arith.constant 0 : index
    %238 = vector.load %arg11[%c0_102, %c0_103] : memref<8x128xbf16, #tpu.memory_space<vmem>>, vector<8x128xbf16>
    tpu.vector_store %arg11[%c0_102, %c0_103], %236 {strides = array<i32>} : memref<8x128xbf16, #tpu.memory_space<vmem>>, vector<8x128xbf16>,
    %239 = arith.index_cast %204 : i32 to index
    %c0_104 = arith.constant 0 : index
    %240 = vector.load %arg10[%239, %c0_104] : memref<64x128xbf16, #tpu.memory_space<vmem>>, vector<8x128xbf16>
    tpu.vector_store %arg10[%239, %c0_104], %236 {strides = array<i32>} : memref<64x128xbf16, #tpu.memory_space<vmem>>, vector<8x128xbf16>,
    %c6_i32 = arith.constant 6 : i32
    %c8_i32_105 = arith.constant 8 : i32
    %241 = arith.muli %c6_i32, %c8_i32_105 : i32
    %242 = tpu.assume_multiple %241, 8 : i32
    %243 = arith.index_cast %242 : i32 to index
    %c0_106 = arith.constant 0 : index
    %244 = vector.load %arg9[%243, %c0_106] : memref<64x512xf32, #tpu.memory_space<vmem>>, vector<8x512xf32>
    %c0_107 = arith.constant 0 : index
    %c0_108 = arith.constant 0 : index
    %245 = vector.load %arg11[%c0_107, %c0_108] : memref<8x128xbf16, #tpu.memory_space<vmem>>, vector<8x128xbf16>
    %cst_109 = arith.constant dense<0.000000e+00> : vector<8x512xf32>
    %246 = tpu.matmul %245, %3, %cst_109 {dimension_numbers = #tpu.dot_dimension_numbers<[1], [0], [0], [1], [0, 0, 1, 1], [], []>} : vector<8x128xbf16>, vector<128x512xbf16>, vector<8x512xf32> -> vector<8x512xf32>
    %247 = arith.addf %244, %246 : vector<8x512xf32>
    %248 = vector.extract_strided_slice %247 {offsets = [0, 0], sizes = [8, 128], strides = [1, 1]} : vector<8x512xf32> to vector<8x128xf32>
    %249 = arith.negf %248 : vector<8x128xf32>
    %250 = math.exp %249 : vector<8x128xf32>
    %cst_110 = arith.constant 1.000000e+00 : f32
    %251 = vector.broadcast %cst_110 : f32 to vector<8x128xf32>
    %252 = arith.addf %251, %250 : vector<8x128xf32>
    %253 = arith.divf %251, %252 : vector<8x128xf32>
    %254 = vector.extract_strided_slice %247 {offsets = [0, 128], sizes = [8, 128], strides = [1, 1]} : vector<8x512xf32> to vector<8x128xf32>
    %255 = arith.negf %254 : vector<8x128xf32>
    %256 = math.exp %255 : vector<8x128xf32>
    %cst_111 = arith.constant 1.000000e+00 : f32
    %257 = vector.broadcast %cst_111 : f32 to vector<8x128xf32>
    %258 = arith.addf %257, %256 : vector<8x128xf32>
    %259 = arith.divf %257, %258 : vector<8x128xf32>
    %260 = vector.extract_strided_slice %247 {offsets = [0, 256], sizes = [8, 128], strides = [1, 1]} : vector<8x512xf32> to vector<8x128xf32>
    %261 = math.tanh %260 : vector<8x128xf32>
    %262 = vector.extract_strided_slice %247 {offsets = [0, 384], sizes = [8, 128], strides = [1, 1]} : vector<8x512xf32> to vector<8x128xf32>
    %263 = arith.negf %262 : vector<8x128xf32>
    %264 = math.exp %263 : vector<8x128xf32>
    %cst_112 = arith.constant 1.000000e+00 : f32
    %265 = vector.broadcast %cst_112 : f32 to vector<8x128xf32>
    %266 = arith.addf %265, %264 : vector<8x128xf32>
    %267 = arith.divf %265, %266 : vector<8x128xf32>
    %c0_113 = arith.constant 0 : index
    %c0_114 = arith.constant 0 : index
    %268 = vector.load %arg12[%c0_113, %c0_114] : memref<8x128xf32, #tpu.memory_space<vmem>>, vector<8x128xf32>
    %269 = arith.mulf %259, %268 : vector<8x128xf32>
    %270 = arith.mulf %253, %261 : vector<8x128xf32>
    %271 = arith.addf %269, %270 : vector<8x128xf32>
    %272 = math.tanh %271 : vector<8x128xf32>
    %273 = arith.mulf %267, %272 : vector<8x128xf32>
    %274 = arith.truncf %273 : vector<8x128xf32> to vector<8x128xbf16>
    %c0_115 = arith.constant 0 : index
    %c0_116 = arith.constant 0 : index
    %275 = vector.load %arg12[%c0_115, %c0_116] : memref<8x128xf32, #tpu.memory_space<vmem>>, vector<8x128xf32>
    tpu.vector_store %arg12[%c0_115, %c0_116], %271 {strides = array<i32>} : memref<8x128xf32, #tpu.memory_space<vmem>>, vector<8x128xf32>,
    %c0_117 = arith.constant 0 : index
    %c0_118 = arith.constant 0 : index
    %276 = vector.load %arg11[%c0_117, %c0_118] : memref<8x128xbf16, #tpu.memory_space<vmem>>, vector<8x128xbf16>
    tpu.vector_store %arg11[%c0_117, %c0_118], %274 {strides = array<i32>} : memref<8x128xbf16, #tpu.memory_space<vmem>>, vector<8x128xbf16>,
    %277 = arith.index_cast %242 : i32 to index
    %c0_119 = arith.constant 0 : index
    %278 = vector.load %arg10[%277, %c0_119] : memref<64x128xbf16, #tpu.memory_space<vmem>>, vector<8x128xbf16>
    tpu.vector_store %arg10[%277, %c0_119], %274 {strides = array<i32>} : memref<64x128xbf16, #tpu.memory_space<vmem>>, vector<8x128xbf16>,
    %c7_i32 = arith.constant 7 : i32
    %c8_i32_120 = arith.constant 8 : i32
    %279 = arith.muli %c7_i32, %c8_i32_120 : i32
    %280 = tpu.assume_multiple %279, 8 : i32
    %281 = arith.index_cast %280 : i32 to index
    %c0_121 = arith.constant 0 : index
    %282 = vector.load %arg9[%281, %c0_121] : memref<64x512xf32, #tpu.memory_space<vmem>>, vector<8x512xf32>
    %c0_122 = arith.constant 0 : index
    %c0_123 = arith.constant 0 : index
    %283 = vector.load %arg11[%c0_122, %c0_123] : memref<8x128xbf16, #tpu.memory_space<vmem>>, vector<8x128xbf16>
    %cst_124 = arith.constant dense<0.000000e+00> : vector<8x512xf32>
    %284 = tpu.matmul %283, %3, %cst_124 {dimension_numbers = #tpu.dot_dimension_numbers<[1], [0], [0], [1], [0, 0, 1, 1], [], []>} : vector<8x128xbf16>, vector<128x512xbf16>, vector<8x512xf32> -> vector<8x512xf32>
    %285 = arith.addf %282, %284 : vector<8x512xf32>
    %286 = vector.extract_strided_slice %285 {offsets = [0, 0], sizes = [8, 128], strides = [1, 1]} : vector<8x512xf32> to vector<8x128xf32>
    %287 = arith.negf %286 : vector<8x128xf32>
    %288 = math.exp %287 : vector<8x128xf32>
    %cst_125 = arith.constant 1.000000e+00 : f32
    %289 = vector.broadcast %cst_125 : f32 to vector<8x128xf32>
    %290 = arith.addf %289, %288 : vector<8x128xf32>
    %291 = arith.divf %289, %290 : vector<8x128xf32>
    %292 = vector.extract_strided_slice %285 {offsets = [0, 128], sizes = [8, 128], strides = [1, 1]} : vector<8x512xf32> to vector<8x128xf32>
    %293 = arith.negf %292 : vector<8x128xf32>
    %294 = math.exp %293 : vector<8x128xf32>
    %cst_126 = arith.constant 1.000000e+00 : f32
    %295 = vector.broadcast %cst_126 : f32 to vector<8x128xf32>
    %296 = arith.addf %295, %294 : vector<8x128xf32>
    %297 = arith.divf %295, %296 : vector<8x128xf32>
    %298 = vector.extract_strided_slice %285 {offsets = [0, 256], sizes = [8, 128], strides = [1, 1]} : vector<8x512xf32> to vector<8x128xf32>
    %299 = math.tanh %298 : vector<8x128xf32>
    %300 = vector.extract_strided_slice %285 {offsets = [0, 384], sizes = [8, 128], strides = [1, 1]} : vector<8x512xf32> to vector<8x128xf32>
    %301 = arith.negf %300 : vector<8x128xf32>
    %302 = math.exp %301 : vector<8x128xf32>
    %cst_127 = arith.constant 1.000000e+00 : f32
    %303 = vector.broadcast %cst_127 : f32 to vector<8x128xf32>
    %304 = arith.addf %303, %302 : vector<8x128xf32>
    %305 = arith.divf %303, %304 : vector<8x128xf32>
    %c0_128 = arith.constant 0 : index
    %c0_129 = arith.constant 0 : index
    %306 = vector.load %arg12[%c0_128, %c0_129] : memref<8x128xf32, #tpu.memory_space<vmem>>, vector<8x128xf32>
    %307 = arith.mulf %297, %306 : vector<8x128xf32>
    %308 = arith.mulf %291, %299 : vector<8x128xf32>
    %309 = arith.addf %307, %308 : vector<8x128xf32>
    %310 = math.tanh %309 : vector<8x128xf32>
    %311 = arith.mulf %305, %310 : vector<8x128xf32>
    %312 = arith.truncf %311 : vector<8x128xf32> to vector<8x128xbf16>
    %c0_130 = arith.constant 0 : index
    %c0_131 = arith.constant 0 : index
    %313 = vector.load %arg12[%c0_130, %c0_131] : memref<8x128xf32, #tpu.memory_space<vmem>>, vector<8x128xf32>
    tpu.vector_store %arg12[%c0_130, %c0_131], %309 {strides = array<i32>} : memref<8x128xf32, #tpu.memory_space<vmem>>, vector<8x128xf32>,
    %c0_132 = arith.constant 0 : index
    %c0_133 = arith.constant 0 : index
    %314 = vector.load %arg11[%c0_132, %c0_133] : memref<8x128xbf16, #tpu.memory_space<vmem>>, vector<8x128xbf16>
    tpu.vector_store %arg11[%c0_132, %c0_133], %312 {strides = array<i32>} : memref<8x128xbf16, #tpu.memory_space<vmem>>, vector<8x128xbf16>,
    %315 = arith.index_cast %280 : i32 to index
    %c0_134 = arith.constant 0 : index
    %316 = vector.load %arg10[%315, %c0_134] : memref<64x128xbf16, #tpu.memory_space<vmem>>, vector<8x128xbf16>
    tpu.vector_store %arg10[%315, %c0_134], %312 {strides = array<i32>} : memref<64x128xbf16, #tpu.memory_space<vmem>>, vector<8x128xbf16>,
    %c8_i32_135 = arith.constant 8 : i32
    %c0_136 = arith.constant 0 : index
    %c0_137 = arith.constant 0 : index
    %317 = vector.load %arg3[%c0_136, %c0_137] : memref<128x512xbf16, #tpu.memory_space<vmem>>, vector<128x512xbf16>
    %c0_138 = arith.constant 0 : index
    %c0_139 = arith.constant 0 : index
    %318 = vector.load %arg5[%c0_138, %c0_139] : memref<128x512xbf16, #tpu.memory_space<vmem>>, vector<128x512xbf16>
    %c0_140 = arith.constant 0 : index
    %c0_141 = arith.constant 0 : index
    %319 = vector.load %arg7[%c0_140, %c0_141] : memref<1x512xf32, #tpu.memory_space<vmem>>, vector<1x512xf32>
    %c0_142 = arith.constant 0 : index
    %c0_143 = arith.constant 0 : index
    %320 = vector.load %arg10[%c0_142, %c0_143] : memref<64x128xbf16, #tpu.memory_space<vmem>>, vector<64x128xbf16>
    %cst_144 = arith.constant dense<0.000000e+00> : vector<64x512xf32>
    %321 = tpu.matmul %320, %317, %cst_144 {dimension_numbers = #tpu.dot_dimension_numbers<[1], [0], [0], [1], [0, 0, 1, 1], [], []>} : vector<64x128xbf16>, vector<128x512xbf16>, vector<64x512xf32> -> vector<64x512xf32>
    %322 = vector.broadcast %319 : vector<1x512xf32> to vector<64x512xf32>
    %323 = arith.addf %321, %322 : vector<64x512xf32>
    %c0_145 = arith.constant 0 : index
    %c0_146 = arith.constant 0 : index
    %324 = vector.load %arg9[%c0_145, %c0_146] : memref<64x512xf32, #tpu.memory_space<vmem>>, vector<64x512xf32>
    tpu.vector_store %arg9[%c0_145, %c0_146], %323 {strides = array<i32>} : memref<64x512xf32, #tpu.memory_space<vmem>>, vector<64x512xf32>,
    %cst_147 = arith.constant 0.000000e+00 : bf16
    %325 = vector.broadcast %cst_147 : bf16 to vector<8x128xbf16>
    %c0_148 = arith.constant 0 : index
    %c0_149 = arith.constant 0 : index
    %326 = vector.load %arg11[%c0_148, %c0_149] : memref<8x128xbf16, #tpu.memory_space<vmem>>, vector<8x128xbf16>
    tpu.vector_store %arg11[%c0_148, %c0_149], %325 {strides = array<i32>} : memref<8x128xbf16, #tpu.memory_space<vmem>>, vector<8x128xbf16>,
    %cst_150 = arith.constant 0.000000e+00 : f32
    %327 = vector.broadcast %cst_150 : f32 to vector<8x128xf32>
    %c0_151 = arith.constant 0 : index
    %c0_152 = arith.constant 0 : index
    %328 = vector.load %arg12[%c0_151, %c0_152] : memref<8x128xf32, #tpu.memory_space<vmem>>, vector<8x128xf32>
    tpu.vector_store %arg12[%c0_151, %c0_152], %327 {strides = array<i32>} : memref<8x128xf32, #tpu.memory_space<vmem>>, vector<8x128xf32>,
    %c0_i32_153 = arith.constant 0 : i32
    %c8_i32_154 = arith.constant 8 : i32
    %329 = arith.muli %c0_i32_153, %c8_i32_154 : i32
    %330 = tpu.assume_multiple %329, 8 : i32
    %331 = arith.index_cast %330 : i32 to index
    %c0_155 = arith.constant 0 : index
    %332 = vector.load %arg9[%331, %c0_155] : memref<64x512xf32, #tpu.memory_space<vmem>>, vector<8x512xf32>
    %c0_156 = arith.constant 0 : index
    %c0_157 = arith.constant 0 : index
    %333 = vector.load %arg11[%c0_156, %c0_157] : memref<8x128xbf16, #tpu.memory_space<vmem>>, vector<8x128xbf16>
    %cst_158 = arith.constant dense<0.000000e+00> : vector<8x512xf32>
    %334 = tpu.matmul %333, %318, %cst_158 {dimension_numbers = #tpu.dot_dimension_numbers<[1], [0], [0], [1], [0, 0, 1, 1], [], []>} : vector<8x128xbf16>, vector<128x512xbf16>, vector<8x512xf32> -> vector<8x512xf32>
    %335 = arith.addf %332, %334 : vector<8x512xf32>
    %336 = vector.extract_strided_slice %335 {offsets = [0, 0], sizes = [8, 128], strides = [1, 1]} : vector<8x512xf32> to vector<8x128xf32>
    %337 = arith.negf %336 : vector<8x128xf32>
    %338 = math.exp %337 : vector<8x128xf32>
    %cst_159 = arith.constant 1.000000e+00 : f32
    %339 = vector.broadcast %cst_159 : f32 to vector<8x128xf32>
    %340 = arith.addf %339, %338 : vector<8x128xf32>
    %341 = arith.divf %339, %340 : vector<8x128xf32>
    %342 = vector.extract_strided_slice %335 {offsets = [0, 128], sizes = [8, 128], strides = [1, 1]} : vector<8x512xf32> to vector<8x128xf32>
    %343 = arith.negf %342 : vector<8x128xf32>
    %344 = math.exp %343 : vector<8x128xf32>
    %cst_160 = arith.constant 1.000000e+00 : f32
    %345 = vector.broadcast %cst_160 : f32 to vector<8x128xf32>
    %346 = arith.addf %345, %344 : vector<8x128xf32>
    %347 = arith.divf %345, %346 : vector<8x128xf32>
    %348 = vector.extract_strided_slice %335 {offsets = [0, 256], sizes = [8, 128], strides = [1, 1]} : vector<8x512xf32> to vector<8x128xf32>
    %349 = math.tanh %348 : vector<8x128xf32>
    %350 = vector.extract_strided_slice %335 {offsets = [0, 384], sizes = [8, 128], strides = [1, 1]} : vector<8x512xf32> to vector<8x128xf32>
    %351 = arith.negf %350 : vector<8x128xf32>
    %352 = math.exp %351 : vector<8x128xf32>
    %cst_161 = arith.constant 1.000000e+00 : f32
    %353 = vector.broadcast %cst_161 : f32 to vector<8x128xf32>
    %354 = arith.addf %353, %352 : vector<8x128xf32>
    %355 = arith.divf %353, %354 : vector<8x128xf32>
    %c0_162 = arith.constant 0 : index
    %c0_163 = arith.constant 0 : index
    %356 = vector.load %arg12[%c0_162, %c0_163] : memref<8x128xf32, #tpu.memory_space<vmem>>, vector<8x128xf32>
    %357 = arith.mulf %347, %356 : vector<8x128xf32>
    %358 = arith.mulf %341, %349 : vector<8x128xf32>
    %359 = arith.addf %357, %358 : vector<8x128xf32>
    %360 = math.tanh %359 : vector<8x128xf32>
    %361 = arith.mulf %355, %360 : vector<8x128xf32>
    %362 = arith.truncf %361 : vector<8x128xf32> to vector<8x128xbf16>
    %c0_164 = arith.constant 0 : index
    %c0_165 = arith.constant 0 : index
    %363 = vector.load %arg12[%c0_164, %c0_165] : memref<8x128xf32, #tpu.memory_space<vmem>>, vector<8x128xf32>
    tpu.vector_store %arg12[%c0_164, %c0_165], %359 {strides = array<i32>} : memref<8x128xf32, #tpu.memory_space<vmem>>, vector<8x128xf32>,
    %c0_166 = arith.constant 0 : index
    %c0_167 = arith.constant 0 : index
    %364 = vector.load %arg11[%c0_166, %c0_167] : memref<8x128xbf16, #tpu.memory_space<vmem>>, vector<8x128xbf16>
    tpu.vector_store %arg11[%c0_166, %c0_167], %362 {strides = array<i32>} : memref<8x128xbf16, #tpu.memory_space<vmem>>, vector<8x128xbf16>,
    %365 = arith.index_cast %330 : i32 to index
    %c0_168 = arith.constant 0 : index
    %366 = vector.load %arg10[%365, %c0_168] : memref<64x128xbf16, #tpu.memory_space<vmem>>, vector<8x128xbf16>
    tpu.vector_store %arg10[%365, %c0_168], %362 {strides = array<i32>} : memref<64x128xbf16, #tpu.memory_space<vmem>>, vector<8x128xbf16>,
    %c1_i32_169 = arith.constant 1 : i32
    %c8_i32_170 = arith.constant 8 : i32
    %367 = arith.muli %c1_i32_169, %c8_i32_170 : i32
    %368 = tpu.assume_multiple %367, 8 : i32
    %369 = arith.index_cast %368 : i32 to index
    %c0_171 = arith.constant 0 : index
    %370 = vector.load %arg9[%369, %c0_171] : memref<64x512xf32, #tpu.memory_space<vmem>>, vector<8x512xf32>
    %c0_172 = arith.constant 0 : index
    %c0_173 = arith.constant 0 : index
    %371 = vector.load %arg11[%c0_172, %c0_173] : memref<8x128xbf16, #tpu.memory_space<vmem>>, vector<8x128xbf16>
    %cst_174 = arith.constant dense<0.000000e+00> : vector<8x512xf32>
    %372 = tpu.matmul %371, %318, %cst_174 {dimension_numbers = #tpu.dot_dimension_numbers<[1], [0], [0], [1], [0, 0, 1, 1], [], []>} : vector<8x128xbf16>, vector<128x512xbf16>, vector<8x512xf32> -> vector<8x512xf32>
    %373 = arith.addf %370, %372 : vector<8x512xf32>
    %374 = vector.extract_strided_slice %373 {offsets = [0, 0], sizes = [8, 128], strides = [1, 1]} : vector<8x512xf32> to vector<8x128xf32>
    %375 = arith.negf %374 : vector<8x128xf32>
    %376 = math.exp %375 : vector<8x128xf32>
    %cst_175 = arith.constant 1.000000e+00 : f32
    %377 = vector.broadcast %cst_175 : f32 to vector<8x128xf32>
    %378 = arith.addf %377, %376 : vector<8x128xf32>
    %379 = arith.divf %377, %378 : vector<8x128xf32>
    %380 = vector.extract_strided_slice %373 {offsets = [0, 128], sizes = [8, 128], strides = [1, 1]} : vector<8x512xf32> to vector<8x128xf32>
    %381 = arith.negf %380 : vector<8x128xf32>
    %382 = math.exp %381 : vector<8x128xf32>
    %cst_176 = arith.constant 1.000000e+00 : f32
    %383 = vector.broadcast %cst_176 : f32 to vector<8x128xf32>
    %384 = arith.addf %383, %382 : vector<8x128xf32>
    %385 = arith.divf %383, %384 : vector<8x128xf32>
    %386 = vector.extract_strided_slice %373 {offsets = [0, 256], sizes = [8, 128], strides = [1, 1]} : vector<8x512xf32> to vector<8x128xf32>
    %387 = math.tanh %386 : vector<8x128xf32>
    %388 = vector.extract_strided_slice %373 {offsets = [0, 384], sizes = [8, 128], strides = [1, 1]} : vector<8x512xf32> to vector<8x128xf32>
    %389 = arith.negf %388 : vector<8x128xf32>
    %390 = math.exp %389 : vector<8x128xf32>
    %cst_177 = arith.constant 1.000000e+00 : f32
    %391 = vector.broadcast %cst_177 : f32 to vector<8x128xf32>
    %392 = arith.addf %391, %390 : vector<8x128xf32>
    %393 = arith.divf %391, %392 : vector<8x128xf32>
    %c0_178 = arith.constant 0 : index
    %c0_179 = arith.constant 0 : index
    %394 = vector.load %arg12[%c0_178, %c0_179] : memref<8x128xf32, #tpu.memory_space<vmem>>, vector<8x128xf32>
    %395 = arith.mulf %385, %394 : vector<8x128xf32>
    %396 = arith.mulf %379, %387 : vector<8x128xf32>
    %397 = arith.addf %395, %396 : vector<8x128xf32>
    %398 = math.tanh %397 : vector<8x128xf32>
    %399 = arith.mulf %393, %398 : vector<8x128xf32>
    %400 = arith.truncf %399 : vector<8x128xf32> to vector<8x128xbf16>
    %c0_180 = arith.constant 0 : index
    %c0_181 = arith.constant 0 : index
    %401 = vector.load %arg12[%c0_180, %c0_181] : memref<8x128xf32, #tpu.memory_space<vmem>>, vector<8x128xf32>
    tpu.vector_store %arg12[%c0_180, %c0_181], %397 {strides = array<i32>} : memref<8x128xf32, #tpu.memory_space<vmem>>, vector<8x128xf32>,
    %c0_182 = arith.constant 0 : index
    %c0_183 = arith.constant 0 : index
    %402 = vector.load %arg11[%c0_182, %c0_183] : memref<8x128xbf16, #tpu.memory_space<vmem>>, vector<8x128xbf16>
    tpu.vector_store %arg11[%c0_182, %c0_183], %400 {strides = array<i32>} : memref<8x128xbf16, #tpu.memory_space<vmem>>, vector<8x128xbf16>,
    %403 = arith.index_cast %368 : i32 to index
    %c0_184 = arith.constant 0 : index
    %404 = vector.load %arg10[%403, %c0_184] : memref<64x128xbf16, #tpu.memory_space<vmem>>, vector<8x128xbf16>
    tpu.vector_store %arg10[%403, %c0_184], %400 {strides = array<i32>} : memref<64x128xbf16, #tpu.memory_space<vmem>>, vector<8x128xbf16>,
    %c2_i32_185 = arith.constant 2 : i32
    %c8_i32_186 = arith.constant 8 : i32
    %405 = arith.muli %c2_i32_185, %c8_i32_186 : i32
    %406 = tpu.assume_multiple %405, 8 : i32
    %407 = arith.index_cast %406 : i32 to index
    %c0_187 = arith.constant 0 : index
    %408 = vector.load %arg9[%407, %c0_187] : memref<64x512xf32, #tpu.memory_space<vmem>>, vector<8x512xf32>
    %c0_188 = arith.constant 0 : index
    %c0_189 = arith.constant 0 : index
    %409 = vector.load %arg11[%c0_188, %c0_189] : memref<8x128xbf16, #tpu.memory_space<vmem>>, vector<8x128xbf16>
    %cst_190 = arith.constant dense<0.000000e+00> : vector<8x512xf32>
    %410 = tpu.matmul %409, %318, %cst_190 {dimension_numbers = #tpu.dot_dimension_numbers<[1], [0], [0], [1], [0, 0, 1, 1], [], []>} : vector<8x128xbf16>, vector<128x512xbf16>, vector<8x512xf32> -> vector<8x512xf32>
    %411 = arith.addf %408, %410 : vector<8x512xf32>
    %412 = vector.extract_strided_slice %411 {offsets = [0, 0], sizes = [8, 128], strides = [1, 1]} : vector<8x512xf32> to vector<8x128xf32>
    %413 = arith.negf %412 : vector<8x128xf32>
    %414 = math.exp %413 : vector<8x128xf32>
    %cst_191 = arith.constant 1.000000e+00 : f32
    %415 = vector.broadcast %cst_191 : f32 to vector<8x128xf32>
    %416 = arith.addf %415, %414 : vector<8x128xf32>
    %417 = arith.divf %415, %416 : vector<8x128xf32>
    %418 = vector.extract_strided_slice %411 {offsets = [0, 128], sizes = [8, 128], strides = [1, 1]} : vector<8x512xf32> to vector<8x128xf32>
    %419 = arith.negf %418 : vector<8x128xf32>
    %420 = math.exp %419 : vector<8x128xf32>
    %cst_192 = arith.constant 1.000000e+00 : f32
    %421 = vector.broadcast %cst_192 : f32 to vector<8x128xf32>
    %422 = arith.addf %421, %420 : vector<8x128xf32>
    %423 = arith.divf %421, %422 : vector<8x128xf32>
    %424 = vector.extract_strided_slice %411 {offsets = [0, 256], sizes = [8, 128], strides = [1, 1]} : vector<8x512xf32> to vector<8x128xf32>
    %425 = math.tanh %424 : vector<8x128xf32>
    %426 = vector.extract_strided_slice %411 {offsets = [0, 384], sizes = [8, 128], strides = [1, 1]} : vector<8x512xf32> to vector<8x128xf32>
    %427 = arith.negf %426 : vector<8x128xf32>
    %428 = math.exp %427 : vector<8x128xf32>
    %cst_193 = arith.constant 1.000000e+00 : f32
    %429 = vector.broadcast %cst_193 : f32 to vector<8x128xf32>
    %430 = arith.addf %429, %428 : vector<8x128xf32>
    %431 = arith.divf %429, %430 : vector<8x128xf32>
    %c0_194 = arith.constant 0 : index
    %c0_195 = arith.constant 0 : index
    %432 = vector.load %arg12[%c0_194, %c0_195] : memref<8x128xf32, #tpu.memory_space<vmem>>, vector<8x128xf32>
    %433 = arith.mulf %423, %432 : vector<8x128xf32>
    %434 = arith.mulf %417, %425 : vector<8x128xf32>
    %435 = arith.addf %433, %434 : vector<8x128xf32>
    %436 = math.tanh %435 : vector<8x128xf32>
    %437 = arith.mulf %431, %436 : vector<8x128xf32>
    %438 = arith.truncf %437 : vector<8x128xf32> to vector<8x128xbf16>
    %c0_196 = arith.constant 0 : index
    %c0_197 = arith.constant 0 : index
    %439 = vector.load %arg12[%c0_196, %c0_197] : memref<8x128xf32, #tpu.memory_space<vmem>>, vector<8x128xf32>
    tpu.vector_store %arg12[%c0_196, %c0_197], %435 {strides = array<i32>} : memref<8x128xf32, #tpu.memory_space<vmem>>, vector<8x128xf32>,
    %c0_198 = arith.constant 0 : index
    %c0_199 = arith.constant 0 : index
    %440 = vector.load %arg11[%c0_198, %c0_199] : memref<8x128xbf16, #tpu.memory_space<vmem>>, vector<8x128xbf16>
    tpu.vector_store %arg11[%c0_198, %c0_199], %438 {strides = array<i32>} : memref<8x128xbf16, #tpu.memory_space<vmem>>, vector<8x128xbf16>,
    %441 = arith.index_cast %406 : i32 to index
    %c0_200 = arith.constant 0 : index
    %442 = vector.load %arg10[%441, %c0_200] : memref<64x128xbf16, #tpu.memory_space<vmem>>, vector<8x128xbf16>
    tpu.vector_store %arg10[%441, %c0_200], %438 {strides = array<i32>} : memref<64x128xbf16, #tpu.memory_space<vmem>>, vector<8x128xbf16>,
    %c3_i32_201 = arith.constant 3 : i32
    %c8_i32_202 = arith.constant 8 : i32
    %443 = arith.muli %c3_i32_201, %c8_i32_202 : i32
    %444 = tpu.assume_multiple %443, 8 : i32
    %445 = arith.index_cast %444 : i32 to index
    %c0_203 = arith.constant 0 : index
    %446 = vector.load %arg9[%445, %c0_203] : memref<64x512xf32, #tpu.memory_space<vmem>>, vector<8x512xf32>
    %c0_204 = arith.constant 0 : index
    %c0_205 = arith.constant 0 : index
    %447 = vector.load %arg11[%c0_204, %c0_205] : memref<8x128xbf16, #tpu.memory_space<vmem>>, vector<8x128xbf16>
    %cst_206 = arith.constant dense<0.000000e+00> : vector<8x512xf32>
    %448 = tpu.matmul %447, %318, %cst_206 {dimension_numbers = #tpu.dot_dimension_numbers<[1], [0], [0], [1], [0, 0, 1, 1], [], []>} : vector<8x128xbf16>, vector<128x512xbf16>, vector<8x512xf32> -> vector<8x512xf32>
    %449 = arith.addf %446, %448 : vector<8x512xf32>
    %450 = vector.extract_strided_slice %449 {offsets = [0, 0], sizes = [8, 128], strides = [1, 1]} : vector<8x512xf32> to vector<8x128xf32>
    %451 = arith.negf %450 : vector<8x128xf32>
    %452 = math.exp %451 : vector<8x128xf32>
    %cst_207 = arith.constant 1.000000e+00 : f32
    %453 = vector.broadcast %cst_207 : f32 to vector<8x128xf32>
    %454 = arith.addf %453, %452 : vector<8x128xf32>
    %455 = arith.divf %453, %454 : vector<8x128xf32>
    %456 = vector.extract_strided_slice %449 {offsets = [0, 128], sizes = [8, 128], strides = [1, 1]} : vector<8x512xf32> to vector<8x128xf32>
    %457 = arith.negf %456 : vector<8x128xf32>
    %458 = math.exp %457 : vector<8x128xf32>
    %cst_208 = arith.constant 1.000000e+00 : f32
    %459 = vector.broadcast %cst_208 : f32 to vector<8x128xf32>
    %460 = arith.addf %459, %458 : vector<8x128xf32>
    %461 = arith.divf %459, %460 : vector<8x128xf32>
    %462 = vector.extract_strided_slice %449 {offsets = [0, 256], sizes = [8, 128], strides = [1, 1]} : vector<8x512xf32> to vector<8x128xf32>
    %463 = math.tanh %462 : vector<8x128xf32>
    %464 = vector.extract_strided_slice %449 {offsets = [0, 384], sizes = [8, 128], strides = [1, 1]} : vector<8x512xf32> to vector<8x128xf32>
    %465 = arith.negf %464 : vector<8x128xf32>
    %466 = math.exp %465 : vector<8x128xf32>
    %cst_209 = arith.constant 1.000000e+00 : f32
    %467 = vector.broadcast %cst_209 : f32 to vector<8x128xf32>
    %468 = arith.addf %467, %466 : vector<8x128xf32>
    %469 = arith.divf %467, %468 : vector<8x128xf32>
    %c0_210 = arith.constant 0 : index
    %c0_211 = arith.constant 0 : index
    %470 = vector.load %arg12[%c0_210, %c0_211] : memref<8x128xf32, #tpu.memory_space<vmem>>, vector<8x128xf32>
    %471 = arith.mulf %461, %470 : vector<8x128xf32>
    %472 = arith.mulf %455, %463 : vector<8x128xf32>
    %473 = arith.addf %471, %472 : vector<8x128xf32>
    %474 = math.tanh %473 : vector<8x128xf32>
    %475 = arith.mulf %469, %474 : vector<8x128xf32>
    %476 = arith.truncf %475 : vector<8x128xf32> to vector<8x128xbf16>
    %c0_212 = arith.constant 0 : index
    %c0_213 = arith.constant 0 : index
    %477 = vector.load %arg12[%c0_212, %c0_213] : memref<8x128xf32, #tpu.memory_space<vmem>>, vector<8x128xf32>
    tpu.vector_store %arg12[%c0_212, %c0_213], %473 {strides = array<i32>} : memref<8x128xf32, #tpu.memory_space<vmem>>, vector<8x128xf32>,
    %c0_214 = arith.constant 0 : index
    %c0_215 = arith.constant 0 : index
    %478 = vector.load %arg11[%c0_214, %c0_215] : memref<8x128xbf16, #tpu.memory_space<vmem>>, vector<8x128xbf16>
    tpu.vector_store %arg11[%c0_214, %c0_215], %476 {strides = array<i32>} : memref<8x128xbf16, #tpu.memory_space<vmem>>, vector<8x128xbf16>,
    %479 = arith.index_cast %444 : i32 to index
    %c0_216 = arith.constant 0 : index
    %480 = vector.load %arg10[%479, %c0_216] : memref<64x128xbf16, #tpu.memory_space<vmem>>, vector<8x128xbf16>
    tpu.vector_store %arg10[%479, %c0_216], %476 {strides = array<i32>} : memref<64x128xbf16, #tpu.memory_space<vmem>>, vector<8x128xbf16>,
    %c4_i32_217 = arith.constant 4 : i32
    %c8_i32_218 = arith.constant 8 : i32
    %481 = arith.muli %c4_i32_217, %c8_i32_218 : i32
    %482 = tpu.assume_multiple %481, 8 : i32
    %483 = arith.index_cast %482 : i32 to index
    %c0_219 = arith.constant 0 : index
    %484 = vector.load %arg9[%483, %c0_219] : memref<64x512xf32, #tpu.memory_space<vmem>>, vector<8x512xf32>
    %c0_220 = arith.constant 0 : index
    %c0_221 = arith.constant 0 : index
    %485 = vector.load %arg11[%c0_220, %c0_221] : memref<8x128xbf16, #tpu.memory_space<vmem>>, vector<8x128xbf16>
    %cst_222 = arith.constant dense<0.000000e+00> : vector<8x512xf32>
    %486 = tpu.matmul %485, %318, %cst_222 {dimension_numbers = #tpu.dot_dimension_numbers<[1], [0], [0], [1], [0, 0, 1, 1], [], []>} : vector<8x128xbf16>, vector<128x512xbf16>, vector<8x512xf32> -> vector<8x512xf32>
    %487 = arith.addf %484, %486 : vector<8x512xf32>
    %488 = vector.extract_strided_slice %487 {offsets = [0, 0], sizes = [8, 128], strides = [1, 1]} : vector<8x512xf32> to vector<8x128xf32>
    %489 = arith.negf %488 : vector<8x128xf32>
    %490 = math.exp %489 : vector<8x128xf32>
    %cst_223 = arith.constant 1.000000e+00 : f32
    %491 = vector.broadcast %cst_223 : f32 to vector<8x128xf32>
    %492 = arith.addf %491, %490 : vector<8x128xf32>
    %493 = arith.divf %491, %492 : vector<8x128xf32>
    %494 = vector.extract_strided_slice %487 {offsets = [0, 128], sizes = [8, 128], strides = [1, 1]} : vector<8x512xf32> to vector<8x128xf32>
    %495 = arith.negf %494 : vector<8x128xf32>
    %496 = math.exp %495 : vector<8x128xf32>
    %cst_224 = arith.constant 1.000000e+00 : f32
    %497 = vector.broadcast %cst_224 : f32 to vector<8x128xf32>
    %498 = arith.addf %497, %496 : vector<8x128xf32>
    %499 = arith.divf %497, %498 : vector<8x128xf32>
    %500 = vector.extract_strided_slice %487 {offsets = [0, 256], sizes = [8, 128], strides = [1, 1]} : vector<8x512xf32> to vector<8x128xf32>
    %501 = math.tanh %500 : vector<8x128xf32>
    %502 = vector.extract_strided_slice %487 {offsets = [0, 384], sizes = [8, 128], strides = [1, 1]} : vector<8x512xf32> to vector<8x128xf32>
    %503 = arith.negf %502 : vector<8x128xf32>
    %504 = math.exp %503 : vector<8x128xf32>
    %cst_225 = arith.constant 1.000000e+00 : f32
    %505 = vector.broadcast %cst_225 : f32 to vector<8x128xf32>
    %506 = arith.addf %505, %504 : vector<8x128xf32>
    %507 = arith.divf %505, %506 : vector<8x128xf32>
    %c0_226 = arith.constant 0 : index
    %c0_227 = arith.constant 0 : index
    %508 = vector.load %arg12[%c0_226, %c0_227] : memref<8x128xf32, #tpu.memory_space<vmem>>, vector<8x128xf32>
    %509 = arith.mulf %499, %508 : vector<8x128xf32>
    %510 = arith.mulf %493, %501 : vector<8x128xf32>
    %511 = arith.addf %509, %510 : vector<8x128xf32>
    %512 = math.tanh %511 : vector<8x128xf32>
    %513 = arith.mulf %507, %512 : vector<8x128xf32>
    %514 = arith.truncf %513 : vector<8x128xf32> to vector<8x128xbf16>
    %c0_228 = arith.constant 0 : index
    %c0_229 = arith.constant 0 : index
    %515 = vector.load %arg12[%c0_228, %c0_229] : memref<8x128xf32, #tpu.memory_space<vmem>>, vector<8x128xf32>
    tpu.vector_store %arg12[%c0_228, %c0_229], %511 {strides = array<i32>} : memref<8x128xf32, #tpu.memory_space<vmem>>, vector<8x128xf32>,
    %c0_230 = arith.constant 0 : index
    %c0_231 = arith.constant 0 : index
    %516 = vector.load %arg11[%c0_230, %c0_231] : memref<8x128xbf16, #tpu.memory_space<vmem>>, vector<8x128xbf16>
    tpu.vector_store %arg11[%c0_230, %c0_231], %514 {strides = array<i32>} : memref<8x128xbf16, #tpu.memory_space<vmem>>, vector<8x128xbf16>,
    %517 = arith.index_cast %482 : i32 to index
    %c0_232 = arith.constant 0 : index
    %518 = vector.load %arg10[%517, %c0_232] : memref<64x128xbf16, #tpu.memory_space<vmem>>, vector<8x128xbf16>
    tpu.vector_store %arg10[%517, %c0_232], %514 {strides = array<i32>} : memref<64x128xbf16, #tpu.memory_space<vmem>>, vector<8x128xbf16>,
    %c5_i32_233 = arith.constant 5 : i32
    %c8_i32_234 = arith.constant 8 : i32
    %519 = arith.muli %c5_i32_233, %c8_i32_234 : i32
    %520 = tpu.assume_multiple %519, 8 : i32
    %521 = arith.index_cast %520 : i32 to index
    %c0_235 = arith.constant 0 : index
    %522 = vector.load %arg9[%521, %c0_235] : memref<64x512xf32, #tpu.memory_space<vmem>>, vector<8x512xf32>
    %c0_236 = arith.constant 0 : index
    %c0_237 = arith.constant 0 : index
    %523 = vector.load %arg11[%c0_236, %c0_237] : memref<8x128xbf16, #tpu.memory_space<vmem>>, vector<8x128xbf16>
    %cst_238 = arith.constant dense<0.000000e+00> : vector<8x512xf32>
    %524 = tpu.matmul %523, %318, %cst_238 {dimension_numbers = #tpu.dot_dimension_numbers<[1], [0], [0], [1], [0, 0, 1, 1], [], []>} : vector<8x128xbf16>, vector<128x512xbf16>, vector<8x512xf32> -> vector<8x512xf32>
    %525 = arith.addf %522, %524 : vector<8x512xf32>
    %526 = vector.extract_strided_slice %525 {offsets = [0, 0], sizes = [8, 128], strides = [1, 1]} : vector<8x512xf32> to vector<8x128xf32>
    %527 = arith.negf %526 : vector<8x128xf32>
    %528 = math.exp %527 : vector<8x128xf32>
    %cst_239 = arith.constant 1.000000e+00 : f32
    %529 = vector.broadcast %cst_239 : f32 to vector<8x128xf32>
    %530 = arith.addf %529, %528 : vector<8x128xf32>
    %531 = arith.divf %529, %530 : vector<8x128xf32>
    %532 = vector.extract_strided_slice %525 {offsets = [0, 128], sizes = [8, 128], strides = [1, 1]} : vector<8x512xf32> to vector<8x128xf32>
    %533 = arith.negf %532 : vector<8x128xf32>
    %534 = math.exp %533 : vector<8x128xf32>
    %cst_240 = arith.constant 1.000000e+00 : f32
    %535 = vector.broadcast %cst_240 : f32 to vector<8x128xf32>
    %536 = arith.addf %535, %534 : vector<8x128xf32>
    %537 = arith.divf %535, %536 : vector<8x128xf32>
    %538 = vector.extract_strided_slice %525 {offsets = [0, 256], sizes = [8, 128], strides = [1, 1]} : vector<8x512xf32> to vector<8x128xf32>
    %539 = math.tanh %538 : vector<8x128xf32>
    %540 = vector.extract_strided_slice %525 {offsets = [0, 384], sizes = [8, 128], strides = [1, 1]} : vector<8x512xf32> to vector<8x128xf32>
    %541 = arith.negf %540 : vector<8x128xf32>
    %542 = math.exp %541 : vector<8x128xf32>
    %cst_241 = arith.constant 1.000000e+00 : f32
    %543 = vector.broadcast %cst_241 : f32 to vector<8x128xf32>
    %544 = arith.addf %543, %542 : vector<8x128xf32>
    %545 = arith.divf %543, %544 : vector<8x128xf32>
    %c0_242 = arith.constant 0 : index
    %c0_243 = arith.constant 0 : index
    %546 = vector.load %arg12[%c0_242, %c0_243] : memref<8x128xf32, #tpu.memory_space<vmem>>, vector<8x128xf32>
    %547 = arith.mulf %537, %546 : vector<8x128xf32>
    %548 = arith.mulf %531, %539 : vector<8x128xf32>
    %549 = arith.addf %547, %548 : vector<8x128xf32>
    %550 = math.tanh %549 : vector<8x128xf32>
    %551 = arith.mulf %545, %550 : vector<8x128xf32>
    %552 = arith.truncf %551 : vector<8x128xf32> to vector<8x128xbf16>
    %c0_244 = arith.constant 0 : index
    %c0_245 = arith.constant 0 : index
    %553 = vector.load %arg12[%c0_244, %c0_245] : memref<8x128xf32, #tpu.memory_space<vmem>>, vector<8x128xf32>
    tpu.vector_store %arg12[%c0_244, %c0_245], %549 {strides = array<i32>} : memref<8x128xf32, #tpu.memory_space<vmem>>, vector<8x128xf32>,
    %c0_246 = arith.constant 0 : index
    %c0_247 = arith.constant 0 : index
    %554 = vector.load %arg11[%c0_246, %c0_247] : memref<8x128xbf16, #tpu.memory_space<vmem>>, vector<8x128xbf16>
    tpu.vector_store %arg11[%c0_246, %c0_247], %552 {strides = array<i32>} : memref<8x128xbf16, #tpu.memory_space<vmem>>, vector<8x128xbf16>,
    %555 = arith.index_cast %520 : i32 to index
    %c0_248 = arith.constant 0 : index
    %556 = vector.load %arg10[%555, %c0_248] : memref<64x128xbf16, #tpu.memory_space<vmem>>, vector<8x128xbf16>
    tpu.vector_store %arg10[%555, %c0_248], %552 {strides = array<i32>} : memref<64x128xbf16, #tpu.memory_space<vmem>>, vector<8x128xbf16>,
    %c6_i32_249 = arith.constant 6 : i32
    %c8_i32_250 = arith.constant 8 : i32
    %557 = arith.muli %c6_i32_249, %c8_i32_250 : i32
    %558 = tpu.assume_multiple %557, 8 : i32
    %559 = arith.index_cast %558 : i32 to index
    %c0_251 = arith.constant 0 : index
    %560 = vector.load %arg9[%559, %c0_251] : memref<64x512xf32, #tpu.memory_space<vmem>>, vector<8x512xf32>
    %c0_252 = arith.constant 0 : index
    %c0_253 = arith.constant 0 : index
    %561 = vector.load %arg11[%c0_252, %c0_253] : memref<8x128xbf16, #tpu.memory_space<vmem>>, vector<8x128xbf16>
    %cst_254 = arith.constant dense<0.000000e+00> : vector<8x512xf32>
    %562 = tpu.matmul %561, %318, %cst_254 {dimension_numbers = #tpu.dot_dimension_numbers<[1], [0], [0], [1], [0, 0, 1, 1], [], []>} : vector<8x128xbf16>, vector<128x512xbf16>, vector<8x512xf32> -> vector<8x512xf32>
    %563 = arith.addf %560, %562 : vector<8x512xf32>
    %564 = vector.extract_strided_slice %563 {offsets = [0, 0], sizes = [8, 128], strides = [1, 1]} : vector<8x512xf32> to vector<8x128xf32>
    %565 = arith.negf %564 : vector<8x128xf32>
    %566 = math.exp %565 : vector<8x128xf32>
    %cst_255 = arith.constant 1.000000e+00 : f32
    %567 = vector.broadcast %cst_255 : f32 to vector<8x128xf32>
    %568 = arith.addf %567, %566 : vector<8x128xf32>
    %569 = arith.divf %567, %568 : vector<8x128xf32>
    %570 = vector.extract_strided_slice %563 {offsets = [0, 128], sizes = [8, 128], strides = [1, 1]} : vector<8x512xf32> to vector<8x128xf32>
    %571 = arith.negf %570 : vector<8x128xf32>
    %572 = math.exp %571 : vector<8x128xf32>
    %cst_256 = arith.constant 1.000000e+00 : f32
    %573 = vector.broadcast %cst_256 : f32 to vector<8x128xf32>
    %574 = arith.addf %573, %572 : vector<8x128xf32>
    %575 = arith.divf %573, %574 : vector<8x128xf32>
    %576 = vector.extract_strided_slice %563 {offsets = [0, 256], sizes = [8, 128], strides = [1, 1]} : vector<8x512xf32> to vector<8x128xf32>
    %577 = math.tanh %576 : vector<8x128xf32>
    %578 = vector.extract_strided_slice %563 {offsets = [0, 384], sizes = [8, 128], strides = [1, 1]} : vector<8x512xf32> to vector<8x128xf32>
    %579 = arith.negf %578 : vector<8x128xf32>
    %580 = math.exp %579 : vector<8x128xf32>
    %cst_257 = arith.constant 1.000000e+00 : f32
    %581 = vector.broadcast %cst_257 : f32 to vector<8x128xf32>
    %582 = arith.addf %581, %580 : vector<8x128xf32>
    %583 = arith.divf %581, %582 : vector<8x128xf32>
    %c0_258 = arith.constant 0 : index
    %c0_259 = arith.constant 0 : index
    %584 = vector.load %arg12[%c0_258, %c0_259] : memref<8x128xf32, #tpu.memory_space<vmem>>, vector<8x128xf32>
    %585 = arith.mulf %575, %584 : vector<8x128xf32>
    %586 = arith.mulf %569, %577 : vector<8x128xf32>
    %587 = arith.addf %585, %586 : vector<8x128xf32>
    %588 = math.tanh %587 : vector<8x128xf32>
    %589 = arith.mulf %583, %588 : vector<8x128xf32>
    %590 = arith.truncf %589 : vector<8x128xf32> to vector<8x128xbf16>
    %c0_260 = arith.constant 0 : index
    %c0_261 = arith.constant 0 : index
    %591 = vector.load %arg12[%c0_260, %c0_261] : memref<8x128xf32, #tpu.memory_space<vmem>>, vector<8x128xf32>
    tpu.vector_store %arg12[%c0_260, %c0_261], %587 {strides = array<i32>} : memref<8x128xf32, #tpu.memory_space<vmem>>, vector<8x128xf32>,
    %c0_262 = arith.constant 0 : index
    %c0_263 = arith.constant 0 : index
    %592 = vector.load %arg11[%c0_262, %c0_263] : memref<8x128xbf16, #tpu.memory_space<vmem>>, vector<8x128xbf16>
    tpu.vector_store %arg11[%c0_262, %c0_263], %590 {strides = array<i32>} : memref<8x128xbf16, #tpu.memory_space<vmem>>, vector<8x128xbf16>,
    %593 = arith.index_cast %558 : i32 to index
    %c0_264 = arith.constant 0 : index
    %594 = vector.load %arg10[%593, %c0_264] : memref<64x128xbf16, #tpu.memory_space<vmem>>, vector<8x128xbf16>
    tpu.vector_store %arg10[%593, %c0_264], %590 {strides = array<i32>} : memref<64x128xbf16, #tpu.memory_space<vmem>>, vector<8x128xbf16>,
    %c7_i32_265 = arith.constant 7 : i32
    %c8_i32_266 = arith.constant 8 : i32
    %595 = arith.muli %c7_i32_265, %c8_i32_266 : i32
    %596 = tpu.assume_multiple %595, 8 : i32
    %597 = arith.index_cast %596 : i32 to index
    %c0_267 = arith.constant 0 : index
    %598 = vector.load %arg9[%597, %c0_267] : memref<64x512xf32, #tpu.memory_space<vmem>>, vector<8x512xf32>
    %c0_268 = arith.constant 0 : index
    %c0_269 = arith.constant 0 : index
    %599 = vector.load %arg11[%c0_268, %c0_269] : memref<8x128xbf16, #tpu.memory_space<vmem>>, vector<8x128xbf16>
    %cst_270 = arith.constant dense<0.000000e+00> : vector<8x512xf32>
    %600 = tpu.matmul %599, %318, %cst_270 {dimension_numbers = #tpu.dot_dimension_numbers<[1], [0], [0], [1], [0, 0, 1, 1], [], []>} : vector<8x128xbf16>, vector<128x512xbf16>, vector<8x512xf32> -> vector<8x512xf32>
    %601 = arith.addf %598, %600 : vector<8x512xf32>
    %602 = vector.extract_strided_slice %601 {offsets = [0, 0], sizes = [8, 128], strides = [1, 1]} : vector<8x512xf32> to vector<8x128xf32>
    %603 = arith.negf %602 : vector<8x128xf32>
    %604 = math.exp %603 : vector<8x128xf32>
    %cst_271 = arith.constant 1.000000e+00 : f32
    %605 = vector.broadcast %cst_271 : f32 to vector<8x128xf32>
    %606 = arith.addf %605, %604 : vector<8x128xf32>
    %607 = arith.divf %605, %606 : vector<8x128xf32>
    %608 = vector.extract_strided_slice %601 {offsets = [0, 128], sizes = [8, 128], strides = [1, 1]} : vector<8x512xf32> to vector<8x128xf32>
    %609 = arith.negf %608 : vector<8x128xf32>
    %610 = math.exp %609 : vector<8x128xf32>
    %cst_272 = arith.constant 1.000000e+00 : f32
    %611 = vector.broadcast %cst_272 : f32 to vector<8x128xf32>
    %612 = arith.addf %611, %610 : vector<8x128xf32>
    %613 = arith.divf %611, %612 : vector<8x128xf32>
    %614 = vector.extract_strided_slice %601 {offsets = [0, 256], sizes = [8, 128], strides = [1, 1]} : vector<8x512xf32> to vector<8x128xf32>
    %615 = math.tanh %614 : vector<8x128xf32>
    %616 = vector.extract_strided_slice %601 {offsets = [0, 384], sizes = [8, 128], strides = [1, 1]} : vector<8x512xf32> to vector<8x128xf32>
    %617 = arith.negf %616 : vector<8x128xf32>
    %618 = math.exp %617 : vector<8x128xf32>
    %cst_273 = arith.constant 1.000000e+00 : f32
    %619 = vector.broadcast %cst_273 : f32 to vector<8x128xf32>
    %620 = arith.addf %619, %618 : vector<8x128xf32>
    %621 = arith.divf %619, %620 : vector<8x128xf32>
    %c0_274 = arith.constant 0 : index
    %c0_275 = arith.constant 0 : index
    %622 = vector.load %arg12[%c0_274, %c0_275] : memref<8x128xf32, #tpu.memory_space<vmem>>, vector<8x128xf32>
    %623 = arith.mulf %613, %622 : vector<8x128xf32>
    %624 = arith.mulf %607, %615 : vector<8x128xf32>
    %625 = arith.addf %623, %624 : vector<8x128xf32>
    %626 = math.tanh %625 : vector<8x128xf32>
    %627 = arith.mulf %621, %626 : vector<8x128xf32>
    %628 = arith.truncf %627 : vector<8x128xf32> to vector<8x128xbf16>
    %c0_276 = arith.constant 0 : index
    %c0_277 = arith.constant 0 : index
    %629 = vector.load %arg12[%c0_276, %c0_277] : memref<8x128xf32, #tpu.memory_space<vmem>>, vector<8x128xf32>
    tpu.vector_store %arg12[%c0_276, %c0_277], %625 {strides = array<i32>} : memref<8x128xf32, #tpu.memory_space<vmem>>, vector<8x128xf32>,
    %c0_278 = arith.constant 0 : index
    %c0_279 = arith.constant 0 : index
    %630 = vector.load %arg11[%c0_278, %c0_279] : memref<8x128xbf16, #tpu.memory_space<vmem>>, vector<8x128xbf16>
    tpu.vector_store %arg11[%c0_278, %c0_279], %628 {strides = array<i32>} : memref<8x128xbf16, #tpu.memory_space<vmem>>, vector<8x128xbf16>,
    %631 = arith.index_cast %596 : i32 to index
    %c0_280 = arith.constant 0 : index
    %632 = vector.load %arg10[%631, %c0_280] : memref<64x128xbf16, #tpu.memory_space<vmem>>, vector<8x128xbf16>
    tpu.vector_store %arg10[%631, %c0_280], %628 {strides = array<i32>} : memref<64x128xbf16, #tpu.memory_space<vmem>>, vector<8x128xbf16>,
    %c8_i32_281 = arith.constant 8 : i32
    %c0_282 = arith.constant 0 : index
    %c0_283 = arith.constant 0 : index
    %633 = vector.load %arg10[%c0_282, %c0_283] : memref<64x128xbf16, #tpu.memory_space<vmem>>, vector<64x128xbf16>
    %c0_284 = arith.constant 0 : index
    %c0_285 = arith.constant 0 : index
    %c0_286 = arith.constant 0 : index
    %634 = vector.load %arg8[%c0_284, %c0_285, %c0_286] : memref<1x64x128xbf16, #tpu.memory_space<vmem>>, vector<1x64x128xbf16>
    %635 = vector.shape_cast %634 : vector<1x64x128xbf16> to vector<64x128xbf16>
    %636 = vector.shape_cast %633 : vector<64x128xbf16> to vector<1x64x128xbf16>
    tpu.vector_store %arg8[%c0_284, %c0_285, %c0_286], %636 {strides = array<i32>} : memref<1x64x128xbf16, #tpu.memory_space<vmem>>, vector<1x64x128xbf16>,
    return
  }
  func.func @transform_0(%arg0: i32) -> (i32, i32, i32) {
    %c0_i32 = arith.constant 0 : i32
    %c0_i32_0 = arith.constant 0 : i32
    %c0_i32_1 = arith.constant 0 : i32
    return %arg0, %c0_i32, %c0_i32_0 : i32, i32, i32
  }
  func.func @transform_1(%arg0: i32) -> (i32, i32) {
    %c0_i32 = arith.constant 0 : i32
    %c0_i32_0 = arith.constant 0 : i32
    %c0_i32_1 = arith.constant 0 : i32
    return %c0_i32, %c0_i32_0 : i32, i32
  }
  func.func @transform_2(%arg0: i32) -> (i32, i32) {
    %c0_i32 = arith.constant 0 : i32
    %c0_i32_0 = arith.constant 0 : i32
    %c0_i32_1 = arith.constant 0 : i32
    return %c0_i32, %c0_i32_0 : i32, i32
  }
  func.func @transform_3(%arg0: i32) -> (i32, i32) {
    %c0_i32 = arith.constant 0 : i32
    %c0_i32_0 = arith.constant 0 : i32
    %c0_i32_1 = arith.constant 0 : i32
    return %c0_i32, %c0_i32_0 : i32, i32
  }
  func.func @transform_4(%arg0: i32) -> (i32, i32) {
    %c0_i32 = arith.constant 0 : i32
    %c0_i32_0 = arith.constant 0 : i32
    %c0_i32_1 = arith.constant 0 : i32
    return %c0_i32, %c0_i32_0 : i32, i32
  }
  func.func @transform_5(%arg0: i32) -> (i32, i32) {
    %c0_i32 = arith.constant 0 : i32
    %c0_i32_0 = arith.constant 0 : i32
    %c0_i32_1 = arith.constant 0 : i32
    return %c0_i32, %c0_i32_0 : i32, i32
  }
  func.func @transform_6(%arg0: i32) -> (i32, i32) {
    %c0_i32 = arith.constant 0 : i32
    %c0_i32_0 = arith.constant 0 : i32
    %c0_i32_1 = arith.constant 0 : i32
    return %c0_i32, %c0_i32_0 : i32, i32
  }
  func.func @transform_7(%arg0: i32) -> (i32, i32, i32) {
    %c0_i32 = arith.constant 0 : i32
    %c0_i32_0 = arith.constant 0 : i32
    %c0_i32_1 = arith.constant 0 : i32
    return %arg0, %c0_i32, %c0_i32_0 : i32, i32, i32
  }
}

module attributes {stable_mosaic.version = 11 : i64} {
  func.func @_decoder_lstm_kernel(%arg0: i32, %arg1: memref<1x64x128xbf16, #tpu.memory_space<vmem>>, %arg2: memref<128x512xbf16, #tpu.memory_space<vmem>>, %arg3: memref<128x512xbf16, #tpu.memory_space<vmem>>, %arg4: memref<128x512xbf16, #tpu.memory_space<vmem>>, %arg5: memref<128x512xbf16, #tpu.memory_space<vmem>>, %arg6: memref<1x512xf32, #tpu.memory_space<vmem>>, %arg7: memref<1x512xf32, #tpu.memory_space<vmem>>, %arg8: memref<1x64x128xbf16, #tpu.memory_space<vmem>>, %arg9: memref<64x512xf32, #tpu.memory_space<vmem>>, %arg10: memref<64x128xbf16, #tpu.memory_space<vmem>>, %arg11: memref<8x128xbf16, #tpu.memory_space<vmem>>, %arg12: memref<8x128xf32, #tpu.memory_space<vmem>>) attributes {dimension_semantics = [#tpu.dimension_semantics<parallel>], iteration_bounds = array<i64: 1>, scalar_prefetch = 0 : i64, scratch_operands = 4 : i64, tpu.core_type = #tpu.core_type<tc>, window_params = [{transform_indices = @transform_0, window_bounds = array<i64: 1, 64, 128>}, {pipeline_mode = #tpu.pipeline_mode<synchronous>, transform_indices = @transform_1, window_bounds = array<i64: 128, 512>}, {pipeline_mode = #tpu.pipeline_mode<synchronous>, transform_indices = @transform_2, window_bounds = array<i64: 128, 512>}, {pipeline_mode = #tpu.pipeline_mode<synchronous>, transform_indices = @transform_3, window_bounds = array<i64: 128, 512>}, {pipeline_mode = #tpu.pipeline_mode<synchronous>, transform_indices = @transform_4, window_bounds = array<i64: 128, 512>}, {pipeline_mode = #tpu.pipeline_mode<synchronous>, transform_indices = @transform_5, window_bounds = array<i64: 1, 512>}, {pipeline_mode = #tpu.pipeline_mode<synchronous>, transform_indices = @transform_6, window_bounds = array<i64: 1, 512>}, {transform_indices = @transform_7, window_bounds = array<i64: 1, 64, 128>}]} {
    %c0 = arith.constant 0 : index
    %c0_0 = arith.constant 0 : index
    %c0_1 = arith.constant 0 : index
    %0 = vector.load %arg1[%c0, %c0_0, %c0_1] : memref<1x64x128xbf16, #tpu.memory_space<vmem>>, vector<1x64x128xbf16>
    %1 = vector.shape_cast %0 : vector<1x64x128xbf16> to vector<64x128xbf16>
    %c0_2 = arith.constant 0 : index
    %c0_3 = arith.constant 0 : index
    %2 = vector.load %arg2[%c0_2, %c0_3] : memref<128x512xbf16, #tpu.memory_space<vmem>>, vector<128x512xbf16>
    %c0_4 = arith.constant 0 : index
    %c0_5 = arith.constant 0 : index
    %3 = vector.load %arg4[%c0_4, %c0_5] : memref<128x512xbf16, #tpu.memory_space<vmem>>, vector<128x512xbf16>
    %c0_6 = arith.constant 0 : index
    %c0_7 = arith.constant 0 : index
    %4 = vector.load %arg6[%c0_6, %c0_7] : memref<1x512xf32, #tpu.memory_space<vmem>>, vector<1x512xf32>
    %cst = arith.constant dense<0.000000e+00> : vector<64x512xf32>
    %5 = tpu.matmul %1, %2, %cst {dimension_numbers = #tpu.dot_dimension_numbers<[1], [0], [0], [1], [0, 0, 1, 1], [], []>} : vector<64x128xbf16>, vector<128x512xbf16>, vector<64x512xf32> -> vector<64x512xf32>
    %6 = vector.broadcast %4 : vector<1x512xf32> to vector<64x512xf32>
    %7 = arith.addf %5, %6 : vector<64x512xf32>
    %c0_8 = arith.constant 0 : index
    %c0_9 = arith.constant 0 : index
    %8 = vector.load %arg9[%c0_8, %c0_9] : memref<64x512xf32, #tpu.memory_space<vmem>>, vector<64x512xf32>
    tpu.vector_store %arg9[%c0_8, %c0_9], %7 {strides = array<i32>} : memref<64x512xf32, #tpu.memory_space<vmem>>, vector<64x512xf32>,
    %cst_10 = arith.constant 0.000000e+00 : bf16
    %9 = vector.broadcast %cst_10 : bf16 to vector<8x128xbf16>
    %c0_11 = arith.constant 0 : index
    %c0_12 = arith.constant 0 : index
    %10 = vector.load %arg11[%c0_11, %c0_12] : memref<8x128xbf16, #tpu.memory_space<vmem>>, vector<8x128xbf16>
    tpu.vector_store %arg11[%c0_11, %c0_12], %9 {strides = array<i32>} : memref<8x128xbf16, #tpu.memory_space<vmem>>, vector<8x128xbf16>,
    %cst_13 = arith.constant 0.000000e+00 : f32
    %11 = vector.broadcast %cst_13 : f32 to vector<8x128xf32>
    %c0_14 = arith.constant 0 : index
    %c0_15 = arith.constant 0 : index
    %12 = vector.load %arg12[%c0_14, %c0_15] : memref<8x128xf32, #tpu.memory_space<vmem>>, vector<8x128xf32>
    tpu.vector_store %arg12[%c0_14, %c0_15], %11 {strides = array<i32>} : memref<8x128xf32, #tpu.memory_space<vmem>>, vector<8x128xf32>,
    %c0_i32 = arith.constant 0 : i32
    %c8_i32 = arith.constant 8 : i32
    %13 = arith.muli %c0_i32, %c8_i32 : i32
    %14 = tpu.assume_multiple %13, 8 : i32
    %15 = arith.index_cast %14 : i32 to index
    %c0_16 = arith.constant 0 : index
    %16 = vector.load %arg9[%15, %c0_16] : memref<64x512xf32, #tpu.memory_space<vmem>>, vector<8x512xf32>
    %c0_17 = arith.constant 0 : index
    %c0_18 = arith.constant 0 : index
    %17 = vector.load %arg11[%c0_17, %c0_18] : memref<8x128xbf16, #tpu.memory_space<vmem>>, vector<8x128xbf16>
    %cst_19 = arith.constant dense<0.000000e+00> : vector<8x512xf32>
    %18 = tpu.matmul %17, %3, %cst_19 {dimension_numbers = #tpu.dot_dimension_numbers<[1], [0], [0], [1], [0, 0, 1, 1], [], []>} : vector<8x128xbf16>, vector<128x512xbf16>, vector<8x512xf32> -> vector<8x512xf32>
    %19 = arith.addf %16, %18 : vector<8x512xf32>
    %20 = vector.extract_strided_slice %19 {offsets = [0, 0], sizes = [8, 128], strides = [1, 1]} : vector<8x512xf32> to vector<8x128xf32>
    %21 = arith.negf %20 : vector<8x128xf32>
    %22 = math.exp %21 : vector<8x128xf32>
    %cst_20 = arith.constant 1.000000e+00 : f32
    %23 = vector.broadcast %cst_20 : f32 to vector<8x128xf32>
    %24 = arith.addf %23, %22 : vector<8x128xf32>
    %25 = arith.divf %23, %24 : vector<8x128xf32>
    %26 = vector.extract_strided_slice %19 {offsets = [0, 128], sizes = [8, 128], strides = [1, 1]} : vector<8x512xf32> to vector<8x128xf32>
    %27 = arith.negf %26 : vector<8x128xf32>
    %28 = math.exp %27 : vector<8x128xf32>
    %cst_21 = arith.constant 1.000000e+00 : f32
    %29 = vector.broadcast %cst_21 : f32 to vector<8x128xf32>
    %30 = arith.addf %29, %28 : vector<8x128xf32>
    %31 = arith.divf %29, %30 : vector<8x128xf32>
    %32 = vector.extract_strided_slice %19 {offsets = [0, 256], sizes = [8, 128], strides = [1, 1]} : vector<8x512xf32> to vector<8x128xf32>
    %33 = math.tanh %32 : vector<8x128xf32>
    %34 = vector.extract_strided_slice %19 {offsets = [0, 384], sizes = [8, 128], strides = [1, 1]} : vector<8x512xf32> to vector<8x128xf32>
    %35 = arith.negf %34 : vector<8x128xf32>
    %36 = math.exp %35 : vector<8x128xf32>
    %cst_22 = arith.constant 1.000000e+00 : f32
    %37 = vector.broadcast %cst_22 : f32 to vector<8x128xf32>
    %38 = arith.addf %37, %36 : vector<8x128xf32>
    %39 = arith.divf %37, %38 : vector<8x128xf32>
    %c0_23 = arith.constant 0 : index
    %c0_24 = arith.constant 0 : index
    %40 = vector.load %arg12[%c0_23, %c0_24] : memref<8x128xf32, #tpu.memory_space<vmem>>, vector<8x128xf32>
    %41 = arith.mulf %31, %40 : vector<8x128xf32>
    %42 = arith.mulf %25, %33 : vector<8x128xf32>
    %43 = arith.addf %41, %42 : vector<8x128xf32>
    %44 = math.tanh %43 : vector<8x128xf32>
    %45 = arith.mulf %39, %44 : vector<8x128xf32>
    %46 = arith.truncf %45 : vector<8x128xf32> to vector<8x128xbf16>
    %c0_25 = arith.constant 0 : index
    %c0_26 = arith.constant 0 : index
    %47 = vector.load %arg12[%c0_25, %c0_26] : memref<8x128xf32, #tpu.memory_space<vmem>>, vector<8x128xf32>
    tpu.vector_store %arg12[%c0_25, %c0_26], %43 {strides = array<i32>} : memref<8x128xf32, #tpu.memory_space<vmem>>, vector<8x128xf32>,
    %c0_27 = arith.constant 0 : index
    %c0_28 = arith.constant 0 : index
    %48 = vector.load %arg11[%c0_27, %c0_28] : memref<8x128xbf16, #tpu.memory_space<vmem>>, vector<8x128xbf16>
    tpu.vector_store %arg11[%c0_27, %c0_28], %46 {strides = array<i32>} : memref<8x128xbf16, #tpu.memory_space<vmem>>, vector<8x128xbf16>,
    %49 = arith.index_cast %14 : i32 to index
    %c0_29 = arith.constant 0 : index
    %50 = vector.load %arg10[%49, %c0_29] : memref<64x128xbf16, #tpu.memory_space<vmem>>, vector<8x128xbf16>
    tpu.vector_store %arg10[%49, %c0_29], %46 {strides = array<i32>} : memref<64x128xbf16, #tpu.memory_space<vmem>>, vector<8x128xbf16>,
    %c1_i32 = arith.constant 1 : i32
    %c8_i32_30 = arith.constant 8 : i32
    %51 = arith.muli %c1_i32, %c8_i32_30 : i32
    %52 = tpu.assume_multiple %51, 8 : i32
    %53 = arith.index_cast %52 : i32 to index
    %c0_31 = arith.constant 0 : index
    %54 = vector.load %arg9[%53, %c0_31] : memref<64x512xf32, #tpu.memory_space<vmem>>, vector<8x512xf32>
    %c0_32 = arith.constant 0 : index
    %c0_33 = arith.constant 0 : index
    %55 = vector.load %arg11[%c0_32, %c0_33] : memref<8x128xbf16, #tpu.memory_space<vmem>>, vector<8x128xbf16>
    %cst_34 = arith.constant dense<0.000000e+00> : vector<8x512xf32>
    %56 = tpu.matmul %55, %3, %cst_34 {dimension_numbers = #tpu.dot_dimension_numbers<[1], [0], [0], [1], [0, 0, 1, 1], [], []>} : vector<8x128xbf16>, vector<128x512xbf16>, vector<8x512xf32> -> vector<8x512xf32>
    %57 = arith.addf %54, %56 : vector<8x512xf32>
    %58 = vector.extract_strided_slice %57 {offsets = [0, 0], sizes = [8, 128], strides = [1, 1]} : vector<8x512xf32> to vector<8x128xf32>
    %59 = arith.negf %58 : vector<8x128xf32>
    %60 = math.exp %59 : vector<8x128xf32>
    %cst_35 = arith.constant 1.000000e+00 : f32
    %61 = vector.broadcast %cst_35 : f32 to vector<8x128xf32>
    %62 = arith.addf %61, %60 : vector<8x128xf32>
    %63 = arith.divf %61, %62 : vector<8x128xf32>
    %64 = vector.extract_strided_slice %57 {offsets = [0, 128], sizes = [8, 128], strides = [1, 1]} : vector<8x512xf32> to vector<8x128xf32>
    %65 = arith.negf %64 : vector<8x128xf32>
    %66 = math.exp %65 : vector<8x128xf32>
    %cst_36 = arith.constant 1.000000e+00 : f32
    %67 = vector.broadcast %cst_36 : f32 to vector<8x128xf32>
    %68 = arith.addf %67, %66 : vector<8x128xf32>
    %69 = arith.divf %67, %68 : vector<8x128xf32>
    %70 = vector.extract_strided_slice %57 {offsets = [0, 256], sizes = [8, 128], strides = [1, 1]} : vector<8x512xf32> to vector<8x128xf32>
    %71 = math.tanh %70 : vector<8x128xf32>
    %72 = vector.extract_strided_slice %57 {offsets = [0, 384], sizes = [8, 128], strides = [1, 1]} : vector<8x512xf32> to vector<8x128xf32>
    %73 = arith.negf %72 : vector<8x128xf32>
    %74 = math.exp %73 : vector<8x128xf32>
    %cst_37 = arith.constant 1.000000e+00 : f32
    %75 = vector.broadcast %cst_37 : f32 to vector<8x128xf32>
    %76 = arith.addf %75, %74 : vector<8x128xf32>
    %77 = arith.divf %75, %76 : vector<8x128xf32>
    %c0_38 = arith.constant 0 : index
    %c0_39 = arith.constant 0 : index
    %78 = vector.load %arg12[%c0_38, %c0_39] : memref<8x128xf32, #tpu.memory_space<vmem>>, vector<8x128xf32>
    %79 = arith.mulf %69, %78 : vector<8x128xf32>
    %80 = arith.mulf %63, %71 : vector<8x128xf32>
    %81 = arith.addf %79, %80 : vector<8x128xf32>
    %82 = math.tanh %81 : vector<8x128xf32>
    %83 = arith.mulf %77, %82 : vector<8x128xf32>
    %84 = arith.truncf %83 : vector<8x128xf32> to vector<8x128xbf16>
    %c0_40 = arith.constant 0 : index
    %c0_41 = arith.constant 0 : index
    %85 = vector.load %arg12[%c0_40, %c0_41] : memref<8x128xf32, #tpu.memory_space<vmem>>, vector<8x128xf32>
    tpu.vector_store %arg12[%c0_40, %c0_41], %81 {strides = array<i32>} : memref<8x128xf32, #tpu.memory_space<vmem>>, vector<8x128xf32>,
    %c0_42 = arith.constant 0 : index
    %c0_43 = arith.constant 0 : index
    %86 = vector.load %arg11[%c0_42, %c0_43] : memref<8x128xbf16, #tpu.memory_space<vmem>>, vector<8x128xbf16>
    tpu.vector_store %arg11[%c0_42, %c0_43], %84 {strides = array<i32>} : memref<8x128xbf16, #tpu.memory_space<vmem>>, vector<8x128xbf16>,
    %87 = arith.index_cast %52 : i32 to index
    %c0_44 = arith.constant 0 : index
    %88 = vector.load %arg10[%87, %c0_44] : memref<64x128xbf16, #tpu.memory_space<vmem>>, vector<8x128xbf16>
    tpu.vector_store %arg10[%87, %c0_44], %84 {strides = array<i32>} : memref<64x128xbf16, #tpu.memory_space<vmem>>, vector<8x128xbf16>,
    %c2_i32 = arith.constant 2 : i32
    %c8_i32_45 = arith.constant 8 : i32
    %89 = arith.muli %c2_i32, %c8_i32_45 : i32
    %90 = tpu.assume_multiple %89, 8 : i32
    %91 = arith.index_cast %90 : i32 to index
    %c0_46 = arith.constant 0 : index
    %92 = vector.load %arg9[%91, %c0_46] : memref<64x512xf32, #tpu.memory_space<vmem>>, vector<8x512xf32>
    %c0_47 = arith.constant 0 : index
    %c0_48 = arith.constant 0 : index
    %93 = vector.load %arg11[%c0_47, %c0_48] : memref<8x128xbf16, #tpu.memory_space<vmem>>, vector<8x128xbf16>
    %cst_49 = arith.constant dense<0.000000e+00> : vector<8x512xf32>
    %94 = tpu.matmul %93, %3, %cst_49 {dimension_numbers = #tpu.dot_dimension_numbers<[1], [0], [0], [1], [0, 0, 1, 1], [], []>} : vector<8x128xbf16>, vector<128x512xbf16>, vector<8x512xf32> -> vector<8x512xf32>
    %95 = arith.addf %92, %94 : vector<8x512xf32>
    %96 = vector.extract_strided_slice %95 {offsets = [0, 0], sizes = [8, 128], strides = [1, 1]} : vector<8x512xf32> to vector<8x128xf32>
    %97 = arith.negf %96 : vector<8x128xf32>
    %98 = math.exp %97 : vector<8x128xf32>
    %cst_50 = arith.constant 1.000000e+00 : f32
    %99 = vector.broadcast %cst_50 : f32 to vector<8x128xf32>
    %100 = arith.addf %99, %98 : vector<8x128xf32>
    %101 = arith.divf %99, %100 : vector<8x128xf32>
    %102 = vector.extract_strided_slice %95 {offsets = [0, 128], sizes = [8, 128], strides = [1, 1]} : vector<8x512xf32> to vector<8x128xf32>
    %103 = arith.negf %102 : vector<8x128xf32>
    %104 = math.exp %103 : vector<8x128xf32>
    %cst_51 = arith.constant 1.000000e+00 : f32
    %105 = vector.broadcast %cst_51 : f32 to vector<8x128xf32>
    %106 = arith.addf %105, %104 : vector<8x128xf32>
    %107 = arith.divf %105, %106 : vector<8x128xf32>
    %108 = vector.extract_strided_slice %95 {offsets = [0, 256], sizes = [8, 128], strides = [1, 1]} : vector<8x512xf32> to vector<8x128xf32>
    %109 = math.tanh %108 : vector<8x128xf32>
    %110 = vector.extract_strided_slice %95 {offsets = [0, 384], sizes = [8, 128], strides = [1, 1]} : vector<8x512xf32> to vector<8x128xf32>
    %111 = arith.negf %110 : vector<8x128xf32>
    %112 = math.exp %111 : vector<8x128xf32>
    %cst_52 = arith.constant 1.000000e+00 : f32
    %113 = vector.broadcast %cst_52 : f32 to vector<8x128xf32>
    %114 = arith.addf %113, %112 : vector<8x128xf32>
    %115 = arith.divf %113, %114 : vector<8x128xf32>
    %c0_53 = arith.constant 0 : index
    %c0_54 = arith.constant 0 : index
    %116 = vector.load %arg12[%c0_53, %c0_54] : memref<8x128xf32, #tpu.memory_space<vmem>>, vector<8x128xf32>
    %117 = arith.mulf %107, %116 : vector<8x128xf32>
    %118 = arith.mulf %101, %109 : vector<8x128xf32>
    %119 = arith.addf %117, %118 : vector<8x128xf32>
    %120 = math.tanh %119 : vector<8x128xf32>
    %121 = arith.mulf %115, %120 : vector<8x128xf32>
    %122 = arith.truncf %121 : vector<8x128xf32> to vector<8x128xbf16>
    %c0_55 = arith.constant 0 : index
    %c0_56 = arith.constant 0 : index
    %123 = vector.load %arg12[%c0_55, %c0_56] : memref<8x128xf32, #tpu.memory_space<vmem>>, vector<8x128xf32>
    tpu.vector_store %arg12[%c0_55, %c0_56], %119 {strides = array<i32>} : memref<8x128xf32, #tpu.memory_space<vmem>>, vector<8x128xf32>,
    %c0_57 = arith.constant 0 : index
    %c0_58 = arith.constant 0 : index
    %124 = vector.load %arg11[%c0_57, %c0_58] : memref<8x128xbf16, #tpu.memory_space<vmem>>, vector<8x128xbf16>
    tpu.vector_store %arg11[%c0_57, %c0_58], %122 {strides = array<i32>} : memref<8x128xbf16, #tpu.memory_space<vmem>>, vector<8x128xbf16>,
    %125 = arith.index_cast %90 : i32 to index
    %c0_59 = arith.constant 0 : index
    %126 = vector.load %arg10[%125, %c0_59] : memref<64x128xbf16, #tpu.memory_space<vmem>>, vector<8x128xbf16>
    tpu.vector_store %arg10[%125, %c0_59], %122 {strides = array<i32>} : memref<64x128xbf16, #tpu.memory_space<vmem>>, vector<8x128xbf16>,
    %c3_i32 = arith.constant 3 : i32
    %c8_i32_60 = arith.constant 8 : i32
    %127 = arith.muli %c3_i32, %c8_i32_60 : i32
    %128 = tpu.assume_multiple %127, 8 : i32
    %129 = arith.index_cast %128 : i32 to index
    %c0_61 = arith.constant 0 : index
    %130 = vector.load %arg9[%129, %c0_61] : memref<64x512xf32, #tpu.memory_space<vmem>>, vector<8x512xf32>
    %c0_62 = arith.constant 0 : index
    %c0_63 = arith.constant 0 : index
    %131 = vector.load %arg11[%c0_62, %c0_63] : memref<8x128xbf16, #tpu.memory_space<vmem>>, vector<8x128xbf16>
    %cst_64 = arith.constant dense<0.000000e+00> : vector<8x512xf32>
    %132 = tpu.matmul %131, %3, %cst_64 {dimension_numbers = #tpu.dot_dimension_numbers<[1], [0], [0], [1], [0, 0, 1, 1], [], []>} : vector<8x128xbf16>, vector<128x512xbf16>, vector<8x512xf32> -> vector<8x512xf32>
    %133 = arith.addf %130, %132 : vector<8x512xf32>
    %134 = vector.extract_strided_slice %133 {offsets = [0, 0], sizes = [8, 128], strides = [1, 1]} : vector<8x512xf32> to vector<8x128xf32>
    %135 = arith.negf %134 : vector<8x128xf32>
    %136 = math.exp %135 : vector<8x128xf32>
    %cst_65 = arith.constant 1.000000e+00 : f32
    %137 = vector.broadcast %cst_65 : f32 to vector<8x128xf32>
    %138 = arith.addf %137, %136 : vector<8x128xf32>
    %139 = arith.divf %137, %138 : vector<8x128xf32>
    %140 = vector.extract_strided_slice %133 {offsets = [0, 128], sizes = [8, 128], strides = [1, 1]} : vector<8x512xf32> to vector<8x128xf32>
    %141 = arith.negf %140 : vector<8x128xf32>
    %142 = math.exp %141 : vector<8x128xf32>
    %cst_66 = arith.constant 1.000000e+00 : f32
    %143 = vector.broadcast %cst_66 : f32 to vector<8x128xf32>
    %144 = arith.addf %143, %142 : vector<8x128xf32>
    %145 = arith.divf %143, %144 : vector<8x128xf32>
    %146 = vector.extract_strided_slice %133 {offsets = [0, 256], sizes = [8, 128], strides = [1, 1]} : vector<8x512xf32> to vector<8x128xf32>
    %147 = math.tanh %146 : vector<8x128xf32>
    %148 = vector.extract_strided_slice %133 {offsets = [0, 384], sizes = [8, 128], strides = [1, 1]} : vector<8x512xf32> to vector<8x128xf32>
    %149 = arith.negf %148 : vector<8x128xf32>
    %150 = math.exp %149 : vector<8x128xf32>
    %cst_67 = arith.constant 1.000000e+00 : f32
    %151 = vector.broadcast %cst_67 : f32 to vector<8x128xf32>
    %152 = arith.addf %151, %150 : vector<8x128xf32>
    %153 = arith.divf %151, %152 : vector<8x128xf32>
    %c0_68 = arith.constant 0 : index
    %c0_69 = arith.constant 0 : index
    %154 = vector.load %arg12[%c0_68, %c0_69] : memref<8x128xf32, #tpu.memory_space<vmem>>, vector<8x128xf32>
    %155 = arith.mulf %145, %154 : vector<8x128xf32>
    %156 = arith.mulf %139, %147 : vector<8x128xf32>
    %157 = arith.addf %155, %156 : vector<8x128xf32>
    %158 = math.tanh %157 : vector<8x128xf32>
    %159 = arith.mulf %153, %158 : vector<8x128xf32>
    %160 = arith.truncf %159 : vector<8x128xf32> to vector<8x128xbf16>
    %c0_70 = arith.constant 0 : index
    %c0_71 = arith.constant 0 : index
    %161 = vector.load %arg12[%c0_70, %c0_71] : memref<8x128xf32, #tpu.memory_space<vmem>>, vector<8x128xf32>
    tpu.vector_store %arg12[%c0_70, %c0_71], %157 {strides = array<i32>} : memref<8x128xf32, #tpu.memory_space<vmem>>, vector<8x128xf32>,
    %c0_72 = arith.constant 0 : index
    %c0_73 = arith.constant 0 : index
    %162 = vector.load %arg11[%c0_72, %c0_73] : memref<8x128xbf16, #tpu.memory_space<vmem>>, vector<8x128xbf16>
    tpu.vector_store %arg11[%c0_72, %c0_73], %160 {strides = array<i32>} : memref<8x128xbf16, #tpu.memory_space<vmem>>, vector<8x128xbf16>,
    %163 = arith.index_cast %128 : i32 to index
    %c0_74 = arith.constant 0 : index
    %164 = vector.load %arg10[%163, %c0_74] : memref<64x128xbf16, #tpu.memory_space<vmem>>, vector<8x128xbf16>
    tpu.vector_store %arg10[%163, %c0_74], %160 {strides = array<i32>} : memref<64x128xbf16, #tpu.memory_space<vmem>>, vector<8x128xbf16>,
    %c4_i32 = arith.constant 4 : i32
    %c8_i32_75 = arith.constant 8 : i32
    %165 = arith.muli %c4_i32, %c8_i32_75 : i32
    %166 = tpu.assume_multiple %165, 8 : i32
    %167 = arith.index_cast %166 : i32 to index
    %c0_76 = arith.constant 0 : index
    %168 = vector.load %arg9[%167, %c0_76] : memref<64x512xf32, #tpu.memory_space<vmem>>, vector<8x512xf32>
    %c0_77 = arith.constant 0 : index
    %c0_78 = arith.constant 0 : index
    %169 = vector.load %arg11[%c0_77, %c0_78] : memref<8x128xbf16, #tpu.memory_space<vmem>>, vector<8x128xbf16>
    %cst_79 = arith.constant dense<0.000000e+00> : vector<8x512xf32>
    %170 = tpu.matmul %169, %3, %cst_79 {dimension_numbers = #tpu.dot_dimension_numbers<[1], [0], [0], [1], [0, 0, 1, 1], [], []>} : vector<8x128xbf16>, vector<128x512xbf16>, vector<8x512xf32> -> vector<8x512xf32>
    %171 = arith.addf %168, %170 : vector<8x512xf32>
    %172 = vector.extract_strided_slice %171 {offsets = [0, 0], sizes = [8, 128], strides = [1, 1]} : vector<8x512xf32> to vector<8x128xf32>
    %173 = arith.negf %172 : vector<8x128xf32>
    %174 = math.exp %173 : vector<8x128xf32>
    %cst_80 = arith.constant 1.000000e+00 : f32
    %175 = vector.broadcast %cst_80 : f32 to vector<8x128xf32>
    %176 = arith.addf %175, %174 : vector<8x128xf32>
    %177 = arith.divf %175, %176 : vector<8x128xf32>
    %178 = vector.extract_strided_slice %171 {offsets = [0, 128], sizes = [8, 128], strides = [1, 1]} : vector<8x512xf32> to vector<8x128xf32>
    %179 = arith.negf %178 : vector<8x128xf32>
    %180 = math.exp %179 : vector<8x128xf32>
    %cst_81 = arith.constant 1.000000e+00 : f32
    %181 = vector.broadcast %cst_81 : f32 to vector<8x128xf32>
    %182 = arith.addf %181, %180 : vector<8x128xf32>
    %183 = arith.divf %181, %182 : vector<8x128xf32>
    %184 = vector.extract_strided_slice %171 {offsets = [0, 256], sizes = [8, 128], strides = [1, 1]} : vector<8x512xf32> to vector<8x128xf32>
    %185 = math.tanh %184 : vector<8x128xf32>
    %186 = vector.extract_strided_slice %171 {offsets = [0, 384], sizes = [8, 128], strides = [1, 1]} : vector<8x512xf32> to vector<8x128xf32>
    %187 = arith.negf %186 : vector<8x128xf32>
    %188 = math.exp %187 : vector<8x128xf32>
    %cst_82 = arith.constant 1.000000e+00 : f32
    %189 = vector.broadcast %cst_82 : f32 to vector<8x128xf32>
    %190 = arith.addf %189, %188 : vector<8x128xf32>
    %191 = arith.divf %189, %190 : vector<8x128xf32>
    %c0_83 = arith.constant 0 : index
    %c0_84 = arith.constant 0 : index
    %192 = vector.load %arg12[%c0_83, %c0_84] : memref<8x128xf32, #tpu.memory_space<vmem>>, vector<8x128xf32>
    %193 = arith.mulf %183, %192 : vector<8x128xf32>
    %194 = arith.mulf %177, %185 : vector<8x128xf32>
    %195 = arith.addf %193, %194 : vector<8x128xf32>
    %196 = math.tanh %195 : vector<8x128xf32>
    %197 = arith.mulf %191, %196 : vector<8x128xf32>
    %198 = arith.truncf %197 : vector<8x128xf32> to vector<8x128xbf16>
    %c0_85 = arith.constant 0 : index
    %c0_86 = arith.constant 0 : index
    %199 = vector.load %arg12[%c0_85, %c0_86] : memref<8x128xf32, #tpu.memory_space<vmem>>, vector<8x128xf32>
    tpu.vector_store %arg12[%c0_85, %c0_86], %195 {strides = array<i32>} : memref<8x128xf32, #tpu.memory_space<vmem>>, vector<8x128xf32>,
    %c0_87 = arith.constant 0 : index
    %c0_88 = arith.constant 0 : index
    %200 = vector.load %arg11[%c0_87, %c0_88] : memref<8x128xbf16, #tpu.memory_space<vmem>>, vector<8x128xbf16>
    tpu.vector_store %arg11[%c0_87, %c0_88], %198 {strides = array<i32>} : memref<8x128xbf16, #tpu.memory_space<vmem>>, vector<8x128xbf16>,
    %201 = arith.index_cast %166 : i32 to index
    %c0_89 = arith.constant 0 : index
    %202 = vector.load %arg10[%201, %c0_89] : memref<64x128xbf16, #tpu.memory_space<vmem>>, vector<8x128xbf16>
    tpu.vector_store %arg10[%201, %c0_89], %198 {strides = array<i32>} : memref<64x128xbf16, #tpu.memory_space<vmem>>, vector<8x128xbf16>,
    %c5_i32 = arith.constant 5 : i32
    %c8_i32_90 = arith.constant 8 : i32
    %203 = arith.muli %c5_i32, %c8_i32_90 : i32
    %204 = tpu.assume_multiple %203, 8 : i32
    %205 = arith.index_cast %204 : i32 to index
    %c0_91 = arith.constant 0 : index
    %206 = vector.load %arg9[%205, %c0_91] : memref<64x512xf32, #tpu.memory_space<vmem>>, vector<8x512xf32>
    %c0_92 = arith.constant 0 : index
    %c0_93 = arith.constant 0 : index
    %207 = vector.load %arg11[%c0_92, %c0_93] : memref<8x128xbf16, #tpu.memory_space<vmem>>, vector<8x128xbf16>
    %cst_94 = arith.constant dense<0.000000e+00> : vector<8x512xf32>
    %208 = tpu.matmul %207, %3, %cst_94 {dimension_numbers = #tpu.dot_dimension_numbers<[1], [0], [0], [1], [0, 0, 1, 1], [], []>} : vector<8x128xbf16>, vector<128x512xbf16>, vector<8x512xf32> -> vector<8x512xf32>
    %209 = arith.addf %206, %208 : vector<8x512xf32>
    %210 = vector.extract_strided_slice %209 {offsets = [0, 0], sizes = [8, 128], strides = [1, 1]} : vector<8x512xf32> to vector<8x128xf32>
    %211 = arith.negf %210 : vector<8x128xf32>
    %212 = math.exp %211 : vector<8x128xf32>
    %cst_95 = arith.constant 1.000000e+00 : f32
    %213 = vector.broadcast %cst_95 : f32 to vector<8x128xf32>
    %214 = arith.addf %213, %212 : vector<8x128xf32>
    %215 = arith.divf %213, %214 : vector<8x128xf32>
    %216 = vector.extract_strided_slice %209 {offsets = [0, 128], sizes = [8, 128], strides = [1, 1]} : vector<8x512xf32> to vector<8x128xf32>
    %217 = arith.negf %216 : vector<8x128xf32>
    %218 = math.exp %217 : vector<8x128xf32>
    %cst_96 = arith.constant 1.000000e+00 : f32
    %219 = vector.broadcast %cst_96 : f32 to vector<8x128xf32>
    %220 = arith.addf %219, %218 : vector<8x128xf32>
    %221 = arith.divf %219, %220 : vector<8x128xf32>
    %222 = vector.extract_strided_slice %209 {offsets = [0, 256], sizes = [8, 128], strides = [1, 1]} : vector<8x512xf32> to vector<8x128xf32>
    %223 = math.tanh %222 : vector<8x128xf32>
    %224 = vector.extract_strided_slice %209 {offsets = [0, 384], sizes = [8, 128], strides = [1, 1]} : vector<8x512xf32> to vector<8x128xf32>
    %225 = arith.negf %224 : vector<8x128xf32>
    %226 = math.exp %225 : vector<8x128xf32>
    %cst_97 = arith.constant 1.000000e+00 : f32
    %227 = vector.broadcast %cst_97 : f32 to vector<8x128xf32>
    %228 = arith.addf %227, %226 : vector<8x128xf32>
    %229 = arith.divf %227, %228 : vector<8x128xf32>
    %c0_98 = arith.constant 0 : index
    %c0_99 = arith.constant 0 : index
    %230 = vector.load %arg12[%c0_98, %c0_99] : memref<8x128xf32, #tpu.memory_space<vmem>>, vector<8x128xf32>
    %231 = arith.mulf %221, %230 : vector<8x128xf32>
    %232 = arith.mulf %215, %223 : vector<8x128xf32>
    %233 = arith.addf %231, %232 : vector<8x128xf32>
    %234 = math.tanh %233 : vector<8x128xf32>
    %235 = arith.mulf %229, %234 : vector<8x128xf32>
    %236 = arith.truncf %235 : vector<8x128xf32> to vector<8x128xbf16>
    %c0_100 = arith.constant 0 : index
    %c0_101 = arith.constant 0 : index
    %237 = vector.load %arg12[%c0_100, %c0_101] : memref<8x128xf32, #tpu.memory_space<vmem>>, vector<8x128xf32>
    tpu.vector_store %arg12[%c0_100, %c0_101], %233 {strides = array<i32>} : memref<8x128xf32, #tpu.memory_space<vmem>>, vector<8x128xf32>,
    %c0_102 = arith.constant 0 : index
    %c0_103 = arith.constant 0 : index
    %238 = vector.load %arg11[%c0_102, %c0_103] : memref<8x128xbf16, #tpu.memory_space<vmem>>, vector<8x128xbf16>
    tpu.vector_store %arg11[%c0_102, %c0_103], %236 {strides = array<i32>} : memref<8x128xbf16, #tpu.memory_space<vmem>>, vector<8x128xbf16>,
    %239 = arith.index_cast %204 : i32 to index
    %c0_104 = arith.constant 0 : index
    %240 = vector.load %arg10[%239, %c0_104] : memref<64x128xbf16, #tpu.memory_space<vmem>>, vector<8x128xbf16>
    tpu.vector_store %arg10[%239, %c0_104], %236 {strides = array<i32>} : memref<64x128xbf16, #tpu.memory_space<vmem>>, vector<8x128xbf16>,
    %c6_i32 = arith.constant 6 : i32
    %c8_i32_105 = arith.constant 8 : i32
    %241 = arith.muli %c6_i32, %c8_i32_105 : i32
    %242 = tpu.assume_multiple %241, 8 : i32
    %243 = arith.index_cast %242 : i32 to index
    %c0_106 = arith.constant 0 : index
    %244 = vector.load %arg9[%243, %c0_106] : memref<64x512xf32, #tpu.memory_space<vmem>>, vector<8x512xf32>
    %c0_107 = arith.constant 0 : index
    %c0_108 = arith.constant 0 : index
    %245 = vector.load %arg11[%c0_107, %c0_108] : memref<8x128xbf16, #tpu.memory_space<vmem>>, vector<8x128xbf16>
    %cst_109 = arith.constant dense<0.000000e+00> : vector<8x512xf32>
    %246 = tpu.matmul %245, %3, %cst_109 {dimension_numbers = #tpu.dot_dimension_numbers<[1], [0], [0], [1], [0, 0, 1, 1], [], []>} : vector<8x128xbf16>, vector<128x512xbf16>, vector<8x512xf32> -> vector<8x512xf32>
    %247 = arith.addf %244, %246 : vector<8x512xf32>
    %248 = vector.extract_strided_slice %247 {offsets = [0, 0], sizes = [8, 128], strides = [1, 1]} : vector<8x512xf32> to vector<8x128xf32>
    %249 = arith.negf %248 : vector<8x128xf32>
    %250 = math.exp %249 : vector<8x128xf32>
    %cst_110 = arith.constant 1.000000e+00 : f32
    %251 = vector.broadcast %cst_110 : f32 to vector<8x128xf32>
    %252 = arith.addf %251, %250 : vector<8x128xf32>
    %253 = arith.divf %251, %252 : vector<8x128xf32>
    %254 = vector.extract_strided_slice %247 {offsets = [0, 128], sizes = [8, 128], strides = [1, 1]} : vector<8x512xf32> to vector<8x128xf32>
    %255 = arith.negf %254 : vector<8x128xf32>
    %256 = math.exp %255 : vector<8x128xf32>
    %cst_111 = arith.constant 1.000000e+00 : f32
    %257 = vector.broadcast %cst_111 : f32 to vector<8x128xf32>
    %258 = arith.addf %257, %256 : vector<8x128xf32>
    %259 = arith.divf %257, %258 : vector<8x128xf32>
    %260 = vector.extract_strided_slice %247 {offsets = [0, 256], sizes = [8, 128], strides = [1, 1]} : vector<8x512xf32> to vector<8x128xf32>
    %261 = math.tanh %260 : vector<8x128xf32>
    %262 = vector.extract_strided_slice %247 {offsets = [0, 384], sizes = [8, 128], strides = [1, 1]} : vector<8x512xf32> to vector<8x128xf32>
    %263 = arith.negf %262 : vector<8x128xf32>
    %264 = math.exp %263 : vector<8x128xf32>
    %cst_112 = arith.constant 1.000000e+00 : f32
    %265 = vector.broadcast %cst_112 : f32 to vector<8x128xf32>
    %266 = arith.addf %265, %264 : vector<8x128xf32>
    %267 = arith.divf %265, %266 : vector<8x128xf32>
    %c0_113 = arith.constant 0 : index
    %c0_114 = arith.constant 0 : index
    %268 = vector.load %arg12[%c0_113, %c0_114] : memref<8x128xf32, #tpu.memory_space<vmem>>, vector<8x128xf32>
    %269 = arith.mulf %259, %268 : vector<8x128xf32>
    %270 = arith.mulf %253, %261 : vector<8x128xf32>
    %271 = arith.addf %269, %270 : vector<8x128xf32>
    %272 = math.tanh %271 : vector<8x128xf32>
    %273 = arith.mulf %267, %272 : vector<8x128xf32>
    %274 = arith.truncf %273 : vector<8x128xf32> to vector<8x128xbf16>
    %c0_115 = arith.constant 0 : index
    %c0_116 = arith.constant 0 : index
    %275 = vector.load %arg12[%c0_115, %c0_116] : memref<8x128xf32, #tpu.memory_space<vmem>>, vector<8x128xf32>
    tpu.vector_store %arg12[%c0_115, %c0_116], %271 {strides = array<i32>} : memref<8x128xf32, #tpu.memory_space<vmem>>, vector<8x128xf32>,
    %c0_117 = arith.constant 0 : index
    %c0_118 = arith.constant 0 : index
    %276 = vector.load %arg11[%c0_117, %c0_118] : memref<8x128xbf16, #tpu.memory_space<vmem>>, vector<8x128xbf16>
    tpu.vector_store %arg11[%c0_117, %c0_118], %274 {strides = array<i32>} : memref<8x128xbf16, #tpu.memory_space<vmem>>, vector<8x128xbf16>,
    %277 = arith.index_cast %242 : i32 to index
    %c0_119 = arith.constant 0 : index
    %278 = vector.load %arg10[%277, %c0_119] : memref<64x128xbf16, #tpu.memory_space<vmem>>, vector<8x128xbf16>
    tpu.vector_store %arg10[%277, %c0_119], %274 {strides = array<i32>} : memref<64x128xbf16, #tpu.memory_space<vmem>>, vector<8x128xbf16>,
    %c7_i32 = arith.constant 7 : i32
    %c8_i32_120 = arith.constant 8 : i32
    %279 = arith.muli %c7_i32, %c8_i32_120 : i32
    %280 = tpu.assume_multiple %279, 8 : i32
    %281 = arith.index_cast %280 : i32 to index
    %c0_121 = arith.constant 0 : index
    %282 = vector.load %arg9[%281, %c0_121] : memref<64x512xf32, #tpu.memory_space<vmem>>, vector<8x512xf32>
    %c0_122 = arith.constant 0 : index
    %c0_123 = arith.constant 0 : index
    %283 = vector.load %arg11[%c0_122, %c0_123] : memref<8x128xbf16, #tpu.memory_space<vmem>>, vector<8x128xbf16>
    %cst_124 = arith.constant dense<0.000000e+00> : vector<8x512xf32>
    %284 = tpu.matmul %283, %3, %cst_124 {dimension_numbers = #tpu.dot_dimension_numbers<[1], [0], [0], [1], [0, 0, 1, 1], [], []>} : vector<8x128xbf16>, vector<128x512xbf16>, vector<8x512xf32> -> vector<8x512xf32>
    %285 = arith.addf %282, %284 : vector<8x512xf32>
    %286 = vector.extract_strided_slice %285 {offsets = [0, 0], sizes = [8, 128], strides = [1, 1]} : vector<8x512xf32> to vector<8x128xf32>
    %287 = arith.negf %286 : vector<8x128xf32>
    %288 = math.exp %287 : vector<8x128xf32>
    %cst_125 = arith.constant 1.000000e+00 : f32
    %289 = vector.broadcast %cst_125 : f32 to vector<8x128xf32>
    %290 = arith.addf %289, %288 : vector<8x128xf32>
    %291 = arith.divf %289, %290 : vector<8x128xf32>
    %292 = vector.extract_strided_slice %285 {offsets = [0, 128], sizes = [8, 128], strides = [1, 1]} : vector<8x512xf32> to vector<8x128xf32>
    %293 = arith.negf %292 : vector<8x128xf32>
    %294 = math.exp %293 : vector<8x128xf32>
    %cst_126 = arith.constant 1.000000e+00 : f32
    %295 = vector.broadcast %cst_126 : f32 to vector<8x128xf32>
    %296 = arith.addf %295, %294 : vector<8x128xf32>
    %297 = arith.divf %295, %296 : vector<8x128xf32>
    %298 = vector.extract_strided_slice %285 {offsets = [0, 256], sizes = [8, 128], strides = [1, 1]} : vector<8x512xf32> to vector<8x128xf32>
    %299 = math.tanh %298 : vector<8x128xf32>
    %300 = vector.extract_strided_slice %285 {offsets = [0, 384], sizes = [8, 128], strides = [1, 1]} : vector<8x512xf32> to vector<8x128xf32>
    %301 = arith.negf %300 : vector<8x128xf32>
    %302 = math.exp %301 : vector<8x128xf32>
    %cst_127 = arith.constant 1.000000e+00 : f32
    %303 = vector.broadcast %cst_127 : f32 to vector<8x128xf32>
    %304 = arith.addf %303, %302 : vector<8x128xf32>
    %305 = arith.divf %303, %304 : vector<8x128xf32>
    %c0_128 = arith.constant 0 : index
    %c0_129 = arith.constant 0 : index
    %306 = vector.load %arg12[%c0_128, %c0_129] : memref<8x128xf32, #tpu.memory_space<vmem>>, vector<8x128xf32>
    %307 = arith.mulf %297, %306 : vector<8x128xf32>
    %308 = arith.mulf %291, %299 : vector<8x128xf32>
    %309 = arith.addf %307, %308 : vector<8x128xf32>
    %310 = math.tanh %309 : vector<8x128xf32>
    %311 = arith.mulf %305, %310 : vector<8x128xf32>
    %312 = arith.truncf %311 : vector<8x128xf32> to vector<8x128xbf16>
    %c0_130 = arith.constant 0 : index
    %c0_131 = arith.constant 0 : index
    %313 = vector.load %arg12[%c0_130, %c0_131] : memref<8x128xf32, #tpu.memory_space<vmem>>, vector<8x128xf32>
    tpu.vector_store %arg12[%c0_130, %c0_131], %309 {strides = array<i32>} : memref<8x128xf32, #tpu.memory_space<vmem>>, vector<8x128xf32>,
    %c0_132 = arith.constant 0 : index
    %c0_133 = arith.constant 0 : index
    %314 = vector.load %arg11[%c0_132, %c0_133] : memref<8x128xbf16, #tpu.memory_space<vmem>>, vector<8x128xbf16>
    tpu.vector_store %arg11[%c0_132, %c0_133], %312 {strides = array<i32>} : memref<8x128xbf16, #tpu.memory_space<vmem>>, vector<8x128xbf16>,
    %315 = arith.index_cast %280 : i32 to index
    %c0_134 = arith.constant 0 : index
    %316 = vector.load %arg10[%315, %c0_134] : memref<64x128xbf16, #tpu.memory_space<vmem>>, vector<8x128xbf16>
    tpu.vector_store %arg10[%315, %c0_134], %312 {strides = array<i32>} : memref<64x128xbf16, #tpu.memory_space<vmem>>, vector<8x128xbf16>,
    %c8_i32_135 = arith.constant 8 : i32
    %c0_136 = arith.constant 0 : index
    %c0_137 = arith.constant 0 : index
    %317 = vector.load %arg3[%c0_136, %c0_137] : memref<128x512xbf16, #tpu.memory_space<vmem>>, vector<128x512xbf16>
    %c0_138 = arith.constant 0 : index
    %c0_139 = arith.constant 0 : index
    %318 = vector.load %arg5[%c0_138, %c0_139] : memref<128x512xbf16, #tpu.memory_space<vmem>>, vector<128x512xbf16>
    %c0_140 = arith.constant 0 : index
    %c0_141 = arith.constant 0 : index
    %319 = vector.load %arg7[%c0_140, %c0_141] : memref<1x512xf32, #tpu.memory_space<vmem>>, vector<1x512xf32>
    %c0_142 = arith.constant 0 : index
    %c0_143 = arith.constant 0 : index
    %320 = vector.load %arg10[%c0_142, %c0_143] : memref<64x128xbf16, #tpu.memory_space<vmem>>, vector<64x128xbf16>
    %cst_144 = arith.constant dense<0.000000e+00> : vector<64x512xf32>
    %321 = tpu.matmul %320, %317, %cst_144 {dimension_numbers = #tpu.dot_dimension_numbers<[1], [0], [0], [1], [0, 0, 1, 1], [], []>} : vector<64x128xbf16>, vector<128x512xbf16>, vector<64x512xf32> -> vector<64x512xf32>
    %322 = vector.broadcast %319 : vector<1x512xf32> to vector<64x512xf32>
    %323 = arith.addf %321, %322 : vector<64x512xf32>
    %c0_145 = arith.constant 0 : index
    %c0_146 = arith.constant 0 : index
    %324 = vector.load %arg9[%c0_145, %c0_146] : memref<64x512xf32, #tpu.memory_space<vmem>>, vector<64x512xf32>
    tpu.vector_store %arg9[%c0_145, %c0_146], %323 {strides = array<i32>} : memref<64x512xf32, #tpu.memory_space<vmem>>, vector<64x512xf32>,
    %cst_147 = arith.constant 0.000000e+00 : bf16
    %325 = vector.broadcast %cst_147 : bf16 to vector<8x128xbf16>
    %c0_148 = arith.constant 0 : index
    %c0_149 = arith.constant 0 : index
    %326 = vector.load %arg11[%c0_148, %c0_149] : memref<8x128xbf16, #tpu.memory_space<vmem>>, vector<8x128xbf16>
    tpu.vector_store %arg11[%c0_148, %c0_149], %325 {strides = array<i32>} : memref<8x128xbf16, #tpu.memory_space<vmem>>, vector<8x128xbf16>,
    %cst_150 = arith.constant 0.000000e+00 : f32
    %327 = vector.broadcast %cst_150 : f32 to vector<8x128xf32>
    %c0_151 = arith.constant 0 : index
    %c0_152 = arith.constant 0 : index
    %328 = vector.load %arg12[%c0_151, %c0_152] : memref<8x128xf32, #tpu.memory_space<vmem>>, vector<8x128xf32>
    tpu.vector_store %arg12[%c0_151, %c0_152], %327 {strides = array<i32>} : memref<8x128xf32, #tpu.memory_space<vmem>>, vector<8x128xf32>,
    %c0_i32_153 = arith.constant 0 : i32
    %c8_i32_154 = arith.constant 8 : i32
    %329 = arith.muli %c0_i32_153, %c8_i32_154 : i32
    %330 = tpu.assume_multiple %329, 8 : i32
    %331 = arith.index_cast %330 : i32 to index
    %c0_155 = arith.constant 0 : index
    %332 = vector.load %arg9[%331, %c0_155] : memref<64x512xf32, #tpu.memory_space<vmem>>, vector<8x512xf32>
    %c0_156 = arith.constant 0 : index
    %c0_157 = arith.constant 0 : index
    %333 = vector.load %arg11[%c0_156, %c0_157] : memref<8x128xbf16, #tpu.memory_space<vmem>>, vector<8x128xbf16>
    %cst_158 = arith.constant dense<0.000000e+00> : vector<8x512xf32>
    %334 = tpu.matmul %333, %318, %cst_158 {dimension_numbers = #tpu.dot_dimension_numbers<[1], [0], [0], [1], [0, 0, 1, 1], [], []>} : vector<8x128xbf16>, vector<128x512xbf16>, vector<8x512xf32> -> vector<8x512xf32>
    %335 = arith.addf %332, %334 : vector<8x512xf32>
    %336 = vector.extract_strided_slice %335 {offsets = [0, 0], sizes = [8, 128], strides = [1, 1]} : vector<8x512xf32> to vector<8x128xf32>
    %337 = arith.negf %336 : vector<8x128xf32>
    %338 = math.exp %337 : vector<8x128xf32>
    %cst_159 = arith.constant 1.000000e+00 : f32
    %339 = vector.broadcast %cst_159 : f32 to vector<8x128xf32>
    %340 = arith.addf %339, %338 : vector<8x128xf32>
    %341 = arith.divf %339, %340 : vector<8x128xf32>
    %342 = vector.extract_strided_slice %335 {offsets = [0, 128], sizes = [8, 128], strides = [1, 1]} : vector<8x512xf32> to vector<8x128xf32>
    %343 = arith.negf %342 : vector<8x128xf32>
    %344 = math.exp %343 : vector<8x128xf32>
    %cst_160 = arith.constant 1.000000e+00 : f32
    %345 = vector.broadcast %cst_160 : f32 to vector<8x128xf32>
    %346 = arith.addf %345, %344 : vector<8x128xf32>
    %347 = arith.divf %345, %346 : vector<8x128xf32>
    %348 = vector.extract_strided_slice %335 {offsets = [0, 256], sizes = [8, 128], strides = [1, 1]} : vector<8x512xf32> to vector<8x128xf32>
    %349 = math.tanh %348 : vector<8x128xf32>
    %350 = vector.extract_strided_slice %335 {offsets = [0, 384], sizes = [8, 128], strides = [1, 1]} : vector<8x512xf32> to vector<8x128xf32>
    %351 = arith.negf %350 : vector<8x128xf32>
    %352 = math.exp %351 : vector<8x128xf32>
    %cst_161 = arith.constant 1.000000e+00 : f32
    %353 = vector.broadcast %cst_161 : f32 to vector<8x128xf32>
    %354 = arith.addf %353, %352 : vector<8x128xf32>
    %355 = arith.divf %353, %354 : vector<8x128xf32>
    %c0_162 = arith.constant 0 : index
    %c0_163 = arith.constant 0 : index
    %356 = vector.load %arg12[%c0_162, %c0_163] : memref<8x128xf32, #tpu.memory_space<vmem>>, vector<8x128xf32>
    %357 = arith.mulf %347, %356 : vector<8x128xf32>
    %358 = arith.mulf %341, %349 : vector<8x128xf32>
    %359 = arith.addf %357, %358 : vector<8x128xf32>
    %360 = math.tanh %359 : vector<8x128xf32>
    %361 = arith.mulf %355, %360 : vector<8x128xf32>
    %362 = arith.truncf %361 : vector<8x128xf32> to vector<8x128xbf16>
    %c0_164 = arith.constant 0 : index
    %c0_165 = arith.constant 0 : index
    %363 = vector.load %arg12[%c0_164, %c0_165] : memref<8x128xf32, #tpu.memory_space<vmem>>, vector<8x128xf32>
    tpu.vector_store %arg12[%c0_164, %c0_165], %359 {strides = array<i32>} : memref<8x128xf32, #tpu.memory_space<vmem>>, vector<8x128xf32>,
    %c0_166 = arith.constant 0 : index
    %c0_167 = arith.constant 0 : index
    %364 = vector.load %arg11[%c0_166, %c0_167] : memref<8x128xbf16, #tpu.memory_space<vmem>>, vector<8x128xbf16>
    tpu.vector_store %arg11[%c0_166, %c0_167], %362 {strides = array<i32>} : memref<8x128xbf16, #tpu.memory_space<vmem>>, vector<8x128xbf16>,
    %365 = arith.index_cast %330 : i32 to index
    %c0_168 = arith.constant 0 : index
    %366 = vector.load %arg10[%365, %c0_168] : memref<64x128xbf16, #tpu.memory_space<vmem>>, vector<8x128xbf16>
    tpu.vector_store %arg10[%365, %c0_168], %362 {strides = array<i32>} : memref<64x128xbf16, #tpu.memory_space<vmem>>, vector<8x128xbf16>,
    %c1_i32_169 = arith.constant 1 : i32
    %c8_i32_170 = arith.constant 8 : i32
    %367 = arith.muli %c1_i32_169, %c8_i32_170 : i32
    %368 = tpu.assume_multiple %367, 8 : i32
    %369 = arith.index_cast %368 : i32 to index
    %c0_171 = arith.constant 0 : index
    %370 = vector.load %arg9[%369, %c0_171] : memref<64x512xf32, #tpu.memory_space<vmem>>, vector<8x512xf32>
    %c0_172 = arith.constant 0 : index
    %c0_173 = arith.constant 0 : index
    %371 = vector.load %arg11[%c0_172, %c0_173] : memref<8x128xbf16, #tpu.memory_space<vmem>>, vector<8x128xbf16>
    %cst_174 = arith.constant dense<0.000000e+00> : vector<8x512xf32>
    %372 = tpu.matmul %371, %318, %cst_174 {dimension_numbers = #tpu.dot_dimension_numbers<[1], [0], [0], [1], [0, 0, 1, 1], [], []>} : vector<8x128xbf16>, vector<128x512xbf16>, vector<8x512xf32> -> vector<8x512xf32>
    %373 = arith.addf %370, %372 : vector<8x512xf32>
    %374 = vector.extract_strided_slice %373 {offsets = [0, 0], sizes = [8, 128], strides = [1, 1]} : vector<8x512xf32> to vector<8x128xf32>
    %375 = arith.negf %374 : vector<8x128xf32>
    %376 = math.exp %375 : vector<8x128xf32>
    %cst_175 = arith.constant 1.000000e+00 : f32
    %377 = vector.broadcast %cst_175 : f32 to vector<8x128xf32>
    %378 = arith.addf %377, %376 : vector<8x128xf32>
    %379 = arith.divf %377, %378 : vector<8x128xf32>
    %380 = vector.extract_strided_slice %373 {offsets = [0, 128], sizes = [8, 128], strides = [1, 1]} : vector<8x512xf32> to vector<8x128xf32>
    %381 = arith.negf %380 : vector<8x128xf32>
    %382 = math.exp %381 : vector<8x128xf32>
    %cst_176 = arith.constant 1.000000e+00 : f32
    %383 = vector.broadcast %cst_176 : f32 to vector<8x128xf32>
    %384 = arith.addf %383, %382 : vector<8x128xf32>
    %385 = arith.divf %383, %384 : vector<8x128xf32>
    %386 = vector.extract_strided_slice %373 {offsets = [0, 256], sizes = [8, 128], strides = [1, 1]} : vector<8x512xf32> to vector<8x128xf32>
    %387 = math.tanh %386 : vector<8x128xf32>
    %388 = vector.extract_strided_slice %373 {offsets = [0, 384], sizes = [8, 128], strides = [1, 1]} : vector<8x512xf32> to vector<8x128xf32>
    %389 = arith.negf %388 : vector<8x128xf32>
    %390 = math.exp %389 : vector<8x128xf32>
    %cst_177 = arith.constant 1.000000e+00 : f32
    %391 = vector.broadcast %cst_177 : f32 to vector<8x128xf32>
    %392 = arith.addf %391, %390 : vector<8x128xf32>
    %393 = arith.divf %391, %392 : vector<8x128xf32>
    %c0_178 = arith.constant 0 : index
    %c0_179 = arith.constant 0 : index
    %394 = vector.load %arg12[%c0_178, %c0_179] : memref<8x128xf32, #tpu.memory_space<vmem>>, vector<8x128xf32>
    %395 = arith.mulf %385, %394 : vector<8x128xf32>
    %396 = arith.mulf %379, %387 : vector<8x128xf32>
    %397 = arith.addf %395, %396 : vector<8x128xf32>
    %398 = math.tanh %397 : vector<8x128xf32>
    %399 = arith.mulf %393, %398 : vector<8x128xf32>
    %400 = arith.truncf %399 : vector<8x128xf32> to vector<8x128xbf16>
    %c0_180 = arith.constant 0 : index
    %c0_181 = arith.constant 0 : index
    %401 = vector.load %arg12[%c0_180, %c0_181] : memref<8x128xf32, #tpu.memory_space<vmem>>, vector<8x128xf32>
    tpu.vector_store %arg12[%c0_180, %c0_181], %397 {strides = array<i32>} : memref<8x128xf32, #tpu.memory_space<vmem>>, vector<8x128xf32>,
    %c0_182 = arith.constant 0 : index
    %c0_183 = arith.constant 0 : index
    %402 = vector.load %arg11[%c0_182, %c0_183] : memref<8x128xbf16, #tpu.memory_space<vmem>>, vector<8x128xbf16>
    tpu.vector_store %arg11[%c0_182, %c0_183], %400 {strides = array<i32>} : memref<8x128xbf16, #tpu.memory_space<vmem>>, vector<8x128xbf16>,
    %403 = arith.index_cast %368 : i32 to index
    %c0_184 = arith.constant 0 : index
    %404 = vector.load %arg10[%403, %c0_184] : memref<64x128xbf16, #tpu.memory_space<vmem>>, vector<8x128xbf16>
    tpu.vector_store %arg10[%403, %c0_184], %400 {strides = array<i32>} : memref<64x128xbf16, #tpu.memory_space<vmem>>, vector<8x128xbf16>,
    %c2_i32_185 = arith.constant 2 : i32
    %c8_i32_186 = arith.constant 8 : i32
    %405 = arith.muli %c2_i32_185, %c8_i32_186 : i32
    %406 = tpu.assume_multiple %405, 8 : i32
    %407 = arith.index_cast %406 : i32 to index
    %c0_187 = arith.constant 0 : index
    %408 = vector.load %arg9[%407, %c0_187] : memref<64x512xf32, #tpu.memory_space<vmem>>, vector<8x512xf32>
    %c0_188 = arith.constant 0 : index
    %c0_189 = arith.constant 0 : index
    %409 = vector.load %arg11[%c0_188, %c0_189] : memref<8x128xbf16, #tpu.memory_space<vmem>>, vector<8x128xbf16>
    %cst_190 = arith.constant dense<0.000000e+00> : vector<8x512xf32>
    %410 = tpu.matmul %409, %318, %cst_190 {dimension_numbers = #tpu.dot_dimension_numbers<[1], [0], [0], [1], [0, 0, 1, 1], [], []>} : vector<8x128xbf16>, vector<128x512xbf16>, vector<8x512xf32> -> vector<8x512xf32>
    %411 = arith.addf %408, %410 : vector<8x512xf32>
    %412 = vector.extract_strided_slice %411 {offsets = [0, 0], sizes = [8, 128], strides = [1, 1]} : vector<8x512xf32> to vector<8x128xf32>
    %413 = arith.negf %412 : vector<8x128xf32>
    %414 = math.exp %413 : vector<8x128xf32>
    %cst_191 = arith.constant 1.000000e+00 : f32
    %415 = vector.broadcast %cst_191 : f32 to vector<8x128xf32>
    %416 = arith.addf %415, %414 : vector<8x128xf32>
    %417 = arith.divf %415, %416 : vector<8x128xf32>
    %418 = vector.extract_strided_slice %411 {offsets = [0, 128], sizes = [8, 128], strides = [1, 1]} : vector<8x512xf32> to vector<8x128xf32>
    %419 = arith.negf %418 : vector<8x128xf32>
    %420 = math.exp %419 : vector<8x128xf32>
    %cst_192 = arith.constant 1.000000e+00 : f32
    %421 = vector.broadcast %cst_192 : f32 to vector<8x128xf32>
    %422 = arith.addf %421, %420 : vector<8x128xf32>
    %423 = arith.divf %421, %422 : vector<8x128xf32>
    %424 = vector.extract_strided_slice %411 {offsets = [0, 256], sizes = [8, 128], strides = [1, 1]} : vector<8x512xf32> to vector<8x128xf32>
    %425 = math.tanh %424 : vector<8x128xf32>
    %426 = vector.extract_strided_slice %411 {offsets = [0, 384], sizes = [8, 128], strides = [1, 1]} : vector<8x512xf32> to vector<8x128xf32>
    %427 = arith.negf %426 : vector<8x128xf32>
    %428 = math.exp %427 : vector<8x128xf32>
    %cst_193 = arith.constant 1.000000e+00 : f32
    %429 = vector.broadcast %cst_193 : f32 to vector<8x128xf32>
    %430 = arith.addf %429, %428 : vector<8x128xf32>
    %431 = arith.divf %429, %430 : vector<8x128xf32>
    %c0_194 = arith.constant 0 : index
    %c0_195 = arith.constant 0 : index
    %432 = vector.load %arg12[%c0_194, %c0_195] : memref<8x128xf32, #tpu.memory_space<vmem>>, vector<8x128xf32>
    %433 = arith.mulf %423, %432 : vector<8x128xf32>
    %434 = arith.mulf %417, %425 : vector<8x128xf32>
    %435 = arith.addf %433, %434 : vector<8x128xf32>
    %436 = math.tanh %435 : vector<8x128xf32>
    %437 = arith.mulf %431, %436 : vector<8x128xf32>
    %438 = arith.truncf %437 : vector<8x128xf32> to vector<8x128xbf16>
    %c0_196 = arith.constant 0 : index
    %c0_197 = arith.constant 0 : index
    %439 = vector.load %arg12[%c0_196, %c0_197] : memref<8x128xf32, #tpu.memory_space<vmem>>, vector<8x128xf32>
    tpu.vector_store %arg12[%c0_196, %c0_197], %435 {strides = array<i32>} : memref<8x128xf32, #tpu.memory_space<vmem>>, vector<8x128xf32>,
    %c0_198 = arith.constant 0 : index
    %c0_199 = arith.constant 0 : index
    %440 = vector.load %arg11[%c0_198, %c0_199] : memref<8x128xbf16, #tpu.memory_space<vmem>>, vector<8x128xbf16>
    tpu.vector_store %arg11[%c0_198, %c0_199], %438 {strides = array<i32>} : memref<8x128xbf16, #tpu.memory_space<vmem>>, vector<8x128xbf16>,
    %441 = arith.index_cast %406 : i32 to index
    %c0_200 = arith.constant 0 : index
    %442 = vector.load %arg10[%441, %c0_200] : memref<64x128xbf16, #tpu.memory_space<vmem>>, vector<8x128xbf16>
    tpu.vector_store %arg10[%441, %c0_200], %438 {strides = array<i32>} : memref<64x128xbf16, #tpu.memory_space<vmem>>, vector<8x128xbf16>,
    %c3_i32_201 = arith.constant 3 : i32
    %c8_i32_202 = arith.constant 8 : i32
    %443 = arith.muli %c3_i32_201, %c8_i32_202 : i32
    %444 = tpu.assume_multiple %443, 8 : i32
    %445 = arith.index_cast %444 : i32 to index
    %c0_203 = arith.constant 0 : index
    %446 = vector.load %arg9[%445, %c0_203] : memref<64x512xf32, #tpu.memory_space<vmem>>, vector<8x512xf32>
    %c0_204 = arith.constant 0 : index
    %c0_205 = arith.constant 0 : index
    %447 = vector.load %arg11[%c0_204, %c0_205] : memref<8x128xbf16, #tpu.memory_space<vmem>>, vector<8x128xbf16>
    %cst_206 = arith.constant dense<0.000000e+00> : vector<8x512xf32>
    %448 = tpu.matmul %447, %318, %cst_206 {dimension_numbers = #tpu.dot_dimension_numbers<[1], [0], [0], [1], [0, 0, 1, 1], [], []>} : vector<8x128xbf16>, vector<128x512xbf16>, vector<8x512xf32> -> vector<8x512xf32>
    %449 = arith.addf %446, %448 : vector<8x512xf32>
    %450 = vector.extract_strided_slice %449 {offsets = [0, 0], sizes = [8, 128], strides = [1, 1]} : vector<8x512xf32> to vector<8x128xf32>
    %451 = arith.negf %450 : vector<8x128xf32>
    %452 = math.exp %451 : vector<8x128xf32>
    %cst_207 = arith.constant 1.000000e+00 : f32
    %453 = vector.broadcast %cst_207 : f32 to vector<8x128xf32>
    %454 = arith.addf %453, %452 : vector<8x128xf32>
    %455 = arith.divf %453, %454 : vector<8x128xf32>
    %456 = vector.extract_strided_slice %449 {offsets = [0, 128], sizes = [8, 128], strides = [1, 1]} : vector<8x512xf32> to vector<8x128xf32>
    %457 = arith.negf %456 : vector<8x128xf32>
    %458 = math.exp %457 : vector<8x128xf32>
    %cst_208 = arith.constant 1.000000e+00 : f32
    %459 = vector.broadcast %cst_208 : f32 to vector<8x128xf32>
    %460 = arith.addf %459, %458 : vector<8x128xf32>
    %461 = arith.divf %459, %460 : vector<8x128xf32>
    %462 = vector.extract_strided_slice %449 {offsets = [0, 256], sizes = [8, 128], strides = [1, 1]} : vector<8x512xf32> to vector<8x128xf32>
    %463 = math.tanh %462 : vector<8x128xf32>
    %464 = vector.extract_strided_slice %449 {offsets = [0, 384], sizes = [8, 128], strides = [1, 1]} : vector<8x512xf32> to vector<8x128xf32>
    %465 = arith.negf %464 : vector<8x128xf32>
    %466 = math.exp %465 : vector<8x128xf32>
    %cst_209 = arith.constant 1.000000e+00 : f32
    %467 = vector.broadcast %cst_209 : f32 to vector<8x128xf32>
    %468 = arith.addf %467, %466 : vector<8x128xf32>
    %469 = arith.divf %467, %468 : vector<8x128xf32>
    %c0_210 = arith.constant 0 : index
    %c0_211 = arith.constant 0 : index
    %470 = vector.load %arg12[%c0_210, %c0_211] : memref<8x128xf32, #tpu.memory_space<vmem>>, vector<8x128xf32>
    %471 = arith.mulf %461, %470 : vector<8x128xf32>
    %472 = arith.mulf %455, %463 : vector<8x128xf32>
    %473 = arith.addf %471, %472 : vector<8x128xf32>
    %474 = math.tanh %473 : vector<8x128xf32>
    %475 = arith.mulf %469, %474 : vector<8x128xf32>
    %476 = arith.truncf %475 : vector<8x128xf32> to vector<8x128xbf16>
    %c0_212 = arith.constant 0 : index
    %c0_213 = arith.constant 0 : index
    %477 = vector.load %arg12[%c0_212, %c0_213] : memref<8x128xf32, #tpu.memory_space<vmem>>, vector<8x128xf32>
    tpu.vector_store %arg12[%c0_212, %c0_213], %473 {strides = array<i32>} : memref<8x128xf32, #tpu.memory_space<vmem>>, vector<8x128xf32>,
    %c0_214 = arith.constant 0 : index
    %c0_215 = arith.constant 0 : index
    %478 = vector.load %arg11[%c0_214, %c0_215] : memref<8x128xbf16, #tpu.memory_space<vmem>>, vector<8x128xbf16>
    tpu.vector_store %arg11[%c0_214, %c0_215], %476 {strides = array<i32>} : memref<8x128xbf16, #tpu.memory_space<vmem>>, vector<8x128xbf16>,
    %479 = arith.index_cast %444 : i32 to index
    %c0_216 = arith.constant 0 : index
    %480 = vector.load %arg10[%479, %c0_216] : memref<64x128xbf16, #tpu.memory_space<vmem>>, vector<8x128xbf16>
    tpu.vector_store %arg10[%479, %c0_216], %476 {strides = array<i32>} : memref<64x128xbf16, #tpu.memory_space<vmem>>, vector<8x128xbf16>,
    %c4_i32_217 = arith.constant 4 : i32
    %c8_i32_218 = arith.constant 8 : i32
    %481 = arith.muli %c4_i32_217, %c8_i32_218 : i32
    %482 = tpu.assume_multiple %481, 8 : i32
    %483 = arith.index_cast %482 : i32 to index
    %c0_219 = arith.constant 0 : index
    %484 = vector.load %arg9[%483, %c0_219] : memref<64x512xf32, #tpu.memory_space<vmem>>, vector<8x512xf32>
    %c0_220 = arith.constant 0 : index
    %c0_221 = arith.constant 0 : index
    %485 = vector.load %arg11[%c0_220, %c0_221] : memref<8x128xbf16, #tpu.memory_space<vmem>>, vector<8x128xbf16>
    %cst_222 = arith.constant dense<0.000000e+00> : vector<8x512xf32>
    %486 = tpu.matmul %485, %318, %cst_222 {dimension_numbers = #tpu.dot_dimension_numbers<[1], [0], [0], [1], [0, 0, 1, 1], [], []>} : vector<8x128xbf16>, vector<128x512xbf16>, vector<8x512xf32> -> vector<8x512xf32>
    %487 = arith.addf %484, %486 : vector<8x512xf32>
    %488 = vector.extract_strided_slice %487 {offsets = [0, 0], sizes = [8, 128], strides = [1, 1]} : vector<8x512xf32> to vector<8x128xf32>
    %489 = arith.negf %488 : vector<8x128xf32>
    %490 = math.exp %489 : vector<8x128xf32>
    %cst_223 = arith.constant 1.000000e+00 : f32
    %491 = vector.broadcast %cst_223 : f32 to vector<8x128xf32>
    %492 = arith.addf %491, %490 : vector<8x128xf32>
    %493 = arith.divf %491, %492 : vector<8x128xf32>
    %494 = vector.extract_strided_slice %487 {offsets = [0, 128], sizes = [8, 128], strides = [1, 1]} : vector<8x512xf32> to vector<8x128xf32>
    %495 = arith.negf %494 : vector<8x128xf32>
    %496 = math.exp %495 : vector<8x128xf32>
    %cst_224 = arith.constant 1.000000e+00 : f32
    %497 = vector.broadcast %cst_224 : f32 to vector<8x128xf32>
    %498 = arith.addf %497, %496 : vector<8x128xf32>
    %499 = arith.divf %497, %498 : vector<8x128xf32>
    %500 = vector.extract_strided_slice %487 {offsets = [0, 256], sizes = [8, 128], strides = [1, 1]} : vector<8x512xf32> to vector<8x128xf32>
    %501 = math.tanh %500 : vector<8x128xf32>
    %502 = vector.extract_strided_slice %487 {offsets = [0, 384], sizes = [8, 128], strides = [1, 1]} : vector<8x512xf32> to vector<8x128xf32>
    %503 = arith.negf %502 : vector<8x128xf32>
    %504 = math.exp %503 : vector<8x128xf32>
    %cst_225 = arith.constant 1.000000e+00 : f32
    %505 = vector.broadcast %cst_225 : f32 to vector<8x128xf32>
    %506 = arith.addf %505, %504 : vector<8x128xf32>
    %507 = arith.divf %505, %506 : vector<8x128xf32>
    %c0_226 = arith.constant 0 : index
    %c0_227 = arith.constant 0 : index
    %508 = vector.load %arg12[%c0_226, %c0_227] : memref<8x128xf32, #tpu.memory_space<vmem>>, vector<8x128xf32>
    %509 = arith.mulf %499, %508 : vector<8x128xf32>
    %510 = arith.mulf %493, %501 : vector<8x128xf32>
    %511 = arith.addf %509, %510 : vector<8x128xf32>
    %512 = math.tanh %511 : vector<8x128xf32>
    %513 = arith.mulf %507, %512 : vector<8x128xf32>
    %514 = arith.truncf %513 : vector<8x128xf32> to vector<8x128xbf16>
    %c0_228 = arith.constant 0 : index
    %c0_229 = arith.constant 0 : index
    %515 = vector.load %arg12[%c0_228, %c0_229] : memref<8x128xf32, #tpu.memory_space<vmem>>, vector<8x128xf32>
    tpu.vector_store %arg12[%c0_228, %c0_229], %511 {strides = array<i32>} : memref<8x128xf32, #tpu.memory_space<vmem>>, vector<8x128xf32>,
    %c0_230 = arith.constant 0 : index
    %c0_231 = arith.constant 0 : index
    %516 = vector.load %arg11[%c0_230, %c0_231] : memref<8x128xbf16, #tpu.memory_space<vmem>>, vector<8x128xbf16>
    tpu.vector_store %arg11[%c0_230, %c0_231], %514 {strides = array<i32>} : memref<8x128xbf16, #tpu.memory_space<vmem>>, vector<8x128xbf16>,
    %517 = arith.index_cast %482 : i32 to index
    %c0_232 = arith.constant 0 : index
    %518 = vector.load %arg10[%517, %c0_232] : memref<64x128xbf16, #tpu.memory_space<vmem>>, vector<8x128xbf16>
    tpu.vector_store %arg10[%517, %c0_232], %514 {strides = array<i32>} : memref<64x128xbf16, #tpu.memory_space<vmem>>, vector<8x128xbf16>,
    %c5_i32_233 = arith.constant 5 : i32
    %c8_i32_234 = arith.constant 8 : i32
    %519 = arith.muli %c5_i32_233, %c8_i32_234 : i32
    %520 = tpu.assume_multiple %519, 8 : i32
    %521 = arith.index_cast %520 : i32 to index
    %c0_235 = arith.constant 0 : index
    %522 = vector.load %arg9[%521, %c0_235] : memref<64x512xf32, #tpu.memory_space<vmem>>, vector<8x512xf32>
    %c0_236 = arith.constant 0 : index
    %c0_237 = arith.constant 0 : index
    %523 = vector.load %arg11[%c0_236, %c0_237] : memref<8x128xbf16, #tpu.memory_space<vmem>>, vector<8x128xbf16>
    %cst_238 = arith.constant dense<0.000000e+00> : vector<8x512xf32>
    %524 = tpu.matmul %523, %318, %cst_238 {dimension_numbers = #tpu.dot_dimension_numbers<[1], [0], [0], [1], [0, 0, 1, 1], [], []>} : vector<8x128xbf16>, vector<128x512xbf16>, vector<8x512xf32> -> vector<8x512xf32>
    %525 = arith.addf %522, %524 : vector<8x512xf32>
    %526 = vector.extract_strided_slice %525 {offsets = [0, 0], sizes = [8, 128], strides = [1, 1]} : vector<8x512xf32> to vector<8x128xf32>
    %527 = arith.negf %526 : vector<8x128xf32>
    %528 = math.exp %527 : vector<8x128xf32>
    %cst_239 = arith.constant 1.000000e+00 : f32
    %529 = vector.broadcast %cst_239 : f32 to vector<8x128xf32>
    %530 = arith.addf %529, %528 : vector<8x128xf32>
    %531 = arith.divf %529, %530 : vector<8x128xf32>
    %532 = vector.extract_strided_slice %525 {offsets = [0, 128], sizes = [8, 128], strides = [1, 1]} : vector<8x512xf32> to vector<8x128xf32>
    %533 = arith.negf %532 : vector<8x128xf32>
    %534 = math.exp %533 : vector<8x128xf32>
    %cst_240 = arith.constant 1.000000e+00 : f32
    %535 = vector.broadcast %cst_240 : f32 to vector<8x128xf32>
    %536 = arith.addf %535, %534 : vector<8x128xf32>
    %537 = arith.divf %535, %536 : vector<8x128xf32>
    %538 = vector.extract_strided_slice %525 {offsets = [0, 256], sizes = [8, 128], strides = [1, 1]} : vector<8x512xf32> to vector<8x128xf32>
    %539 = math.tanh %538 : vector<8x128xf32>
    %540 = vector.extract_strided_slice %525 {offsets = [0, 384], sizes = [8, 128], strides = [1, 1]} : vector<8x512xf32> to vector<8x128xf32>
    %541 = arith.negf %540 : vector<8x128xf32>
    %542 = math.exp %541 : vector<8x128xf32>
    %cst_241 = arith.constant 1.000000e+00 : f32
    %543 = vector.broadcast %cst_241 : f32 to vector<8x128xf32>
    %544 = arith.addf %543, %542 : vector<8x128xf32>
    %545 = arith.divf %543, %544 : vector<8x128xf32>
    %c0_242 = arith.constant 0 : index
    %c0_243 = arith.constant 0 : index
    %546 = vector.load %arg12[%c0_242, %c0_243] : memref<8x128xf32, #tpu.memory_space<vmem>>, vector<8x128xf32>
    %547 = arith.mulf %537, %546 : vector<8x128xf32>
    %548 = arith.mulf %531, %539 : vector<8x128xf32>
    %549 = arith.addf %547, %548 : vector<8x128xf32>
    %550 = math.tanh %549 : vector<8x128xf32>
    %551 = arith.mulf %545, %550 : vector<8x128xf32>
    %552 = arith.truncf %551 : vector<8x128xf32> to vector<8x128xbf16>
    %c0_244 = arith.constant 0 : index
    %c0_245 = arith.constant 0 : index
    %553 = vector.load %arg12[%c0_244, %c0_245] : memref<8x128xf32, #tpu.memory_space<vmem>>, vector<8x128xf32>
    tpu.vector_store %arg12[%c0_244, %c0_245], %549 {strides = array<i32>} : memref<8x128xf32, #tpu.memory_space<vmem>>, vector<8x128xf32>,
    %c0_246 = arith.constant 0 : index
    %c0_247 = arith.constant 0 : index
    %554 = vector.load %arg11[%c0_246, %c0_247] : memref<8x128xbf16, #tpu.memory_space<vmem>>, vector<8x128xbf16>
    tpu.vector_store %arg11[%c0_246, %c0_247], %552 {strides = array<i32>} : memref<8x128xbf16, #tpu.memory_space<vmem>>, vector<8x128xbf16>,
    %555 = arith.index_cast %520 : i32 to index
    %c0_248 = arith.constant 0 : index
    %556 = vector.load %arg10[%555, %c0_248] : memref<64x128xbf16, #tpu.memory_space<vmem>>, vector<8x128xbf16>
    tpu.vector_store %arg10[%555, %c0_248], %552 {strides = array<i32>} : memref<64x128xbf16, #tpu.memory_space<vmem>>, vector<8x128xbf16>,
    %c6_i32_249 = arith.constant 6 : i32
    %c8_i32_250 = arith.constant 8 : i32
    %557 = arith.muli %c6_i32_249, %c8_i32_250 : i32
    %558 = tpu.assume_multiple %557, 8 : i32
    %559 = arith.index_cast %558 : i32 to index
    %c0_251 = arith.constant 0 : index
    %560 = vector.load %arg9[%559, %c0_251] : memref<64x512xf32, #tpu.memory_space<vmem>>, vector<8x512xf32>
    %c0_252 = arith.constant 0 : index
    %c0_253 = arith.constant 0 : index
    %561 = vector.load %arg11[%c0_252, %c0_253] : memref<8x128xbf16, #tpu.memory_space<vmem>>, vector<8x128xbf16>
    %cst_254 = arith.constant dense<0.000000e+00> : vector<8x512xf32>
    %562 = tpu.matmul %561, %318, %cst_254 {dimension_numbers = #tpu.dot_dimension_numbers<[1], [0], [0], [1], [0, 0, 1, 1], [], []>} : vector<8x128xbf16>, vector<128x512xbf16>, vector<8x512xf32> -> vector<8x512xf32>
    %563 = arith.addf %560, %562 : vector<8x512xf32>
    %564 = vector.extract_strided_slice %563 {offsets = [0, 0], sizes = [8, 128], strides = [1, 1]} : vector<8x512xf32> to vector<8x128xf32>
    %565 = arith.negf %564 : vector<8x128xf32>
    %566 = math.exp %565 : vector<8x128xf32>
    %cst_255 = arith.constant 1.000000e+00 : f32
    %567 = vector.broadcast %cst_255 : f32 to vector<8x128xf32>
    %568 = arith.addf %567, %566 : vector<8x128xf32>
    %569 = arith.divf %567, %568 : vector<8x128xf32>
    %570 = vector.extract_strided_slice %563 {offsets = [0, 128], sizes = [8, 128], strides = [1, 1]} : vector<8x512xf32> to vector<8x128xf32>
    %571 = arith.negf %570 : vector<8x128xf32>
    %572 = math.exp %571 : vector<8x128xf32>
    %cst_256 = arith.constant 1.000000e+00 : f32
    %573 = vector.broadcast %cst_256 : f32 to vector<8x128xf32>
    %574 = arith.addf %573, %572 : vector<8x128xf32>
    %575 = arith.divf %573, %574 : vector<8x128xf32>
    %576 = vector.extract_strided_slice %563 {offsets = [0, 256], sizes = [8, 128], strides = [1, 1]} : vector<8x512xf32> to vector<8x128xf32>
    %577 = math.tanh %576 : vector<8x128xf32>
    %578 = vector.extract_strided_slice %563 {offsets = [0, 384], sizes = [8, 128], strides = [1, 1]} : vector<8x512xf32> to vector<8x128xf32>
    %579 = arith.negf %578 : vector<8x128xf32>
    %580 = math.exp %579 : vector<8x128xf32>
    %cst_257 = arith.constant 1.000000e+00 : f32
    %581 = vector.broadcast %cst_257 : f32 to vector<8x128xf32>
    %582 = arith.addf %581, %580 : vector<8x128xf32>
    %583 = arith.divf %581, %582 : vector<8x128xf32>
    %c0_258 = arith.constant 0 : index
    %c0_259 = arith.constant 0 : index
    %584 = vector.load %arg12[%c0_258, %c0_259] : memref<8x128xf32, #tpu.memory_space<vmem>>, vector<8x128xf32>
    %585 = arith.mulf %575, %584 : vector<8x128xf32>
    %586 = arith.mulf %569, %577 : vector<8x128xf32>
    %587 = arith.addf %585, %586 : vector<8x128xf32>
    %588 = math.tanh %587 : vector<8x128xf32>
    %589 = arith.mulf %583, %588 : vector<8x128xf32>
    %590 = arith.truncf %589 : vector<8x128xf32> to vector<8x128xbf16>
    %c0_260 = arith.constant 0 : index
    %c0_261 = arith.constant 0 : index
    %591 = vector.load %arg12[%c0_260, %c0_261] : memref<8x128xf32, #tpu.memory_space<vmem>>, vector<8x128xf32>
    tpu.vector_store %arg12[%c0_260, %c0_261], %587 {strides = array<i32>} : memref<8x128xf32, #tpu.memory_space<vmem>>, vector<8x128xf32>,
    %c0_262 = arith.constant 0 : index
    %c0_263 = arith.constant 0 : index
    %592 = vector.load %arg11[%c0_262, %c0_263] : memref<8x128xbf16, #tpu.memory_space<vmem>>, vector<8x128xbf16>
    tpu.vector_store %arg11[%c0_262, %c0_263], %590 {strides = array<i32>} : memref<8x128xbf16, #tpu.memory_space<vmem>>, vector<8x128xbf16>,
    %593 = arith.index_cast %558 : i32 to index
    %c0_264 = arith.constant 0 : index
    %594 = vector.load %arg10[%593, %c0_264] : memref<64x128xbf16, #tpu.memory_space<vmem>>, vector<8x128xbf16>
    tpu.vector_store %arg10[%593, %c0_264], %590 {strides = array<i32>} : memref<64x128xbf16, #tpu.memory_space<vmem>>, vector<8x128xbf16>,
    %c7_i32_265 = arith.constant 7 : i32
    %c8_i32_266 = arith.constant 8 : i32
    %595 = arith.muli %c7_i32_265, %c8_i32_266 : i32
    %596 = tpu.assume_multiple %595, 8 : i32
    %597 = arith.index_cast %596 : i32 to index
    %c0_267 = arith.constant 0 : index
    %598 = vector.load %arg9[%597, %c0_267] : memref<64x512xf32, #tpu.memory_space<vmem>>, vector<8x512xf32>
    %c0_268 = arith.constant 0 : index
    %c0_269 = arith.constant 0 : index
    %599 = vector.load %arg11[%c0_268, %c0_269] : memref<8x128xbf16, #tpu.memory_space<vmem>>, vector<8x128xbf16>
    %cst_270 = arith.constant dense<0.000000e+00> : vector<8x512xf32>
    %600 = tpu.matmul %599, %318, %cst_270 {dimension_numbers = #tpu.dot_dimension_numbers<[1], [0], [0], [1], [0, 0, 1, 1], [], []>} : vector<8x128xbf16>, vector<128x512xbf16>, vector<8x512xf32> -> vector<8x512xf32>
    %601 = arith.addf %598, %600 : vector<8x512xf32>
    %602 = vector.extract_strided_slice %601 {offsets = [0, 0], sizes = [8, 128], strides = [1, 1]} : vector<8x512xf32> to vector<8x128xf32>
    %603 = arith.negf %602 : vector<8x128xf32>
    %604 = math.exp %603 : vector<8x128xf32>
    %cst_271 = arith.constant 1.000000e+00 : f32
    %605 = vector.broadcast %cst_271 : f32 to vector<8x128xf32>
    %606 = arith.addf %605, %604 : vector<8x128xf32>
    %607 = arith.divf %605, %606 : vector<8x128xf32>
    %608 = vector.extract_strided_slice %601 {offsets = [0, 128], sizes = [8, 128], strides = [1, 1]} : vector<8x512xf32> to vector<8x128xf32>
    %609 = arith.negf %608 : vector<8x128xf32>
    %610 = math.exp %609 : vector<8x128xf32>
    %cst_272 = arith.constant 1.000000e+00 : f32
    %611 = vector.broadcast %cst_272 : f32 to vector<8x128xf32>
    %612 = arith.addf %611, %610 : vector<8x128xf32>
    %613 = arith.divf %611, %612 : vector<8x128xf32>
    %614 = vector.extract_strided_slice %601 {offsets = [0, 256], sizes = [8, 128], strides = [1, 1]} : vector<8x512xf32> to vector<8x128xf32>
    %615 = math.tanh %614 : vector<8x128xf32>
    %616 = vector.extract_strided_slice %601 {offsets = [0, 384], sizes = [8, 128], strides = [1, 1]} : vector<8x512xf32> to vector<8x128xf32>
    %617 = arith.negf %616 : vector<8x128xf32>
    %618 = math.exp %617 : vector<8x128xf32>
    %cst_273 = arith.constant 1.000000e+00 : f32
    %619 = vector.broadcast %cst_273 : f32 to vector<8x128xf32>
    %620 = arith.addf %619, %618 : vector<8x128xf32>
    %621 = arith.divf %619, %620 : vector<8x128xf32>
    %c0_274 = arith.constant 0 : index
    %c0_275 = arith.constant 0 : index
    %622 = vector.load %arg12[%c0_274, %c0_275] : memref<8x128xf32, #tpu.memory_space<vmem>>, vector<8x128xf32>
    %623 = arith.mulf %613, %622 : vector<8x128xf32>
    %624 = arith.mulf %607, %615 : vector<8x128xf32>
    %625 = arith.addf %623, %624 : vector<8x128xf32>
    %626 = math.tanh %625 : vector<8x128xf32>
    %627 = arith.mulf %621, %626 : vector<8x128xf32>
    %628 = arith.truncf %627 : vector<8x128xf32> to vector<8x128xbf16>
    %c0_276 = arith.constant 0 : index
    %c0_277 = arith.constant 0 : index
    %629 = vector.load %arg12[%c0_276, %c0_277] : memref<8x128xf32, #tpu.memory_space<vmem>>, vector<8x128xf32>
    tpu.vector_store %arg12[%c0_276, %c0_277], %625 {strides = array<i32>} : memref<8x128xf32, #tpu.memory_space<vmem>>, vector<8x128xf32>,
    %c0_278 = arith.constant 0 : index
    %c0_279 = arith.constant 0 : index
    %630 = vector.load %arg11[%c0_278, %c0_279] : memref<8x128xbf16, #tpu.memory_space<vmem>>, vector<8x128xbf16>
    tpu.vector_store %arg11[%c0_278, %c0_279], %628 {strides = array<i32>} : memref<8x128xbf16, #tpu.memory_space<vmem>>, vector<8x128xbf16>,
    %631 = arith.index_cast %596 : i32 to index
    %c0_280 = arith.constant 0 : index
    %632 = vector.load %arg10[%631, %c0_280] : memref<64x128xbf16, #tpu.memory_space<vmem>>, vector<8x128xbf16>
    tpu.vector_store %arg10[%631, %c0_280], %628 {strides = array<i32>} : memref<64x128xbf16, #tpu.memory_space<vmem>>, vector<8x128xbf16>,
    %c8_i32_281 = arith.constant 8 : i32
    %c0_282 = arith.constant 0 : index
    %c0_283 = arith.constant 0 : index
    %633 = vector.load %arg10[%c0_282, %c0_283] : memref<64x128xbf16, #tpu.memory_space<vmem>>, vector<64x128xbf16>
    %c0_284 = arith.constant 0 : index
    %c0_285 = arith.constant 0 : index
    %c0_286 = arith.constant 0 : index
    %634 = vector.load %arg8[%c0_284, %c0_285, %c0_286] : memref<1x64x128xbf16, #tpu.memory_space<vmem>>, vector<1x64x128xbf16>
    %635 = vector.shape_cast %634 : vector<1x64x128xbf16> to vector<64x128xbf16>
    %636 = vector.shape_cast %633 : vector<64x128xbf16> to vector<1x64x128xbf16>
    tpu.vector_store %arg8[%c0_284, %c0_285, %c0_286], %636 {strides = array<i32>} : memref<1x64x128xbf16, #tpu.memory_space<vmem>>, vector<1x64x128xbf16>,
    return
  }
  func.func @transform_0(%arg0: i32) -> (i32, i32, i32) {
    %c0_i32 = arith.constant 0 : i32
    %c0_i32_0 = arith.constant 0 : i32
    %c0_i32_1 = arith.constant 0 : i32
    return %arg0, %c0_i32, %c0_i32_0 : i32, i32, i32
  }
  func.func @transform_1(%arg0: i32) -> (i32, i32) {
    %c0_i32 = arith.constant 0 : i32
    %c0_i32_0 = arith.constant 0 : i32
    %c0_i32_1 = arith.constant 0 : i32
    return %c0_i32, %c0_i32_0 : i32, i32
  }
  func.func @transform_2(%arg0: i32) -> (i32, i32) {
    %c0_i32 = arith.constant 0 : i32
    %c0_i32_0 = arith.constant 0 : i32
    %c0_i32_1 = arith.constant 0 : i32
    return %c0_i32, %c0_i32_0 : i32, i32
  }
  func.func @transform_3(%arg0: i32) -> (i32, i32) {
    %c0_i32 = arith.constant 0 : i32
    %c0_i32_0 = arith.constant 0 : i32
    %c0_i32_1 = arith.constant 0 : i32
    return %c0_i32, %c0_i32_0 : i32, i32
  }
  func.func @transform_4(%arg0: i32) -> (i32, i32) {
    %c0_i32 = arith.constant 0 : i32
    %c0_i32_0 = arith.constant 0 : i32
    %c0_i32_1 = arith.constant 0 : i32
    return %c0_i32, %c0_i32_0 : i32, i32
  }
  func.func @transform_5(%arg0: i32) -> (i32, i32) {
    %c0_i32 = arith.constant 0 : i32
    %c0_i32_0 = arith.constant 0 : i32
    %c0_i32_1 = arith.constant 0 : i32
    return %c0_i32, %c0_i32_0 : i32, i32
  }
  func.func @transform_6(%arg0: i32) -> (i32, i32) {
    %c0_i32 = arith.constant 0 : i32
    %c0_i32_0 = arith.constant 0 : i32
    %c0_i32_1 = arith.constant 0 : i32
    return %c0_i32, %c0_i32_0 : i32, i32
  }
  func.func @transform_7(%arg0: i32) -> (i32, i32, i32) {
    %c0_i32 = arith.constant 0 : i32
    %c0_i32_0 = arith.constant 0 : i32
    %c0_i32_1 = arith.constant 0 : i32
    return %arg0, %c0_i32, %c0_i32_0 : i32, i32, i32
  }
}

</mosaic_0001>

<bundles_post_ra>
// kernel: tpu_custom_call.1
= control target key start
LH: loop header
LB: loop body
LE: loop exit
PB: predicated region body
PF: predicated region fallthrough
CT: control target
= control target key end

     0   :  { %12 = vsyncpa [#allocation7], 0  ;;  %s5763_s0 = inlined_call_operand.hbm [shape: bf16[1,64,128], index: 0, kind: input, shape index: {}]   ;;  %s5764_s1 = inlined_call_operand.hbm [shape: bf16[128,512], index: 1, kind: input, shape index: {}]   ;;  %s5765_s2 = inlined_call_operand.hbm [shape: bf16[128,512], index: 2, kind: input, shape index: {}]   ;;  %s5766_s3 = inlined_call_operand.hbm [shape: bf16[128,512], index: 3, kind: input, shape index: {}]   ;;  %s5767_s4 = inlined_call_operand.hbm [shape: bf16[128,512], index: 4, kind: input, shape index: {}]   ;;  %s5768_s5 = inlined_call_operand.vmem [shape: f32[1,512], index: 5, kind: input, shape index: {}]   ;;  %s5769_s6 = inlined_call_operand.hbm [shape: f32[1,512], index: 6, kind: input, shape index: {}]   ;;  %s5770_s7 = inlined_call_operand.hbm [shape: bf16[1,64,128], index: 7, kind: output, shape index: {}]  }
   0x1   :  { %13 = vsyncpa [#allocation10], 0 }
   0x2   :  { %14 = vsyncpa [#allocation13], 0 }
   0x3   :  { %15 = vsyncpa [#allocation16], 0  ;;  %s34_s26 = sshll.u32 %s5764_s1, 4  ;;  %s35_s26 = int_to_ptr.hbm [resolvable:$true] %s34_s26 }
   0x4   :  { %16 = vsyncpa [#allocation8], 0  ;;  %s4586_s27 = smov [#allocation9]   ;;  %s60_s8 = sshll.u32 %s5766_s3, 4  ;;  %s61_s8 = int_to_ptr.hbm [resolvable:$true] %s60_s8 }
   0x5   :  { %s36_s28 = sshll.u32 %s4586_s27, 4  ;;  %s4587_s9 = smov 256   ;;  %s37_s28 = int_to_ptr.vmem [resolvable:$true] %s36_s28 }
   0x6   :  { %s4588_s10 = smov 16   ;;  %s4589_s11 = smov [#allocation12]  }
   0x7   :  { %42 = dma.hbm_to_vmem [thread:$0]  %s35_s26, 4096, %s37_s28, [#allocation10], %s4587_s9, %s4587_s9, %s4588_s10  }
   0x8   :  { %s62_s12 = sshll.u32 %s4589_s11, 4  ;;  %s21_s14 = sshll.u32 %s5763_s0, 4  ;;  %s63_s12 = int_to_ptr.vmem [resolvable:$true] %s62_s12  ;;  %s22_s14 = int_to_ptr.hbm [resolvable:$true] %s21_s14 }
   0x9   :  { %68 = dma.hbm_to_vmem [thread:$0]  %s61_s8, 4096, %s63_s12, [#allocation13], %s4587_s9, %s4587_s9, %s4588_s10  }
   0xa   :  { %s4590_s3 = smov [#allocation6]   ;;  %s47_s18 = sshll.u32 %s5765_s2, 4  ;;  %s48_s18 = int_to_ptr.hbm [resolvable:$true] %s47_s18 }
   0xb   :  { %s23_s15 = sshll.u32 %s4590_s3, 4  ;;  %s4591_s19 = smov 64   ;;  %s24_s15 = int_to_ptr.vmem [resolvable:$true] %s23_s15 }
   0xc   :  { %s4592_s20 = smov 4   ;;  %s4593_s0 = smov [#allocation11]  }
   0xd   :  { %29 = dma.hbm_to_vmem [thread:$0]  %s22_s14, 512, %s24_s15, [#allocation7], %s4591_s19, %s4591_s19, %s4592_s20  }
   0xe   :  { %s49_s21 = sshll.u32 %s4593_s0, 4  ;;  %s73_s24 = sshll.u32 %s5767_s4, 4  ;;  %s50_s21 = int_to_ptr.vmem [resolvable:$true] %s49_s21  ;;  %s74_s24 = int_to_ptr.hbm [resolvable:$true] %s73_s24 }
   0xf   :  { %55 = dma.hbm_to_vmem [thread:$0]  %s48_s18, 4096, %s50_s21, [#allocation10], %s4587_s9, %s4587_s9, %s4588_s10  }
  0x10   :  { %s89_s26 = sshll.u32 %s5769_s6, 4  ;;  %s4594_s27 = smov [#allocation14]   ;;  %s90_s26 = int_to_ptr.hbm [resolvable:$true] %s89_s26 }
  0x11   :  { %s75_s28 = sshll.u32 %s4594_s27, 4  ;;  %s4595_s29 = smov [#allocation15]   ;;  %s76_s28 = int_to_ptr.vmem [resolvable:$true] %s75_s28 }
  0x12   :  { %81 = dma.hbm_to_vmem [thread:$0]  %s74_s24, 4096, %s76_s28, [#allocation13], %s4587_s9, %s4587_s9, %s4588_s10  }
  0x13   :  { %s91_s4 = sshll.u32 %s4595_s29, 4  ;;  %s92_s4 = int_to_ptr.vmem [resolvable:$true] %s91_s4 }
  0x14   :  { %94 = dma.hbm_to_vmem [thread:$0]  %s90_s26, 64, %s92_s4, [#allocation16]  }
  0x15   :  { %4576 = dma.done.wait [#allocation7], 512  }
  0x16   :  { %4577 = vsyncadd [#allocation7], 4294966784 }
  0x17   :  { %4578 = dma.done.wait [#allocation10], 8192  }
  0x18   :  { %4579 = vsyncadd [#allocation10], 4294959104 }
  0x19   :  { %4580 = dma.done.wait [#allocation13], 8192  }
  0x1a   :  { %4581 = vsyncadd [#allocation13], 4294959104 }
  0x1b   :  { %4582 = dma.done.wait [#allocation16], 64  }
  0x1c   :  { %4583 = vsyncadd [#allocation16], 4294967232  ;;  %v3542_v0 = vld [vmem:[#allocation9 + $0xe0] sm:$0xf]  ;;  %v4038_v1 = vld [vmem:[#allocation9 + $0xec] sm:$0xf0] }
  0x1d   :  { %v4036_v2 = vld [vmem:[#allocation9 + $0xe4] sm:$0xf]  ;;  %v3543_v3 = vor.u32 %v4038_v1, %v3542_v0  ;;  %v3544_v4 = vld [vmem:[#allocation9 + $0xf0] sm:$0xf0]  ;;  %v3550_v5 = vld [vmem:[#allocation9 + $0xe8] sm:$0xf] }
  0x1e   :  { %v4039_v6 = vld [vmem:[#allocation9 + $0xf4] sm:$0xf0]  ;;  %v3547_v7 = vor.u32 %v4036_v2, %v3544_v4  ;;  %v4037_v9 = vld [vmem:[#allocation9 + $0xec] sm:$0xf]  ;;  %v3552_v10 = vld [vmem:[#allocation9 + $0xf8] sm:$0xf0] }
  0x1f   :  { %v3551_v8 = vor.u32 %v4039_v6, %v3550_v5  ;;  %v3526_v11 = vld [vmem:[#allocation9 + $0xc0] sm:$0xf]  ;;  %386 = vmatpush.bf16.msra.mxu0 %v3543_v3  ;;  %v3555_v12 = vor.u32 %v4037_v9, %v3552_v10  ;;  %v4034_v13 = vld [vmem:[#allocation9 + $0xcc] sm:$0xf0]  ;;  %v4032_v14 = vld [vmem:[#allocation9 + $0xc4] sm:$0xf] }
  0x20   :  { %v3528_v15 = vld [vmem:[#allocation9 + $0xd0] sm:$0xf0]  ;;  %415 = vmatpush.bf16.msra.mxu1 %v3547_v7  ;;  %v3527_v16 = vor.u32 %v4034_v13, %v3526_v11  ;;  %v3534_v18 = vld [vmem:[#allocation9 + $0xc8] sm:$0xf]  ;;  %v4035_v19 = vld [vmem:[#allocation9 + $0xd4] sm:$0xf0] }
  0x21   :  { %444 = vmatpush.bf16.msra.mxu2 %v3551_v8  ;;  %v3531_v17 = vor.u32 %v4032_v14, %v3528_v15  ;;  %v4033_v20 = vld [vmem:[#allocation9 + $0xcc] sm:$0xf]  ;;  %473 = vmatpush.bf16.msra.mxu3 %v3555_v12  ;;  %v3535_v21 = vor.u32 %v4035_v19, %v3534_v18  ;;  %v3536_v22 = vld [vmem:[#allocation9 + $0xd8] sm:$0xf0]  ;;  %v3510_v23 = vld [vmem:[#allocation9 + $0xa0] sm:$0xf] }
  0x22   :  { %v4030_v24 = vld [vmem:[#allocation9 + $0xac] sm:$0xf0]  ;;  %v3539_v25 = vor.u32 %v4033_v20, %v3536_v22  ;;  %v4028_v26 = vld [vmem:[#allocation9 + $0xa4] sm:$0xf]  ;;  %v3512_v27 = vld [vmem:[#allocation9 + $0xb0] sm:$0xf0] }
  0x23   :  { %v3518_v28 = vld [vmem:[#allocation9 + $0xa8] sm:$0xf]  ;;  %387 = vmatpush.bf16.msra.mxu0 %v3527_v16  ;;  %v3511_v29 = vor.u32 %v4030_v24, %v3510_v23  ;;  %v4031_v30 = vld [vmem:[#allocation9 + $0xb4] sm:$0xf0]  ;;  %v4029_v31 = vld [vmem:[#allocation9 + $0xac] sm:$0xf]  ;;  %v3515_v33 = vor.u32 %v4028_v26, %v3512_v27 }
  0x24   :  { %v3520_v32 = vld [vmem:[#allocation9 + $0xb8] sm:$0xf0]  ;;  %416 = vmatpush.bf16.msra.mxu1 %v3531_v17  ;;  %v3519_v34 = vor.u32 %v4031_v30, %v3518_v28  ;;  %v3494_v35 = vld [vmem:[#allocation9 + $0x80] sm:$0xf]  ;;  %v4026_v36 = vld [vmem:[#allocation9 + $0x8c] sm:$0xf0] }
  0x25   :  { %445 = vmatpush.bf16.msra.mxu2 %v3535_v21  ;;  %v4024_v37 = vld [vmem:[#allocation9 + $0x84] sm:$0xf]  ;;  %474 = vmatpush.bf16.msra.mxu3 %v3539_v25  ;;  %v3523_v38 = vor.u32 %v4029_v31, %v3520_v32  ;;  %v3496_v39 = vld [vmem:[#allocation9 + $0x90] sm:$0xf0]  ;;  %v3502_v40 = vld [vmem:[#allocation9 + $0x88] sm:$0xf]  ;;  %v3495_v44 = vor.u32 %v4026_v36, %v3494_v35 }
  0x26   :  { %v4027_v41 = vld [vmem:[#allocation9 + $0x94] sm:$0xf0]  ;;  %v4025_v42 = vld [vmem:[#allocation9 + $0x8c] sm:$0xf]  ;;  %v3504_v43 = vld [vmem:[#allocation9 + $0x98] sm:$0xf0]  ;;  %v3499_v45 = vor.u32 %v4024_v37, %v3496_v39 }
  0x27   :  { %388 = vmatpush.bf16.msra.mxu0 %v3511_v29  ;;  %v3503_v46 = vor.u32 %v4027_v41, %v3502_v40  ;;  %v3478_v47 = vld [vmem:[#allocation9 + $0x60] sm:$0xf]  ;;  %v4022_v48 = vld [vmem:[#allocation9 + $0x6c] sm:$0xf0]  ;;  %v4020_v49 = vld [vmem:[#allocation9 + $0x64] sm:$0xf]  ;;  %v3507_v50 = vor.u32 %v4025_v42, %v3504_v43 }
  0x28   :  { %417 = vmatpush.bf16.msra.mxu1 %v3515_v33  ;;  %v3480_v51 = vld [vmem:[#allocation9 + $0x70] sm:$0xf0]  ;;  %v3486_v52 = vld [vmem:[#allocation9 + $0x68] sm:$0xf]  ;;  %v4023_v53 = vld [vmem:[#allocation9 + $0x74] sm:$0xf0]  ;;  %v3479_v56 = vor.u32 %v4022_v48, %v3478_v47 }
  0x29   :  { %446 = vmatpush.bf16.msra.mxu2 %v3519_v34  ;;  %475 = vmatpush.bf16.msra.mxu3 %v3523_v38  ;;  %v4021_v54 = vld [vmem:[#allocation9 + $0x6c] sm:$0xf]  ;;  %v3488_v55 = vld [vmem:[#allocation9 + $0x78] sm:$0xf0]  ;;  %v3483_v57 = vor.u32 %v4020_v49, %v3480_v51  ;;  %v3487_v58 = vor.u32 %v4023_v53, %v3486_v52  ;;  %v3462_v59 = vld [vmem:[#allocation9 + $0x40] sm:$0xf] }
  0x2a   :  { %v4018_v60 = vld [vmem:[#allocation9 + $0x4c] sm:$0xf0]  ;;  %v4016_v61 = vld [vmem:[#allocation9 + $0x44] sm:$0xf]  ;;  %v3491_v62 = vor.u32 %v4021_v54, %v3488_v55  ;;  %v3464_v63 = vld [vmem:[#allocation9 + $0x50] sm:$0xf0] }
  0x2b   :  { %389 = vmatpush.bf16.msra.mxu0 %v3495_v44  ;;  %v3470_v0 = vld [vmem:[#allocation9 + $0x48] sm:$0xf]  ;;  %v4019_v1 = vld [vmem:[#allocation9 + $0x54] sm:$0xf0]  ;;  %v4017_v2 = vld [vmem:[#allocation9 + $0x4c] sm:$0xf]  ;;  %v3463_v4 = vor.u32 %v4018_v60, %v3462_v59  ;;  %v3467_v5 = vor.u32 %v4016_v61, %v3464_v63 }
  0x2c   :  { %418 = vmatpush.bf16.msra.mxu1 %v3499_v45  ;;  %v3472_v3 = vld [vmem:[#allocation9 + $0x58] sm:$0xf0]  ;;  %v3471_v6 = vor.u32 %v4019_v1, %v3470_v0  ;;  %v3446_v7 = vld [vmem:[#allocation9 + $0x20] sm:$0xf]  ;;  %v4014_v8 = vld [vmem:[#allocation9 + $0x2c] sm:$0xf0] }
  0x2d   :  { %447 = vmatpush.bf16.msra.mxu2 %v3503_v46  ;;  %476 = vmatpush.bf16.msra.mxu3 %v3507_v50  ;;  %v4012_v9 = vld [vmem:[#allocation9 + $0x24] sm:$0xf]  ;;  %v3475_v10 = vor.u32 %v4017_v2, %v3472_v3  ;;  %v3448_v11 = vld [vmem:[#allocation9 + $0x30] sm:$0xf0]  ;;  %v3454_v12 = vld [vmem:[#allocation9 + $0x28] sm:$0xf]  ;;  %v3447_v16 = vor.u32 %v4014_v8, %v3446_v7 }
  0x2e   :  { %v4015_v13 = vld [vmem:[#allocation9 + $0x34] sm:$0xf0]  ;;  %v4013_v14 = vld [vmem:[#allocation9 + $0x2c] sm:$0xf]  ;;  %v3456_v15 = vld [vmem:[#allocation9 + $0x38] sm:$0xf0]  ;;  %v3451_v18 = vor.u32 %v4012_v9, %v3448_v11 }
  0x2f   :  { %390 = vmatpush.bf16.msra.mxu0 %v3479_v56  ;;  %v3430_v17 = vld [vmem:[#allocation9] sm:$0xf]  ;;  %v3455_v19 = vor.u32 %v4015_v13, %v3454_v12  ;;  %v4010_v20 = vld [vmem:[#allocation9 + $0xc] sm:$0xf0]  ;;  %v4008_v21 = vld [vmem:[#allocation9 + $0x4] sm:$0xf]  ;;  %v3459_v23 = vor.u32 %v4013_v14, %v3456_v15 }
  0x30   :  { %419 = vmatpush.bf16.msra.mxu1 %v3483_v57  ;;  %v3432_v22 = vld [vmem:[#allocation9 + $0x10] sm:$0xf0]  ;;  %v3438_v24 = vld [vmem:[#allocation9 + $0x8] sm:$0xf]  ;;  %v4011_v25 = vld [vmem:[#allocation9 + $0x14] sm:$0xf0]  ;;  %v3431_v30 = vor.u32 %v4010_v20, %v3430_v17 }
  0x31   :  { %448 = vmatpush.bf16.msra.mxu2 %v3487_v58  ;;  %477 = vmatpush.bf16.msra.mxu3 %v3491_v62  ;;  %v4009_v26 = vld [vmem:[#allocation9 + $0xc] sm:$0xf]  ;;  %v3440_v27 = vld [vmem:[#allocation9 + $0x18] sm:$0xf0]  ;;  %v3670_v28 = vld [vmem:[#allocation12 + $0xe0] sm:$0xf]  ;;  %v3435_v33 = vor.u32 %v4008_v21, %v3432_v22  ;;  %v3439_v34 = vor.u32 %v4011_v25, %v3438_v24 }
  0x32   :  { %v4070_v29 = vld [vmem:[#allocation12 + $0xec] sm:$0xf0]  ;;  %v4068_v31 = vld [vmem:[#allocation12 + $0xe4] sm:$0xf]  ;;  %v3672_v32 = vld [vmem:[#allocation12 + $0xf0] sm:$0xf0]  ;;  %v3443_v36 = vor.u32 %v4009_v26, %v3440_v27 }
  0x33   :  { %391 = vmatpush.bf16.msra.mxu0 %v3463_v4  ;;  %v4004_v35 = vld [vmem:[#allocation6] sm:$0xff]  ;;  %v4671_v37 = vor.u32 %v4070_v29, %v3670_v28  ;;  %v4069_v38 = vld [vmem:[#allocation12 + $0xec] sm:$0xf]  ;;  %v3678_v39 = vld [vmem:[#allocation12 + $0xe8] sm:$0xf]  ;;  %v4673_v41 = vor.u32 %v4068_v31, %v3672_v32  ;;  %s3389_s11 = sshll.u32 %s5770_s7, 4  ;;  %s3390_s11 = int_to_ptr.hbm [resolvable:$true] %s3389_s11 }
  0x34   :  { %420 = vmatpush.bf16.msra.mxu1 %v3467_v5  ;;  %v4071_v40 = vld [vmem:[#allocation12 + $0xf4] sm:$0xf0]  ;;  %v3680_v42 = vld [vmem:[#allocation12 + $0xf8] sm:$0xf0]  ;;  %v3654_v43 = vld [vmem:[#allocation12 + $0xc0] sm:$0xf] }
  0x35   :  { %449 = vmatpush.bf16.msra.mxu2 %v3471_v6  ;;  %478 = vmatpush.bf16.msra.mxu3 %v3475_v10  ;;  %v4066_v44 = vld [vmem:[#allocation12 + $0xcc] sm:$0xf0]  ;;  %v4064_v45 = vld [vmem:[#allocation12 + $0xc4] sm:$0xf]  ;;  %v3656_v46 = vld [vmem:[#allocation12 + $0xd0] sm:$0xf0]  ;;  %v4675_v47 = vor.u32 %v4071_v40, %v3678_v39  ;;  %v4678_v48 = vor.u32 %v4069_v38, %v3680_v42 }
  0x36   :  { %v4680_v49 = vor.u32 %v4066_v44, %v3654_v43  ;;  %v4065_v50 = vld [vmem:[#allocation12 + $0xcc] sm:$0xf]  ;;  %v3662_v51 = vld [vmem:[#allocation12 + $0xc8] sm:$0xf]  ;;  %v4067_v52 = vld [vmem:[#allocation12 + $0xd4] sm:$0xf0]  ;;  %v4683_v53 = vor.u32 %v4064_v45, %v3656_v46 }
  0x37   :  { %392 = vmatpush.bf16.msra.mxu0 %v3447_v16  ;;  %v3664_v54 = vld [vmem:[#allocation12 + $0xd8] sm:$0xf0]  ;;  %v3638_v55 = vld [vmem:[#allocation12 + $0xa0] sm:$0xf]  ;;  %v4062_v56 = vld [vmem:[#allocation12 + $0xac] sm:$0xf0]  ;;  %v4686_v59 = vor.u32 %v4067_v52, %v3662_v51 }
  0x38   :  { %421 = vmatpush.bf16.msra.mxu1 %v3451_v18  ;;  %v4060_v57 = vld [vmem:[#allocation12 + $0xa4] sm:$0xf]  ;;  %v3640_v58 = vld [vmem:[#allocation12 + $0xb0] sm:$0xf0]  ;;  %v4690_v60 = vor.u32 %v4065_v50, %v3664_v54  ;;  %v4692_v61 = vor.u32 %v4062_v56, %v3638_v55  ;;  %v4061_v62 = vld [vmem:[#allocation12 + $0xac] sm:$0xf] }
  0x39   :  { %450 = vmatpush.bf16.msra.mxu2 %v3455_v19  ;;  %479 = vmatpush.bf16.msra.mxu3 %v3459_v23  ;;  %v3646_v63 = vld [vmem:[#allocation12 + $0xa8] sm:$0xf]  ;;  %v4063_v0 = vld [vmem:[#allocation12 + $0xb4] sm:$0xf0]  ;;  %v4695_v1 = vor.u32 %v4060_v57, %v3640_v58  ;;  %v3648_v2 = vld [vmem:[#allocation12 + $0xb8] sm:$0xf0] }
  0x3a   :  { %v3622_v3 = vld [vmem:[#allocation12 + $0x80] sm:$0xf]  ;;  %v4058_v4 = vld [vmem:[#allocation12 + $0x8c] sm:$0xf0]  ;;  %v4056_v5 = vld [vmem:[#allocation12 + $0x84] sm:$0xf]  ;;  %v4698_v7 = vor.u32 %v4063_v0, %v3646_v63  ;;  %v4702_v8 = vor.u32 %v4061_v62, %v3648_v2 }
  0x3b   :  { %393 = vmatpush.bf16.msra.mxu0 %v3431_v30  ;;  %v3624_v6 = vld [vmem:[#allocation12 + $0x90] sm:$0xf0]  ;;  %v4704_v9 = vor.u32 %v4058_v4, %v3622_v3  ;;  %v4057_v10 = vld [vmem:[#allocation12 + $0x8c] sm:$0xf]  ;;  %v3630_v11 = vld [vmem:[#allocation12 + $0x88] sm:$0xf] }
  0x3c   :  { %422 = vmatpush.bf16.msra.mxu1 %v3435_v33  ;;  %v4059_v12 = vld [vmem:[#allocation12 + $0x94] sm:$0xf0]  ;;  %v4707_v13 = vor.u32 %v4056_v5, %v3624_v6  ;;  %v3632_v14 = vld [vmem:[#allocation12 + $0x98] sm:$0xf0]  ;;  %v3606_v15 = vld [vmem:[#allocation12 + $0x60] sm:$0xf] }
  0x3d   :  { %451 = vmatpush.bf16.msra.mxu2 %v3439_v34  ;;  %480 = vmatpush.bf16.msra.mxu3 %v3443_v36  ;;  %v4054_v16 = vld [vmem:[#allocation12 + $0x6c] sm:$0xf0]  ;;  %v4052_v17 = vld [vmem:[#allocation12 + $0x64] sm:$0xf]  ;;  %v3608_v18 = vld [vmem:[#allocation12 + $0x70] sm:$0xf0]  ;;  %v4710_v20 = vor.u32 %v4059_v12, %v3630_v11  ;;  %v4714_v21 = vor.u32 %v4057_v10, %v3632_v14 }
  0x3e   :  { %394 = vmatmul.bf16.vlgmr.msra.gmra.mxu0 %v4004_v35  ;;  %v4005_v19 = vld [vmem:[#allocation6 + $0x8] sm:$0xff]  ;;  %v4716_v22 = vor.u32 %v4054_v16, %v3606_v15  ;;  %v4055_v25 = vld [vmem:[#allocation12 + $0x74] sm:$0xf0]  ;;  %v4719_v26 = vor.u32 %v4052_v17, %v3608_v18  ;;  %v3616_v27 = vld [vmem:[#allocation12 + $0x78] sm:$0xf0]  ;;  %v5771_v14 = vmov 0  }
  0x3f   :  { %704 = vmatpush.bf16.msrb.mxu0 %v4671_v37  ;;  %423 = vmatmul.bf16.vlgmr.msra.gmra.mxu1 %v4004_v35  ;;  %v4053_v23 = vld [vmem:[#allocation12 + $0x6c] sm:$0xf]  ;;  %v3614_v24 = vld [vmem:[#allocation12 + $0x68] sm:$0xf]  ;;  %v3590_v28 = vld [vmem:[#allocation12 + $0x40] sm:$0xf] }
  0x40   :  { %717 = vmatpush.bf16.msrb.mxu1 %v4673_v41  ;;  %452 = vmatmul.bf16.vlgmr.msra.gmra.mxu2 %v4004_v35  ;;  %v4050_v29 = vld [vmem:[#allocation12 + $0x4c] sm:$0xf0]  ;;  %v4048_v30 = vld [vmem:[#allocation12 + $0x44] sm:$0xf]  ;;  %v3592_v31 = vld [vmem:[#allocation12 + $0x50] sm:$0xf0]  ;;  %v4722_v32 = vor.u32 %v4055_v25, %v3614_v24  ;;  %v4726_v33 = vor.u32 %v4053_v23, %v3616_v27 }
  0x41   :  { %481 = vmatmul.bf16.vlgmr.msra.gmra.mxu3 %v4004_v35  ;;  %730 = vmatpush.bf16.msrb.mxu2 %v4675_v47  ;;  %v4728_v34 = vor.u32 %v4050_v29, %v3590_v28  ;;  %v4731_v35 = vor.u32 %v4048_v30, %v3592_v31  ;;  %v4049_v36 = vld [vmem:[#allocation12 + $0x4c] sm:$0xf]  ;;  %v3600_v38 = vld [vmem:[#allocation12 + $0x58] sm:$0xf0]  ;;  %v3574_v39 = vld [vmem:[#allocation12 + $0x20] sm:$0xf] }
  0x42   :  { %743 = vmatpush.bf16.msrb.mxu3 %v4678_v48  ;;  %v4046_v40 = vld [vmem:[#allocation12 + $0x2c] sm:$0xf0]  ;;  %v4044_v42 = vld [vmem:[#allocation12 + $0x24] sm:$0xf]  ;;  %v4736_v43 = vor.u32 %v4049_v36, %v3600_v38  ;;  %v3576_v45 = vld [vmem:[#allocation12 + $0x30] sm:$0xf0] }
  0x43   :  { %705 = vmatpush.bf16.msrb.mxu0 %v4680_v49  ;;  %v4738_v44 = vor.u32 %v4046_v40, %v3574_v39  ;;  %v3598_v46 = vld [vmem:[#allocation12 + $0x48] sm:$0xf]  ;;  %v4051_v50 = vld [vmem:[#allocation12 + $0x54] sm:$0xf0]  ;;  %v4741_v51 = vor.u32 %v4044_v42, %v3576_v45  ;;  %v4045_v54 = vld [vmem:[#allocation12 + $0x2c] sm:$0xf] }
  0x44   :  { %718 = vmatpush.bf16.msrb.mxu1 %v4683_v53  ;;  %v4743_v52 = vor.u32 %v4051_v50, %v3598_v46  ;;  %v3584_v55 = vld [vmem:[#allocation12 + $0x38] sm:$0xf0]  ;;  %v3558_v56 = vld [vmem:[#allocation12] sm:$0xf]  ;;  %v4042_v57 = vld [vmem:[#allocation12 + $0xc] sm:$0xf0] }
  0x45   :  { %731 = vmatpush.bf16.msrb.mxu2 %v4686_v59  ;;  %v4040_v58 = vld [vmem:[#allocation12 + $0x4] sm:$0xf]  ;;  %v3560_v62 = vld [vmem:[#allocation12 + $0x10] sm:$0xf0]  ;;  %v3582_v63 = vld [vmem:[#allocation12 + $0x28] sm:$0xf]  ;;  %v4748_v2 = vor.u32 %v4045_v54, %v3584_v55  ;;  %v4750_v3 = vor.u32 %v4042_v57, %v3558_v56 }
  0x46   :  { %744 = vmatpush.bf16.msrb.mxu3 %v4690_v60  ;;  %v4047_v0 = vld [vmem:[#allocation12 + $0x34] sm:$0xf0]  ;;  %v3566_v5 = vld [vmem:[#allocation12 + $0x8] sm:$0xf]  ;;  %v4755_v10 = vor.u32 %v4040_v58, %v3560_v62  ;;  %v4041_v11 = vld [vmem:[#allocation12 + $0xc] sm:$0xf] }
  0x47   :  { %706 = vmatpush.bf16.msrb.mxu0 %v4692_v61  ;;  %v4752_v4 = vor.u32 %v4047_v0, %v3582_v63  ;;  %v4043_v6 = vld [vmem:[#allocation12 + $0x14] sm:$0xf0]  ;;  %v3568_v12 = vld [vmem:[#allocation12 + $0x18] sm:$0xf0]  ;;  %534 = vst [vmem:[#allocation4] sm:$0xf] %v5771_v14 }
  0x48   :  { %719 = vmatpush.bf16.msrb.mxu1 %v4695_v1  ;;  %v4759_v15 = vor.u32 %v4043_v6, %v3566_v5  ;;  %v4763_v16 = vor.u32 %v4041_v11, %v3568_v12  ;;  %v4006_v17 = vld [vmem:[#allocation6 + $0x10] sm:$0xff]  ;;  %v4007_v18 = vld [vmem:[#allocation6 + $0x18] sm:$0xff] }
  0x49   :  { %732 = vmatpush.bf16.msrb.mxu2 %v4698_v7  ;;  %v192_v30 = vld [vmem:[%s5768_s5] sm:$0xf]  ;;  %s4597_s5 = smov [#allocation17]  }
  0x4a   :  { %745 = vmatpush.bf16.msrb.mxu3 %v4702_v8  ;;  %v4841_v31 = vperm.slane %v192_v30, 0  ;;  %v4845_v38 = vperm.slane %v192_v30, 1  ;;  %v4855_v50 = vperm.slane %v192_v30, 2  ;;  %v4857_v54 = vperm.slane %v192_v30, 3  ;;  %s3387_s8 = sshll.u32 %s4597_s5, 4  ;;  %s3388_s8 = int_to_ptr.vmem [resolvable:$true] %s3387_s8 }
  0x4b   :  { %707 = vmatpush.bf16.msrb.mxu0 %v4704_v9 }
  0x4c   :  { %720 = vmatpush.bf16.msrb.mxu1 %v4707_v13 }
  0x4d   :  { %733 = vmatpush.bf16.msrb.mxu2 %v4710_v20 }
  0x4e   :  { %746 = vmatpush.bf16.msrb.mxu3 %v4714_v21  ;;  %399 = vmatmul.bf16.gmra.mxu0 %v4005_v19 }
  0x4f   :  { %708 = vmatpush.bf16.msrb.mxu0 %v4716_v22  ;;  %428 = vmatmul.bf16.gmra.mxu1 %v4005_v19 }
  0x50   :  { %721 = vmatpush.bf16.msrb.mxu1 %v4719_v26  ;;  %457 = vmatmul.bf16.gmra.mxu2 %v4005_v19 }
  0x51   :  { %486 = vmatmul.bf16.gmra.mxu3 %v4005_v19  ;;  %734 = vmatpush.bf16.msrb.mxu2 %v4722_v32  ;;  %v543_v19 = vld [vmem:[#allocation4] sm:$0xf] }
  0x52   :  { %747 = vmatpush.bf16.msrb.mxu3 %v4726_v33 }
  0x53   :  { %709 = vmatpush.bf16.msrb.mxu0 %v4728_v34 }
  0x54   :  { %722 = vmatpush.bf16.msrb.mxu1 %v4731_v35 }
  0x55   :  { %735 = vmatpush.bf16.msrb.mxu2 %v4743_v52 }
  0x56   :  { %748 = vmatpush.bf16.msrb.mxu3 %v4736_v43 }
  0x57   :  { %710 = vmatpush.bf16.msrb.mxu0 %v4738_v44 }
  0x58   :  { %723 = vmatpush.bf16.msrb.mxu1 %v4741_v51 }
  0x59   :  { %736 = vmatpush.bf16.msrb.mxu2 %v4752_v4 }
  0x5a   :  { %749 = vmatpush.bf16.msrb.mxu3 %v4748_v2 }
  0x5b   :  { %711 = vmatpush.bf16.msrb.mxu0 %v4750_v3 }
  0x5c   :  { %724 = vmatpush.bf16.msrb.mxu1 %v4755_v10 }
  0x5d   :  { %737 = vmatpush.bf16.msrb.mxu2 %v4759_v15 }
  0x5e   :  { %750 = vmatpush.bf16.msrb.mxu3 %v4763_v16  ;;  %404 = vmatmul.bf16.gmra.mxu0 %v4006_v17 }
  0x5f   :  { %836 = vmatpush.bf16.msra.mxu0 %v4671_v37  ;;  %433 = vmatmul.bf16.gmra.mxu1 %v4006_v17 }
  0x60   :  { %849 = vmatpush.bf16.msra.mxu1 %v4673_v41  ;;  %462 = vmatmul.bf16.gmra.mxu2 %v4006_v17 }
  0x61   :  { %862 = vmatpush.bf16.msra.mxu2 %v4675_v47  ;;  %491 = vmatmul.bf16.gmra.mxu3 %v4006_v17 }
  0x62   :  { %875 = vmatpush.bf16.msra.mxu3 %v4678_v48 }
  0x63   :  { %837 = vmatpush.bf16.msra.mxu0 %v4680_v49 }
  0x64   :  { %850 = vmatpush.bf16.msra.mxu1 %v4683_v53 }
  0x65   :  { %863 = vmatpush.bf16.msra.mxu2 %v4686_v59 }
  0x66   :  { %876 = vmatpush.bf16.msra.mxu3 %v4690_v60 }
  0x67   :  { %838 = vmatpush.bf16.msra.mxu0 %v4692_v61 }
  0x68   :  { %851 = vmatpush.bf16.msra.mxu1 %v4695_v1 }
  0x69   :  { %864 = vmatpush.bf16.msra.mxu2 %v4698_v7 }
  0x6a   :  { %877 = vmatpush.bf16.msra.mxu3 %v4702_v8 }
  0x6b   :  { %839 = vmatpush.bf16.msra.mxu0 %v4704_v9 }
  0x6c   :  { %852 = vmatpush.bf16.msra.mxu1 %v4707_v13 }
  0x6d   :  { %865 = vmatpush.bf16.msra.mxu2 %v4710_v20 }
  0x6e   :  { %878 = vmatpush.bf16.msra.mxu3 %v4714_v21  ;;  %409 = vmatmul.bf16.gmra.mxu0 %v4007_v18 }
  0x6f   :  { %840 = vmatpush.bf16.msra.mxu0 %v4716_v22  ;;  %438 = vmatmul.bf16.gmra.mxu1 %v4007_v18 }
  0x70   :  { %853 = vmatpush.bf16.msra.mxu1 %v4719_v26  ;;  %467 = vmatmul.bf16.gmra.mxu2 %v4007_v18 }
  0x71   :  { %866 = vmatpush.bf16.msra.mxu2 %v4722_v32  ;;  %496 = vmatmul.bf16.gmra.mxu3 %v4007_v18 }
  0x72   :  { %879 = vmatpush.bf16.msra.mxu3 %v4726_v33 }
  0x73   :  { %841 = vmatpush.bf16.msra.mxu0 %v4728_v34 }
  0x74   :  { %854 = vmatpush.bf16.msra.mxu1 %v4731_v35 }
  0x75   :  { %867 = vmatpush.bf16.msra.mxu2 %v4743_v52 }
  0x76   :  { %880 = vmatpush.bf16.msra.mxu3 %v4736_v43 }
  0x77   :  { %842 = vmatpush.bf16.msra.mxu0 %v4738_v44 }
  0x78   :  { %855 = vmatpush.bf16.msra.mxu1 %v4741_v51 }
  0x79   :  { %868 = vmatpush.bf16.msra.mxu2 %v4752_v4 }
  0x7a   :  { %881 = vmatpush.bf16.msra.mxu3 %v4748_v2 }
  0x7b   :  { %843 = vmatpush.bf16.msra.mxu0 %v4750_v3 }
  0x7c   :  { %856 = vmatpush.bf16.msra.mxu1 %v4755_v10 }
  0x7d   :  { %869 = vmatpush.bf16.msra.mxu2 %v4759_v15 }
  0x7e   :  { %882 = vmatpush.bf16.msra.mxu3 %v4763_v16  ;;  %712 = vmatmul.bf16.vlgmr.msrb.gmra.mxu0 %v543_v19 }
  0x7f   :  { %725 = vmatmul.bf16.vlgmr.msrb.gmra.mxu1 %v543_v19  ;;  %969 = vmatpush.bf16.msrb.mxu0 %v4671_v37 }
  0x80   :  { %738 = vmatmul.bf16.vlgmr.msrb.gmra.mxu2 %v543_v19  ;;  %982 = vmatpush.bf16.msrb.mxu1 %v4673_v41 }
  0x81   :  { %751 = vmatmul.bf16.vlgmr.msrb.gmra.mxu3 %v543_v19  ;;  %995 = vmatpush.bf16.msrb.mxu2 %v4675_v47 }
  0x82   :  { %1008 = vmatpush.bf16.msrb.mxu3 %v4678_v48 }
  0x83   :  { %970 = vmatpush.bf16.msrb.mxu0 %v4680_v49 }
  0x84   :  { %983 = vmatpush.bf16.msrb.mxu1 %v4683_v53 }
  0x85   :  { %996 = vmatpush.bf16.msrb.mxu2 %v4686_v59 }
  0x86   :  { %1009 = vmatpush.bf16.msrb.mxu3 %v4690_v60 }
  0x87   :  { %971 = vmatpush.bf16.msrb.mxu0 %v4692_v61 }
  0x88   :  { %984 = vmatpush.bf16.msrb.mxu1 %v4695_v1 }
  0x89   :  { %997 = vmatpush.bf16.msrb.mxu2 %v4698_v7 }
  0x8a   :  { %1010 = vmatpush.bf16.msrb.mxu3 %v4702_v8 }
  0x8b   :  { %972 = vmatpush.bf16.msrb.mxu0 %v4704_v9 }
  0x8c   :  { %985 = vmatpush.bf16.msrb.mxu1 %v4707_v13 }
  0x8d   :  { %998 = vmatpush.bf16.msrb.mxu2 %v4710_v20 }
  0x8e   :  { %1011 = vmatpush.bf16.msrb.mxu3 %v4714_v21 }
  0x8f   :  { %973 = vmatpush.bf16.msrb.mxu0 %v4716_v22 }
  0x90   :  { %986 = vmatpush.bf16.msrb.mxu1 %v4719_v26 }
  0x91   :  { %999 = vmatpush.bf16.msrb.mxu2 %v4722_v32 }
  0x92   :  { %1012 = vmatpush.bf16.msrb.mxu3 %v4726_v33 }
  0x93   :  { %974 = vmatpush.bf16.msrb.mxu0 %v4728_v34 }
  0x94   :  { %987 = vmatpush.bf16.msrb.mxu1 %v4731_v35 }
  0x95   :  { %1000 = vmatpush.bf16.msrb.mxu2 %v4743_v52 }
  0x96   :  { %1013 = vmatpush.bf16.msrb.mxu3 %v4736_v43 }
  0x97   :  { %975 = vmatpush.bf16.msrb.mxu0 %v4738_v44 }
  0x98   :  { %988 = vmatpush.bf16.msrb.mxu1 %v4741_v51 }
  0x99   :  { %1001 = vmatpush.bf16.msrb.mxu2 %v4752_v4 }
  0x9a   :  { %1014 = vmatpush.bf16.msrb.mxu3 %v4748_v2 }
  0x9b   :  { %976 = vmatpush.bf16.msrb.mxu0 %v4750_v3 }
  0x9c   :  { %989 = vmatpush.bf16.msrb.mxu1 %v4755_v10 }
  0x9d   :  { %1002 = vmatpush.bf16.msrb.mxu2 %v4759_v15 }
  0x9e   :  { %1015 = vmatpush.bf16.msrb.mxu3 %v4763_v16 }
  0xbb   :  { %v395_v23 = vpop.f32.mrf.mxu0 }
  0xbc   :  { %v424_v24 = vpop.f32.mrf.mxu1 }
  0xc3   :  { %v4832_v25 = vpop.f32.mrf.mxu2  ;;  %v4834_v28 = vpop.f32.mrf.mxu0 }
  0xc4   :  { %v482_v27 = vpop.f32.mrf.mxu3  ;;  %v4836_v29 = vpop.f32.mrf.mxu1 }
  0xcb   :  { %v4843_v36 = vpop.f32.mrf.mxu2  ;;  %v400_v40 = vpop.f32.mrf.mxu0 }
  0xcc   :  { %5774 = vst [vmem:[#allocation23_spill] sm:$0xff] %v4843_v36  ;;  %v4847_v39 = vpop.f32.mrf.mxu3  ;;  %v4850_v42 = vadd.f32 %v400_v40, %v4841_v31  ;;  %v429_v45 = vpop.f32.mrf.mxu1 }
  0xcd   :  { %v4853_v46 = vadd.f32 %v429_v45, %v4845_v38 }
  0xce   :  { %5775 = vst [vmem:[#allocation24_spill] sm:$0xff] %v4850_v42 }
  0xcf   :  { %5776 = vst [vmem:[#allocation25_spill] sm:$0xff] %v4853_v46 }
  0xd3   :  { %v458_v55 = vpop.f32.mrf.mxu2  ;;  %v4862_v58 = vpop.f32.mrf.mxu0 }
  0xd4   :  { %v4860_v56 = vadd.f32 %v458_v55, %v4855_v50  ;;  %v487_v57 = vpop.f32.mrf.mxu3  ;;  %5778 = vst [vmem:[#allocation27_spill] sm:$0xff] %v4862_v58  ;;  %v4867_v63 = vpop.f32.mrf.mxu1 }
  0xd5   :  { %v4865_v62 = vadd.f32 %v487_v57, %v4857_v54  ;;  %5780 = vst [vmem:[#allocation29_spill] sm:$0xff] %v4867_v63 }
  0xd6   :  { %5777 = vst [vmem:[#allocation26_spill] sm:$0xff] %v4860_v56 }
  0xd7   :  { %5779 = vst [vmem:[#allocation28_spill] sm:$0xff] %v4865_v62 }
  0xdb   :  { %v4869_v0 = vpop.f32.mrf.mxu2  ;;  %v405_v6 = vpop.f32.mrf.mxu0 }
  0xdc   :  { %5781 = vst [vmem:[#allocation30_spill] sm:$0xff] %v4869_v0  ;;  %v4871_v5 = vpop.f32.mrf.mxu3  ;;  %v4874_v11 = vadd.f32 %v405_v6, %v4841_v31  ;;  %v434_v12 = vpop.f32.mrf.mxu1 }
  0xdd   :  { %5782 = vst [vmem:[#allocation31_spill] sm:$0xff] %v4871_v5  ;;  %v4877_v17 = vadd.f32 %v434_v12, %v4845_v38 }
  0xde   :  { %5783 = vst [vmem:[#allocation32_spill] sm:$0xff] %v4874_v11 }
  0xdf   :  { %5784 = vst [vmem:[#allocation33_spill] sm:$0xff] %v4877_v17 }
  0xe3   :  { %v463_v18 = vpop.f32.mrf.mxu2  ;;  %v4882_v40 = vpop.f32.mrf.mxu0 }
  0xe4   :  { %v4880_v19 = vadd.f32 %v463_v18, %v4855_v50  ;;  %v492_v30 = vpop.f32.mrf.mxu3  ;;  %5786 = vst [vmem:[#allocation35_spill] sm:$0xff] %v4882_v40  ;;  %v4887_v55 = vpop.f32.mrf.mxu1 }
  0xe5   :  { %v4885_v45 = vadd.f32 %v492_v30, %v4857_v54  ;;  %5788 = vst [vmem:[#allocation37_spill] sm:$0xff] %v4887_v55 }
  0xe6   :  { %5785 = vst [vmem:[#allocation34_spill] sm:$0xff] %v4880_v19 }
  0xe7   :  { %5787 = vst [vmem:[#allocation36_spill] sm:$0xff] %v4885_v45 }
  0xeb   :  { %v4889_v57 = vpop.f32.mrf.mxu2  ;;  %v410_v14 = vpop.f32.mrf.mxu0 }
  0xec   :  { %5789 = vst [vmem:[#allocation38_spill] sm:$0xff] %v4889_v57  ;;  %v4891_v6 = vpop.f32.mrf.mxu3  ;;  %v4894_v12 = vadd.f32 %v410_v14, %v4841_v31  ;;  %v439_v17 = vpop.f32.mrf.mxu1 }
  0xed   :  { %5790 = vst [vmem:[#allocation39_spill] sm:$0xff] %v4891_v6  ;;  %v4897_v18 = vadd.f32 %v439_v17, %v4845_v38  ;;  %v396_v6 = vadd.f32 %v395_v23, %v4841_v31 }
  0xee   :  { %5791 = vst [vmem:[#allocation40_spill] sm:$0xff] %v4894_v12  ;;  %v425_v12 = vadd.f32 %v424_v24, %v4845_v38 }
  0xef   :  { %5792 = vst [vmem:[#allocation41_spill] sm:$0xff] %v4897_v18 }
  0xf3   :  { %v468_v19 = vpop.f32.mrf.mxu2  ;;  %v4902_v45 = vpop.f32.mrf.mxu0 }
  0xf4   :  { %v4900_v40 = vadd.f32 %v468_v19, %v4855_v50  ;;  %v497_v30 = vpop.f32.mrf.mxu3  ;;  %5794 = vst [vmem:[#allocation43_spill] sm:$0xff] %v4902_v45  ;;  %v4907_v57 = vpop.f32.mrf.mxu1 }
  0xf5   :  { %v4905_v55 = vadd.f32 %v497_v30, %v4857_v54  ;;  %5796 = vst [vmem:[#allocation45_spill] sm:$0xff] %v4907_v57  ;;  %v483_v30 = vadd.f32 %v482_v27, %v4857_v54 }
  0xf6   :  { %5793 = vst [vmem:[#allocation42_spill] sm:$0xff] %v4900_v40 }
  0xf7   :  { %5795 = vst [vmem:[#allocation44_spill] sm:$0xff] %v4905_v55 }
  0xfb   :  { %v4910_v14 = vpop.f32.mrf.mxu2  ;;  %v713_v18 = vpop.f32.mrf.mxu0 }
  0xfc   :  { %5797 = vst [vmem:[#allocation46_spill] sm:$0xff] %v4910_v14  ;;  %v4913_v17 = vpop.f32.mrf.mxu3  ;;  %v756_v11 = vadd.f32 %v713_v18, %v396_v6  ;;  %v726_v19 = vpop.f32.mrf.mxu1 }
  0xfd   :  { %5798 = vst [vmem:[#allocation47_spill] sm:$0xff] %v4913_v17  ;;  %v757_v40 = vadd.f32 %v726_v19, %v425_v12 }
  0xfe   :  { %v3684_v0 = vmul.f32 -1.442695, %v756_v11 }
  0xff   :  { %v3685_v5 = vmul.f32 -1.442695, %v757_v40 }
 0x100   :  { %4152 = vpow2.f32 %v3684_v0  ;;  %v454_v0 = vadd.f32 %v4832_v25, %v4855_v50 }
 0x101   :  { %4154 = vpow2.f32 %v3685_v5 }
 0x103   :  { %v739_v45 = vpop.f32.mrf.mxu2  ;;  %v715_v55 = vpop.f32.mrf.mxu0 }
 0x104   :  { %v752_v57 = vpop.f32.mrf.mxu3  ;;  %v728_v63 = vpop.f32.mrf.mxu1  ;;  %v758_v40 = vadd.f32 %v739_v45, %v454_v0 }
 0x105   :  { %v759_v23 = vadd.f32 %v752_v57, %v483_v30 }
 0x106   :  { %v4153_v14 = vpop.eup %4152 }
 0x107   :  { %v3686_v58 = vmul.f32 -1.442695, %v759_v23  ;;  %v4155_v24 = vpop.eup %4154  ;;  %v763_v56 = vadd.f32 1.0, %v4153_v14 }
 0x108   :  { %v782_v17 = vadd.f32 1.0, %v4155_v24 }
 0x109   :  { %4156 = vpow2.f32 %v3686_v58  ;;  %v775_v14 = vand.u32 2147483648, %v763_v56  ;;  %v773_v23 = vand.u32 2147483647, %v763_v56  ;;  %vm769_vm2 = vweird.f32 %v763_v56 }
 0x10a   :  { %4158 = vrcp.f32 %v763_v56  ;;  %v794_v58 = vand.u32 2147483648, %v782_v17  ;;  %vm788_vm3 = vweird.f32 %v782_v17 }
 0x10b   :  { %4160 = vrcp.f32 %v782_v17  ;;  %v741_v6 = vpop.f32.mrf.mxu2  ;;  %v776_v45 = vor.u32 1.1754944e-38, %v775_v14  ;;  %vm774_vm5 = vcmp.eq.f32.partialorder %v773_v23, 8.507059e+37 }
 0x10c   :  { %v754_v11 = vpop.f32.mrf.mxu3  ;;  %v792_v6 = vand.u32 2147483647, %v782_v17 }
 0x10e   :  { %vm793_vm7 = vcmp.eq.f32.partialorder %v792_v6, 8.507059e+37 }
 0x10f   :  { %v4157_v5 = vpop.eup %4156 }
 0x110   :  { %v4159_v27 = vpop.eup %4158  ;;  %v802_v12 = vadd.f32 1.0, %v4157_v5  ;;  %v795_v5 = vor.u32 1.1754944e-38, %v794_v58 }
 0x111   :  { %v4161_v55 = vpop.eup %4160  ;;  %v765_v57 = vmul.f32 %v4159_v27, %v763_v56  ;;  %vm770_vm0 = vweird.f32 %v4159_v27 }
 0x112   :  { %v784_v63 = vmul.f32 %v4161_v55, %v782_v17  ;;  %4162 = vrcp.f32 %v802_v12  ;;  %vm789_vm1 = vweird.f32 %v4161_v55  ;;  %vm771_vm4 = vmor %vm769_vm2, %vm770_vm0  ;;  %v814_v14 = vand.u32 2147483648, %v802_v12 }
 0x113   :  { %v766_v18 = vsub.f32 1.0, %v765_v57  ;;  %4164 = vtanh.f32 %v758_v40  ;;  %vm790_vm6 = vmor %vm788_vm3, %vm789_vm1  ;;  %vm808_vm9 = vweird.f32 %v802_v12 }
 0x114   :  { %v785_v19 = vsub.f32 1.0, %v784_v63  ;;  %v815_v23 = vor.u32 1.1754944e-38, %v814_v14 }
 0x115   :  { %v767_v30 = vmul.f32 %v4159_v27, %v766_v18 }
 0x116   :  { %v786_v24 = vmul.f32 %v4161_v55, %v785_v19 }
 0x117   :  { %v768_v25 = vadd.f32 %v4159_v27, %v767_v30 }
 0x118   :  { %v4163_v11 = vpop.eup %4162  ;;  %v787_v0 = vadd.f32 %v4161_v55, %v786_v24 }
 0x119   :  { %v772_v62 = vsel %vm771_vm4, %v4159_v27, %v768_v25  ;;  %v804_v57 = vmul.f32 %v4163_v11, %v802_v12  ;;  %v4165_v40 = vpop.eup %4164  ;;  %vm809_vm8 = vweird.f32 %v4163_v11  ;;  %v812_v27 = vand.u32 2147483647, %v802_v12 }
 0x11a   :  { %v777_v63 = vsel %vm774_vm5, %v776_v45, %v772_v62  ;;  %v791_v18 = vsel %vm790_vm6, %v4161_v55, %v787_v0  ;;  %vm810_vm10 = vmor %vm808_vm9, %vm809_vm8 }
 0x11b   :  { %v796_v46 = vsel %vm793_vm7, %v795_v5, %v791_v18  ;;  %v820_v19 = vmul.f32 %v4165_v40, %v777_v63  ;;  %v805_v42 = vsub.f32 1.0, %v804_v57  ;;  %vm813_vm11 = vcmp.eq.f32.partialorder %v812_v27, 8.507059e+37 }
 0x11c   :  { %v819_v36 = vmul.f32 0.0, %v796_v46  ;;  %v427_v46 = vadd.f32 %v4836_v29, %v4845_v38  ;;  %v485_v57 = vadd.f32 %v4847_v39, %v4857_v54 }
 0x11d   :  { %v806_v30 = vmul.f32 %v4163_v11, %v805_v42 }
 0x11e   :  { %v4918_v56 = vadd.f32 %v820_v19, %v819_v36  ;;  %v398_v36 = vadd.f32 %v4834_v28, %v4841_v31 }
 0x11f   :  { %v807_v17 = vadd.f32 %v4163_v11, %v806_v30 }
 0x120   :  { %4166 = vtanh.f32 %v4918_v56 }
 0x121   :  { %v811_v58 = vsel %vm810_vm10, %v4163_v11, %v807_v17 }
 0x122   :  { %v816_v55 = vsel %vm813_vm11, %v815_v23, %v811_v58 }
 0x126   :  { %v4167_v62 = vpop.eup %4166 }
 0x127   :  { %v823_v24 = vmul.f32 %v4167_v62, %v816_v55  ;;  %v5799_v55 = vld [vmem:[#allocation23_spill] sm:$0xff] }
 0x128   :  { %v456_v39 = vadd.f32 %v5799_v55, %v4855_v50 }
 0x129   :  { %v824_v6 = vpack.c.bf16 %v823_v24, %v823_v24 }
 0x12b   :  { %826 = vst [vmem:[#allocation4] sm:$0xf] %v824_v6 }
 0x12c   :  { %827 = vst [vmem:[#allocation3] sm:$0xf] %v824_v6 }
 0x132   :  { %v835_v42 = vld [vmem:[#allocation4] sm:$0xf] }
 0x133   :  { %844 = vmatmul.bf16.vlgmr.msra.gmra.mxu0 %v835_v42  ;;  %857 = vmatmul.bf16.vlgmr.msra.gmra.mxu1 %v835_v42 }
 0x134   :  { %870 = vmatmul.bf16.vlgmr.msra.gmra.mxu2 %v835_v42  ;;  %883 = vmatmul.bf16.vlgmr.msra.gmra.mxu3 %v835_v42 }
 0x135   :  { %1102 = vmatpush.bf16.msra.mxu0 %v4671_v37  ;;  %1115 = vmatpush.bf16.msra.mxu1 %v4673_v41 }
 0x136   :  { %1128 = vmatpush.bf16.msra.mxu2 %v4675_v47  ;;  %1141 = vmatpush.bf16.msra.mxu3 %v4678_v48 }
 0x139   :  { %1103 = vmatpush.bf16.msra.mxu0 %v4680_v49  ;;  %1116 = vmatpush.bf16.msra.mxu1 %v4683_v53 }
 0x13a   :  { %1129 = vmatpush.bf16.msra.mxu2 %v4686_v59  ;;  %1142 = vmatpush.bf16.msra.mxu3 %v4690_v60 }
 0x13d   :  { %1104 = vmatpush.bf16.msra.mxu0 %v4692_v61  ;;  %1117 = vmatpush.bf16.msra.mxu1 %v4695_v1 }
 0x13e   :  { %1130 = vmatpush.bf16.msra.mxu2 %v4698_v7  ;;  %1143 = vmatpush.bf16.msra.mxu3 %v4702_v8 }
 0x141   :  { %1105 = vmatpush.bf16.msra.mxu0 %v4704_v9  ;;  %1118 = vmatpush.bf16.msra.mxu1 %v4707_v13 }
 0x142   :  { %1131 = vmatpush.bf16.msra.mxu2 %v4710_v20  ;;  %1144 = vmatpush.bf16.msra.mxu3 %v4714_v21 }
 0x145   :  { %1106 = vmatpush.bf16.msra.mxu0 %v4716_v22  ;;  %1119 = vmatpush.bf16.msra.mxu1 %v4719_v26 }
 0x146   :  { %1132 = vmatpush.bf16.msra.mxu2 %v4722_v32  ;;  %1145 = vmatpush.bf16.msra.mxu3 %v4726_v33 }
 0x149   :  { %1107 = vmatpush.bf16.msra.mxu0 %v4728_v34  ;;  %1120 = vmatpush.bf16.msra.mxu1 %v4731_v35 }
 0x14a   :  { %1133 = vmatpush.bf16.msra.mxu2 %v4743_v52  ;;  %1146 = vmatpush.bf16.msra.mxu3 %v4736_v43 }
 0x14d   :  { %1108 = vmatpush.bf16.msra.mxu0 %v4738_v44  ;;  %1121 = vmatpush.bf16.msra.mxu1 %v4741_v51 }
 0x14e   :  { %1134 = vmatpush.bf16.msra.mxu2 %v4752_v4  ;;  %1147 = vmatpush.bf16.msra.mxu3 %v4748_v2 }
 0x151   :  { %1109 = vmatpush.bf16.msra.mxu0 %v4750_v3  ;;  %1122 = vmatpush.bf16.msra.mxu1 %v4755_v10 }
 0x152   :  { %1135 = vmatpush.bf16.msra.mxu2 %v4759_v15  ;;  %1148 = vmatpush.bf16.msra.mxu3 %v4763_v16 }
 0x1b0   :  { %v845_v12 = vpop.f32.mrf.mxu0  ;;  %v858_v25 = vpop.f32.mrf.mxu1 }
 0x1b1   :  { %v888_v11 = vadd.f32 %v845_v12, %v398_v36  ;;  %v889_v45 = vadd.f32 %v858_v25, %v427_v46 }
 0x1b3   :  { %v3687_v0 = vmul.f32 -1.442695, %v888_v11  ;;  %v3688_v5 = vmul.f32 -1.442695, %v889_v45 }
 0x1b5   :  { %4168 = vpow2.f32 %v3687_v0 }
 0x1b6   :  { %4170 = vpow2.f32 %v3688_v5 }
 0x1b7   :  { %v871_v40 = vpop.f32.mrf.mxu2  ;;  %v884_v63 = vpop.f32.mrf.mxu3 }
 0x1b8   :  { %v891_v18 = vadd.f32 %v884_v63, %v485_v57  ;;  %v847_v19 = vpop.f32.mrf.mxu0  ;;  %v860_v30 = vpop.f32.mrf.mxu1  ;;  %v890_v42 = vadd.f32 %v871_v40, %v456_v39 }
 0x1ba   :  { %v3689_v28 = vmul.f32 -1.442695, %v891_v18 }
 0x1bb   :  { %v4169_v17 = vpop.eup %4168 }
 0x1bc   :  { %v4171_v14 = vpop.eup %4170  ;;  %v895_v29 = vadd.f32 1.0, %v4169_v17  ;;  %4172 = vpow2.f32 %v3689_v28 }
 0x1bd   :  { %v914_v27 = vadd.f32 1.0, %v4171_v14 }
 0x1be   :  { %4174 = vrcp.f32 %v895_v29  ;;  %v907_v45 = vand.u32 2147483648, %v895_v29  ;;  %v905_v57 = vand.u32 2147483647, %v895_v29  ;;  %vm901_vm14 = vweird.f32 %v895_v29 }
 0x1bf   :  { %4176 = vrcp.f32 %v914_v27  ;;  %v873_v58 = vpop.f32.mrf.mxu2  ;;  %v886_v23 = vpop.f32.mrf.mxu3  ;;  %v926_v0 = vand.u32 2147483648, %v914_v27  ;;  %v924_v18 = vand.u32 2147483647, %v914_v27  ;;  %vm920_vm15 = vweird.f32 %v914_v27 }
 0x1c0   :  { %v908_v40 = vor.u32 1.1754944e-38, %v907_v45  ;;  %vm906_vm2 = vcmp.eq.f32.partialorder %v905_v57, 8.507059e+37 }
 0x1c1   :  { %v927_v14 = vor.u32 1.1754944e-38, %v926_v0  ;;  %vm925_vm3 = vcmp.eq.f32.partialorder %v924_v18, 8.507059e+37 }
 0x1c2   :  { %v4173_v62 = vpop.eup %4172 }
 0x1c3   :  { %v934_v24 = vadd.f32 1.0, %v4173_v62 }
 0x1c4   :  { %v4175_v6 = vpop.eup %4174 }
 0x1c5   :  { %v4177_v36 = vpop.eup %4176  ;;  %v897_v46 = vmul.f32 %v4175_v6, %v895_v29  ;;  %4178 = vrcp.f32 %v934_v24  ;;  %vm902_vm12 = vweird.f32 %v4175_v6  ;;  %vm940_vm5 = vweird.f32 %v934_v24 }
 0x1c6   :  { %v916_v12 = vmul.f32 %v4177_v36, %v914_v27  ;;  %4180 = vtanh.f32 %v890_v42  ;;  %vm921_vm13 = vweird.f32 %v4177_v36  ;;  %vm903_vm0 = vmor %vm901_vm14, %vm902_vm12 }
 0x1c7   :  { %v898_v25 = vsub.f32 1.0, %v897_v46  ;;  %vm922_vm1 = vmor %vm920_vm15, %vm921_vm13 }
 0x1c8   :  { %v917_v11 = vsub.f32 1.0, %v916_v12 }
 0x1c9   :  { %v899_v5 = vmul.f32 %v4175_v6, %v898_v25 }
 0x1ca   :  { %v918_v63 = vmul.f32 %v4177_v36, %v917_v11  ;;  %v946_v11 = vand.u32 2147483648, %v934_v24 }
 0x1cb   :  { %v4179_v19 = vpop.eup %4178  ;;  %v900_v30 = vadd.f32 %v4175_v6, %v899_v5 }
 0x1cc   :  { %v919_v28 = vadd.f32 %v4177_v36, %v918_v63  ;;  %v936_v17 = vmul.f32 %v4179_v19, %v934_v24  ;;  %v4181_v23 = vpop.eup %4180  ;;  %vm941_vm4 = vweird.f32 %v4179_v19  ;;  %v947_v0 = vor.u32 1.1754944e-38, %v946_v11 }
 0x1cd   :  { %v904_v58 = vsel %vm903_vm0, %v4175_v6, %v900_v30  ;;  %v944_v6 = vand.u32 2147483647, %v934_v24  ;;  %vm942_vm6 = vmor %vm940_vm5, %vm941_vm4 }
 0x1ce   :  { %v909_v62 = vsel %vm906_vm2, %v908_v40, %v904_v58  ;;  %v923_v55 = vsel %vm922_vm1, %v4177_v36, %v919_v28  ;;  %v937_v39 = vsub.f32 1.0, %v936_v17  ;;  %v5801_v40 = vld [vmem:[#allocation25_spill] sm:$0xff] }
 0x1cf   :  { %v928_v42 = vsel %vm925_vm3, %v927_v14, %v923_v55  ;;  %v952_v46 = vmul.f32 %v4181_v23, %v909_v62  ;;  %vm945_vm7 = vcmp.eq.f32.partialorder %v944_v6, 8.507059e+37  ;;  %v5802_v62 = vld [vmem:[#allocation28_spill] sm:$0xff] }
 0x1d0   :  { %v951_v12 = vmul.f32 %v928_v42, %v4918_v56  ;;  %v938_v25 = vmul.f32 %v4179_v19, %v937_v39 }
 0x1d2   :  { %v4962_v29 = vadd.f32 %v952_v46, %v951_v12  ;;  %v939_v27 = vadd.f32 %v4179_v19, %v938_v25 }
 0x1d4   :  { %4182 = vtanh.f32 %v4962_v29  ;;  %v943_v45 = vsel %vm942_vm6, %v4179_v19, %v939_v27  ;;  %v5800_v19 = vld [vmem:[#allocation24_spill] sm:$0xff] }
 0x1d5   :  { %v948_v5 = vsel %vm945_vm7, %v947_v0, %v943_v45 }
 0x1da   :  { %v4183_v36 = vpop.eup %4182 }
 0x1db   :  { %v955_v57 = vmul.f32 %v4183_v36, %v948_v5 }
 0x1dd   :  { %v956_v63 = vpack.c.bf16 %v955_v57, %v955_v57  ;;  %v5803_v57 = vld [vmem:[#allocation26_spill] sm:$0xff] }
 0x1df   :  { %958 = vst [vmem:[#allocation4] sm:$0xf] %v956_v63 }
 0x1e0   :  { %960 = vst [vmem:[#allocation3 + $0x4] sm:$0xf] %v956_v63 }
 0x1e6   :  { %v968_v56 = vld [vmem:[#allocation4] sm:$0xf] }
 0x1e7   :  { %977 = vmatmul.bf16.vlgmr.msrb.gmra.mxu0 %v968_v56  ;;  %990 = vmatmul.bf16.vlgmr.msrb.gmra.mxu1 %v968_v56 }
 0x1e8   :  { %1003 = vmatmul.bf16.vlgmr.msrb.gmra.mxu2 %v968_v56  ;;  %1016 = vmatmul.bf16.vlgmr.msrb.gmra.mxu3 %v968_v56 }
 0x1e9   :  { %1235 = vmatpush.bf16.msrb.mxu0 %v4671_v37  ;;  %1248 = vmatpush.bf16.msrb.mxu1 %v4673_v41 }
 0x1ea   :  { %1261 = vmatpush.bf16.msrb.mxu2 %v4675_v47  ;;  %1274 = vmatpush.bf16.msrb.mxu3 %v4678_v48 }
 0x1ed   :  { %1236 = vmatpush.bf16.msrb.mxu0 %v4680_v49  ;;  %1249 = vmatpush.bf16.msrb.mxu1 %v4683_v53 }
 0x1ee   :  { %1262 = vmatpush.bf16.msrb.mxu2 %v4686_v59  ;;  %1275 = vmatpush.bf16.msrb.mxu3 %v4690_v60 }
 0x1f1   :  { %1237 = vmatpush.bf16.msrb.mxu0 %v4692_v61  ;;  %1250 = vmatpush.bf16.msrb.mxu1 %v4695_v1 }
 0x1f2   :  { %1263 = vmatpush.bf16.msrb.mxu2 %v4698_v7  ;;  %1276 = vmatpush.bf16.msrb.mxu3 %v4702_v8 }
 0x1f5   :  { %1238 = vmatpush.bf16.msrb.mxu0 %v4704_v9  ;;  %1251 = vmatpush.bf16.msrb.mxu1 %v4707_v13 }
 0x1f6   :  { %1264 = vmatpush.bf16.msrb.mxu2 %v4710_v20  ;;  %1277 = vmatpush.bf16.msrb.mxu3 %v4714_v21 }
 0x1f9   :  { %1239 = vmatpush.bf16.msrb.mxu0 %v4716_v22  ;;  %1252 = vmatpush.bf16.msrb.mxu1 %v4719_v26 }
 0x1fa   :  { %1265 = vmatpush.bf16.msrb.mxu2 %v4722_v32  ;;  %1278 = vmatpush.bf16.msrb.mxu3 %v4726_v33 }
 0x1fd   :  { %1240 = vmatpush.bf16.msrb.mxu0 %v4728_v34  ;;  %1253 = vmatpush.bf16.msrb.mxu1 %v4731_v35 }
 0x1fe   :  { %1266 = vmatpush.bf16.msrb.mxu2 %v4743_v52  ;;  %1279 = vmatpush.bf16.msrb.mxu3 %v4736_v43 }
 0x201   :  { %1241 = vmatpush.bf16.msrb.mxu0 %v4738_v44  ;;  %1254 = vmatpush.bf16.msrb.mxu1 %v4741_v51 }
 0x202   :  { %1267 = vmatpush.bf16.msrb.mxu2 %v4752_v4  ;;  %1280 = vmatpush.bf16.msrb.mxu3 %v4748_v2 }
 0x205   :  { %1242 = vmatpush.bf16.msrb.mxu0 %v4750_v3  ;;  %1255 = vmatpush.bf16.msrb.mxu1 %v4755_v10 }
 0x206   :  { %1268 = vmatpush.bf16.msrb.mxu2 %v4759_v15  ;;  %1281 = vmatpush.bf16.msrb.mxu3 %v4763_v16 }
 0x264   :  { %v978_v24 = vpop.f32.mrf.mxu0  ;;  %v991_v18 = vpop.f32.mrf.mxu1 }
 0x265   :  { %v1021_v30 = vadd.f32 %v978_v24, %v5800_v19  ;;  %v1022_v28 = vadd.f32 %v991_v18, %v5801_v40 }
 0x267   :  { %v3690_v17 = vmul.f32 -1.442695, %v1021_v30  ;;  %v3691_v14 = vmul.f32 -1.442695, %v1022_v28 }
 0x269   :  { %4184 = vpow2.f32 %v3690_v17 }
 0x26a   :  { %4186 = vpow2.f32 %v3691_v14 }
 0x26b   :  { %v1004_v58 = vpop.f32.mrf.mxu2  ;;  %v1017_v23 = vpop.f32.mrf.mxu3 }
 0x26c   :  { %v1024_v55 = vadd.f32 %v1017_v23, %v5802_v62  ;;  %v980_v39 = vpop.f32.mrf.mxu0  ;;  %v993_v42 = vpop.f32.mrf.mxu1  ;;  %v1023_v63 = vadd.f32 %v1004_v58, %v5803_v57 }
 0x26e   :  { %v3692_v46 = vmul.f32 -1.442695, %v1024_v55 }
 0x26f   :  { %v4185_v12 = vpop.eup %4184 }
 0x270   :  { %v4187_v25 = vpop.eup %4186  ;;  %v1028_v27 = vadd.f32 1.0, %v4185_v12  ;;  %4188 = vpow2.f32 %v3692_v46 }
 0x271   :  { %v1047_v11 = vadd.f32 1.0, %v4187_v25 }
 0x272   :  { %4190 = vrcp.f32 %v1028_v27  ;;  %v1040_v40 = vand.u32 2147483648, %v1028_v27  ;;  %v1038_v14 = vand.u32 2147483647, %v1028_v27  ;;  %vm1034_vm10 = vweird.f32 %v1028_v27 }
 0x273   :  { %4192 = vrcp.f32 %v1047_v11  ;;  %v1006_v6 = vpop.f32.mrf.mxu2  ;;  %v1019_v45 = vpop.f32.mrf.mxu3  ;;  %v1059_v28 = vand.u32 2147483648, %v1047_v11  ;;  %v1057_v62 = vand.u32 2147483647, %v1047_v11  ;;  %vm1053_vm11 = vweird.f32 %v1047_v11 }
 0x274   :  { %v1041_v58 = vor.u32 1.1754944e-38, %v1040_v40  ;;  %vm1039_vm14 = vcmp.eq.f32.partialorder %v1038_v14, 8.507059e+37 }
 0x275   :  { %v1060_v12 = vor.u32 1.1754944e-38, %v1059_v28  ;;  %vm1058_vm15 = vcmp.eq.f32.partialorder %v1057_v62, 8.507059e+37 }
 0x276   :  { %v4189_v0 = vpop.eup %4188 }
 0x277   :  { %v1067_v36 = vadd.f32 1.0, %v4189_v0 }
 0x278   :  { %v4191_v5 = vpop.eup %4190 }
 0x279   :  { %v4193_v56 = vpop.eup %4192  ;;  %v1030_v24 = vmul.f32 %v4191_v5, %v1028_v27  ;;  %4194 = vrcp.f32 %v1067_v36  ;;  %vm1035_vm8 = vweird.f32 %v4191_v5  ;;  %vm1073_vm1 = vweird.f32 %v1067_v36 }
 0x27a   :  { %v1049_v18 = vmul.f32 %v4193_v56, %v1047_v11  ;;  %4196 = vtanh.f32 %v1023_v63  ;;  %vm1054_vm9 = vweird.f32 %v4193_v56  ;;  %vm1036_vm12 = vmor %vm1034_vm10, %vm1035_vm8 }
 0x27b   :  { %v1031_v19 = vsub.f32 1.0, %v1030_v24  ;;  %vm1055_vm13 = vmor %vm1053_vm11, %vm1054_vm9 }
 0x27c   :  { %v1050_v30 = vsub.f32 1.0, %v1049_v18 }
 0x27d   :  { %v1032_v17 = vmul.f32 %v4191_v5, %v1031_v19 }
 0x27e   :  { %v1051_v23 = vmul.f32 %v4193_v56, %v1050_v30  ;;  %v1079_v30 = vand.u32 2147483648, %v1067_v36 }
 0x27f   :  { %v4195_v55 = vpop.eup %4194  ;;  %v1033_v39 = vadd.f32 %v4191_v5, %v1032_v17 }
 0x280   :  { %v1052_v42 = vadd.f32 %v4193_v56, %v1051_v23  ;;  %v1069_v46 = vmul.f32 %v4195_v55, %v1067_v36  ;;  %v4197_v6 = vpop.eup %4196  ;;  %vm1074_vm0 = vweird.f32 %v4195_v55  ;;  %v1080_v28 = vor.u32 1.1754944e-38, %v1079_v30 }
 0x281   :  { %v1037_v25 = vsel %vm1036_vm12, %v4191_v5, %v1033_v39  ;;  %v1077_v5 = vand.u32 2147483647, %v1067_v36  ;;  %vm1075_vm2 = vmor %vm1073_vm1, %vm1074_vm0  ;;  %v5804_v36 = vld [vmem:[#allocation27_spill] sm:$0xff] }
 0x282   :  { %v1042_v45 = vsel %vm1039_vm14, %v1041_v58, %v1037_v25  ;;  %v1056_v0 = vsel %vm1055_vm13, %v4193_v56, %v1052_v42  ;;  %v1070_v57 = vsub.f32 1.0, %v1069_v46  ;;  %v403_v62 = vadd.f32 %v5804_v36, %v4841_v31 }
 0x283   :  { %v1061_v63 = vsel %vm1058_vm15, %v1060_v12, %v1056_v0  ;;  %v1085_v24 = vmul.f32 %v4197_v6, %v1042_v45  ;;  %vm1078_vm3 = vcmp.eq.f32.partialorder %v1077_v5, 8.507059e+37  ;;  %v5806_v45 = vld [vmem:[#allocation31_spill] sm:$0xff] }
 0x284   :  { %v1084_v18 = vmul.f32 %v1061_v63, %v4962_v29  ;;  %v1071_v19 = vmul.f32 %v4195_v55, %v1070_v57  ;;  %v490_v0 = vadd.f32 %v5806_v45, %v4857_v54 }
 0x286   :  { %v5002_v27 = vadd.f32 %v1085_v24, %v1084_v18  ;;  %v1072_v11 = vadd.f32 %v4195_v55, %v1071_v19 }
 0x288   :  { %4198 = vtanh.f32 %v5002_v27  ;;  %v1076_v40 = vsel %vm1075_vm2, %v4195_v55, %v1072_v11  ;;  %v5805_v55 = vld [vmem:[#allocation29_spill] sm:$0xff] }
 0x289   :  { %v1081_v17 = vsel %vm1078_vm3, %v1080_v28, %v1076_v40  ;;  %v432_v39 = vadd.f32 %v5805_v55, %v4845_v38 }
 0x28e   :  { %v4199_v56 = vpop.eup %4198 }
 0x28f   :  { %v1088_v14 = vmul.f32 %v4199_v56, %v1081_v17 }
 0x291   :  { %v1089_v23 = vpack.c.bf16 %v1088_v14, %v1088_v14 }
 0x293   :  { %1091 = vst [vmem:[#allocation4] sm:$0xf] %v1089_v23 }
 0x294   :  { %1093 = vst [vmem:[#allocation3 + $0x8] sm:$0xf] %v1089_v23  ;;  %v5807_v23 = vld [vmem:[#allocation30_spill] sm:$0xff] }
 0x29a   :  { %v1101_v29 = vld [vmem:[#allocation4] sm:$0xf] }
 0x29b   :  { %1110 = vmatmul.bf16.vlgmr.msra.gmra.mxu0 %v1101_v29  ;;  %1123 = vmatmul.bf16.vlgmr.msra.gmra.mxu1 %v1101_v29 }
 0x29c   :  { %1136 = vmatmul.bf16.vlgmr.msra.gmra.mxu2 %v1101_v29  ;;  %1149 = vmatmul.bf16.vlgmr.msra.gmra.mxu3 %v1101_v29  ;;  %v461_v29 = vadd.f32 %v5807_v23, %v4855_v50 }
 0x29d   :  { %1368 = vmatpush.bf16.msra.mxu0 %v4671_v37  ;;  %1381 = vmatpush.bf16.msra.mxu1 %v4673_v41 }
 0x29e   :  { %1394 = vmatpush.bf16.msra.mxu2 %v4675_v47  ;;  %1407 = vmatpush.bf16.msra.mxu3 %v4678_v48 }
 0x2a1   :  { %1369 = vmatpush.bf16.msra.mxu0 %v4680_v49  ;;  %1382 = vmatpush.bf16.msra.mxu1 %v4683_v53 }
 0x2a2   :  { %1395 = vmatpush.bf16.msra.mxu2 %v4686_v59  ;;  %1408 = vmatpush.bf16.msra.mxu3 %v4690_v60 }
 0x2a5   :  { %1370 = vmatpush.bf16.msra.mxu0 %v4692_v61  ;;  %1383 = vmatpush.bf16.msra.mxu1 %v4695_v1 }
 0x2a6   :  { %1396 = vmatpush.bf16.msra.mxu2 %v4698_v7  ;;  %1409 = vmatpush.bf16.msra.mxu3 %v4702_v8 }
 0x2a9   :  { %1371 = vmatpush.bf16.msra.mxu0 %v4704_v9  ;;  %1384 = vmatpush.bf16.msra.mxu1 %v4707_v13 }
 0x2aa   :  { %1397 = vmatpush.bf16.msra.mxu2 %v4710_v20  ;;  %1410 = vmatpush.bf16.msra.mxu3 %v4714_v21 }
 0x2ad   :  { %1372 = vmatpush.bf16.msra.mxu0 %v4716_v22  ;;  %1385 = vmatpush.bf16.msra.mxu1 %v4719_v26 }
 0x2ae   :  { %1398 = vmatpush.bf16.msra.mxu2 %v4722_v32  ;;  %1411 = vmatpush.bf16.msra.mxu3 %v4726_v33 }
 0x2b1   :  { %1373 = vmatpush.bf16.msra.mxu0 %v4728_v34  ;;  %1386 = vmatpush.bf16.msra.mxu1 %v4731_v35 }
 0x2b2   :  { %1399 = vmatpush.bf16.msra.mxu2 %v4743_v52  ;;  %1412 = vmatpush.bf16.msra.mxu3 %v4736_v43 }
 0x2b5   :  { %1374 = vmatpush.bf16.msra.mxu0 %v4738_v44  ;;  %1387 = vmatpush.bf16.msra.mxu1 %v4741_v51 }
 0x2b6   :  { %1400 = vmatpush.bf16.msra.mxu2 %v4752_v4  ;;  %1413 = vmatpush.bf16.msra.mxu3 %v4748_v2 }
 0x2b9   :  { %1375 = vmatpush.bf16.msra.mxu0 %v4750_v3  ;;  %1388 = vmatpush.bf16.msra.mxu1 %v4755_v10 }
 0x2ba   :  { %1401 = vmatpush.bf16.msra.mxu2 %v4759_v15  ;;  %1414 = vmatpush.bf16.msra.mxu3 %v4763_v16 }
 0x318   :  { %v1111_v58 = vpop.f32.mrf.mxu0  ;;  %v1124_v42 = vpop.f32.mrf.mxu1 }
 0x319   :  { %v1154_v46 = vadd.f32 %v1111_v58, %v403_v62  ;;  %v1155_v12 = vadd.f32 %v1124_v42, %v432_v39 }
 0x31b   :  { %v3693_v25 = vmul.f32 -1.442695, %v1154_v46  ;;  %v3694_v6 = vmul.f32 -1.442695, %v1155_v12 }
 0x31d   :  { %4200 = vpow2.f32 %v3693_v25 }
 0x31e   :  { %4202 = vpow2.f32 %v3694_v6 }
 0x31f   :  { %v1137_v57 = vpop.f32.mrf.mxu2  ;;  %v1150_v63 = vpop.f32.mrf.mxu3 }
 0x320   :  { %v1157_v24 = vadd.f32 %v1150_v63, %v490_v0  ;;  %v1113_v18 = vpop.f32.mrf.mxu0  ;;  %v1126_v19 = vpop.f32.mrf.mxu1  ;;  %v1156_v55 = vadd.f32 %v1137_v57, %v461_v29 }
 0x322   :  { %v3695_v11 = vmul.f32 -1.442695, %v1157_v24 }
 0x323   :  { %v4201_v30 = vpop.eup %4200 }
 0x324   :  { %v4203_v5 = vpop.eup %4202  ;;  %v1161_v40 = vadd.f32 1.0, %v4201_v30  ;;  %4204 = vpow2.f32 %v3695_v11 }
 0x325   :  { %v1180_v28 = vadd.f32 1.0, %v4203_v5 }
 0x326   :  { %4206 = vrcp.f32 %v1161_v40  ;;  %v1173_v25 = vand.u32 2147483648, %v1161_v40  ;;  %v1171_v0 = vand.u32 2147483647, %v1161_v40  ;;  %vm1167_vm6 = vweird.f32 %v1161_v40 }
 0x327   :  { %4208 = vrcp.f32 %v1180_v28  ;;  %v1139_v56 = vpop.f32.mrf.mxu2  ;;  %v1152_v17 = vpop.f32.mrf.mxu3  ;;  %v1192_v6 = vand.u32 2147483648, %v1180_v28  ;;  %v1190_v24 = vand.u32 2147483647, %v1180_v28  ;;  %vm1186_vm7 = vweird.f32 %v1180_v28 }
 0x328   :  { %v1174_v57 = vor.u32 1.1754944e-38, %v1173_v25  ;;  %vm1172_vm10 = vcmp.eq.f32.partialorder %v1171_v0, 8.507059e+37 }
 0x329   :  { %v1193_v5 = vor.u32 1.1754944e-38, %v1192_v6  ;;  %vm1191_vm11 = vcmp.eq.f32.partialorder %v1190_v24, 8.507059e+37 }
 0x32a   :  { %v4205_v14 = vpop.eup %4204 }
 0x32b   :  { %v1200_v36 = vadd.f32 1.0, %v4205_v14 }
 0x32c   :  { %v4207_v62 = vpop.eup %4206 }
 0x32d   :  { %v4209_v39 = vpop.eup %4208  ;;  %v1163_v58 = vmul.f32 %v4207_v62, %v1161_v40  ;;  %4210 = vrcp.f32 %v1200_v36  ;;  %vm1168_vm4 = vweird.f32 %v4207_v62  ;;  %vm1206_vm13 = vweird.f32 %v1200_v36 }
 0x32e   :  { %v1182_v42 = vmul.f32 %v4209_v39, %v1180_v28  ;;  %4212 = vtanh.f32 %v1156_v55  ;;  %vm1187_vm5 = vweird.f32 %v4209_v39  ;;  %vm1169_vm8 = vmor %vm1167_vm6, %vm1168_vm4 }
 0x32f   :  { %v1164_v46 = vsub.f32 1.0, %v1163_v58  ;;  %vm1188_vm9 = vmor %vm1186_vm7, %vm1187_vm5 }
 0x330   :  { %v1183_v12 = vsub.f32 1.0, %v1182_v42 }
 0x331   :  { %v1165_v45 = vmul.f32 %v4207_v62, %v1164_v46 }
 0x332   :  { %v1184_v63 = vmul.f32 %v4209_v39, %v1183_v12  ;;  %v1212_v12 = vand.u32 2147483648, %v1200_v36 }
 0x333   :  { %v4211_v18 = vpop.eup %4210  ;;  %v1166_v19 = vadd.f32 %v4207_v62, %v1165_v45 }
 0x334   :  { %v1185_v11 = vadd.f32 %v4209_v39, %v1184_v63  ;;  %v1202_v30 = vmul.f32 %v4211_v18, %v1200_v36  ;;  %v4213_v17 = vpop.eup %4212  ;;  %vm1207_vm12 = vweird.f32 %v4211_v18  ;;  %v1213_v6 = vor.u32 1.1754944e-38, %v1212_v12 }
 0x335   :  { %v1170_v56 = vsel %vm1169_vm8, %v4207_v62, %v1166_v19  ;;  %v1210_v62 = vand.u32 2147483647, %v1200_v36  ;;  %vm1208_vm14 = vmor %vm1206_vm13, %vm1207_vm12 }
 0x336   :  { %v1175_v14 = vsel %vm1172_vm10, %v1174_v57, %v1170_v56  ;;  %v1189_v23 = vsel %vm1188_vm9, %v4209_v39, %v1185_v11  ;;  %v1203_v29 = vsub.f32 1.0, %v1202_v30  ;;  %v5809_v57 = vld [vmem:[#allocation33_spill] sm:$0xff] }
 0x337   :  { %v1194_v55 = vsel %vm1191_vm11, %v1193_v5, %v1189_v23  ;;  %v1218_v58 = vmul.f32 %v4213_v17, %v1175_v14  ;;  %vm1211_vm15 = vcmp.eq.f32.partialorder %v1210_v62, 8.507059e+37  ;;  %v5810_v14 = vld [vmem:[#allocation36_spill] sm:$0xff] }
 0x338   :  { %v1217_v42 = vmul.f32 %v1194_v55, %v5002_v27  ;;  %v1204_v46 = vmul.f32 %v4211_v18, %v1203_v29 }
 0x33a   :  { %v5046_v40 = vadd.f32 %v1218_v58, %v1217_v42  ;;  %v1205_v28 = vadd.f32 %v4211_v18, %v1204_v46 }
 0x33c   :  { %4214 = vtanh.f32 %v5046_v40  ;;  %v1209_v25 = vsel %vm1208_vm14, %v4211_v18, %v1205_v28  ;;  %v5808_v18 = vld [vmem:[#allocation32_spill] sm:$0xff] }
 0x33d   :  { %v1214_v45 = vsel %vm1211_vm15, %v1213_v6, %v1209_v25 }
 0x342   :  { %v4215_v39 = vpop.eup %4214 }
 0x343   :  { %v1221_v0 = vmul.f32 %v4215_v39, %v1214_v45 }
 0x345   :  { %v1222_v63 = vpack.c.bf16 %v1221_v0, %v1221_v0  ;;  %v5811_v0 = vld [vmem:[#allocation34_spill] sm:$0xff] }
 0x347   :  { %1224 = vst [vmem:[#allocation4] sm:$0xf] %v1222_v63 }
 0x348   :  { %1226 = vst [vmem:[#allocation3 + $0xc] sm:$0xf] %v1222_v63 }
 0x34e   :  { %v1234_v27 = vld [vmem:[#allocation4] sm:$0xf] }
 0x34f   :  { %1243 = vmatmul.bf16.vlgmr.msrb.gmra.mxu0 %v1234_v27  ;;  %1256 = vmatmul.bf16.vlgmr.msrb.gmra.mxu1 %v1234_v27 }
 0x350   :  { %1269 = vmatmul.bf16.vlgmr.msrb.gmra.mxu2 %v1234_v27  ;;  %1282 = vmatmul.bf16.vlgmr.msrb.gmra.mxu3 %v1234_v27 }
 0x351   :  { %1501 = vmatpush.bf16.msrb.mxu0 %v4671_v37  ;;  %1514 = vmatpush.bf16.msrb.mxu1 %v4673_v41 }
 0x352   :  { %1527 = vmatpush.bf16.msrb.mxu2 %v4675_v47  ;;  %1540 = vmatpush.bf16.msrb.mxu3 %v4678_v48 }
 0x355   :  { %1502 = vmatpush.bf16.msrb.mxu0 %v4680_v49  ;;  %1515 = vmatpush.bf16.msrb.mxu1 %v4683_v53 }
 0x356   :  { %1528 = vmatpush.bf16.msrb.mxu2 %v4686_v59  ;;  %1541 = vmatpush.bf16.msrb.mxu3 %v4690_v60 }
 0x359   :  { %1503 = vmatpush.bf16.msrb.mxu0 %v4692_v61  ;;  %1516 = vmatpush.bf16.msrb.mxu1 %v4695_v1 }
 0x35a   :  { %1529 = vmatpush.bf16.msrb.mxu2 %v4698_v7  ;;  %1542 = vmatpush.bf16.msrb.mxu3 %v4702_v8 }
 0x35d   :  { %1504 = vmatpush.bf16.msrb.mxu0 %v4704_v9  ;;  %1517 = vmatpush.bf16.msrb.mxu1 %v4707_v13 }
 0x35e   :  { %1530 = vmatpush.bf16.msrb.mxu2 %v4710_v20  ;;  %1543 = vmatpush.bf16.msrb.mxu3 %v4714_v21 }
 0x361   :  { %1505 = vmatpush.bf16.msrb.mxu0 %v4716_v22  ;;  %1518 = vmatpush.bf16.msrb.mxu1 %v4719_v26 }
 0x362   :  { %1531 = vmatpush.bf16.msrb.mxu2 %v4722_v32  ;;  %1544 = vmatpush.bf16.msrb.mxu3 %v4726_v33 }
 0x365   :  { %1506 = vmatpush.bf16.msrb.mxu0 %v4728_v34  ;;  %1519 = vmatpush.bf16.msrb.mxu1 %v4731_v35 }
 0x366   :  { %1532 = vmatpush.bf16.msrb.mxu2 %v4743_v52  ;;  %1545 = vmatpush.bf16.msrb.mxu3 %v4736_v43 }
 0x369   :  { %1507 = vmatpush.bf16.msrb.mxu0 %v4738_v44  ;;  %1520 = vmatpush.bf16.msrb.mxu1 %v4741_v51 }
 0x36a   :  { %1533 = vmatpush.bf16.msrb.mxu2 %v4752_v4  ;;  %1546 = vmatpush.bf16.msrb.mxu3 %v4748_v2 }
 0x36d   :  { %1508 = vmatpush.bf16.msrb.mxu0 %v4750_v3  ;;  %1521 = vmatpush.bf16.msrb.mxu1 %v4755_v10 }
 0x36e   :  { %1534 = vmatpush.bf16.msrb.mxu2 %v4759_v15  ;;  %1547 = vmatpush.bf16.msrb.mxu3 %v4763_v16 }
 0x3cc   :  { %v1244_v36 = vpop.f32.mrf.mxu0  ;;  %v1257_v24 = vpop.f32.mrf.mxu1 }
 0x3cd   :  { %v1287_v19 = vadd.f32 %v1244_v36, %v5808_v18  ;;  %v1288_v11 = vadd.f32 %v1257_v24, %v5809_v57 }
 0x3cf   :  { %v3696_v30 = vmul.f32 -1.442695, %v1287_v19  ;;  %v3697_v5 = vmul.f32 -1.442695, %v1288_v11 }
 0x3d1   :  { %4216 = vpow2.f32 %v3696_v30 }
 0x3d2   :  { %4218 = vpow2.f32 %v3697_v5 }
 0x3d3   :  { %v1270_v56 = vpop.f32.mrf.mxu2  ;;  %v1283_v17 = vpop.f32.mrf.mxu3 }
 0x3d4   :  { %v1290_v23 = vadd.f32 %v1283_v17, %v5810_v14  ;;  %v1246_v29 = vpop.f32.mrf.mxu0  ;;  %v1259_v55 = vpop.f32.mrf.mxu1  ;;  %v1289_v63 = vadd.f32 %v1270_v56, %v5811_v0 }
 0x3d6   :  { %v3698_v58 = vmul.f32 -1.442695, %v1290_v23 }
 0x3d7   :  { %v4217_v42 = vpop.eup %4216 }
 0x3d8   :  { %v4219_v46 = vpop.eup %4218  ;;  %v1294_v28 = vadd.f32 1.0, %v4217_v42  ;;  %4220 = vpow2.f32 %v3698_v58 }
 0x3d9   :  { %v1313_v12 = vadd.f32 1.0, %v4219_v46 }
 0x3da   :  { %4222 = vrcp.f32 %v1294_v28  ;;  %v1306_v57 = vand.u32 2147483648, %v1294_v28  ;;  %v1304_v5 = vand.u32 2147483647, %v1294_v28  ;;  %vm1300_vm2 = vweird.f32 %v1294_v28 }
 0x3db   :  { %4224 = vrcp.f32 %v1313_v12  ;;  %v1272_v62 = vpop.f32.mrf.mxu2  ;;  %v1285_v25 = vpop.f32.mrf.mxu3  ;;  %v1325_v11 = vand.u32 2147483648, %v1313_v12  ;;  %v1323_v14 = vand.u32 2147483647, %v1313_v12  ;;  %vm1319_vm3 = vweird.f32 %v1313_v12 }
 0x3dc   :  { %v1307_v56 = vor.u32 1.1754944e-38, %v1306_v57  ;;  %vm1305_vm6 = vcmp.eq.f32.partialorder %v1304_v5, 8.507059e+37 }
 0x3dd   :  { %v1326_v42 = vor.u32 1.1754944e-38, %v1325_v11  ;;  %vm1324_vm7 = vcmp.eq.f32.partialorder %v1323_v14, 8.507059e+37 }
 0x3de   :  { %v4221_v6 = vpop.eup %4220 }
 0x3df   :  { %v1333_v39 = vadd.f32 1.0, %v4221_v6 }
 0x3e0   :  { %v4223_v45 = vpop.eup %4222 }
 0x3e1   :  { %v4225_v27 = vpop.eup %4224  ;;  %v1296_v36 = vmul.f32 %v4223_v45, %v1294_v28  ;;  %4226 = vrcp.f32 %v1333_v39  ;;  %vm1301_vm0 = vweird.f32 %v4223_v45  ;;  %vm1339_vm9 = vweird.f32 %v1333_v39 }
 0x3e2   :  { %v1315_v24 = vmul.f32 %v4225_v27, %v1313_v12  ;;  %4228 = vtanh.f32 %v1289_v63  ;;  %vm1320_vm1 = vweird.f32 %v4225_v27  ;;  %vm1302_vm4 = vmor %vm1300_vm2, %vm1301_vm0 }
 0x3e3   :  { %v1297_v18 = vsub.f32 1.0, %v1296_v36  ;;  %vm1321_vm5 = vmor %vm1319_vm3, %vm1320_vm1 }
 0x3e4   :  { %v1316_v19 = vsub.f32 1.0, %v1315_v24 }
 0x3e5   :  { %v1298_v30 = vmul.f32 %v4223_v45, %v1297_v18 }
 0x3e6   :  { %v1317_v17 = vmul.f32 %v4225_v27, %v1316_v19  ;;  %v1345_v19 = vand.u32 2147483648, %v1333_v39 }
 0x3e7   :  { %v4227_v23 = vpop.eup %4226  ;;  %v1299_v29 = vadd.f32 %v4223_v45, %v1298_v30 }
 0x3e8   :  { %v1318_v55 = vadd.f32 %v4225_v27, %v1317_v17  ;;  %v1335_v58 = vmul.f32 %v4227_v23, %v1333_v39  ;;  %v4229_v62 = vpop.eup %4228  ;;  %vm1340_vm8 = vweird.f32 %v4227_v23  ;;  %v1346_v11 = vor.u32 1.1754944e-38, %v1345_v19 }
 0x3e9   :  { %v1303_v46 = vsel %vm1302_vm4, %v4223_v45, %v1299_v29  ;;  %v1343_v45 = vand.u32 2147483647, %v1333_v39  ;;  %vm1341_vm10 = vmor %vm1339_vm9, %vm1340_vm8 }
 0x3ea   :  { %v1308_v25 = vsel %vm1305_vm6, %v1307_v56, %v1303_v46  ;;  %v1322_v6 = vsel %vm1321_vm5, %v4225_v27, %v1318_v55  ;;  %v1336_v0 = vsub.f32 1.0, %v1335_v58 }
 0x3eb   :  { %v1327_v63 = vsel %vm1324_vm7, %v1326_v42, %v1322_v6  ;;  %v1351_v36 = vmul.f32 %v4229_v62, %v1308_v25  ;;  %vm1344_vm11 = vcmp.eq.f32.partialorder %v1343_v45, 8.507059e+37 }
 0x3ec   :  { %v1350_v24 = vmul.f32 %v1327_v63, %v5046_v40  ;;  %v1337_v18 = vmul.f32 %v4227_v23, %v1336_v0 }
 0x3ee   :  { %v5086_v28 = vadd.f32 %v1351_v36, %v1350_v24  ;;  %v1338_v12 = vadd.f32 %v4227_v23, %v1337_v18 }
 0x3f0   :  { %4230 = vtanh.f32 %v5086_v28  ;;  %v1342_v57 = vsel %vm1341_vm10, %v4227_v23, %v1338_v12 }
 0x3f1   :  { %v1347_v30 = vsel %vm1344_vm11, %v1346_v11, %v1342_v57 }
 0x3f6   :  { %v4231_v27 = vpop.eup %4230 }
 0x3f7   :  { %v1354_v5 = vmul.f32 %v4231_v27, %v1347_v30 }
 0x3f9   :  { %v1355_v17 = vpack.c.bf16 %v1354_v5, %v1354_v5 }
 0x3fb   :  { %1357 = vst [vmem:[#allocation4] sm:$0xf] %v1355_v17 }
 0x3fc   :  { %1359 = vst [vmem:[#allocation3 + $0x10] sm:$0xf] %v1355_v17 }
 0x402   :  { %v1367_v40 = vld [vmem:[#allocation4] sm:$0xf] }
 0x403   :  { %1376 = vmatmul.bf16.vlgmr.msra.gmra.mxu0 %v1367_v40  ;;  %1389 = vmatmul.bf16.vlgmr.msra.gmra.mxu1 %v1367_v40 }
 0x404   :  { %1402 = vmatmul.bf16.vlgmr.msra.gmra.mxu2 %v1367_v40  ;;  %1415 = vmatmul.bf16.vlgmr.msra.gmra.mxu3 %v1367_v40 }
 0x405   :  { %1634 = vmatpush.bf16.msra.mxu0 %v4671_v37  ;;  %1647 = vmatpush.bf16.msra.mxu1 %v4673_v41  ;;  %v5812_v37 = vld [vmem:[#allocation35_spill] sm:$0xff] }
 0x406   :  { %1660 = vmatpush.bf16.msra.mxu2 %v4675_v47  ;;  %1673 = vmatpush.bf16.msra.mxu3 %v4678_v48  ;;  %v408_v41 = vadd.f32 %v5812_v37, %v4841_v31  ;;  %v5813_v47 = vld [vmem:[#allocation37_spill] sm:$0xff] }
 0x407   :  { %v437_v48 = vadd.f32 %v5813_v47, %v4845_v38 }
 0x409   :  { %1635 = vmatpush.bf16.msra.mxu0 %v4680_v49  ;;  %1648 = vmatpush.bf16.msra.mxu1 %v4683_v53 }
 0x40a   :  { %1661 = vmatpush.bf16.msra.mxu2 %v4686_v59  ;;  %1674 = vmatpush.bf16.msra.mxu3 %v4690_v60 }
 0x40d   :  { %1636 = vmatpush.bf16.msra.mxu0 %v4692_v61  ;;  %1649 = vmatpush.bf16.msra.mxu1 %v4695_v1 }
 0x40e   :  { %1662 = vmatpush.bf16.msra.mxu2 %v4698_v7  ;;  %1675 = vmatpush.bf16.msra.mxu3 %v4702_v8  ;;  %v5814_v7 = vld [vmem:[#allocation39_spill] sm:$0xff] }
 0x40f   :  { %v495_v8 = vadd.f32 %v5814_v7, %v4857_v54 }
 0x411   :  { %1637 = vmatpush.bf16.msra.mxu0 %v4704_v9  ;;  %1650 = vmatpush.bf16.msra.mxu1 %v4707_v13 }
 0x412   :  { %1663 = vmatpush.bf16.msra.mxu2 %v4710_v20  ;;  %1676 = vmatpush.bf16.msra.mxu3 %v4714_v21 }
 0x415   :  { %1638 = vmatpush.bf16.msra.mxu0 %v4716_v22  ;;  %1651 = vmatpush.bf16.msra.mxu1 %v4719_v26 }
 0x416   :  { %1664 = vmatpush.bf16.msra.mxu2 %v4722_v32  ;;  %1677 = vmatpush.bf16.msra.mxu3 %v4726_v33 }
 0x419   :  { %1639 = vmatpush.bf16.msra.mxu0 %v4728_v34  ;;  %1652 = vmatpush.bf16.msra.mxu1 %v4731_v35 }
 0x41a   :  { %1665 = vmatpush.bf16.msra.mxu2 %v4743_v52  ;;  %1678 = vmatpush.bf16.msra.mxu3 %v4736_v43  ;;  %v5815_v52 = vld [vmem:[#allocation38_spill] sm:$0xff] }
 0x41d   :  { %1640 = vmatpush.bf16.msra.mxu0 %v4738_v44  ;;  %1653 = vmatpush.bf16.msra.mxu1 %v4741_v51 }
 0x41e   :  { %1666 = vmatpush.bf16.msra.mxu2 %v4752_v4  ;;  %1679 = vmatpush.bf16.msra.mxu3 %v4748_v2  ;;  %v466_v2 = vadd.f32 %v5815_v52, %v4855_v50 }
 0x421   :  { %1641 = vmatpush.bf16.msra.mxu0 %v4750_v3  ;;  %1654 = vmatpush.bf16.msra.mxu1 %v4755_v10 }
 0x422   :  { %1667 = vmatpush.bf16.msra.mxu2 %v4759_v15  ;;  %1680 = vmatpush.bf16.msra.mxu3 %v4763_v16 }
 0x480   :  { %v1377_v49 = vpop.f32.mrf.mxu0  ;;  %v1390_v53 = vpop.f32.mrf.mxu1 }
 0x481   :  { %v1420_v59 = vadd.f32 %v1377_v49, %v408_v41  ;;  %v1421_v60 = vadd.f32 %v1390_v53, %v437_v48 }
 0x483   :  { %v3699_v61 = vmul.f32 -1.442695, %v1420_v59  ;;  %v3700_v1 = vmul.f32 -1.442695, %v1421_v60 }
 0x485   :  { %4232 = vpow2.f32 %v3699_v61 }
 0x486   :  { %4234 = vpow2.f32 %v3700_v1  ;;  %v5816_v1 = vld [vmem:[#allocation40_spill] sm:$0xff] }
 0x487   :  { %v1403_v9 = vpop.f32.mrf.mxu2  ;;  %v1416_v13 = vpop.f32.mrf.mxu3 }
 0x488   :  { %v1423_v20 = vadd.f32 %v1416_v13, %v495_v8  ;;  %v1379_v21 = vpop.f32.mrf.mxu0  ;;  %v1392_v22 = vpop.f32.mrf.mxu1  ;;  %v1422_v10 = vadd.f32 %v1403_v9, %v466_v2  ;;  %v5817_v8 = vld [vmem:[#allocation41_spill] sm:$0xff] }
 0x489   :  { %v3838_v21 = vld [vmem:[#allocation11 + $0xe0] sm:$0xf]  ;;  %v4102_v22 = vld [vmem:[#allocation11 + $0xec] sm:$0xf0] }
 0x48a   :  { %v3701_v26 = vmul.f32 -1.442695, %v1423_v20 }
 0x48b   :  { %v4233_v32 = vpop.eup %4232 }
 0x48c   :  { %v4235_v33 = vpop.eup %4234  ;;  %v1427_v34 = vadd.f32 1.0, %v4233_v32  ;;  %4236 = vpow2.f32 %v3701_v26  ;;  %v4100_v26 = vld [vmem:[#allocation11 + $0xe4] sm:$0xf] }
 0x48d   :  { %v1446_v35 = vadd.f32 1.0, %v4235_v33 }
 0x48e   :  { %4238 = vrcp.f32 %v1427_v34  ;;  %v1439_v29 = vand.u32 2147483648, %v1427_v34  ;;  %v1437_v58 = vand.u32 2147483647, %v1427_v34  ;;  %vm1433_vm14 = vweird.f32 %v1427_v34 }
 0x48f   :  { %4240 = vrcp.f32 %v1446_v35  ;;  %v1405_v43 = vpop.f32.mrf.mxu2  ;;  %v1418_v44 = vpop.f32.mrf.mxu3  ;;  %v1458_v56 = vand.u32 2147483648, %v1446_v35  ;;  %v1456_v46 = vand.u32 2147483647, %v1446_v35  ;;  %vm1452_vm15 = vweird.f32 %v1446_v35 }
 0x490   :  { %v1440_v6 = vor.u32 1.1754944e-38, %v1439_v29  ;;  %vm1438_vm2 = vcmp.eq.f32.partialorder %v1437_v58, 8.507059e+37  ;;  %v3846_v43 = vld [vmem:[#allocation11 + $0xe8] sm:$0xf]  ;;  %v4103_v44 = vld [vmem:[#allocation11 + $0xf4] sm:$0xf0] }
 0x491   :  { %v1459_v36 = vor.u32 1.1754944e-38, %v1458_v56  ;;  %vm1457_vm3 = vcmp.eq.f32.partialorder %v1456_v46, 8.507059e+37  ;;  %v4098_v29 = vld [vmem:[#allocation11 + $0xcc] sm:$0xf0]  ;;  %v4096_v58 = vld [vmem:[#allocation11 + $0xc4] sm:$0xf] }
 0x492   :  { %v4237_v51 = vpop.eup %4236  ;;  %v3830_v46 = vld [vmem:[#allocation11 + $0xc8] sm:$0xf] }
 0x493   :  { %v1466_v3 = vadd.f32 1.0, %v4237_v51  ;;  %v5818_v51 = vld [vmem:[#allocation44_spill] sm:$0xff] }
 0x494   :  { %v4239_v4 = vpop.eup %4238 }
 0x495   :  { %v4241_v15 = vpop.eup %4240  ;;  %v1429_v16 = vmul.f32 %v4239_v4, %v1427_v34  ;;  %4242 = vrcp.f32 %v1466_v3  ;;  %vm1434_vm12 = vweird.f32 %v4239_v4  ;;  %v1478_v40 = vand.u32 2147483648, %v1466_v3 }
 0x496   :  { %v1448_v39 = vmul.f32 %v4241_v15, %v1446_v35  ;;  %4244 = vtanh.f32 %v1422_v10  ;;  %vm1453_vm13 = vweird.f32 %v4241_v15  ;;  %vm1435_vm0 = vmor %vm1433_vm14, %vm1434_vm12  ;;  %vm1472_vm5 = vweird.f32 %v1466_v3  ;;  %v3840_v35 = vld [vmem:[#allocation11 + $0xf0] sm:$0xf0] }
 0x497   :  { %v1430_v14 = vsub.f32 1.0, %v1429_v16  ;;  %vm1454_vm1 = vmor %vm1452_vm15, %vm1453_vm13  ;;  %v1476_v37 = vand.u32 2147483647, %v1466_v3  ;;  %v1479_v47 = vor.u32 1.1754944e-38, %v1478_v40  ;;  %v3839_v34 = vor.u32 %v4102_v22, %v3838_v21  ;;  %v3848_v16 = vld [vmem:[#allocation11 + $0xf8] sm:$0xf0] }
 0x498   :  { %v1449_v23 = vsub.f32 1.0, %v1448_v39  ;;  %v3847_v10 = vor.u32 %v4103_v44, %v3846_v43  ;;  %v4089_v43 = vld [vmem:[#allocation11 + $0x8c] sm:$0xf]  ;;  %v3800_v44 = vld [vmem:[#allocation11 + $0x98] sm:$0xf0] }
 0x499   :  { %v1431_v55 = vmul.f32 %v4239_v4, %v1430_v14  ;;  %vm1477_vm7 = vcmp.eq.f32.partialorder %v1476_v37, 8.507059e+37  ;;  %v4092_v37 = vld [vmem:[#allocation11 + $0xa4] sm:$0xf] }
 0x49a   :  { %v1450_v42 = vmul.f32 %v4241_v15, %v1449_v23  ;;  %v3822_v23 = vld [vmem:[#allocation11 + $0xc0] sm:$0xf] }
 0x49b   :  { %v4243_v62 = vpop.eup %4242  ;;  %v1432_v25 = vadd.f32 %v4239_v4, %v1431_v55  ;;  %v3823_v55 = vor.u32 %v4098_v29, %v3822_v23 }
 0x49c   :  { %v1451_v0 = vadd.f32 %v4241_v15, %v1450_v42  ;;  %v1468_v63 = vmul.f32 %v4243_v62, %v1466_v3  ;;  %v4245_v18 = vpop.eup %4244  ;;  %vm1473_vm4 = vweird.f32 %v4243_v62  ;;  %v3824_v42 = vld [vmem:[#allocation11 + $0xd0] sm:$0xf0] }
 0x49d   :  { %v1436_v24 = vsel %vm1435_vm0, %v4239_v4, %v1432_v25  ;;  %vm1474_vm6 = vmor %vm1472_vm5, %vm1473_vm4  ;;  %v3843_v4 = vor.u32 %v4100_v26, %v3840_v35  ;;  %v3792_v26 = vld [vmem:[#allocation11 + $0x90] sm:$0xf0] }
 0x49e   :  { %v1441_v12 = vsel %vm1438_vm2, %v1440_v6, %v1436_v24  ;;  %v1455_v19 = vsel %vm1454_vm1, %v4241_v15, %v1451_v0  ;;  %v1469_v45 = vsub.f32 1.0, %v1468_v63  ;;  %v4101_v15 = vld [vmem:[#allocation11 + $0xec] sm:$0xf]  ;;  %v3827_v6 = vor.u32 %v4096_v58, %v3824_v42  ;;  %v4099_v0 = vld [vmem:[#allocation11 + $0xd4] sm:$0xf0] }
 0x49f   :  { %v1460_v57 = vsel %vm1457_vm3, %v1459_v36, %v1455_v19  ;;  %v1484_v11 = vmul.f32 %v4245_v18, %v1441_v12  ;;  %v3851_v39 = vor.u32 %v4101_v15, %v3848_v16  ;;  %v3831_v36 = vor.u32 %v4099_v0, %v3830_v46  ;;  %v4097_v24 = vld [vmem:[#allocation11 + $0xcc] sm:$0xf]  ;;  %v3832_v18 = vld [vmem:[#allocation11 + $0xd8] sm:$0xf0]  ;;  %v3806_v12 = vld [vmem:[#allocation11 + $0xa0] sm:$0xf] }
 0x4a0   :  { %v1483_v27 = vmul.f32 %v1460_v57, %v5086_v28  ;;  %v1470_v30 = vmul.f32 %v4243_v62, %v1469_v45  ;;  %v4094_v57 = vld [vmem:[#allocation11 + $0xac] sm:$0xf0]  ;;  %v3803_v16 = vor.u32 %v4089_v43, %v3800_v44  ;;  %v3776_v42 = vld [vmem:[#allocation11 + $0x70] sm:$0xf0]  ;;  %v4085_v0 = vld [vmem:[#allocation11 + $0x6c] sm:$0xf] }
 0x4a1   :  { %v3807_v40 = vor.u32 %v4094_v57, %v3806_v12  ;;  %v3784_v12 = vld [vmem:[#allocation11 + $0x78] sm:$0xf0]  ;;  %v4079_v43 = vld [vmem:[#allocation11 + $0x34] sm:$0xf0]  ;;  %v4077_v44 = vld [vmem:[#allocation11 + $0x2c] sm:$0xf] }
 0x4a2   :  { %v5130_v5 = vadd.f32 %v1484_v11, %v1483_v27  ;;  %v1471_v17 = vadd.f32 %v4243_v62, %v1470_v30  ;;  %v5819_v11 = vld [vmem:[#allocation42_spill] sm:$0xff] }
 0x4a4   :  { %4246 = vtanh.f32 %v5130_v5  ;;  %v1475_v41 = vsel %vm1474_vm6, %v4243_v62, %v1471_v17  ;;  %v3835_v17 = vor.u32 %v4097_v24, %v3832_v18 }
 0x4a5   :  { %v1480_v49 = vsel %vm1477_vm7, %v1479_v47, %v1475_v41  ;;  %v3808_v41 = vld [vmem:[#allocation11 + $0xb0] sm:$0xf0] }
 0x4aa   :  { %v4247_v48 = vpop.eup %4246 }
 0x4ab   :  { %v1487_v53 = vmul.f32 %v4247_v48, %v1480_v49  ;;  %v3811_v48 = vor.u32 %v4092_v37, %v3808_v41  ;;  %v3814_v49 = vld [vmem:[#allocation11 + $0xa8] sm:$0xf] }
 0x4ac   :  { %v3766_v37 = vld [vmem:[#allocation11 + $0x48] sm:$0xf] }
 0x4ad   :  { %v1488_v59 = vpack.c.bf16 %v1487_v53, %v1487_v53  ;;  %v4095_v53 = vld [vmem:[#allocation11 + $0xb4] sm:$0xf0] }
 0x4af   :  { %1490 = vst [vmem:[#allocation4] sm:$0xf] %v1488_v59 }
 0x4b0   :  { %1492 = vst [vmem:[#allocation3 + $0x14] sm:$0xf] %v1488_v59 }
 0x4b6   :  { %v1500_v28 = vld [vmem:[#allocation4] sm:$0xf] }
 0x4b7   :  { %1509 = vmatmul.bf16.vlgmr.msrb.gmra.mxu0 %v1500_v28  ;;  %1522 = vmatmul.bf16.vlgmr.msrb.gmra.mxu1 %v1500_v28 }
 0x4b8   :  { %1535 = vmatmul.bf16.vlgmr.msrb.gmra.mxu2 %v1500_v28  ;;  %1548 = vmatmul.bf16.vlgmr.msrb.gmra.mxu3 %v1500_v28  ;;  %v3815_v28 = vor.u32 %v4095_v53, %v3814_v49  ;;  %v4083_v49 = vld [vmem:[#allocation11 + $0x54] sm:$0xf0]  ;;  %v4081_v53 = vld [vmem:[#allocation11 + $0x4c] sm:$0xf] }
 0x4b9   :  { %2025 = vmatpush.bf16.msrb.mxu0 %v3839_v34  ;;  %2054 = vmatpush.bf16.msrb.mxu1 %v3843_v4 }
 0x4ba   :  { %2083 = vmatpush.bf16.msrb.mxu2 %v3847_v10  ;;  %2112 = vmatpush.bf16.msrb.mxu3 %v3851_v39  ;;  %v4086_v39 = vld [vmem:[#allocation11 + $0x6c] sm:$0xf0] }
 0x4bd   :  { %2026 = vmatpush.bf16.msrb.mxu0 %v3823_v55  ;;  %2055 = vmatpush.bf16.msrb.mxu1 %v3827_v6  ;;  %v4087_v6 = vld [vmem:[#allocation11 + $0x74] sm:$0xf0] }
 0x4be   :  { %2084 = vmatpush.bf16.msrb.mxu2 %v3831_v36  ;;  %2113 = vmatpush.bf16.msrb.mxu3 %v3835_v17  ;;  %v4080_v17 = vld [vmem:[#allocation11 + $0x44] sm:$0xf] }
 0x4c1   :  { %2027 = vmatpush.bf16.msrb.mxu0 %v3807_v40  ;;  %2056 = vmatpush.bf16.msrb.mxu1 %v3811_v48  ;;  %v3760_v40 = vld [vmem:[#allocation11 + $0x50] sm:$0xf0] }
 0x4c2   :  { %2085 = vmatpush.bf16.msrb.mxu2 %v3815_v28  ;;  %v3763_v48 = vor.u32 %v4080_v17, %v3760_v40  ;;  %v5827_v17 = vld [vmem:[#allocation45_spill] sm:$0xff] }
 0x4c3   :  { %v442_v40 = vadd.f32 %v5827_v17, %v4845_v38 }
 0x534   :  { %v1510_v60 = vpop.f32.mrf.mxu0  ;;  %v1523_v61 = vpop.f32.mrf.mxu1 }
 0x535   :  { %v1553_v7 = vadd.f32 %v1510_v60, %v5816_v1  ;;  %v1554_v9 = vadd.f32 %v1523_v61, %v5817_v8  ;;  %v4093_v60 = vld [vmem:[#allocation11 + $0xac] sm:$0xf]  ;;  %v3816_v61 = vld [vmem:[#allocation11 + $0xb8] sm:$0xf0]  ;;  %v3790_v1 = vld [vmem:[#allocation11 + $0x80] sm:$0xf] }
 0x537   :  { %v3702_v13 = vmul.f32 -1.442695, %v1553_v7  ;;  %v3703_v20 = vmul.f32 -1.442695, %v1554_v9  ;;  %v3819_v9 = vor.u32 %v4093_v60, %v3816_v61 }
 0x539   :  { %4248 = vpow2.f32 %v3702_v13  ;;  %v4090_v13 = vld [vmem:[#allocation11 + $0x8c] sm:$0xf0]  ;;  %2114 = vmatpush.bf16.msrb.mxu3 %v3819_v9 }
 0x53a   :  { %4250 = vpow2.f32 %v3703_v20  ;;  %v4088_v20 = vld [vmem:[#allocation11 + $0x84] sm:$0xf]  ;;  %v3791_v22 = vor.u32 %v4090_v13, %v3790_v1  ;;  %v3742_v1 = vld [vmem:[#allocation11 + $0x20] sm:$0xf] }
 0x53b   :  { %v1536_v32 = vpop.f32.mrf.mxu2  ;;  %v1549_v33 = vpop.f32.mrf.mxu3  ;;  %v3795_v10 = vor.u32 %v4088_v20, %v3792_v26  ;;  %v4076_v26 = vld [vmem:[#allocation11 + $0x24] sm:$0xf] }
 0x53c   :  { %v1556_v52 = vadd.f32 %v1549_v33, %v5818_v51  ;;  %v1512_v2 = vpop.f32.mrf.mxu0  ;;  %v1525_v3 = vpop.f32.mrf.mxu1  ;;  %v1555_v27 = vadd.f32 %v1536_v32, %v5819_v11  ;;  %v3798_v32 = vld [vmem:[#allocation11 + $0x88] sm:$0xf]  ;;  %v4091_v33 = vld [vmem:[#allocation11 + $0x94] sm:$0xf0]  ;;  %2028 = vmatpush.bf16.msrb.mxu0 %v3791_v22 }
 0x53d   :  { %v3774_v3 = vld [vmem:[#allocation11 + $0x60] sm:$0xf]  ;;  %v3799_v15 = vor.u32 %v4091_v33, %v3798_v32  ;;  %2057 = vmatpush.bf16.msrb.mxu1 %v3795_v10  ;;  %2115 = vmatpush.bf16.msrb.mxu3 %v3803_v16 }
 0x53e   :  { %v3704_v14 = vmul.f32 -1.442695, %v1556_v52  ;;  %v3775_v58 = vor.u32 %v4086_v39, %v3774_v3  ;;  %v3726_v3 = vld [vmem:[#allocation11] sm:$0xf] }
 0x53f   :  { %v4249_v56 = vpop.eup %4248  ;;  %2086 = vmatpush.bf16.msrb.mxu2 %v3799_v15  ;;  %v4072_v15 = vld [vmem:[#allocation11 + $0x4] sm:$0xf] }
 0x540   :  { %v4251_v62 = vpop.eup %4250  ;;  %v5136_v25 = vadd.f32 1.0, %v4249_v56  ;;  %4252 = vpow2.f32 %v3704_v14  ;;  %v4084_v14 = vld [vmem:[#allocation11 + $0x64] sm:$0xf]  ;;  %2029 = vmatpush.bf16.msrb.mxu0 %v3775_v58  ;;  %v4075_v56 = vld [vmem:[#allocation11 + $0x14] sm:$0xf0] }
 0x541   :  { %v5138_v63 = vadd.f32 1.0, %v4251_v62  ;;  %v3779_v62 = vor.u32 %v4084_v14, %v3776_v42  ;;  %v3736_v58 = vld [vmem:[#allocation11 + $0x18] sm:$0xf0] }
 0x542   :  { %4254 = vrcp.f32 %v5136_v25  ;;  %v1570_v30 = vand.u32 2147483647, %v5136_v25  ;;  %v1572_v47 = vand.u32 2147483648, %v5136_v25  ;;  %vm1566_vm9 = vweird.f32 %v5136_v25 }
 0x543   :  { %4256 = vrcp.f32 %v5138_v63  ;;  %v1538_v19 = vpop.f32.mrf.mxu2  ;;  %v1551_v45 = vpop.f32.mrf.mxu3  ;;  %v1591_v7 = vand.u32 2147483648, %v5138_v63  ;;  %v1589_v2 = vand.u32 2147483647, %v5138_v63  ;;  %vm1585_vm13 = vweird.f32 %v5138_v63  ;;  %2058 = vmatpush.bf16.msrb.mxu1 %v3779_v62 }
 0x544   :  { %4258 = vtanh.f32 %v1555_v27  ;;  %vm5159_vm10 = vcmp.eq.f32.partialorder %v1570_v30, 8.507059e+37  ;;  %v1573_v55 = vor.u32 1.1754944e-38, %v1572_v47  ;;  %v3758_v19 = vld [vmem:[#allocation11 + $0x40] sm:$0xf]  ;;  %v4082_v45 = vld [vmem:[#allocation11 + $0x4c] sm:$0xf0]  ;;  %v3787_v27 = vor.u32 %v4085_v0, %v3784_v12 }
 0x545   :  { %v1592_v29 = vor.u32 1.1754944e-38, %v1591_v7  ;;  %v3759_v30 = vor.u32 %v4082_v45, %v3758_v19  ;;  %vm1590_vm15 = vcmp.eq.f32.partialorder %v1589_v2, 8.507059e+37  ;;  %v4078_v7 = vld [vmem:[#allocation11 + $0x2c] sm:$0xf0]  ;;  %v3752_v2 = vld [vmem:[#allocation11 + $0x38] sm:$0xf0] }
 0x546   :  { %v4253_v59 = vpop.eup %4252  ;;  %2116 = vmatpush.bf16.msrb.mxu3 %v3787_v27  ;;  %v3743_v22 = vor.u32 %v4078_v7, %v3742_v1  ;;  %v3755_v39 = vor.u32 %v4077_v44, %v3752_v2  ;;  %v4136_v45 = vld [vmem:[#allocation3] sm:$0xff]  ;;  %v5826_v27 = vld [vmem:[#allocation43_spill] sm:$0xff]  ;;  %v4134_v1 = vld [vmem:[#allocation14 + $0xec] sm:$0xf0] }
 0x547   :  { %v5146_v8 = vadd.f32 1.0, %v4253_v59  ;;  %v3768_v59 = vld [vmem:[#allocation11 + $0x58] sm:$0xf0]  ;;  %2030 = vmatpush.bf16.msrb.mxu0 %v3759_v30  ;;  %2059 = vmatpush.bf16.msrb.mxu1 %v3763_v48  ;;  %v413_v30 = vadd.f32 %v5826_v27, %v4841_v31  ;;  %v4132_v7 = vld [vmem:[#allocation14 + $0xe4] sm:$0xf] }
 0x548   :  { %v5148_v21 = vpop.eup %4254  ;;  %v3771_v61 = vor.u32 %v4081_v53, %v3768_v59  ;;  %v5828_v59 = vld [vmem:[#allocation47_spill] sm:$0xff]  ;;  %v4122_v27 = vld [vmem:[#allocation14 + $0x8c] sm:$0xf0] }
 0x549   :  { %v5150_v34 = vpop.eup %4256  ;;  %v1562_v35 = vmul.f32 %v5148_v21, %v5136_v25  ;;  %vm1567_vm8 = vweird.f32 %v5148_v21  ;;  %4260 = vrcp.f32 %v5146_v8  ;;  %v3782_v25 = vld [vmem:[#allocation11 + $0x68] sm:$0xf]  ;;  %v1611_v42 = vand.u32 2147483648, %v5146_v8  ;;  %v4128_v2 = vld [vmem:[#allocation14 + $0xc4] sm:$0xf] }
 0x54a   :  { %v1581_v51 = vmul.f32 %v5150_v34, %v5138_v63  ;;  %vm5166_vm11 = vmor %vm1566_vm9, %vm1567_vm8  ;;  %v4259_v36 = vpop.eup %4258  ;;  %vm1586_vm12 = vweird.f32 %v5150_v34  ;;  %v3783_v18 = vor.u32 %v4087_v6, %v3782_v25  ;;  %v3767_v63 = vor.u32 %v4083_v49, %v3766_v37  ;;  %2117 = vmatpush.bf16.msrb.mxu3 %v3771_v61  ;;  %v3966_v61 = vld [vmem:[#allocation14 + $0xe0] sm:$0xf] }
 0x54b   :  { %v1563_v4 = vsub.f32 1.0, %v1562_v35  ;;  %vm5182_vm14 = vmor %vm1585_vm13, %vm1586_vm12  ;;  %v3750_v35 = vld [vmem:[#allocation11 + $0x28] sm:$0xf]  ;;  %2031 = vmatpush.bf16.msrb.mxu0 %v3743_v22  ;;  %vm1605_vm1 = vweird.f32 %v5146_v8  ;;  %v500_v28 = vadd.f32 %v5828_v59, %v4857_v54  ;;  %v5211_v38 = vor.u32 %v4134_v1, %v3966_v61  ;;  %v4133_v22 = vld [vmem:[#allocation14 + $0xec] sm:$0xf] }
 0x54c   :  { %v1582_v23 = vsub.f32 1.0, %v1581_v51  ;;  %2087 = vmatpush.bf16.msrb.mxu2 %v3783_v18  ;;  %v3751_v10 = vor.u32 %v4079_v43, %v3750_v35  ;;  %v4135_v54 = vld [vmem:[#allocation14 + $0xf4] sm:$0xf0]  ;;  %v3928_v59 = vld [vmem:[#allocation14 + $0x98] sm:$0xf0] }
 0x54d   :  { %v1564_v46 = vmul.f32 %v5148_v21, %v1563_v4  ;;  %v4074_v4 = vld [vmem:[#allocation11 + $0xc] sm:$0xf0]  ;;  %v4127_v61 = vld [vmem:[#allocation14 + $0xb4] sm:$0xf0]  ;;  %v3902_v1 = vld [vmem:[#allocation14 + $0x60] sm:$0xf] }
 0x54e   :  { %v1583_v24 = vmul.f32 %v5150_v34, %v1582_v23  ;;  %v3727_v14 = vor.u32 %v4074_v4, %v3726_v3  ;;  %v3728_v23 = vld [vmem:[#allocation11 + $0x10] sm:$0xf0]  ;;  %2118 = vmatpush.bf16.msrb.mxu3 %v3755_v39 }
 0x54f   :  { %v5173_v57 = vpop.eup %4260  ;;  %v1565_v11 = vadd.f32 %v5148_v21, %v1564_v46  ;;  %v1609_v46 = vand.u32 2147483647, %v5146_v8  ;;  %v3731_v62 = vor.u32 %v4072_v15, %v3728_v23  ;;  %v4129_v15 = vld [vmem:[#allocation14 + $0xcc] sm:$0xf]  ;;  %v3960_v23 = vld [vmem:[#allocation14 + $0xd8] sm:$0xf0] }
 0x550   :  { %v1584_v41 = vadd.f32 %v5150_v34, %v1583_v24  ;;  %v1601_v47 = vmul.f32 %v5173_v57, %v5146_v8  ;;  %2088 = vmatpush.bf16.msrb.mxu2 %v3767_v63  ;;  %vm1606_vm0 = vweird.f32 %v5173_v57  ;;  %2032 = vmatpush.bf16.msrb.mxu0 %v3727_v14 }
 0x551   :  { %v1569_v60 = vsel %vm5166_vm11, %v5148_v21, %v1565_v11  ;;  %v3744_v21 = vld [vmem:[#allocation11 + $0x30] sm:$0xf0]  ;;  %vm1607_vm2 = vmor %vm1605_vm1, %vm1606_vm0  ;;  %vm1610_vm3 = vcmp.eq.f32.partialorder %v1609_v46, 8.507059e+37  ;;  %v4138_v11 = vld [vmem:[#allocation3 + $0x10] sm:$0xff] }
 0x552   :  { %v1574_v9 = vsel %vm5159_vm10, %v1573_v55, %v1569_v60  ;;  %v1588_v13 = vsel %vm5182_vm14, %v5150_v34, %v1584_v41  ;;  %v1602_v20 = vsub.f32 1.0, %v1601_v47  ;;  %v3747_v34 = vor.u32 %v4076_v26, %v3744_v21  ;;  %v4073_v55 = vld [vmem:[#allocation11 + $0xc] sm:$0xf]  ;;  %v3976_v26 = vld [vmem:[#allocation14 + $0xf8] sm:$0xf0] }
 0x553   :  { %v1593_v32 = vsel %vm1590_vm15, %v1592_v29, %v1588_v13  ;;  %v1617_v33 = vmul.f32 %v4259_v36, %v1574_v9  ;;  %v3734_v29 = vld [vmem:[#allocation11 + $0x8] sm:$0xf]  ;;  %v3739_v6 = vor.u32 %v4073_v55, %v3736_v58  ;;  %v1612_v36 = vor.u32 1.1754944e-38, %v1611_v42  ;;  %v3934_v58 = vld [vmem:[#allocation14 + $0xa0] sm:$0xf] }
 0x554   :  { %v1616_v51 = vmul.f32 %v1593_v32, %v5130_v5  ;;  %v1603_v52 = vmul.f32 %v5173_v57, %v1602_v20  ;;  %2060 = vmatpush.bf16.msrb.mxu1 %v3747_v34  ;;  %2089 = vmatpush.bf16.msrb.mxu2 %v3751_v10  ;;  %v3735_v25 = vor.u32 %v4075_v56, %v3734_v29  ;;  %v3968_v20 = vld [vmem:[#allocation14 + $0xf0] sm:$0xf0]  ;;  %v3958_v29 = vld [vmem:[#allocation14 + $0xc8] sm:$0xf]  ;;  %v4131_v56 = vld [vmem:[#allocation14 + $0xd4] sm:$0xf0] }
 0x555   :  { %2119 = vmatpush.bf16.msrb.mxu3 %v3739_v6  ;;  %v5213_v21 = vor.u32 %v4132_v7, %v3968_v20  ;;  %v5215_v32 = vor.u32 %v4133_v22, %v3976_v26  ;;  %v3952_v10 = vld [vmem:[#allocation14 + $0xd0] sm:$0xf0]  ;;  %v5829_v42 = vld [vmem:[#allocation46_spill] sm:$0xff]  ;;  %v4126_v6 = vld [vmem:[#allocation14 + $0xac] sm:$0xf0] }
 0x556   :  { %v5196_v16 = vadd.f32 %v1617_v33, %v1616_v51  ;;  %v1604_v5 = vadd.f32 %v5173_v57, %v1603_v52  ;;  %v3974_v33 = vld [vmem:[#allocation14 + $0xe8] sm:$0xf]  ;;  %v3950_v51 = vld [vmem:[#allocation14 + $0xc0] sm:$0xf]  ;;  %v4130_v52 = vld [vmem:[#allocation14 + $0xcc] sm:$0xf0]  ;;  %v5229_v14 = vor.u32 %v4128_v2, %v3952_v10  ;;  %v471_v46 = vadd.f32 %v5829_v42, %v4855_v50 }
 0x557   :  { %v5218_v43 = vor.u32 %v4135_v54, %v3974_v33  ;;  %v5224_v34 = vor.u32 %v4130_v52, %v3950_v51  ;;  %v3944_v50 = vld [vmem:[#allocation14 + $0xb8] sm:$0xf0]  ;;  %v4118_v7 = vld [vmem:[#allocation14 + $0x6c] sm:$0xf0]  ;;  %v3904_v54 = vld [vmem:[#allocation14 + $0x70] sm:$0xf0] }
 0x558   :  { %4262 = vtanh.f32 %v5196_v16  ;;  %v1608_v0 = vsel %vm1607_vm2, %v5173_v57, %v1604_v5  ;;  %2061 = vmatpush.bf16.msrb.mxu1 %v3731_v62  ;;  %2090 = vmatpush.bf16.msrb.mxu2 %v3735_v25  ;;  %v4137_v57 = vld [vmem:[#allocation3 + $0x8] sm:$0xff]  ;;  %v5238_v25 = vor.u32 %v4129_v15, %v3960_v23  ;;  %v4123_v23 = vld [vmem:[#allocation14 + $0x94] sm:$0xf0]  ;;  %v4114_v42 = vld [vmem:[#allocation14 + $0x4c] sm:$0xf0] }
 0x559   :  { %v1613_v18 = vsel %vm1610_vm3, %v1612_v36, %v1608_v0  ;;  %v4124_v0 = vld [vmem:[#allocation14 + $0xa4] sm:$0xf]  ;;  %v5240_v36 = vor.u32 %v4131_v56, %v3958_v29  ;;  %v3926_v15 = vld [vmem:[#allocation14 + $0x88] sm:$0xf]  ;;  %v3886_v29 = vld [vmem:[#allocation14 + $0x40] sm:$0xf] }
 0x55e   :  { %v4263_v24 = vpop.eup %4262 }
 0x55f   :  { %v1620_v12 = vmul.f32 %v4263_v24, %v1613_v18  ;;  %v3936_v18 = vld [vmem:[#allocation14 + $0xb0] sm:$0xf0] }
 0x561   :  { %v1621_v19 = vpack.c.bf16 %v1620_v12, %v1620_v12  ;;  %v4125_v12 = vld [vmem:[#allocation14 + $0xac] sm:$0xf] }
 0x563   :  { %1623 = vst [vmem:[#allocation4] sm:$0xf] %v1621_v19 }
 0x564   :  { %1625 = vst [vmem:[#allocation3 + $0x18] sm:$0xf] %v1621_v19 }
 0x56a   :  { %v1633_v8 = vld [vmem:[#allocation4] sm:$0xf] }
 0x56b   :  { %1642 = vmatmul.bf16.vlgmr.msra.gmra.mxu0 %v1633_v8  ;;  %1655 = vmatmul.bf16.vlgmr.msra.gmra.mxu1 %v1633_v8 }
 0x56c   :  { %1668 = vmatmul.bf16.vlgmr.msra.gmra.mxu2 %v1633_v8  ;;  %1681 = vmatmul.bf16.vlgmr.msra.gmra.mxu3 %v1633_v8 }
 0x56d   :  { %2340 = vmatpush.bf16.msra.mxu0 %v5211_v38  ;;  %2353 = vmatpush.bf16.msra.mxu1 %v5213_v21 }
 0x56e   :  { %2379 = vmatpush.bf16.msra.mxu3 %v5215_v32  ;;  %2366 = vmatpush.bf16.msra.mxu2 %v5218_v43 }
 0x571   :  { %2341 = vmatpush.bf16.msra.mxu0 %v5224_v34  ;;  %2354 = vmatpush.bf16.msra.mxu1 %v5229_v14 }
 0x572   :  { %2380 = vmatpush.bf16.msra.mxu3 %v5238_v25  ;;  %2367 = vmatpush.bf16.msra.mxu2 %v5240_v36 }
 0x57b   :  { %2033 = vmatmul.bf16.vlgmr.msrb.gmra.mxu0 %v4136_v45  ;;  %2062 = vmatmul.bf16.vlgmr.msrb.gmra.mxu1 %v4136_v45 }
 0x57c   :  { %2091 = vmatmul.bf16.vlgmr.msrb.gmra.mxu2 %v4136_v45  ;;  %2120 = vmatmul.bf16.vlgmr.msrb.gmra.mxu3 %v4136_v45  ;;  %v5244_v45 = vor.u32 %v4126_v6, %v3934_v58  ;;  %v5300_v58 = vor.u32 %v4123_v23, %v3926_v15  ;;  %v4104_v15 = vld [vmem:[#allocation14 + $0x4] sm:$0xf] }
 0x57e   :  { %2342 = vmatpush.bf16.msra.mxu0 %v5244_v45 }
 0x58b   :  { %2038 = vmatmul.bf16.gmra.mxu0 %v4137_v57  ;;  %2067 = vmatmul.bf16.gmra.mxu1 %v4137_v57 }
 0x58c   :  { %2096 = vmatmul.bf16.gmra.mxu2 %v4137_v57  ;;  %2125 = vmatmul.bf16.gmra.mxu3 %v4137_v57  ;;  %v5246_v57 = vor.u32 %v4124_v0, %v3936_v18  ;;  %v3896_v18 = vld [vmem:[#allocation14 + $0x58] sm:$0xf0] }
 0x58e   :  { %2355 = vmatpush.bf16.msra.mxu1 %v5246_v57 }
 0x59b   :  { %2043 = vmatmul.bf16.gmra.mxu0 %v4138_v11  ;;  %2072 = vmatmul.bf16.gmra.mxu1 %v4138_v11 }
 0x59c   :  { %2101 = vmatmul.bf16.gmra.mxu2 %v4138_v11  ;;  %2130 = vmatmul.bf16.gmra.mxu3 %v4138_v11  ;;  %v3918_v11 = vld [vmem:[#allocation14 + $0x80] sm:$0xf] }
 0x5e8   :  { %v1643_v37 = vpop.f32.mrf.mxu0  ;;  %v1656_v41 = vpop.f32.mrf.mxu1 }
 0x5e9   :  { %v1686_v47 = vadd.f32 %v1643_v37, %v413_v30  ;;  %v1687_v48 = vadd.f32 %v1656_v41, %v442_v40  ;;  %v5252_v40 = vor.u32 %v4125_v12, %v3944_v50  ;;  %v4120_v37 = vld [vmem:[#allocation14 + $0x84] sm:$0xf]  ;;  %v3920_v41 = vld [vmem:[#allocation14 + $0x90] sm:$0xf0]  ;;  %v3910_v12 = vld [vmem:[#allocation14 + $0x68] sm:$0xf] }
 0x5eb   :  { %v3705_v49 = vmul.f32 -1.442695, %v1686_v47  ;;  %v3706_v53 = vmul.f32 -1.442695, %v1687_v48  ;;  %v5258_v48 = vor.u32 %v4122_v27, %v3918_v11  ;;  %2381 = vmatpush.bf16.msra.mxu3 %v5252_v40  ;;  %v5321_v27 = vor.u32 %v4114_v42, %v3886_v29  ;;  %v3856_v29 = vld [vmem:[#allocation14 + $0x10] sm:$0xf0] }
 0x5ec   :  { %v4111_v42 = vld [vmem:[#allocation14 + $0x34] sm:$0xf0] }
 0x5ed   :  { %4264 = vpow2.f32 %v3705_v49  ;;  %v5260_v49 = vor.u32 %v4120_v37, %v3920_v41  ;;  %2343 = vmatpush.bf16.msra.mxu0 %v5258_v48  ;;  %v3870_v37 = vld [vmem:[#allocation14 + $0x20] sm:$0xf]  ;;  %v4107_v11 = vld [vmem:[#allocation14 + $0x14] sm:$0xf0] }
 0x5ee   :  { %4266 = vpow2.f32 %v3706_v53  ;;  %v4121_v53 = vld [vmem:[#allocation14 + $0x8c] sm:$0xf] }
 0x5ef   :  { %v1669_v60 = vpop.f32.mrf.mxu2  ;;  %v1682_v63 = vpop.f32.mrf.mxu3  ;;  %v5277_v26 = vor.u32 %v4121_v53, %v3928_v59  ;;  %2356 = vmatpush.bf16.msra.mxu1 %v5260_v49 }
 0x5f0   :  { %v1689_v31 = vadd.f32 %v1682_v63, %v500_v28  ;;  %v1645_v9 = vpop.f32.mrf.mxu0  ;;  %v1658_v13 = vpop.f32.mrf.mxu1  ;;  %v1688_v8 = vadd.f32 %v1669_v60, %v471_v46  ;;  %v3942_v28 = vld [vmem:[#allocation14 + $0xa8] sm:$0xf]  ;;  %v4112_v46 = vld [vmem:[#allocation14 + $0x44] sm:$0xf] }
 0x5f1   :  { %v4116_v13 = vld [vmem:[#allocation14 + $0x64] sm:$0xf]  ;;  %v5279_v33 = vor.u32 %v4127_v61, %v3942_v28  ;;  %2382 = vmatpush.bf16.msra.mxu3 %v5277_v26  ;;  %v4110_v28 = vld [vmem:[#allocation14 + $0x2c] sm:$0xf0]  ;;  %v3872_v61 = vld [vmem:[#allocation14 + $0x30] sm:$0xf0] }
 0x5f2   :  { %v3707_v35 = vmul.f32 -1.442695, %v1689_v31 }
 0x5f3   :  { %v4265_v44 = vpop.eup %4264  ;;  %2368 = vmatpush.bf16.msra.mxu2 %v5279_v33 }
 0x5f4   :  { %v4267_v3 = vpop.eup %4266  ;;  %v5222_v4 = vadd.f32 1.0, %v4265_v44  ;;  %4268 = vpow2.f32 %v3707_v35  ;;  %v4117_v35 = vld [vmem:[#allocation14 + $0x6c] sm:$0xf] }
 0x5f5   :  { %v5227_v39 = vadd.f32 1.0, %v4267_v3  ;;  %v5289_v3 = vor.u32 %v4118_v7, %v3902_v1 }
 0x5f6   :  { %4270 = vrcp.f32 %v5222_v4  ;;  %v1703_v62 = vand.u32 2147483647, %v5222_v4  ;;  %v1705_v24 = vand.u32 2147483648, %v5222_v4  ;;  %vm1699_vm5 = vweird.f32 %v5222_v4 }
 0x5f7   :  { %4272 = vrcp.f32 %v5227_v39  ;;  %v1671_v5 = vpop.f32.mrf.mxu2  ;;  %v1684_v55 = vpop.f32.mrf.mxu3  ;;  %v1724_v30 = vand.u32 2147483648, %v5227_v39  ;;  %v1722_v9 = vand.u32 2147483647, %v5227_v39  ;;  %vm1718_vm9 = vweird.f32 %v5227_v39  ;;  %2344 = vmatpush.bf16.msra.mxu0 %v5289_v3  ;;  %2369 = vmatpush.bf16.msra.mxu2 %v5300_v58 }
 0x5f8   :  { %vm5273_vm6 = vcmp.eq.f32.partialorder %v1703_v62, 8.507059e+37  ;;  %v1706_v2 = vor.u32 1.1754944e-38, %v1705_v24  ;;  %v5296_v5 = vor.u32 %v4116_v13, %v3904_v54  ;;  %v3888_v62 = vld [vmem:[#allocation14 + $0x50] sm:$0xf0]  ;;  %v4113_v24 = vld [vmem:[#allocation14 + $0x4c] sm:$0xf] }
 0x5f9   :  { %v1725_v51 = vor.u32 1.1754944e-38, %v1724_v30  ;;  %vm5313_vm11 = vcmp.eq.f32.partialorder %v1722_v9, 8.507059e+37  ;;  %v4119_v30 = vld [vmem:[#allocation14 + $0x74] sm:$0xf0]  ;;  %v5327_v53 = vor.u32 %v4112_v46, %v3888_v62  ;;  %v3894_v9 = vld [vmem:[#allocation14 + $0x48] sm:$0xf] }
 0x5fa   :  { %v4269_v19 = vpop.eup %4268  ;;  %2357 = vmatpush.bf16.msra.mxu1 %v5296_v5  ;;  %v5329_v59 = vor.u32 %v4119_v30, %v3910_v12  ;;  %v4115_v13 = vld [vmem:[#allocation14 + $0x54] sm:$0xf0]  ;;  %v4105_v62 = vld [vmem:[#allocation14 + $0xc] sm:$0xf] }
 0x5fb   :  { %v5250_v17 = vadd.f32 1.0, %v4269_v19  ;;  %2345 = vmatpush.bf16.msra.mxu0 %v5321_v27 }
 0x5fc   :  { %v5254_v47 = vpop.eup %4270  ;;  %2370 = vmatpush.bf16.msra.mxu2 %v5329_v59 }
 0x5fd   :  { %v5262_v60 = vpop.eup %4272  ;;  %v1695_v63 = vmul.f32 %v5254_v47, %v5222_v4  ;;  %vm1700_vm4 = vweird.f32 %v5254_v47  ;;  %4274 = vrcp.f32 %v5250_v17  ;;  %v3912_v4 = vld [vmem:[#allocation14 + $0x78] sm:$0xf0]  ;;  %vm1738_vm13 = vweird.f32 %v5250_v17 }
 0x5fe   :  { %v1714_v31 = vmul.f32 %v5262_v60, %v5227_v39  ;;  %4276 = vtanh.f32 %v1688_v8  ;;  %vm5283_vm7 = vmor %vm1699_vm5, %vm1700_vm4  ;;  %vm1719_vm8 = vweird.f32 %v5262_v60  ;;  %v5298_v55 = vor.u32 %v4117_v35, %v3912_v4  ;;  %v4109_v35 = vld [vmem:[#allocation14 + $0x2c] sm:$0xf]  ;;  %2358 = vmatpush.bf16.msra.mxu1 %v5327_v53 }
 0x5ff   :  { %v1696_v20 = vsub.f32 1.0, %v1695_v63  ;;  %vm5308_vm10 = vmor %vm1718_vm9, %vm1719_vm8  ;;  %v4108_v63 = vld [vmem:[#allocation14 + $0x24] sm:$0xf]  ;;  %v5350_v4 = vor.u32 %v4115_v13, %v3894_v9  ;;  %v1742_v12 = vand.u32 2147483647, %v5250_v17  ;;  %v2063_v9 = vpop.f32.mrf.mxu1  ;;  %v2092_v13 = vpop.f32.mrf.mxu2 }
 0x600   :  { %v1715_v44 = vsub.f32 1.0, %v1714_v31  ;;  %2383 = vmatpush.bf16.msra.mxu3 %v5298_v55 }
 0x601   :  { %v1697_v10 = vmul.f32 %v5254_v47, %v1696_v20  ;;  %2371 = vmatpush.bf16.msra.mxu2 %v5350_v4  ;;  %vm1743_vm15 = vcmp.eq.f32.partialorder %v1742_v12, 8.507059e+37 }
 0x602   :  { %v1716_v56 = vmul.f32 %v5262_v60, %v1715_v44  ;;  %v3880_v44 = vld [vmem:[#allocation14 + $0x38] sm:$0xf0] }
 0x603   :  { %v5302_v6 = vpop.eup %4274  ;;  %v1698_v0 = vadd.f32 %v5254_v47, %v1697_v10  ;;  %v4106_v10 = vld [vmem:[#allocation14 + $0xc] sm:$0xf0] }
 0x604   :  { %v4277_v19 = vpop.eup %4276  ;;  %v1717_v50 = vadd.f32 %v5262_v60, %v1716_v56  ;;  %v1734_v39 = vmul.f32 %v5302_v6, %v5250_v17  ;;  %v3878_v56 = vld [vmem:[#allocation14 + $0x28] sm:$0xf]  ;;  %vm1739_vm12 = vweird.f32 %v5302_v6 }
 0x605   :  { %v1702_v41 = vsel %vm5283_vm7, %v5254_v47, %v1698_v0  ;;  %v5337_v47 = vor.u32 %v4113_v24, %v3896_v18  ;;  %v3864_v0 = vld [vmem:[#allocation14 + $0x18] sm:$0xf0]  ;;  %v1744_v24 = vand.u32 2147483648, %v5250_v17  ;;  %v5367_v8 = vor.u32 %v4111_v42, %v3878_v56  ;;  %vm1740_vm14 = vmor %vm1738_vm13, %vm1739_vm12 }
 0x606   :  { %v1707_v1 = vsel %vm5273_vm6, %v1706_v2, %v1702_v41  ;;  %v1721_v7 = vsel %vm5308_vm10, %v5262_v60, %v1717_v50  ;;  %v1735_v31 = vsub.f32 1.0, %v1734_v39  ;;  %v5344_v60 = vor.u32 %v4110_v28, %v3870_v37  ;;  %v3862_v50 = vld [vmem:[#allocation14 + $0x8] sm:$0xf] }
 0x607   :  { %v1726_v20 = vsel %vm5313_vm11, %v1725_v51, %v1721_v7  ;;  %v1750_v54 = vmul.f32 %v4277_v19, %v1707_v1  ;;  %v5348_v2 = vor.u32 %v4108_v63, %v3872_v61  ;;  %v3854_v51 = vld [vmem:[#allocation14] sm:$0xf]  ;;  %2384 = vmatpush.bf16.msra.mxu3 %v5337_v47  ;;  %v5365_v19 = vor.u32 %v4104_v15, %v3856_v29 }
 0x608   :  { %v1749_v22 = vmul.f32 %v1726_v20, %v5196_v16  ;;  %v1736_v52 = vmul.f32 %v5302_v6, %v1735_v31  ;;  %v5353_v16 = vor.u32 %v4109_v35, %v3880_v44  ;;  %2346 = vmatpush.bf16.msra.mxu0 %v5344_v60  ;;  %v5359_v18 = vor.u32 %v4106_v10, %v3854_v51  ;;  %v2034_v31 = vpop.f32.mrf.mxu0  ;;  %v2121_v20 = vpop.f32.mrf.mxu3 }
 0x609   :  { %2359 = vmatpush.bf16.msra.mxu1 %v5348_v2  ;;  %v5370_v39 = vor.u32 %v4105_v62, %v3864_v0  ;;  %v1745_v37 = vor.u32 1.1754944e-38, %v1744_v24  ;;  %2372 = vmatpush.bf16.msra.mxu2 %v5367_v8  ;;  %v5376_v17 = vor.u32 %v4107_v11, %v3862_v50  ;;  %v5838_v61 = vmov 0   ;;  %v5447_v35 = vpop.f32.mrf.mxu1  ;;  %v5449_v44 = vpop.f32.mrf.mxu2 }
 0x60a   :  { %v1751_v23 = vadd.f32 %v1750_v54, %v1749_v22  ;;  %v1737_v46 = vadd.f32 %v5302_v6, %v1736_v52  ;;  %5839 = vst [vmem:[#allocation23_spill] sm:$0xff] %v5449_v44 }
 0x60b   :  { %2385 = vmatpush.bf16.msra.mxu3 %v5353_v16 }
 0x60c   :  { %4278 = vtanh.f32 %v1751_v23  ;;  %v1741_v30 = vsel %vm1740_vm14, %v5302_v6, %v1737_v46  ;;  %2347 = vmatpush.bf16.msra.mxu0 %v5359_v18 }
 0x60d   :  { %2360 = vmatpush.bf16.msra.mxu1 %v5365_v19  ;;  %v1746_v28 = vsel %vm1743_vm15, %v1745_v37, %v1741_v30  ;;  %2373 = vmatpush.bf16.msra.mxu2 %v5376_v17 }
 0x60f   :  { %2386 = vmatpush.bf16.msra.mxu3 %v5370_v39 }
 0x610   :  { %2469 = vmatpush.bf16.msrb.mxu0 %v5211_v38  ;;  %v5445_v54 = vpop.f32.mrf.mxu0  ;;  %v5451_v22 = vpop.f32.mrf.mxu3 }
 0x611   :  { %2482 = vmatpush.bf16.msrb.mxu1 %v5213_v21  ;;  %2495 = vmatpush.bf16.msrb.mxu2 %v5218_v43  ;;  %v5455_v51 = vpop.f32.mrf.mxu1  ;;  %v5457_v10 = vpop.f32.mrf.mxu2 }
 0x612   :  { %v4279_v41 = vpop.eup %4278  ;;  %5841 = vst [vmem:[#allocation25_spill] sm:$0xff] %v5455_v51 }
 0x613   :  { %v1753_v63 = vmul.f32 %v4279_v41, %v1746_v28  ;;  %2508 = vmatpush.bf16.msrb.mxu3 %v5215_v32  ;;  %5842 = vst [vmem:[#allocation28_spill] sm:$0xff] %v5457_v10 }
 0x614   :  { %2470 = vmatpush.bf16.msrb.mxu0 %v5224_v34 }
 0x615   :  { %v1754_v6 = vpack.c.bf16 %v1753_v63, %v1753_v63  ;;  %2483 = vmatpush.bf16.msrb.mxu1 %v5229_v14  ;;  %2496 = vmatpush.bf16.msrb.mxu2 %v5240_v36 }
 0x617   :  { %1756 = vst [vmem:[#allocation4] sm:$0xf] %v1754_v6  ;;  %2509 = vmatpush.bf16.msrb.mxu3 %v5238_v25 }
 0x618   :  { %1758 = vst [vmem:[#allocation3 + $0x1c] sm:$0xf] %v1754_v6  ;;  %2471 = vmatpush.bf16.msrb.mxu0 %v5244_v45  ;;  %v5453_v52 = vpop.f32.mrf.mxu0  ;;  %v5459_v15 = vpop.f32.mrf.mxu3  ;;  %v1823_v6 = vld [vmem:[#allocation15] sm:$0xf] }
 0x619   :  { %2173 = vst [vmem:[#allocation4] sm:$0xf] %v5838_v61  ;;  %2484 = vmatpush.bf16.msrb.mxu1 %v5246_v57  ;;  %2497 = vmatpush.bf16.msrb.mxu2 %v5279_v33  ;;  %v5463_v29 = vpop.f32.mrf.mxu1  ;;  %v5465_v56 = vpop.f32.mrf.mxu2 }
 0x61a   :  { %5840 = vst [vmem:[#allocation24_spill] sm:$0xff] %v5453_v52 }
 0x61b   :  { %2510 = vmatpush.bf16.msrb.mxu3 %v5252_v40  ;;  %5843 = vst [vmem:[#allocation26_spill] sm:$0xff] %v5459_v15 }
 0x61c   :  { %2472 = vmatpush.bf16.msrb.mxu0 %v5258_v48  ;;  %5845 = vst [vmem:[#allocation29_spill] sm:$0xff] %v5463_v29 }
 0x61d   :  { %2485 = vmatpush.bf16.msrb.mxu1 %v5260_v49  ;;  %2498 = vmatpush.bf16.msrb.mxu2 %v5300_v58  ;;  %5846 = vst [vmem:[#allocation31_spill] sm:$0xff] %v5465_v56 }
 0x61f   :  { %v4139_v1 = vld [vmem:[#allocation3 + $0x18] sm:$0xff]  ;;  %2511 = vmatpush.bf16.msrb.mxu3 %v5277_v26 }
 0x620   :  { %2048 = vmatmul.bf16.gmra.mxu0 %v4139_v1  ;;  %2077 = vmatmul.bf16.gmra.mxu1 %v4139_v1  ;;  %v2179_v7 = vld [vmem:[#allocation4] sm:$0xf]  ;;  %v5461_v23 = vpop.f32.mrf.mxu0  ;;  %v5467_v42 = vpop.f32.mrf.mxu3 }
 0x621   :  { %2106 = vmatmul.bf16.gmra.mxu2 %v4139_v1  ;;  %2135 = vmatmul.bf16.gmra.mxu3 %v4139_v1  ;;  %5844 = vst [vmem:[#allocation27_spill] sm:$0xff] %v5461_v23  ;;  %v5471_v62 = vpop.f32.mrf.mxu1  ;;  %v5473_v0 = vpop.f32.mrf.mxu2 }
 0x622   :  { %2473 = vmatpush.bf16.msrb.mxu0 %v5289_v3  ;;  %2486 = vmatpush.bf16.msrb.mxu1 %v5296_v5  ;;  %5847 = vst [vmem:[#allocation30_spill] sm:$0xff] %v5467_v42 }
 0x623   :  { %2512 = vmatpush.bf16.msrb.mxu3 %v5298_v55  ;;  %2499 = vmatpush.bf16.msrb.mxu2 %v5329_v59  ;;  %5849 = vst [vmem:[#allocation33_spill] sm:$0xff] %v5471_v62 }
 0x624   :  { %5850 = vst [vmem:[#allocation36_spill] sm:$0xff] %v5473_v0 }
 0x626   :  { %2474 = vmatpush.bf16.msrb.mxu0 %v5321_v27  ;;  %2487 = vmatpush.bf16.msrb.mxu1 %v5327_v53 }
 0x627   :  { %2513 = vmatpush.bf16.msrb.mxu3 %v5337_v47  ;;  %2500 = vmatpush.bf16.msrb.mxu2 %v5350_v4 }
 0x628   :  { %v5469_v46 = vpop.f32.mrf.mxu0  ;;  %v5475_v24 = vpop.f32.mrf.mxu3 }
 0x629   :  { %5848 = vst [vmem:[#allocation32_spill] sm:$0xff] %v5469_v46  ;;  %v5479_v50 = vpop.f32.mrf.mxu1  ;;  %v5481_v11 = vpop.f32.mrf.mxu2 }
 0x62a   :  { %2475 = vmatpush.bf16.msrb.mxu0 %v5344_v60  ;;  %2488 = vmatpush.bf16.msrb.mxu1 %v5348_v2  ;;  %5851 = vst [vmem:[#allocation34_spill] sm:$0xff] %v5475_v24  ;;  %v5507_v24 = vperm.slane %v1823_v6, 3 }
 0x62b   :  { %2514 = vmatpush.bf16.msrb.mxu3 %v5353_v16  ;;  %2501 = vmatpush.bf16.msrb.mxu2 %v5367_v8  ;;  %5853 = vst [vmem:[#allocation37_spill] sm:$0xff] %v5479_v50  ;;  %v5499_v50 = vperm.slane %v1823_v6, 1 }
 0x62c   :  { %5854 = vst [vmem:[#allocation39_spill] sm:$0xff] %v5481_v11  ;;  %v2122_v62 = vadd.f32 %v2121_v20, %v5507_v24 }
 0x62e   :  { %2476 = vmatpush.bf16.msrb.mxu0 %v5359_v18  ;;  %2489 = vmatpush.bf16.msrb.mxu1 %v5365_v19 }
 0x62f   :  { %2515 = vmatpush.bf16.msrb.mxu3 %v5370_v39  ;;  %2502 = vmatpush.bf16.msrb.mxu2 %v5376_v17 }
 0x630   :  { %2348 = vmatmul.bf16.vlgmr.msra.gmra.mxu0 %v2179_v7  ;;  %2361 = vmatmul.bf16.vlgmr.msra.gmra.mxu1 %v2179_v7  ;;  %v5477_v12 = vpop.f32.mrf.mxu0  ;;  %v5483_v30 = vpop.f32.mrf.mxu3 }
 0x631   :  { %2374 = vmatmul.bf16.vlgmr.msra.gmra.mxu2 %v2179_v7  ;;  %2387 = vmatmul.bf16.vlgmr.msra.gmra.mxu3 %v2179_v7  ;;  %5852 = vst [vmem:[#allocation35_spill] sm:$0xff] %v5477_v12  ;;  %v5497_v7 = vperm.slane %v1823_v6, 0 }
 0x632   :  { %2598 = vmatpush.bf16.msra.mxu0 %v5211_v38  ;;  %2611 = vmatpush.bf16.msra.mxu1 %v5213_v21  ;;  %5855 = vst [vmem:[#allocation38_spill] sm:$0xff] %v5483_v30  ;;  %v2064_v30 = vadd.f32 %v2063_v9, %v5499_v50 }
 0x633   :  { %2624 = vmatpush.bf16.msra.mxu2 %v5218_v43  ;;  %2637 = vmatpush.bf16.msra.mxu3 %v5215_v32  ;;  %v2035_v11 = vadd.f32 %v2034_v31, %v5497_v7 }
 0x636   :  { %2599 = vmatpush.bf16.msra.mxu0 %v5224_v34  ;;  %2612 = vmatpush.bf16.msra.mxu1 %v5229_v14 }
 0x637   :  { %2625 = vmatpush.bf16.msra.mxu2 %v5240_v36  ;;  %2638 = vmatpush.bf16.msra.mxu3 %v5238_v25 }
 0x63a   :  { %2600 = vmatpush.bf16.msra.mxu0 %v5244_v45  ;;  %2613 = vmatpush.bf16.msra.mxu1 %v5246_v57 }
 0x63b   :  { %2626 = vmatpush.bf16.msra.mxu2 %v5279_v33  ;;  %2639 = vmatpush.bf16.msra.mxu3 %v5252_v40 }
 0x63e   :  { %2601 = vmatpush.bf16.msra.mxu0 %v5258_v48  ;;  %2614 = vmatpush.bf16.msra.mxu1 %v5260_v49 }
 0x63f   :  { %2627 = vmatpush.bf16.msra.mxu2 %v5300_v58  ;;  %2640 = vmatpush.bf16.msra.mxu3 %v5277_v26 }
 0x642   :  { %2602 = vmatpush.bf16.msra.mxu0 %v5289_v3  ;;  %2615 = vmatpush.bf16.msra.mxu1 %v5296_v5 }
 0x643   :  { %2628 = vmatpush.bf16.msra.mxu2 %v5329_v59  ;;  %2641 = vmatpush.bf16.msra.mxu3 %v5298_v55 }
 0x646   :  { %2603 = vmatpush.bf16.msra.mxu0 %v5321_v27  ;;  %2616 = vmatpush.bf16.msra.mxu1 %v5327_v53 }
 0x647   :  { %2629 = vmatpush.bf16.msra.mxu2 %v5350_v4  ;;  %2642 = vmatpush.bf16.msra.mxu3 %v5337_v47 }
 0x64a   :  { %2604 = vmatpush.bf16.msra.mxu0 %v5344_v60  ;;  %2617 = vmatpush.bf16.msra.mxu1 %v5348_v2 }
 0x64b   :  { %2630 = vmatpush.bf16.msra.mxu2 %v5367_v8  ;;  %2643 = vmatpush.bf16.msra.mxu3 %v5353_v16 }
 0x64e   :  { %2605 = vmatpush.bf16.msra.mxu0 %v5359_v18  ;;  %2618 = vmatpush.bf16.msra.mxu1 %v5365_v19 }
 0x64f   :  { %2631 = vmatpush.bf16.msra.mxu2 %v5376_v17  ;;  %2644 = vmatpush.bf16.msra.mxu3 %v5370_v39 }
 0x69d   :  { %v5485_v37 = vpop.f32.mrf.mxu0  ;;  %v5487_v41 = vpop.f32.mrf.mxu1 }
 0x69e   :  { %5856 = vst [vmem:[#allocation40_spill] sm:$0xff] %v5485_v37 }
 0x69f   :  { %5857 = vst [vmem:[#allocation41_spill] sm:$0xff] %v5487_v41 }
 0x6a4   :  { %v5489_v28 = vpop.f32.mrf.mxu2  ;;  %v5491_v63 = vpop.f32.mrf.mxu3 }
 0x6a5   :  { %5858 = vst [vmem:[#allocation44_spill] sm:$0xff] %v5489_v28  ;;  %v5493_v61 = vpop.f32.mrf.mxu0  ;;  %v5495_v1 = vpop.f32.mrf.mxu1 }
 0x6a6   :  { %5859 = vst [vmem:[#allocation42_spill] sm:$0xff] %v5491_v63 }
 0x6a7   :  { %5860 = vst [vmem:[#allocation43_spill] sm:$0xff] %v5493_v61 }
 0x6a8   :  { %5861 = vst [vmem:[#allocation45_spill] sm:$0xff] %v5495_v1 }
 0x6ac   :  { %v5503_v37 = vpop.f32.mrf.mxu2  ;;  %v5505_v41 = vpop.f32.mrf.mxu3 }
 0x6ad   :  { %5862 = vst [vmem:[#allocation47_spill] sm:$0xff] %v5503_v37  ;;  %v2349_v28 = vpop.f32.mrf.mxu0  ;;  %v2362_v12 = vpop.f32.mrf.mxu1 }
 0x6ae   :  { %5863 = vst [vmem:[#allocation46_spill] sm:$0xff] %v5505_v41  ;;  %v2392_v63 = vadd.f32 %v2349_v28, %v2035_v11  ;;  %v2393_v0 = vadd.f32 %v2362_v12, %v2064_v30  ;;  %v5510_v12 = vperm.slane %v1823_v6, 2 }
 0x6b0   :  { %v3980_v61 = vmul.f32 -1.442695, %v2392_v63  ;;  %v3981_v1 = vmul.f32 -1.442695, %v2393_v0  ;;  %5864 = vst [vmem:[#allocation48_spill] sm:$0xff] %v5510_v12  ;;  %v2093_v20 = vadd.f32 %v2092_v13, %v5510_v12 }
 0x6b2   :  { %4280 = vpow2.f32 %v3980_v61 }
 0x6b3   :  { %4282 = vpow2.f32 %v3981_v1 }
 0x6b4   :  { %v2375_v46 = vpop.f32.mrf.mxu2  ;;  %v2388_v31 = vpop.f32.mrf.mxu3 }
 0x6b5   :  { %v2395_v56 = vadd.f32 %v2388_v31, %v2122_v62  ;;  %v2351_v9 = vpop.f32.mrf.mxu0  ;;  %v2364_v42 = vpop.f32.mrf.mxu1  ;;  %v2394_v62 = vadd.f32 %v2375_v46, %v2093_v20 }
 0x6b7   :  { %v3982_v37 = vmul.f32 -1.442695, %v2395_v56 }
 0x6b8   :  { %v4281_v29 = vpop.eup %4280 }
 0x6b9   :  { %v4283_v41 = vpop.eup %4282  ;;  %v2399_v23 = vadd.f32 1.0, %v4281_v29  ;;  %4284 = vpow2.f32 %v3982_v37 }
 0x6ba   :  { %v2418_v11 = vadd.f32 1.0, %v4283_v41 }
 0x6bb   :  { %4286 = vrcp.f32 %v2399_v23  ;;  %v2411_v37 = vand.u32 2147483648, %v2399_v23  ;;  %v2409_v9 = vand.u32 2147483647, %v2399_v23  ;;  %vm2405_vm2 = vweird.f32 %v2399_v23 }
 0x6bc   :  { %4288 = vrcp.f32 %v2418_v11  ;;  %v2390_v0 = vpop.f32.mrf.mxu3  ;;  %v2377_v30 = vpop.f32.mrf.mxu2  ;;  %v2430_v41 = vand.u32 2147483648, %v2418_v11  ;;  %vm2424_vm3 = vweird.f32 %v2418_v11 }
 0x6bd   :  { %v2428_v30 = vand.u32 2147483647, %v2418_v11  ;;  %v2412_v46 = vor.u32 1.1754944e-38, %v2411_v37  ;;  %vm2410_vm5 = vcmp.eq.f32.partialorder %v2409_v9, 8.507059e+37 }
 0x6be   :  { %v2431_v15 = vor.u32 1.1754944e-38, %v2430_v41 }
 0x6bf   :  { %v4285_v28 = vpop.eup %4284  ;;  %vm2429_vm7 = vcmp.eq.f32.partialorder %v2428_v30, 8.507059e+37 }
 0x6c0   :  { %v2438_v63 = vadd.f32 1.0, %v4285_v28 }
 0x6c1   :  { %v4287_v61 = vpop.eup %4286 }
 0x6c2   :  { %v4289_v1 = vpop.eup %4288  ;;  %v2401_v42 = vmul.f32 %v4287_v61, %v2399_v23  ;;  %4290 = vrcp.f32 %v2438_v63  ;;  %vm2406_vm0 = vweird.f32 %v4287_v61  ;;  %vm2444_vm9 = vweird.f32 %v2438_v63 }
 0x6c3   :  { %v2420_v56 = vmul.f32 %v4289_v1, %v2418_v11  ;;  %4292 = vtanh.f32 %v2394_v62  ;;  %vm2425_vm1 = vweird.f32 %v4289_v1  ;;  %vm2407_vm4 = vmor %vm2405_vm2, %vm2406_vm0  ;;  %v2450_v11 = vand.u32 2147483648, %v2438_v63 }
 0x6c4   :  { %v2402_v31 = vsub.f32 1.0, %v2401_v42  ;;  %vm2426_vm6 = vmor %vm2424_vm3, %vm2425_vm1 }
 0x6c5   :  { %v2421_v29 = vsub.f32 1.0, %v2420_v56  ;;  %v2451_v41 = vor.u32 1.1754944e-38, %v2450_v11 }
 0x6c6   :  { %v2403_v6 = vmul.f32 %v4287_v61, %v2402_v31 }
 0x6c7   :  { %v2422_v0 = vmul.f32 %v4289_v1, %v2421_v29 }
 0x6c8   :  { %v4291_v10 = vpop.eup %4290  ;;  %v2404_v13 = vadd.f32 %v4287_v61, %v2403_v6 }
 0x6c9   :  { %v2423_v28 = vadd.f32 %v4289_v1, %v2422_v0  ;;  %v2440_v20 = vmul.f32 %v4291_v10, %v2438_v63  ;;  %v4293_v62 = vpop.eup %4292  ;;  %vm2445_vm8 = vweird.f32 %v4291_v10 }
 0x6ca   :  { %v2408_v42 = vsel %vm2407_vm4, %v4287_v61, %v2404_v13  ;;  %v2448_v61 = vand.u32 2147483647, %v2438_v63  ;;  %vm2446_vm10 = vmor %vm2444_vm9, %vm2445_vm8 }
 0x6cb   :  { %v2413_v56 = vsel %vm2410_vm5, %v2412_v46, %v2408_v42  ;;  %v2427_v31 = vsel %vm2426_vm6, %v4289_v1, %v2423_v28  ;;  %v2441_v51 = vsub.f32 1.0, %v2440_v20  ;;  %v2124_v28 = vadd.f32 %v5451_v22, %v5507_v24 }
 0x6cc   :  { %v2432_v29 = vsel %vm2429_vm7, %v2431_v15, %v2427_v31  ;;  %v2456_v52 = vmul.f32 %v4293_v62, %v2413_v56  ;;  %vm2449_vm11 = vcmp.eq.f32.partialorder %v2448_v61, 8.507059e+37 }
 0x6cd   :  { %v2455_v44 = vmul.f32 0.0, %v2432_v29  ;;  %v2442_v12 = vmul.f32 %v4291_v10, %v2441_v51 }
 0x6cf   :  { %v5513_v6 = vadd.f32 %v2456_v52, %v2455_v44  ;;  %v2443_v23 = vadd.f32 %v4291_v10, %v2442_v12  ;;  %v2037_v44 = vadd.f32 %v5445_v54, %v5497_v7  ;;  %v2066_v52 = vadd.f32 %v5447_v35, %v5499_v50 }
 0x6d1   :  { %4294 = vtanh.f32 %v5513_v6  ;;  %v2447_v37 = vsel %vm2446_vm10, %v4291_v10, %v2443_v23 }
 0x6d2   :  { %v2452_v9 = vsel %vm2449_vm11, %v2451_v41, %v2447_v37 }
 0x6d7   :  { %v4295_v1 = vpop.eup %4294 }
 0x6d8   :  { %v2459_v0 = vmul.f32 %v4295_v1, %v2452_v9  ;;  %v5865_v1 = vld [vmem:[#allocation48_spill] sm:$0xff]  ;;  %v5866_v9 = vld [vmem:[#allocation23_spill] sm:$0xff] }
 0x6d9   :  { %v2095_v22 = vadd.f32 %v5866_v9, %v5865_v1 }
 0x6da   :  { %v2460_v15 = vpack.c.bf16 %v2459_v0, %v2459_v0 }
 0x6dc   :  { %2463 = vst [vmem:[#allocation3] sm:$0xf] %v2460_v15 }
 0x6dd   :  { %2462 = vst [vmem:[#allocation4] sm:$0xf] %v2460_v15 }
 0x6e4   :  { %v2468_v51 = vld [vmem:[#allocation4] sm:$0xf] }
 0x6e5   :  { %2477 = vmatmul.bf16.vlgmr.msrb.gmra.mxu0 %v2468_v51  ;;  %2490 = vmatmul.bf16.vlgmr.msrb.gmra.mxu1 %v2468_v51 }
 0x6e6   :  { %2503 = vmatmul.bf16.vlgmr.msrb.gmra.mxu2 %v2468_v51  ;;  %2516 = vmatmul.bf16.vlgmr.msrb.gmra.mxu3 %v2468_v51 }
 0x6e7   :  { %2727 = vmatpush.bf16.msrb.mxu0 %v5211_v38  ;;  %2740 = vmatpush.bf16.msrb.mxu1 %v5213_v21 }
 0x6e8   :  { %2753 = vmatpush.bf16.msrb.mxu2 %v5218_v43  ;;  %2766 = vmatpush.bf16.msrb.mxu3 %v5215_v32 }
 0x6eb   :  { %2728 = vmatpush.bf16.msrb.mxu0 %v5224_v34  ;;  %2741 = vmatpush.bf16.msrb.mxu1 %v5229_v14 }
 0x6ec   :  { %2754 = vmatpush.bf16.msrb.mxu2 %v5240_v36  ;;  %2767 = vmatpush.bf16.msrb.mxu3 %v5238_v25 }
 0x6ef   :  { %2729 = vmatpush.bf16.msrb.mxu0 %v5244_v45  ;;  %2742 = vmatpush.bf16.msrb.mxu1 %v5246_v57 }
 0x6f0   :  { %2755 = vmatpush.bf16.msrb.mxu2 %v5279_v33  ;;  %2768 = vmatpush.bf16.msrb.mxu3 %v5252_v40 }
 0x6f3   :  { %2730 = vmatpush.bf16.msrb.mxu0 %v5258_v48  ;;  %2743 = vmatpush.bf16.msrb.mxu1 %v5260_v49 }
 0x6f4   :  { %2756 = vmatpush.bf16.msrb.mxu2 %v5300_v58  ;;  %2769 = vmatpush.bf16.msrb.mxu3 %v5277_v26 }
 0x6f7   :  { %2731 = vmatpush.bf16.msrb.mxu0 %v5289_v3  ;;  %2744 = vmatpush.bf16.msrb.mxu1 %v5296_v5 }
 0x6f8   :  { %2757 = vmatpush.bf16.msrb.mxu2 %v5329_v59  ;;  %2770 = vmatpush.bf16.msrb.mxu3 %v5298_v55 }
 0x6fb   :  { %2732 = vmatpush.bf16.msrb.mxu0 %v5321_v27  ;;  %2745 = vmatpush.bf16.msrb.mxu1 %v5327_v53 }
 0x6fc   :  { %2758 = vmatpush.bf16.msrb.mxu2 %v5350_v4  ;;  %2771 = vmatpush.bf16.msrb.mxu3 %v5337_v47 }
 0x6ff   :  { %2733 = vmatpush.bf16.msrb.mxu0 %v5344_v60  ;;  %2746 = vmatpush.bf16.msrb.mxu1 %v5348_v2 }
 0x700   :  { %2759 = vmatpush.bf16.msrb.mxu2 %v5367_v8  ;;  %2772 = vmatpush.bf16.msrb.mxu3 %v5353_v16 }
 0x703   :  { %2734 = vmatpush.bf16.msrb.mxu0 %v5359_v18  ;;  %2747 = vmatpush.bf16.msrb.mxu1 %v5365_v19 }
 0x704   :  { %2760 = vmatpush.bf16.msrb.mxu2 %v5376_v17  ;;  %2773 = vmatpush.bf16.msrb.mxu3 %v5370_v39 }
 0x762   :  { %v2478_v10 = vpop.f32.mrf.mxu0  ;;  %v2491_v12 = vpop.f32.mrf.mxu1 }
 0x763   :  { %v2521_v63 = vadd.f32 %v2478_v10, %v2037_v44  ;;  %v2522_v30 = vadd.f32 %v2491_v12, %v2066_v52 }
 0x765   :  { %v3983_v13 = vmul.f32 -1.442695, %v2521_v63  ;;  %v3984_v46 = vmul.f32 -1.442695, %v2522_v30 }
 0x767   :  { %4296 = vpow2.f32 %v3983_v13 }
 0x768   :  { %4298 = vpow2.f32 %v3984_v46 }
 0x769   :  { %v2504_v20 = vpop.f32.mrf.mxu2  ;;  %v2517_v42 = vpop.f32.mrf.mxu3 }
 0x76a   :  { %v2524_v62 = vadd.f32 %v2517_v42, %v2124_v28  ;;  %v2480_v56 = vpop.f32.mrf.mxu0  ;;  %v2493_v31 = vpop.f32.mrf.mxu1  ;;  %v2523_v51 = vadd.f32 %v2504_v20, %v2095_v22 }
 0x76c   :  { %v3985_v54 = vmul.f32 -1.442695, %v2524_v62 }
 0x76d   :  { %v4297_v29 = vpop.eup %4296 }
 0x76e   :  { %v4299_v23 = vpop.eup %4298  ;;  %v2528_v35 = vadd.f32 1.0, %v4297_v29  ;;  %4300 = vpow2.f32 %v3985_v54 }
 0x76f   :  { %v2547_v11 = vadd.f32 1.0, %v4299_v23 }
 0x770   :  { %4302 = vrcp.f32 %v2528_v35  ;;  %v2540_v30 = vand.u32 2147483648, %v2528_v35  ;;  %v2538_v28 = vand.u32 2147483647, %v2528_v35  ;;  %vm2534_vm14 = vweird.f32 %v2528_v35 }
 0x771   :  { %4304 = vrcp.f32 %v2547_v11  ;;  %v2506_v61 = vpop.f32.mrf.mxu2  ;;  %v2519_v37 = vpop.f32.mrf.mxu3  ;;  %v2559_v13 = vand.u32 2147483648, %v2547_v11  ;;  %v2557_v62 = vand.u32 2147483647, %v2547_v11  ;;  %vm2553_vm15 = vweird.f32 %v2547_v11 }
 0x772   :  { %v2541_v20 = vor.u32 1.1754944e-38, %v2540_v30  ;;  %vm2539_vm2 = vcmp.eq.f32.partialorder %v2538_v28, 8.507059e+37 }
 0x773   :  { %v2560_v23 = vor.u32 1.1754944e-38, %v2559_v13  ;;  %vm2558_vm3 = vcmp.eq.f32.partialorder %v2557_v62, 8.507059e+37 }
 0x774   :  { %v4301_v41 = vpop.eup %4300 }
 0x775   :  { %v2567_v0 = vadd.f32 1.0, %v4301_v41 }
 0x776   :  { %v4303_v15 = vpop.eup %4302 }
 0x777   :  { %v4305_v44 = vpop.eup %4304  ;;  %v2530_v52 = vmul.f32 %v4303_v15, %v2528_v35  ;;  %4306 = vrcp.f32 %v2567_v0  ;;  %vm2535_vm12 = vweird.f32 %v4303_v15  ;;  %vm2573_vm5 = vweird.f32 %v2567_v0 }
 0x778   :  { %v2549_v10 = vmul.f32 %v4305_v44, %v2547_v11  ;;  %4308 = vtanh.f32 %v2523_v51  ;;  %vm2554_vm13 = vweird.f32 %v4305_v44  ;;  %vm2536_vm0 = vmor %vm2534_vm14, %vm2535_vm12 }
 0x779   :  { %v2531_v12 = vsub.f32 1.0, %v2530_v52  ;;  %vm2555_vm1 = vmor %vm2553_vm15, %vm2554_vm13 }
 0x77a   :  { %v2550_v63 = vsub.f32 1.0, %v2549_v10 }
 0x77b   :  { %v2532_v46 = vmul.f32 %v4303_v15, %v2531_v12 }
 0x77c   :  { %v2551_v42 = vmul.f32 %v4305_v44, %v2550_v63  ;;  %v2579_v63 = vand.u32 2147483648, %v2567_v0 }
 0x77d   :  { %v4307_v56 = vpop.eup %4306  ;;  %v2533_v31 = vadd.f32 %v4303_v15, %v2532_v46 }
 0x77e   :  { %v2552_v54 = vadd.f32 %v4305_v44, %v2551_v42  ;;  %v2569_v29 = vmul.f32 %v4307_v56, %v2567_v0  ;;  %v4309_v37 = vpop.eup %4308  ;;  %vm2574_vm4 = vweird.f32 %v4307_v56  ;;  %v2580_v13 = vor.u32 1.1754944e-38, %v2579_v63 }
 0x77f   :  { %v2537_v61 = vsel %vm2536_vm0, %v4303_v15, %v2533_v31  ;;  %v2577_v15 = vand.u32 2147483647, %v2567_v0  ;;  %vm2575_vm6 = vmor %vm2573_vm5, %vm2574_vm4  ;;  %v5867_v0 = vld [vmem:[#allocation24_spill] sm:$0xff]  ;;  %v5868_v31 = vld [vmem:[#allocation25_spill] sm:$0xff] }
 0x780   :  { %v2542_v41 = vsel %vm2539_vm2, %v2541_v20, %v2537_v61  ;;  %v2556_v9 = vsel %vm2555_vm1, %v4305_v44, %v2552_v54  ;;  %v2570_v22 = vsub.f32 1.0, %v2569_v29  ;;  %v2069_v20 = vadd.f32 %v5868_v31, %v5499_v50 }
 0x781   :  { %v2561_v51 = vsel %vm2558_vm3, %v2560_v23, %v2556_v9  ;;  %v2585_v52 = vmul.f32 %v4309_v37, %v2542_v41  ;;  %vm2578_vm7 = vcmp.eq.f32.partialorder %v2577_v15, 8.507059e+37  ;;  %v5869_v9 = vld [vmem:[#allocation26_spill] sm:$0xff] }
 0x782   :  { %v2584_v10 = vmul.f32 %v2561_v51, %v5513_v6  ;;  %v2571_v12 = vmul.f32 %v4307_v56, %v2570_v22  ;;  %v2127_v22 = vadd.f32 %v5869_v9, %v5507_v24 }
 0x784   :  { %v5557_v35 = vadd.f32 %v2585_v52, %v2584_v10  ;;  %v2572_v11 = vadd.f32 %v4307_v56, %v2571_v12 }
 0x786   :  { %4310 = vtanh.f32 %v5557_v35  ;;  %v2576_v30 = vsel %vm2575_vm6, %v4307_v56, %v2572_v11  ;;  %v2040_v56 = vadd.f32 %v5867_v0, %v5497_v7 }
 0x787   :  { %v2581_v46 = vsel %vm2578_vm7, %v2580_v13, %v2576_v30 }
 0x78c   :  { %v4311_v44 = vpop.eup %4310 }
 0x78d   :  { %v2588_v28 = vmul.f32 %v4311_v44, %v2581_v46 }
 0x78f   :  { %v2589_v42 = vpack.c.bf16 %v2588_v28, %v2588_v28 }
 0x791   :  { %2592 = vst [vmem:[#allocation3 + $0x4] sm:$0xf] %v2589_v42 }
 0x792   :  { %2591 = vst [vmem:[#allocation4] sm:$0xf] %v2589_v42 }
 0x798   :  { %v3367_v6 = vld [vmem:[#allocation3] sm:$0xff]  }
 0x799   :  { %v2597_v62 = vld [vmem:[#allocation4] sm:$0xf]  ;;  %3375 = vst [vmem:[#allocation17] sm:$0xff] %v3367_v6   ;;  %v5870_v6 = vld [vmem:[#allocation28_spill] sm:$0xff] }
 0x79a   :  { %2606 = vmatmul.bf16.vlgmr.msra.gmra.mxu0 %v2597_v62  ;;  %2619 = vmatmul.bf16.vlgmr.msra.gmra.mxu1 %v2597_v62 }
 0x79b   :  { %2632 = vmatmul.bf16.vlgmr.msra.gmra.mxu2 %v2597_v62  ;;  %2645 = vmatmul.bf16.vlgmr.msra.gmra.mxu3 %v2597_v62  ;;  %v2098_v62 = vadd.f32 %v5870_v6, %v5865_v1 }
 0x79c   :  { %2856 = vmatpush.bf16.msra.mxu0 %v5211_v38  ;;  %2869 = vmatpush.bf16.msra.mxu1 %v5213_v21 }
 0x79d   :  { %2882 = vmatpush.bf16.msra.mxu2 %v5218_v43  ;;  %2895 = vmatpush.bf16.msra.mxu3 %v5215_v32 }
 0x7a0   :  { %2857 = vmatpush.bf16.msra.mxu0 %v5224_v34  ;;  %2870 = vmatpush.bf16.msra.mxu1 %v5229_v14 }
 0x7a1   :  { %2883 = vmatpush.bf16.msra.mxu2 %v5240_v36  ;;  %2896 = vmatpush.bf16.msra.mxu3 %v5238_v25 }
 0x7a4   :  { %2858 = vmatpush.bf16.msra.mxu0 %v5244_v45  ;;  %2871 = vmatpush.bf16.msra.mxu1 %v5246_v57 }
 0x7a5   :  { %2884 = vmatpush.bf16.msra.mxu2 %v5279_v33  ;;  %2897 = vmatpush.bf16.msra.mxu3 %v5252_v40 }
 0x7a8   :  { %2859 = vmatpush.bf16.msra.mxu0 %v5258_v48  ;;  %2872 = vmatpush.bf16.msra.mxu1 %v5260_v49 }
 0x7a9   :  { %2885 = vmatpush.bf16.msra.mxu2 %v5300_v58  ;;  %2898 = vmatpush.bf16.msra.mxu3 %v5277_v26 }
 0x7ac   :  { %2860 = vmatpush.bf16.msra.mxu0 %v5289_v3  ;;  %2873 = vmatpush.bf16.msra.mxu1 %v5296_v5 }
 0x7ad   :  { %2886 = vmatpush.bf16.msra.mxu2 %v5329_v59  ;;  %2899 = vmatpush.bf16.msra.mxu3 %v5298_v55 }
 0x7b0   :  { %2861 = vmatpush.bf16.msra.mxu0 %v5321_v27  ;;  %2874 = vmatpush.bf16.msra.mxu1 %v5327_v53 }
 0x7b1   :  { %2887 = vmatpush.bf16.msra.mxu2 %v5350_v4  ;;  %2900 = vmatpush.bf16.msra.mxu3 %v5337_v47 }
 0x7b4   :  { %2862 = vmatpush.bf16.msra.mxu0 %v5344_v60  ;;  %2875 = vmatpush.bf16.msra.mxu1 %v5348_v2 }
 0x7b5   :  { %2888 = vmatpush.bf16.msra.mxu2 %v5367_v8  ;;  %2901 = vmatpush.bf16.msra.mxu3 %v5353_v16 }
 0x7b8   :  { %2863 = vmatpush.bf16.msra.mxu0 %v5359_v18  ;;  %2876 = vmatpush.bf16.msra.mxu1 %v5365_v19 }
 0x7b9   :  { %2889 = vmatpush.bf16.msra.mxu2 %v5376_v17  ;;  %2902 = vmatpush.bf16.msra.mxu3 %v5370_v39 }
 0x817   :  { %v2607_v54 = vpop.f32.mrf.mxu0  ;;  %v2620_v29 = vpop.f32.mrf.mxu1 }
 0x818   :  { %v2650_v23 = vadd.f32 %v2607_v54, %v2040_v56  ;;  %v2651_v61 = vadd.f32 %v2620_v29, %v2069_v20 }
 0x81a   :  { %v3986_v37 = vmul.f32 -1.442695, %v2650_v23  ;;  %v3987_v41 = vmul.f32 -1.442695, %v2651_v61 }
 0x81c   :  { %4312 = vpow2.f32 %v3986_v37 }
 0x81d   :  { %4314 = vpow2.f32 %v3987_v41 }
 0x81e   :  { %v2633_v51 = vpop.f32.mrf.mxu2  ;;  %v2646_v52 = vpop.f32.mrf.mxu3 }
 0x81f   :  { %v2653_v10 = vadd.f32 %v2646_v52, %v2127_v22  ;;  %v2609_v12 = vpop.f32.mrf.mxu0  ;;  %v2622_v11 = vpop.f32.mrf.mxu1  ;;  %v2652_v31 = vadd.f32 %v2633_v51, %v2098_v62 }
 0x821   :  { %v3988_v63 = vmul.f32 -1.442695, %v2653_v10 }
 0x822   :  { %v4313_v15 = vpop.eup %4312 }
 0x823   :  { %v4315_v30 = vpop.eup %4314  ;;  %v2657_v13 = vadd.f32 1.0, %v4313_v15  ;;  %4316 = vpow2.f32 %v3988_v63 }
 0x824   :  { %v2676_v44 = vadd.f32 1.0, %v4315_v30 }
 0x825   :  { %4318 = vrcp.f32 %v2657_v13  ;;  %v2669_v37 = vand.u32 2147483648, %v2657_v13  ;;  %v2667_v22 = vand.u32 2147483647, %v2657_v13  ;;  %vm2663_vm10 = vweird.f32 %v2657_v13 }
 0x826   :  { %4320 = vrcp.f32 %v2676_v44  ;;  %v2635_v46 = vpop.f32.mrf.mxu2  ;;  %v2648_v28 = vpop.f32.mrf.mxu3  ;;  %v2688_v41 = vand.u32 2147483648, %v2676_v44  ;;  %v2686_v10 = vand.u32 2147483647, %v2676_v44  ;;  %vm2682_vm11 = vweird.f32 %v2676_v44 }
 0x827   :  { %v2670_v51 = vor.u32 1.1754944e-38, %v2669_v37  ;;  %vm2668_vm14 = vcmp.eq.f32.partialorder %v2667_v22, 8.507059e+37 }
 0x828   :  { %v2689_v30 = vor.u32 1.1754944e-38, %v2688_v41  ;;  %vm2687_vm15 = vcmp.eq.f32.partialorder %v2686_v10, 8.507059e+37 }
 0x829   :  { %v4317_v42 = vpop.eup %4316 }
 0x82a   :  { %v2696_v0 = vadd.f32 1.0, %v4317_v42 }
 0x82b   :  { %v4319_v56 = vpop.eup %4318 }
 0x82c   :  { %v4321_v20 = vpop.eup %4320  ;;  %v2659_v54 = vmul.f32 %v4319_v56, %v2657_v13  ;;  %4322 = vrcp.f32 %v2696_v0  ;;  %vm2664_vm8 = vweird.f32 %v4319_v56  ;;  %vm2702_vm1 = vweird.f32 %v2696_v0 }
 0x82d   :  { %v2678_v29 = vmul.f32 %v4321_v20, %v2676_v44  ;;  %4324 = vtanh.f32 %v2652_v31  ;;  %vm2683_vm9 = vweird.f32 %v4321_v20  ;;  %vm2665_vm12 = vmor %vm2663_vm10, %vm2664_vm8 }
 0x82e   :  { %v2660_v23 = vsub.f32 1.0, %v2659_v54  ;;  %vm2684_vm13 = vmor %vm2682_vm11, %vm2683_vm9 }
 0x82f   :  { %v2679_v61 = vsub.f32 1.0, %v2678_v29 }
 0x830   :  { %v2661_v9 = vmul.f32 %v4319_v56, %v2660_v23 }
 0x831   :  { %v2680_v52 = vmul.f32 %v4321_v20, %v2679_v61  ;;  %v2708_v61 = vand.u32 2147483648, %v2696_v0 }
 0x832   :  { %v4323_v12 = vpop.eup %4322  ;;  %v2662_v11 = vadd.f32 %v4319_v56, %v2661_v9 }
 0x833   :  { %v2681_v63 = vadd.f32 %v4321_v20, %v2680_v52  ;;  %v2698_v15 = vmul.f32 %v4323_v12, %v2696_v0  ;;  %v4325_v28 = vpop.eup %4324  ;;  %vm2703_vm0 = vweird.f32 %v4323_v12  ;;  %v2709_v41 = vor.u32 1.1754944e-38, %v2708_v61 }
 0x834   :  { %v2666_v46 = vsel %vm2665_vm12, %v4319_v56, %v2662_v11  ;;  %v2706_v56 = vand.u32 2147483647, %v2696_v0  ;;  %vm2704_vm2 = vmor %vm2702_vm1, %vm2703_vm0  ;;  %v5871_v0 = vld [vmem:[#allocation27_spill] sm:$0xff] }
 0x835   :  { %v2671_v42 = vsel %vm2668_vm14, %v2670_v51, %v2666_v46  ;;  %v2685_v6 = vsel %vm2684_vm13, %v4321_v20, %v2681_v63  ;;  %v2699_v62 = vsub.f32 1.0, %v2698_v15  ;;  %v2042_v10 = vadd.f32 %v5871_v0, %v5497_v7 }
 0x836   :  { %v2690_v31 = vsel %vm2687_vm15, %v2689_v30, %v2685_v6  ;;  %v2714_v54 = vmul.f32 %v4325_v28, %v2671_v42  ;;  %vm2707_vm3 = vcmp.eq.f32.partialorder %v2706_v56, 8.507059e+37  ;;  %v5873_v42 = vld [vmem:[#allocation30_spill] sm:$0xff] }
 0x837   :  { %v2713_v29 = vmul.f32 %v2690_v31, %v5557_v35  ;;  %v2700_v23 = vmul.f32 %v4323_v12, %v2699_v62  ;;  %v2129_v6 = vadd.f32 %v5873_v42, %v5507_v24 }
 0x839   :  { %v5601_v13 = vadd.f32 %v2714_v54, %v2713_v29  ;;  %v2701_v44 = vadd.f32 %v4323_v12, %v2700_v23 }
 0x83b   :  { %4326 = vtanh.f32 %v5601_v13  ;;  %v2705_v37 = vsel %vm2704_vm2, %v4323_v12, %v2701_v44  ;;  %v5872_v12 = vld [vmem:[#allocation29_spill] sm:$0xff] }
 0x83c   :  { %v2710_v9 = vsel %vm2707_vm3, %v2709_v41, %v2705_v37  ;;  %v2071_v11 = vadd.f32 %v5872_v12, %v5499_v50 }
 0x841   :  { %v4327_v20 = vpop.eup %4326 }
 0x842   :  { %v2717_v22 = vmul.f32 %v4327_v20, %v2710_v9 }
 0x844   :  { %v2718_v52 = vpack.c.bf16 %v2717_v22, %v2717_v22 }
 0x846   :  { %2721 = vst [vmem:[#allocation3 + $0x8] sm:$0xf] %v2718_v52 }
 0x847   :  { %2720 = vst [vmem:[#allocation4] sm:$0xf] %v2718_v52  ;;  %v5874_v52 = vld [vmem:[#allocation31_spill] sm:$0xff] }
 0x84e   :  { %v2726_v35 = vld [vmem:[#allocation4] sm:$0xf] }
 0x84f   :  { %2735 = vmatmul.bf16.vlgmr.msrb.gmra.mxu0 %v2726_v35  ;;  %2748 = vmatmul.bf16.vlgmr.msrb.gmra.mxu1 %v2726_v35 }
 0x850   :  { %2761 = vmatmul.bf16.vlgmr.msrb.gmra.mxu2 %v2726_v35  ;;  %2774 = vmatmul.bf16.vlgmr.msrb.gmra.mxu3 %v2726_v35  ;;  %v2100_v35 = vadd.f32 %v5874_v52, %v5865_v1 }
 0x851   :  { %2985 = vmatpush.bf16.msrb.mxu0 %v5211_v38  ;;  %2998 = vmatpush.bf16.msrb.mxu1 %v5213_v21 }
 0x852   :  { %3011 = vmatpush.bf16.msrb.mxu2 %v5218_v43  ;;  %3024 = vmatpush.bf16.msrb.mxu3 %v5215_v32 }
 0x855   :  { %2986 = vmatpush.bf16.msrb.mxu0 %v5224_v34  ;;  %2999 = vmatpush.bf16.msrb.mxu1 %v5229_v14 }
 0x856   :  { %3012 = vmatpush.bf16.msrb.mxu2 %v5240_v36  ;;  %3025 = vmatpush.bf16.msrb.mxu3 %v5238_v25 }
 0x859   :  { %2987 = vmatpush.bf16.msrb.mxu0 %v5244_v45  ;;  %3000 = vmatpush.bf16.msrb.mxu1 %v5246_v57 }
 0x85a   :  { %3013 = vmatpush.bf16.msrb.mxu2 %v5279_v33  ;;  %3026 = vmatpush.bf16.msrb.mxu3 %v5252_v40 }
 0x85d   :  { %2988 = vmatpush.bf16.msrb.mxu0 %v5258_v48  ;;  %3001 = vmatpush.bf16.msrb.mxu1 %v5260_v49 }
 0x85e   :  { %3014 = vmatpush.bf16.msrb.mxu2 %v5300_v58  ;;  %3027 = vmatpush.bf16.msrb.mxu3 %v5277_v26 }
 0x861   :  { %2989 = vmatpush.bf16.msrb.mxu0 %v5289_v3  ;;  %3002 = vmatpush.bf16.msrb.mxu1 %v5296_v5 }
 0x862   :  { %3015 = vmatpush.bf16.msrb.mxu2 %v5329_v59  ;;  %3028 = vmatpush.bf16.msrb.mxu3 %v5298_v55 }
 0x865   :  { %2990 = vmatpush.bf16.msrb.mxu0 %v5321_v27  ;;  %3003 = vmatpush.bf16.msrb.mxu1 %v5327_v53 }
 0x866   :  { %3016 = vmatpush.bf16.msrb.mxu2 %v5350_v4  ;;  %3029 = vmatpush.bf16.msrb.mxu3 %v5337_v47 }
 0x869   :  { %2991 = vmatpush.bf16.msrb.mxu0 %v5344_v60  ;;  %3004 = vmatpush.bf16.msrb.mxu1 %v5348_v2 }
 0x86a   :  { %3017 = vmatpush.bf16.msrb.mxu2 %v5367_v8  ;;  %3030 = vmatpush.bf16.msrb.mxu3 %v5353_v16 }
 0x86d   :  { %2992 = vmatpush.bf16.msrb.mxu0 %v5359_v18  ;;  %3005 = vmatpush.bf16.msrb.mxu1 %v5365_v19 }
 0x86e   :  { %3018 = vmatpush.bf16.msrb.mxu2 %v5376_v17  ;;  %3031 = vmatpush.bf16.msrb.mxu3 %v5370_v39 }
 0x8cc   :  { %v2736_v51 = vpop.f32.mrf.mxu0  ;;  %v2749_v63 = vpop.f32.mrf.mxu1 }
 0x8cd   :  { %v2779_v15 = vadd.f32 %v2736_v51, %v2042_v10  ;;  %v2780_v30 = vadd.f32 %v2749_v63, %v2071_v11 }
 0x8cf   :  { %v3989_v46 = vmul.f32 -1.442695, %v2779_v15  ;;  %v3990_v28 = vmul.f32 -1.442695, %v2780_v30 }
 0x8d1   :  { %4328 = vpow2.f32 %v3989_v46 }
 0x8d2   :  { %4330 = vpow2.f32 %v3990_v28 }
 0x8d3   :  { %v2762_v62 = vpop.f32.mrf.mxu2  ;;  %v2775_v31 = vpop.f32.mrf.mxu3 }
 0x8d4   :  { %v2782_v54 = vadd.f32 %v2775_v31, %v2129_v6  ;;  %v2738_v29 = vpop.f32.mrf.mxu0  ;;  %v2751_v23 = vpop.f32.mrf.mxu1  ;;  %v2781_v12 = vadd.f32 %v2762_v62, %v2100_v35 }
 0x8d6   :  { %v3991_v44 = vmul.f32 -1.442695, %v2782_v54 }
 0x8d7   :  { %v4329_v61 = vpop.eup %4328 }
 0x8d8   :  { %v4331_v56 = vpop.eup %4330  ;;  %v2786_v37 = vadd.f32 1.0, %v4329_v61  ;;  %4332 = vpow2.f32 %v3991_v44 }
 0x8d9   :  { %v2805_v41 = vadd.f32 1.0, %v4331_v56 }
 0x8da   :  { %4334 = vrcp.f32 %v2786_v37  ;;  %v2798_v46 = vand.u32 2147483648, %v2786_v37  ;;  %v2796_v6 = vand.u32 2147483647, %v2786_v37  ;;  %vm2792_vm6 = vweird.f32 %v2786_v37 }
 0x8db   :  { %4336 = vrcp.f32 %v2805_v41  ;;  %v2764_v20 = vpop.f32.mrf.mxu2  ;;  %v2777_v9 = vpop.f32.mrf.mxu3  ;;  %v2817_v28 = vand.u32 2147483648, %v2805_v41  ;;  %v2815_v54 = vand.u32 2147483647, %v2805_v41  ;;  %vm2811_vm7 = vweird.f32 %v2805_v41 }
 0x8dc   :  { %v2799_v62 = vor.u32 1.1754944e-38, %v2798_v46  ;;  %vm2797_vm10 = vcmp.eq.f32.partialorder %v2796_v6, 8.507059e+37 }
 0x8dd   :  { %v2818_v56 = vor.u32 1.1754944e-38, %v2817_v28  ;;  %vm2816_vm11 = vcmp.eq.f32.partialorder %v2815_v54, 8.507059e+37 }
 0x8de   :  { %v4333_v22 = vpop.eup %4332 }
 0x8df   :  { %v2825_v0 = vadd.f32 1.0, %v4333_v22 }
 0x8e0   :  { %v4335_v10 = vpop.eup %4334 }
 0x8e1   :  { %v4337_v11 = vpop.eup %4336  ;;  %v2788_v51 = vmul.f32 %v4335_v10, %v2786_v37  ;;  %4338 = vrcp.f32 %v2825_v0  ;;  %vm2793_vm4 = vweird.f32 %v4335_v10  ;;  %vm2831_vm13 = vweird.f32 %v2825_v0 }
 0x8e2   :  { %v2807_v63 = vmul.f32 %v4337_v11, %v2805_v41  ;;  %4340 = vtanh.f32 %v2781_v12  ;;  %vm2812_vm5 = vweird.f32 %v4337_v11  ;;  %vm2794_vm8 = vmor %vm2792_vm6, %vm2793_vm4 }
 0x8e3   :  { %v2789_v15 = vsub.f32 1.0, %v2788_v51  ;;  %vm2813_vm9 = vmor %vm2811_vm7, %vm2812_vm5 }
 0x8e4   :  { %v2808_v30 = vsub.f32 1.0, %v2807_v63 }
 0x8e5   :  { %v2790_v42 = vmul.f32 %v4335_v10, %v2789_v15 }
 0x8e6   :  { %v2809_v31 = vmul.f32 %v4337_v11, %v2808_v30  ;;  %v2837_v30 = vand.u32 2147483648, %v2825_v0 }
 0x8e7   :  { %v4339_v29 = vpop.eup %4338  ;;  %v2791_v23 = vadd.f32 %v4335_v10, %v2790_v42 }
 0x8e8   :  { %v2810_v44 = vadd.f32 %v4337_v11, %v2809_v31  ;;  %v2827_v61 = vmul.f32 %v4339_v29, %v2825_v0  ;;  %v4341_v9 = vpop.eup %4340  ;;  %vm2832_vm12 = vweird.f32 %v4339_v29  ;;  %v2838_v28 = vor.u32 1.1754944e-38, %v2837_v30 }
 0x8e9   :  { %v2795_v20 = vsel %vm2794_vm8, %v4335_v10, %v2791_v23  ;;  %v2835_v10 = vand.u32 2147483647, %v2825_v0  ;;  %vm2833_vm14 = vmor %vm2831_vm13, %vm2832_vm12  ;;  %v5875_v0 = vld [vmem:[#allocation32_spill] sm:$0xff]  ;;  %v5876_v23 = vld [vmem:[#allocation33_spill] sm:$0xff] }
 0x8ea   :  { %v2800_v22 = vsel %vm2797_vm10, %v2799_v62, %v2795_v20  ;;  %v2814_v52 = vsel %vm2813_vm9, %v4337_v11, %v2810_v44  ;;  %v2828_v35 = vsub.f32 1.0, %v2827_v61  ;;  %v2074_v62 = vadd.f32 %v5876_v23, %v5499_v50 }
 0x8eb   :  { %v2819_v12 = vsel %vm2816_vm11, %v2818_v56, %v2814_v52  ;;  %v2843_v51 = vmul.f32 %v4341_v9, %v2800_v22  ;;  %vm2836_vm15 = vcmp.eq.f32.partialorder %v2835_v10, 8.507059e+37  ;;  %v5877_v52 = vld [vmem:[#allocation34_spill] sm:$0xff] }
 0x8ec   :  { %v2842_v63 = vmul.f32 %v2819_v12, %v5601_v13  ;;  %v2829_v15 = vmul.f32 %v4339_v29, %v2828_v35  ;;  %v2132_v35 = vadd.f32 %v5877_v52, %v5507_v24 }
 0x8ee   :  { %v5645_v37 = vadd.f32 %v2843_v51, %v2842_v63  ;;  %v2830_v41 = vadd.f32 %v4339_v29, %v2829_v15 }
 0x8f0   :  { %4342 = vtanh.f32 %v5645_v37  ;;  %v2834_v46 = vsel %vm2833_vm14, %v4339_v29, %v2830_v41  ;;  %v2045_v29 = vadd.f32 %v5875_v0, %v5497_v7 }
 0x8f1   :  { %v2839_v42 = vsel %vm2836_vm15, %v2838_v28, %v2834_v46 }
 0x8f6   :  { %v4343_v11 = vpop.eup %4342 }
 0x8f7   :  { %v2846_v6 = vmul.f32 %v4343_v11, %v2839_v42 }
 0x8f9   :  { %v2847_v31 = vpack.c.bf16 %v2846_v6, %v2846_v6 }
 0x8fb   :  { %2850 = vst [vmem:[#allocation3 + $0xc] sm:$0xf] %v2847_v31 }
 0x8fc   :  { %2849 = vst [vmem:[#allocation4] sm:$0xf] %v2847_v31 }
 0x902   :  { %v3369_v13 = vld [vmem:[#allocation3 + $0x8] sm:$0xff]  }
 0x903   :  { %v2855_v54 = vld [vmem:[#allocation4] sm:$0xf]  ;;  %3377 = vst [vmem:[#allocation17 + $0x8] sm:$0xff] %v3369_v13   ;;  %v5878_v13 = vld [vmem:[#allocation36_spill] sm:$0xff] }
 0x904   :  { %2864 = vmatmul.bf16.vlgmr.msra.gmra.mxu0 %v2855_v54  ;;  %2877 = vmatmul.bf16.vlgmr.msra.gmra.mxu1 %v2855_v54 }
 0x905   :  { %2890 = vmatmul.bf16.vlgmr.msra.gmra.mxu2 %v2855_v54  ;;  %2903 = vmatmul.bf16.vlgmr.msra.gmra.mxu3 %v2855_v54  ;;  %v2103_v54 = vadd.f32 %v5878_v13, %v5865_v1 }
 0x906   :  { %3114 = vmatpush.bf16.msra.mxu0 %v5211_v38  ;;  %3127 = vmatpush.bf16.msra.mxu1 %v5213_v21 }
 0x907   :  { %3140 = vmatpush.bf16.msra.mxu2 %v5218_v43  ;;  %3153 = vmatpush.bf16.msra.mxu3 %v5215_v32 }
 0x90a   :  { %3115 = vmatpush.bf16.msra.mxu0 %v5224_v34  ;;  %3128 = vmatpush.bf16.msra.mxu1 %v5229_v14 }
 0x90b   :  { %3141 = vmatpush.bf16.msra.mxu2 %v5240_v36  ;;  %3154 = vmatpush.bf16.msra.mxu3 %v5238_v25 }
 0x90e   :  { %3116 = vmatpush.bf16.msra.mxu0 %v5244_v45  ;;  %3129 = vmatpush.bf16.msra.mxu1 %v5246_v57 }
 0x90f   :  { %3142 = vmatpush.bf16.msra.mxu2 %v5279_v33  ;;  %3155 = vmatpush.bf16.msra.mxu3 %v5252_v40 }
 0x912   :  { %3117 = vmatpush.bf16.msra.mxu0 %v5258_v48  ;;  %3130 = vmatpush.bf16.msra.mxu1 %v5260_v49 }
 0x913   :  { %3143 = vmatpush.bf16.msra.mxu2 %v5300_v58  ;;  %3156 = vmatpush.bf16.msra.mxu3 %v5277_v26 }
 0x916   :  { %3118 = vmatpush.bf16.msra.mxu0 %v5289_v3  ;;  %3131 = vmatpush.bf16.msra.mxu1 %v5296_v5 }
 0x917   :  { %3144 = vmatpush.bf16.msra.mxu2 %v5329_v59  ;;  %3157 = vmatpush.bf16.msra.mxu3 %v5298_v55 }
 0x91a   :  { %3119 = vmatpush.bf16.msra.mxu0 %v5321_v27  ;;  %3132 = vmatpush.bf16.msra.mxu1 %v5327_v53 }
 0x91b   :  { %3145 = vmatpush.bf16.msra.mxu2 %v5350_v4  ;;  %3158 = vmatpush.bf16.msra.mxu3 %v5337_v47 }
 0x91e   :  { %3120 = vmatpush.bf16.msra.mxu0 %v5344_v60  ;;  %3133 = vmatpush.bf16.msra.mxu1 %v5348_v2 }
 0x91f   :  { %3146 = vmatpush.bf16.msra.mxu2 %v5367_v8  ;;  %3159 = vmatpush.bf16.msra.mxu3 %v5353_v16 }
 0x922   :  { %3121 = vmatpush.bf16.msra.mxu0 %v5359_v18  ;;  %3134 = vmatpush.bf16.msra.mxu1 %v5365_v19 }
 0x923   :  { %3147 = vmatpush.bf16.msra.mxu2 %v5376_v17  ;;  %3160 = vmatpush.bf16.msra.mxu3 %v5370_v39 }
 0x981   :  { %v2865_v44 = vpop.f32.mrf.mxu0  ;;  %v2878_v61 = vpop.f32.mrf.mxu1 }
 0x982   :  { %v2908_v56 = vadd.f32 %v2865_v44, %v2045_v29  ;;  %v2909_v20 = vadd.f32 %v2878_v61, %v2074_v62 }
 0x984   :  { %v3992_v9 = vmul.f32 -1.442695, %v2908_v56  ;;  %v3993_v22 = vmul.f32 -1.442695, %v2909_v20 }
 0x986   :  { %4344 = vpow2.f32 %v3992_v9 }
 0x987   :  { %4346 = vpow2.f32 %v3993_v22 }
 0x988   :  { %v2891_v12 = vpop.f32.mrf.mxu2  ;;  %v2904_v51 = vpop.f32.mrf.mxu3 }
 0x989   :  { %v2911_v63 = vadd.f32 %v2904_v51, %v2132_v35  ;;  %v2867_v15 = vpop.f32.mrf.mxu0  ;;  %v2880_v41 = vpop.f32.mrf.mxu1  ;;  %v2910_v23 = vadd.f32 %v2891_v12, %v2103_v54 }
 0x98b   :  { %v3994_v30 = vmul.f32 -1.442695, %v2911_v63 }
 0x98c   :  { %v4345_v10 = vpop.eup %4344 }
 0x98d   :  { %v4347_v46 = vpop.eup %4346  ;;  %v2915_v28 = vadd.f32 1.0, %v4345_v10  ;;  %4348 = vpow2.f32 %v3994_v30 }
 0x98e   :  { %v2934_v11 = vadd.f32 1.0, %v4347_v46 }
 0x98f   :  { %4350 = vrcp.f32 %v2915_v28  ;;  %v2927_v9 = vand.u32 2147483648, %v2915_v28  ;;  %v2925_v35 = vand.u32 2147483647, %v2915_v28  ;;  %vm2921_vm2 = vweird.f32 %v2915_v28 }
 0x990   :  { %4352 = vrcp.f32 %v2934_v11  ;;  %v2893_v42 = vpop.f32.mrf.mxu2  ;;  %v2906_v6 = vpop.f32.mrf.mxu3  ;;  %v2946_v22 = vand.u32 2147483648, %v2934_v11  ;;  %v2944_v63 = vand.u32 2147483647, %v2934_v11  ;;  %vm2940_vm3 = vweird.f32 %v2934_v11 }
 0x991   :  { %v2928_v12 = vor.u32 1.1754944e-38, %v2927_v9  ;;  %vm2926_vm6 = vcmp.eq.f32.partialorder %v2925_v35, 8.507059e+37 }
 0x992   :  { %v2947_v46 = vor.u32 1.1754944e-38, %v2946_v22  ;;  %vm2945_vm7 = vcmp.eq.f32.partialorder %v2944_v63, 8.507059e+37 }
 0x993   :  { %v4349_v31 = vpop.eup %4348 }
 0x994   :  { %v2954_v0 = vadd.f32 1.0, %v4349_v31 }
 0x995   :  { %v4351_v29 = vpop.eup %4350 }
 0x996   :  { %v4353_v62 = vpop.eup %4352  ;;  %v2917_v44 = vmul.f32 %v4351_v29, %v2915_v28  ;;  %4354 = vrcp.f32 %v2954_v0  ;;  %vm2922_vm0 = vweird.f32 %v4351_v29  ;;  %vm2960_vm9 = vweird.f32 %v2954_v0 }
 0x997   :  { %v2936_v61 = vmul.f32 %v4353_v62, %v2934_v11  ;;  %4356 = vtanh.f32 %v2910_v23  ;;  %vm2941_vm1 = vweird.f32 %v4353_v62  ;;  %vm2923_vm4 = vmor %vm2921_vm2, %vm2922_vm0 }
 0x998   :  { %v2918_v56 = vsub.f32 1.0, %v2917_v44  ;;  %vm2942_vm5 = vmor %vm2940_vm3, %vm2941_vm1 }
 0x999   :  { %v2937_v20 = vsub.f32 1.0, %v2936_v61 }
 0x99a   :  { %v2919_v52 = vmul.f32 %v4351_v29, %v2918_v56 }
 0x99b   :  { %v2938_v51 = vmul.f32 %v4353_v62, %v2937_v20  ;;  %v2966_v20 = vand.u32 2147483648, %v2954_v0 }
 0x99c   :  { %v4355_v15 = vpop.eup %4354  ;;  %v2920_v41 = vadd.f32 %v4351_v29, %v2919_v52 }
 0x99d   :  { %v2939_v30 = vadd.f32 %v4353_v62, %v2938_v51  ;;  %v2956_v10 = vmul.f32 %v4355_v15, %v2954_v0  ;;  %v4357_v6 = vpop.eup %4356  ;;  %vm2961_vm8 = vweird.f32 %v4355_v15  ;;  %v2967_v22 = vor.u32 1.1754944e-38, %v2966_v20 }
 0x99e   :  { %v2924_v42 = vsel %vm2923_vm4, %v4351_v29, %v2920_v41  ;;  %v2964_v29 = vand.u32 2147483647, %v2954_v0  ;;  %vm2962_vm10 = vmor %vm2960_vm9, %vm2961_vm8 }
 0x99f   :  { %v2929_v31 = vsel %vm2926_vm6, %v2928_v12, %v2924_v42  ;;  %v2943_v13 = vsel %vm2942_vm5, %v4353_v62, %v2939_v30  ;;  %v2957_v54 = vsub.f32 1.0, %v2956_v10 }
 0x9a0   :  { %v2948_v23 = vsel %vm2945_vm7, %v2947_v46, %v2943_v13  ;;  %v2972_v44 = vmul.f32 %v4357_v6, %v2929_v31  ;;  %vm2965_vm11 = vcmp.eq.f32.partialorder %v2964_v29, 8.507059e+37 }
 0x9a1   :  { %v2971_v61 = vmul.f32 %v2948_v23, %v5645_v37  ;;  %v2958_v56 = vmul.f32 %v4355_v15, %v2957_v54 }
 0x9a3   :  { %v5689_v28 = vadd.f32 %v2972_v44, %v2971_v61  ;;  %v2959_v11 = vadd.f32 %v4355_v15, %v2958_v56 }
 0x9a5   :  { %4358 = vtanh.f32 %v5689_v28  ;;  %v2963_v9 = vsel %vm2962_vm10, %v4355_v15, %v2959_v11 }
 0x9a6   :  { %v2968_v52 = vsel %vm2965_vm11, %v2967_v22, %v2963_v9 }
 0x9ab   :  { %v4359_v62 = vpop.eup %4358 }
 0x9ac   :  { %v2975_v35 = vmul.f32 %v4359_v62, %v2968_v52 }
 0x9ae   :  { %v2976_v51 = vpack.c.bf16 %v2975_v35, %v2975_v35 }
 0x9b0   :  { %2979 = vst [vmem:[#allocation3 + $0x10] sm:$0xf] %v2976_v51 }
 0x9b1   :  { %2978 = vst [vmem:[#allocation4] sm:$0xf] %v2976_v51 }
 0x9b8   :  { %v2984_v37 = vld [vmem:[#allocation4] sm:$0xf] }
 0x9b9   :  { %2993 = vmatmul.bf16.vlgmr.msrb.gmra.mxu0 %v2984_v37  ;;  %3006 = vmatmul.bf16.vlgmr.msrb.gmra.mxu1 %v2984_v37 }
 0x9ba   :  { %3019 = vmatmul.bf16.vlgmr.msrb.gmra.mxu2 %v2984_v37  ;;  %3032 = vmatmul.bf16.vlgmr.msrb.gmra.mxu3 %v2984_v37 }
 0x9bb   :  { %3243 = vmatpush.bf16.msrb.mxu0 %v5211_v38  ;;  %3256 = vmatpush.bf16.msrb.mxu1 %v5213_v21  ;;  %v5879_v38 = vld [vmem:[#allocation35_spill] sm:$0xff] }
 0x9bc   :  { %3269 = vmatpush.bf16.msrb.mxu2 %v5218_v43  ;;  %3282 = vmatpush.bf16.msrb.mxu3 %v5215_v32  ;;  %v2047_v21 = vadd.f32 %v5879_v38, %v5497_v7  ;;  %v5880_v32 = vld [vmem:[#allocation37_spill] sm:$0xff] }
 0x9bd   :  { %v2076_v43 = vadd.f32 %v5880_v32, %v5499_v50 }
 0x9bf   :  { %3244 = vmatpush.bf16.msrb.mxu0 %v5224_v34  ;;  %3257 = vmatpush.bf16.msrb.mxu1 %v5229_v14 }
 0x9c0   :  { %3270 = vmatpush.bf16.msrb.mxu2 %v5240_v36  ;;  %3283 = vmatpush.bf16.msrb.mxu3 %v5238_v25 }
 0x9c3   :  { %3245 = vmatpush.bf16.msrb.mxu0 %v5244_v45  ;;  %3258 = vmatpush.bf16.msrb.mxu1 %v5246_v57 }
 0x9c4   :  { %3271 = vmatpush.bf16.msrb.mxu2 %v5279_v33  ;;  %3284 = vmatpush.bf16.msrb.mxu3 %v5252_v40  ;;  %v5881_v40 = vld [vmem:[#allocation38_spill] sm:$0xff] }
 0x9c7   :  { %3246 = vmatpush.bf16.msrb.mxu0 %v5258_v48  ;;  %3259 = vmatpush.bf16.msrb.mxu1 %v5260_v49  ;;  %v2134_v48 = vadd.f32 %v5881_v40, %v5507_v24  ;;  %v5884_v40 = vld [vmem:[#allocation41_spill] sm:$0xff] }
 0x9c8   :  { %3272 = vmatpush.bf16.msrb.mxu2 %v5300_v58  ;;  %3285 = vmatpush.bf16.msrb.mxu3 %v5277_v26 }
 0x9cb   :  { %3247 = vmatpush.bf16.msrb.mxu0 %v5289_v3  ;;  %3260 = vmatpush.bf16.msrb.mxu1 %v5296_v5 }
 0x9cc   :  { %3273 = vmatpush.bf16.msrb.mxu2 %v5329_v59  ;;  %3286 = vmatpush.bf16.msrb.mxu3 %v5298_v55 }
 0x9cf   :  { %3248 = vmatpush.bf16.msrb.mxu0 %v5321_v27  ;;  %3261 = vmatpush.bf16.msrb.mxu1 %v5327_v53 }
 0x9d0   :  { %3274 = vmatpush.bf16.msrb.mxu2 %v5350_v4  ;;  %3287 = vmatpush.bf16.msrb.mxu3 %v5337_v47  ;;  %v5882_v4 = vld [vmem:[#allocation39_spill] sm:$0xff] }
 0x9d3   :  { %3249 = vmatpush.bf16.msrb.mxu0 %v5344_v60  ;;  %3262 = vmatpush.bf16.msrb.mxu1 %v5348_v2 }
 0x9d4   :  { %3275 = vmatpush.bf16.msrb.mxu2 %v5367_v8  ;;  %3288 = vmatpush.bf16.msrb.mxu3 %v5353_v16  ;;  %v2105_v16 = vadd.f32 %v5882_v4, %v5865_v1 }
 0x9d7   :  { %3250 = vmatpush.bf16.msrb.mxu0 %v5359_v18  ;;  %3263 = vmatpush.bf16.msrb.mxu1 %v5365_v19 }
 0x9d8   :  { %3276 = vmatpush.bf16.msrb.mxu2 %v5376_v17  ;;  %3289 = vmatpush.bf16.msrb.mxu3 %v5370_v39 }
 0xa36   :  { %v2994_v34 = vpop.f32.mrf.mxu0  ;;  %v3007_v14 = vpop.f32.mrf.mxu1 }
 0xa37   :  { %v3037_v25 = vadd.f32 %v2994_v34, %v2047_v21  ;;  %v3038_v36 = vadd.f32 %v3007_v14, %v2076_v43 }
 0xa39   :  { %v3995_v45 = vmul.f32 -1.442695, %v3037_v25  ;;  %v3996_v57 = vmul.f32 -1.442695, %v3038_v36 }
 0xa3b   :  { %4360 = vpow2.f32 %v3995_v45  ;;  %v5883_v45 = vld [vmem:[#allocation40_spill] sm:$0xff] }
 0xa3c   :  { %4362 = vpow2.f32 %v3996_v57  ;;  %v2050_v57 = vadd.f32 %v5883_v45, %v5497_v7 }
 0xa3d   :  { %v3020_v49 = vpop.f32.mrf.mxu2  ;;  %v3033_v26 = vpop.f32.mrf.mxu3 }
 0xa3e   :  { %v3040_v33 = vadd.f32 %v3033_v26, %v2134_v48  ;;  %v2996_v3 = vpop.f32.mrf.mxu0  ;;  %v3009_v5 = vpop.f32.mrf.mxu1  ;;  %v3039_v8 = vadd.f32 %v3020_v49, %v2105_v16  ;;  %v2079_v48 = vadd.f32 %v5884_v40, %v5499_v50 }
 0xa40   :  { %v3997_v55 = vmul.f32 -1.442695, %v3040_v33 }
 0xa41   :  { %v4361_v58 = vpop.eup %4360 }
 0xa42   :  { %v4363_v27 = vpop.eup %4362  ;;  %v3044_v53 = vadd.f32 1.0, %v4361_v58  ;;  %4364 = vpow2.f32 %v3997_v55  ;;  %v5885_v58 = vld [vmem:[#allocation42_spill] sm:$0xff] }
 0xa43   :  { %v3063_v59 = vadd.f32 1.0, %v4363_v27  ;;  %v2137_v27 = vadd.f32 %v5885_v58, %v5507_v24 }
 0xa44   :  { %4366 = vrcp.f32 %v3044_v53  ;;  %v3056_v41 = vand.u32 2147483648, %v3044_v53  ;;  %v3054_v10 = vand.u32 2147483647, %v3044_v53  ;;  %vm3050_vm14 = vweird.f32 %v3044_v53 }
 0xa45   :  { %4368 = vrcp.f32 %v3063_v59  ;;  %v3022_v47 = vpop.f32.mrf.mxu2  ;;  %v3035_v60 = vpop.f32.mrf.mxu3  ;;  %v3075_v12 = vand.u32 2147483648, %v3063_v59  ;;  %v3073_v42 = vand.u32 2147483647, %v3063_v59  ;;  %vm3069_vm15 = vweird.f32 %v3063_v59 }
 0xa46   :  { %v3057_v13 = vor.u32 1.1754944e-38, %v3056_v41  ;;  %vm3055_vm2 = vcmp.eq.f32.partialorder %v3054_v10, 8.507059e+37 }
 0xa47   :  { %v3076_v44 = vor.u32 1.1754944e-38, %v3075_v12  ;;  %vm3074_vm3 = vcmp.eq.f32.partialorder %v3073_v42, 8.507059e+37 }
 0xa48   :  { %v4365_v2 = vpop.eup %4364 }
 0xa49   :  { %v3083_v18 = vadd.f32 1.0, %v4365_v2 }
 0xa4a   :  { %v4367_v19 = vpop.eup %4366 }
 0xa4b   :  { %v4369_v39 = vpop.eup %4368  ;;  %v3046_v17 = vmul.f32 %v4367_v19, %v3044_v53  ;;  %4370 = vrcp.f32 %v3083_v18  ;;  %vm3051_vm12 = vweird.f32 %v4367_v19  ;;  %v3095_v37 = vand.u32 2147483648, %v3083_v18 }
 0xa4c   :  { %v3065_v0 = vmul.f32 %v4369_v39, %v3063_v59  ;;  %4372 = vtanh.f32 %v3039_v8  ;;  %vm3070_vm13 = vweird.f32 %v4369_v39  ;;  %vm3052_vm0 = vmor %vm3050_vm14, %vm3051_vm12  ;;  %vm3089_vm5 = vweird.f32 %v3083_v18 }
 0xa4d   :  { %v3047_v63 = vsub.f32 1.0, %v3046_v17  ;;  %vm3071_vm1 = vmor %vm3069_vm15, %vm3070_vm13  ;;  %v3093_v38 = vand.u32 2147483647, %v3083_v18  ;;  %v3096_v32 = vor.u32 1.1754944e-38, %v3095_v37 }
 0xa4e   :  { %v3066_v15 = vsub.f32 1.0, %v3065_v0 }
 0xa4f   :  { %v3048_v30 = vmul.f32 %v4367_v19, %v3047_v63  ;;  %vm3094_vm7 = vcmp.eq.f32.partialorder %v3093_v38, 8.507059e+37  ;;  %v5886_v63 = vld [vmem:[#allocation44_spill] sm:$0xff] }
 0xa50   :  { %v3067_v46 = vmul.f32 %v4369_v39, %v3066_v15  ;;  %v2108_v15 = vadd.f32 %v5886_v63, %v5865_v1 }
 0xa51   :  { %v4371_v6 = vpop.eup %4370  ;;  %v3049_v31 = vadd.f32 %v4367_v19, %v3048_v30 }
 0xa52   :  { %v3068_v54 = vadd.f32 %v4369_v39, %v3067_v46  ;;  %v3085_v23 = vmul.f32 %v4371_v6, %v3083_v18  ;;  %v4373_v56 = vpop.eup %4372  ;;  %vm3090_vm4 = vweird.f32 %v4371_v6 }
 0xa53   :  { %v3053_v61 = vsel %vm3052_vm0, %v4367_v19, %v3049_v31  ;;  %vm3091_vm6 = vmor %vm3089_vm5, %vm3090_vm4 }
 0xa54   :  { %v3058_v11 = vsel %vm3055_vm2, %v3057_v13, %v3053_v61  ;;  %v3072_v20 = vsel %vm3071_vm1, %v4369_v39, %v3068_v54  ;;  %v3086_v29 = vsub.f32 1.0, %v3085_v23 }
 0xa55   :  { %v3077_v9 = vsel %vm3074_vm3, %v3076_v44, %v3072_v20  ;;  %v3101_v22 = vmul.f32 %v4373_v56, %v3058_v11 }
 0xa56   :  { %v3100_v62 = vmul.f32 %v3077_v9, %v5689_v28  ;;  %v3087_v52 = vmul.f32 %v4371_v6, %v3086_v29 }
 0xa58   :  { %v5733_v35 = vadd.f32 %v3101_v22, %v3100_v62  ;;  %v3088_v51 = vadd.f32 %v4371_v6, %v3087_v52 }
 0xa5a   :  { %4374 = vtanh.f32 %v5733_v35  ;;  %v3092_v21 = vsel %vm3091_vm6, %v4371_v6, %v3088_v51 }
 0xa5b   :  { %v3097_v34 = vsel %vm3094_vm7, %v3096_v32, %v3092_v21 }
 0xa60   :  { %v4375_v43 = vpop.eup %4374 }
 0xa61   :  { %v3104_v14 = vmul.f32 %v4375_v43, %v3097_v34 }
 0xa63   :  { %v3105_v25 = vpack.c.bf16 %v3104_v14, %v3104_v14 }
 0xa65   :  { %3108 = vst [vmem:[#allocation3 + $0x14] sm:$0xf] %v3105_v25 }
 0xa66   :  { %3107 = vst [vmem:[#allocation4] sm:$0xf] %v3105_v25 }
 0xa6c   :  { %v3371_v28 = vld [vmem:[#allocation3 + $0x10] sm:$0xff]  }
 0xa6d   :  { %v3113_v36 = vld [vmem:[#allocation4] sm:$0xf]  ;;  %3379 = vst [vmem:[#allocation17 + $0x10] sm:$0xff] %v3371_v28  }
 0xa6e   :  { %3122 = vmatmul.bf16.vlgmr.msra.gmra.mxu0 %v3113_v36  ;;  %3135 = vmatmul.bf16.vlgmr.msra.gmra.mxu1 %v3113_v36 }
 0xa6f   :  { %3148 = vmatmul.bf16.vlgmr.msra.gmra.mxu2 %v3113_v36  ;;  %3161 = vmatmul.bf16.vlgmr.msra.gmra.mxu3 %v3113_v36 }
 0xaeb   :  { %v3123_v49 = vpop.f32.mrf.mxu0  ;;  %v3136_v26 = vpop.f32.mrf.mxu1 }
 0xaec   :  { %v3166_v33 = vadd.f32 %v3123_v49, %v2050_v57  ;;  %v3167_v3 = vadd.f32 %v3136_v26, %v2079_v48 }
 0xaee   :  { %v3998_v5 = vmul.f32 -1.442695, %v3166_v33  ;;  %v3999_v55 = vmul.f32 -1.442695, %v3167_v3  ;;  %v5887_v3 = vld [vmem:[#allocation43_spill] sm:$0xff] }
 0xaf0   :  { %4376 = vpow2.f32 %v3998_v5  ;;  %v2052_v5 = vadd.f32 %v5887_v3, %v5497_v7 }
 0xaf1   :  { %4378 = vpow2.f32 %v3999_v55  ;;  %v5888_v55 = vld [vmem:[#allocation45_spill] sm:$0xff] }
 0xaf2   :  { %v3149_v53 = vpop.f32.mrf.mxu2  ;;  %v3162_v59 = vpop.f32.mrf.mxu3  ;;  %v2081_v58 = vadd.f32 %v5888_v55, %v5499_v50 }
 0xaf3   :  { %v3169_v47 = vadd.f32 %v3162_v59, %v2137_v27  ;;  %v3125_v60 = vpop.f32.mrf.mxu0  ;;  %v3138_v2 = vpop.f32.mrf.mxu1  ;;  %v3168_v30 = vadd.f32 %v3149_v53, %v2108_v15 }
 0xaf5   :  { %v4000_v4 = vmul.f32 -1.442695, %v3169_v47 }
 0xaf6   :  { %v4377_v16 = vpop.eup %4376 }
 0xaf7   :  { %v4379_v18 = vpop.eup %4378  ;;  %v3173_v19 = vadd.f32 1.0, %v4377_v16  ;;  %4380 = vpow2.f32 %v4000_v4  ;;  %v5889_v4 = vld [vmem:[#allocation46_spill] sm:$0xff] }
 0xaf8   :  { %v3192_v8 = vadd.f32 1.0, %v4379_v18  ;;  %v2139_v16 = vadd.f32 %v5889_v4, %v5507_v24 }
 0xaf9   :  { %4382 = vrcp.f32 %v3173_v19  ;;  %v3185_v13 = vand.u32 2147483648, %v3173_v19  ;;  %v3183_v44 = vand.u32 2147483647, %v3173_v19  ;;  %vm3179_vm10 = vweird.f32 %v3173_v19 }
 0xafa   :  { %4384 = vrcp.f32 %v3192_v8  ;;  %v3151_v39 = vpop.f32.mrf.mxu2  ;;  %v3164_v17 = vpop.f32.mrf.mxu3  ;;  %v3204_v54 = vand.u32 2147483648, %v3192_v8  ;;  %v3202_v56 = vand.u32 2147483647, %v3192_v8  ;;  %vm3198_vm11 = vweird.f32 %v3192_v8 }
 0xafb   :  { %v3186_v29 = vor.u32 1.1754944e-38, %v3185_v13  ;;  %vm3184_vm14 = vcmp.eq.f32.partialorder %v3183_v44, 8.507059e+37 }
 0xafc   :  { %v3205_v62 = vor.u32 1.1754944e-38, %v3204_v54  ;;  %vm3203_vm15 = vcmp.eq.f32.partialorder %v3202_v56, 8.507059e+37 }
 0xafd   :  { %v4381_v0 = vpop.eup %4380 }
 0xafe   :  { %v3212_v41 = vadd.f32 1.0, %v4381_v0 }
 0xaff   :  { %v4383_v12 = vpop.eup %4382 }
 0xb00   :  { %v4385_v10 = vpop.eup %4384  ;;  %v3175_v46 = vmul.f32 %v4383_v12, %v3173_v19  ;;  %4386 = vrcp.f32 %v3212_v41  ;;  %vm3180_vm8 = vweird.f32 %v4383_v12  ;;  %v3224_v36 = vand.u32 2147483648, %v3212_v41 }
 0xb01   :  { %v3194_v42 = vmul.f32 %v4385_v10, %v3192_v8  ;;  %4388 = vtanh.f32 %v3168_v30  ;;  %vm3199_vm9 = vweird.f32 %v4385_v10  ;;  %vm3181_vm12 = vmor %vm3179_vm10, %vm3180_vm8  ;;  %vm3218_vm1 = vweird.f32 %v3212_v41 }
 0xb02   :  { %v3176_v6 = vsub.f32 1.0, %v3175_v46  ;;  %vm3200_vm13 = vmor %vm3198_vm11, %vm3199_vm9  ;;  %v3222_v45 = vand.u32 2147483647, %v3212_v41  ;;  %v3225_v40 = vor.u32 1.1754944e-38, %v3224_v36 }
 0xb03   :  { %v3195_v31 = vsub.f32 1.0, %v3194_v42 }
 0xb04   :  { %v3177_v23 = vmul.f32 %v4383_v12, %v3176_v6  ;;  %vm3223_vm3 = vcmp.eq.f32.partialorder %v3222_v45, 8.507059e+37 }
 0xb05   :  { %v3196_v61 = vmul.f32 %v4385_v10, %v3195_v31 }
 0xb06   :  { %v4387_v11 = vpop.eup %4386  ;;  %v3178_v20 = vadd.f32 %v4383_v12, %v3177_v23 }
 0xb07   :  { %v3197_v9 = vadd.f32 %v4385_v10, %v3196_v61  ;;  %v3214_v22 = vmul.f32 %v4387_v11, %v3212_v41  ;;  %v4389_v51 = vpop.eup %4388  ;;  %vm3219_vm0 = vweird.f32 %v4387_v11 }
 0xb08   :  { %v3182_v52 = vsel %vm3181_vm12, %v4383_v12, %v3178_v20  ;;  %vm3220_vm2 = vmor %vm3218_vm1, %vm3219_vm0 }
 0xb09   :  { %v3187_v37 = vsel %vm3184_vm14, %v3186_v29, %v3182_v52  ;;  %v3201_v38 = vsel %vm3200_vm13, %v4385_v10, %v3197_v9  ;;  %v3215_v21 = vsub.f32 1.0, %v3214_v22  ;;  %v5890_v10 = vld [vmem:[#allocation47_spill] sm:$0xff] }
 0xb0a   :  { %v3206_v32 = vsel %vm3203_vm15, %v3205_v62, %v3201_v38  ;;  %v3230_v43 = vmul.f32 %v4389_v51, %v3187_v37  ;;  %v2110_v24 = vadd.f32 %v5890_v10, %v5865_v1 }
 0xb0b   :  { %v3229_v34 = vmul.f32 %v3206_v32, %v5733_v35  ;;  %v3216_v14 = vmul.f32 %v4387_v11, %v3215_v21 }
 0xb0d   :  { %v5745_v25 = vadd.f32 %v3230_v43, %v3229_v34  ;;  %v3217_v28 = vadd.f32 %v4387_v11, %v3216_v14 }
 0xb0f   :  { %4390 = vtanh.f32 %v5745_v25  ;;  %v3221_v57 = vsel %vm3220_vm2, %v4387_v11, %v3217_v28 }
 0xb10   :  { %v3226_v49 = vsel %vm3223_vm3, %v3225_v40, %v3221_v57 }
 0xb15   :  { %v4391_v48 = vpop.eup %4390 }
 0xb16   :  { %v3233_v26 = vmul.f32 %v4391_v48, %v3226_v49 }
 0xb18   :  { %v3234_v33 = vpack.c.bf16 %v3233_v26, %v3233_v26 }
 0xb1a   :  { %3237 = vst [vmem:[#allocation3 + $0x18] sm:$0xf] %v3234_v33 }
 0xb1b   :  { %3236 = vst [vmem:[#allocation4] sm:$0xf] %v3234_v33 }
 0xb22   :  { %v3242_v35 = vld [vmem:[#allocation4] sm:$0xf] }
 0xb23   :  { %3251 = vmatmul.bf16.vlgmr.msrb.gmra.mxu0 %v3242_v35  ;;  %3264 = vmatmul.bf16.vlgmr.msrb.gmra.mxu1 %v3242_v35 }
 0xb24   :  { %3277 = vmatmul.bf16.vlgmr.msrb.gmra.mxu2 %v3242_v35  ;;  %3290 = vmatmul.bf16.vlgmr.msrb.gmra.mxu3 %v3242_v35 }
 0xba0   :  { %v3252_v27 = vpop.f32.mrf.mxu0  ;;  %v3265_v53 = vpop.f32.mrf.mxu1 }
 0xba1   :  { %v3295_v59 = vadd.f32 %v3252_v27, %v2052_v5  ;;  %v3296_v47 = vadd.f32 %v3265_v53, %v2081_v58 }
 0xba3   :  { %v4001_v60 = vmul.f32 -1.442695, %v3295_v59  ;;  %v4002_v2 = vmul.f32 -1.442695, %v3296_v47 }
 0xba5   :  { %4392 = vpow2.f32 %v4001_v60 }
 0xba6   :  { %4394 = vpow2.f32 %v4002_v2 }
 0xba7   :  { %v3278_v18 = vpop.f32.mrf.mxu2  ;;  %v3291_v19 = vpop.f32.mrf.mxu3 }
 0xba8   :  { %v3298_v8 = vadd.f32 %v3291_v19, %v2139_v16  ;;  %v3254_v39 = vpop.f32.mrf.mxu0  ;;  %v3267_v17 = vpop.f32.mrf.mxu1  ;;  %v3297_v6 = vadd.f32 %v3278_v18, %v2110_v24 }
 0xbaa   :  { %v4003_v7 = vmul.f32 -1.442695, %v3298_v8 }
 0xbab   :  { %v4393_v0 = vpop.eup %4392 }
 0xbac   :  { %v4395_v63 = vpop.eup %4394  ;;  %v3302_v50 = vadd.f32 1.0, %v4393_v0  ;;  %4396 = vpow2.f32 %v4003_v7 }
 0xbad   :  { %v3321_v15 = vadd.f32 1.0, %v4395_v63 }
 0xbae   :  { %4398 = vrcp.f32 %v3302_v50  ;;  %v3314_v61 = vand.u32 2147483648, %v3302_v50  ;;  %v3312_v20 = vand.u32 2147483647, %v3302_v50  ;;  %vm3308_vm6 = vweird.f32 %v3302_v50 }
 0xbaf   :  { %4400 = vrcp.f32 %v3321_v15  ;;  %v3280_v41 = vpop.f32.mrf.mxu2  ;;  %v3293_v12 = vpop.f32.mrf.mxu3  ;;  %v3333_v56 = vand.u32 2147483648, %v3321_v15  ;;  %v3331_v9 = vand.u32 2147483647, %v3321_v15  ;;  %vm3327_vm7 = vweird.f32 %v3321_v15 }
 0xbb0   :  { %v3315_v62 = vor.u32 1.1754944e-38, %v3314_v61  ;;  %vm3313_vm10 = vcmp.eq.f32.partialorder %v3312_v20, 8.507059e+37 }
 0xbb1   :  { %v3334_v37 = vor.u32 1.1754944e-38, %v3333_v56  ;;  %vm3332_vm11 = vcmp.eq.f32.partialorder %v3331_v9, 8.507059e+37 }
 0xbb2   :  { %v4397_v30 = vpop.eup %4396 }
 0xbb3   :  { %v3341_v46 = vadd.f32 1.0, %v4397_v30 }
 0xbb4   :  { %v4399_v42 = vpop.eup %4398 }
 0xbb5   :  { %v4401_v31 = vpop.eup %4400  ;;  %v3304_v13 = vmul.f32 %v4399_v42, %v3302_v50  ;;  %4402 = vrcp.f32 %v3341_v46  ;;  %vm3309_vm4 = vweird.f32 %v4399_v42  ;;  %v3353_v48 = vand.u32 2147483648, %v3341_v46 }
 0xbb6   :  { %v3323_v54 = vmul.f32 %v4401_v31, %v3321_v15  ;;  %4404 = vtanh.f32 %v3297_v6  ;;  %vm3328_vm5 = vweird.f32 %v4401_v31  ;;  %vm3310_vm8 = vmor %vm3308_vm6, %vm3309_vm4  ;;  %vm3347_vm13 = vweird.f32 %v3341_v46 }
 0xbb7   :  { %v3305_v23 = vsub.f32 1.0, %v3304_v13  ;;  %vm3329_vm9 = vmor %vm3327_vm7, %vm3328_vm5  ;;  %v3351_v49 = vand.u32 2147483647, %v3341_v46  ;;  %v3354_v33 = vor.u32 1.1754944e-38, %v3353_v48 }
 0xbb8   :  { %v3324_v44 = vsub.f32 1.0, %v3323_v54 }
 0xbb9   :  { %v3306_v11 = vmul.f32 %v4399_v42, %v3305_v23  ;;  %vm3352_vm15 = vcmp.eq.f32.partialorder %v3351_v49, 8.507059e+37 }
 0xbba   :  { %v3325_v29 = vmul.f32 %v4401_v31, %v3324_v44 }
 0xbbb   :  { %v4403_v22 = vpop.eup %4402  ;;  %v3307_v1 = vadd.f32 %v4399_v42, %v3306_v11 }
 0xbbc   :  { %v3326_v52 = vadd.f32 %v4401_v31, %v3325_v29  ;;  %v3343_v51 = vmul.f32 %v4403_v22, %v3341_v46  ;;  %v4405_v21 = vpop.eup %4404  ;;  %vm3348_vm12 = vweird.f32 %v4403_v22 }
 0xbbd   :  { %v3311_v38 = vsel %vm3310_vm8, %v4399_v42, %v3307_v1  ;;  %vm3349_vm14 = vmor %vm3347_vm13, %vm3348_vm12 }
 0xbbe   :  { %v3316_v32 = vsel %vm3313_vm10, %v3315_v62, %v3311_v38  ;;  %v3330_v43 = vsel %vm3329_vm9, %v4401_v31, %v3326_v52  ;;  %v3344_v34 = vsub.f32 1.0, %v3343_v51 }
 0xbbf   :  { %v3335_v14 = vsel %vm3332_vm11, %v3334_v37, %v3330_v43  ;;  %v3359_v28 = vmul.f32 %v4405_v21, %v3316_v32 }
 0xbc0   :  { %v3358_v36 = vmul.f32 %v3335_v14, %v5745_v25  ;;  %v3345_v45 = vmul.f32 %v4403_v22, %v3344_v34 }
 0xbc2   :  { %v3360_v57 = vadd.f32 %v3359_v28, %v3358_v36  ;;  %v3346_v40 = vadd.f32 %v4403_v22, %v3345_v45 }
 0xbc4   :  { %4406 = vtanh.f32 %v3360_v57  ;;  %v3350_v26 = vsel %vm3349_vm14, %v4403_v22, %v3346_v40 }
 0xbc5   :  { %v3355_v3 = vsel %vm3352_vm15, %v3354_v33, %v3350_v26 }
 0xbca   :  { %v4407_v35 = vpop.eup %4406 }
 0xbcb   :  { %v3362_v5 = vmul.f32 %v4407_v35, %v3355_v3 }
 0xbcd   :  { %v3363_v55 = vpack.c.bf16 %v3362_v5, %v3362_v5 }
 0xbcf   :  { %3365 = vst [vmem:[#allocation4] sm:$0xf] %v3363_v55 }
 0xbd0   :  { %3366 = vst [vmem:[#allocation3 + $0x1c] sm:$0xf] %v3363_v55 }
 0xbd7   :  { %v3373_v25 = vld [vmem:[#allocation3 + $0x18] sm:$0xff]  }
 0xbd8   :  { %3381 = vst [vmem:[#allocation17 + $0x18] sm:$0xff] %v3373_v25  }
 0xbd9   :  { %3395 = dma.vmem_to_hbm [thread:$0]  %s3388_s8, 512, %s3390_s11, [#allocation8], %s4591_s19, %s4591_s19, %s4592_s20  }
 0xbda   :  { %4584 = dma.done.wait [#allocation8], 512  }
 0xbdb   :  { %4585 = vsyncadd [#allocation8], 4294966784 }
 0xbdc   :  { %3400 = vsyncpa [#allocation7], 1 }
 0xbdd   :  { %3401 = vsyncpa [#allocation10], 1 }
 0xbde   :  { %3402 = vsyncpa [#allocation13], 1 }
 0xbdf   :  { %3403 = vsyncpa [#allocation16], 1 }
 0xbe0   :  { %3404 = vsyncpa [#allocation8], 1 }

// kernel: tpu_custom_call.1
= control target key start
LH: loop header
LB: loop body
LE: loop exit
PB: predicated region body
PF: predicated region fallthrough
CT: control target
= control target key end

     0   :  { %12 = vsyncpa [#allocation7], 0  ;;  %s5763_s0 = inlined_call_operand.hbm [shape: bf16[1,64,128], index: 0, kind: input, shape index: {}]   ;;  %s5764_s1 = inlined_call_operand.hbm [shape: bf16[128,512], index: 1, kind: input, shape index: {}]   ;;  %s5765_s2 = inlined_call_operand.hbm [shape: bf16[128,512], index: 2, kind: input, shape index: {}]   ;;  %s5766_s3 = inlined_call_operand.hbm [shape: bf16[128,512], index: 3, kind: input, shape index: {}]   ;;  %s5767_s4 = inlined_call_operand.hbm [shape: bf16[128,512], index: 4, kind: input, shape index: {}]   ;;  %s5768_s5 = inlined_call_operand.vmem [shape: f32[1,512], index: 5, kind: input, shape index: {}]   ;;  %s5769_s6 = inlined_call_operand.hbm [shape: f32[1,512], index: 6, kind: input, shape index: {}]   ;;  %s5770_s7 = inlined_call_operand.hbm [shape: bf16[1,64,128], index: 7, kind: output, shape index: {}]  }
   0x1   :  { %13 = vsyncpa [#allocation10], 0 }
   0x2   :  { %14 = vsyncpa [#allocation13], 0 }
   0x3   :  { %15 = vsyncpa [#allocation16], 0  ;;  %s34_s26 = sshll.u32 %s5764_s1, 4  ;;  %s35_s26 = int_to_ptr.hbm [resolvable:$true] %s34_s26 }
   0x4   :  { %16 = vsyncpa [#allocation8], 0  ;;  %s4586_s27 = smov [#allocation9]   ;;  %s60_s8 = sshll.u32 %s5766_s3, 4  ;;  %s61_s8 = int_to_ptr.hbm [resolvable:$true] %s60_s8 }
   0x5   :  { %s36_s28 = sshll.u32 %s4586_s27, 4  ;;  %s4587_s9 = smov 256   ;;  %s37_s28 = int_to_ptr.vmem [resolvable:$true] %s36_s28 }
   0x6   :  { %s4588_s10 = smov 16   ;;  %s4589_s11 = smov [#allocation12]  }
   0x7   :  { %42 = dma.hbm_to_vmem [thread:$0]  %s35_s26, 4096, %s37_s28, [#allocation10], %s4587_s9, %s4587_s9, %s4588_s10  }
   0x8   :  { %s62_s12 = sshll.u32 %s4589_s11, 4  ;;  %s21_s14 = sshll.u32 %s5763_s0, 4  ;;  %s63_s12 = int_to_ptr.vmem [resolvable:$true] %s62_s12  ;;  %s22_s14 = int_to_ptr.hbm [resolvable:$true] %s21_s14 }
   0x9   :  { %68 = dma.hbm_to_vmem [thread:$0]  %s61_s8, 4096, %s63_s12, [#allocation13], %s4587_s9, %s4587_s9, %s4588_s10  }
   0xa   :  { %s4590_s3 = smov [#allocation6]   ;;  %s47_s18 = sshll.u32 %s5765_s2, 4  ;;  %s48_s18 = int_to_ptr.hbm [resolvable:$true] %s47_s18 }
   0xb   :  { %s23_s15 = sshll.u32 %s4590_s3, 4  ;;  %s4591_s19 = smov 64   ;;  %s24_s15 = int_to_ptr.vmem [resolvable:$true] %s23_s15 }
   0xc   :  { %s4592_s20 = smov 4   ;;  %s4593_s0 = smov [#allocation11]  }
   0xd   :  { %29 = dma.hbm_to_vmem [thread:$0]  %s22_s14, 512, %s24_s15, [#allocation7], %s4591_s19, %s4591_s19, %s4592_s20  }
   0xe   :  { %s49_s21 = sshll.u32 %s4593_s0, 4  ;;  %s73_s24 = sshll.u32 %s5767_s4, 4  ;;  %s50_s21 = int_to_ptr.vmem [resolvable:$true] %s49_s21  ;;  %s74_s24 = int_to_ptr.hbm [resolvable:$true] %s73_s24 }
   0xf   :  { %55 = dma.hbm_to_vmem [thread:$0]  %s48_s18, 4096, %s50_s21, [#allocation10], %s4587_s9, %s4587_s9, %s4588_s10  }
  0x10   :  { %s89_s26 = sshll.u32 %s5769_s6, 4  ;;  %s4594_s27 = smov [#allocation14]   ;;  %s90_s26 = int_to_ptr.hbm [resolvable:$true] %s89_s26 }
  0x11   :  { %s75_s28 = sshll.u32 %s4594_s27, 4  ;;  %s4595_s29 = smov [#allocation15]   ;;  %s76_s28 = int_to_ptr.vmem [resolvable:$true] %s75_s28 }
  0x12   :  { %81 = dma.hbm_to_vmem [thread:$0]  %s74_s24, 4096, %s76_s28, [#allocation13], %s4587_s9, %s4587_s9, %s4588_s10  }
  0x13   :  { %s91_s4 = sshll.u32 %s4595_s29, 4  ;;  %s92_s4 = int_to_ptr.vmem [resolvable:$true] %s91_s4 }
  0x14   :  { %94 = dma.hbm_to_vmem [thread:$0]  %s90_s26, 64, %s92_s4, [#allocation16]  }
  0x15   :  { %4576 = dma.done.wait [#allocation7], 512  }
  0x16   :  { %4577 = vsyncadd [#allocation7], 4294966784 }
  0x17   :  { %4578 = dma.done.wait [#allocation10], 8192  }
  0x18   :  { %4579 = vsyncadd [#allocation10], 4294959104 }
  0x19   :  { %4580 = dma.done.wait [#allocation13], 8192  }
  0x1a   :  { %4581 = vsyncadd [#allocation13], 4294959104 }
  0x1b   :  { %4582 = dma.done.wait [#allocation16], 64  }
  0x1c   :  { %4583 = vsyncadd [#allocation16], 4294967232  ;;  %v3542_v0 = vld [vmem:[#allocation9 + $0xe0] sm:$0xf]  ;;  %v4038_v1 = vld [vmem:[#allocation9 + $0xec] sm:$0xf0] }
  0x1d   :  { %v4036_v2 = vld [vmem:[#allocation9 + $0xe4] sm:$0xf]  ;;  %v3543_v3 = vor.u32 %v4038_v1, %v3542_v0  ;;  %v3544_v4 = vld [vmem:[#allocation9 + $0xf0] sm:$0xf0]  ;;  %v3550_v5 = vld [vmem:[#allocation9 + $0xe8] sm:$0xf] }
  0x1e   :  { %v4039_v6 = vld [vmem:[#allocation9 + $0xf4] sm:$0xf0]  ;;  %v3547_v7 = vor.u32 %v4036_v2, %v3544_v4  ;;  %v4037_v9 = vld [vmem:[#allocation9 + $0xec] sm:$0xf]  ;;  %v3552_v10 = vld [vmem:[#allocation9 + $0xf8] sm:$0xf0] }
  0x1f   :  { %v3551_v8 = vor.u32 %v4039_v6, %v3550_v5  ;;  %v3526_v11 = vld [vmem:[#allocation9 + $0xc0] sm:$0xf]  ;;  %386 = vmatpush.bf16.msra.mxu0 %v3543_v3  ;;  %v3555_v12 = vor.u32 %v4037_v9, %v3552_v10  ;;  %v4034_v13 = vld [vmem:[#allocation9 + $0xcc] sm:$0xf0]  ;;  %v4032_v14 = vld [vmem:[#allocation9 + $0xc4] sm:$0xf] }
  0x20   :  { %v3528_v15 = vld [vmem:[#allocation9 + $0xd0] sm:$0xf0]  ;;  %415 = vmatpush.bf16.msra.mxu1 %v3547_v7  ;;  %v3527_v16 = vor.u32 %v4034_v13, %v3526_v11  ;;  %v3534_v18 = vld [vmem:[#allocation9 + $0xc8] sm:$0xf]  ;;  %v4035_v19 = vld [vmem:[#allocation9 + $0xd4] sm:$0xf0] }
  0x21   :  { %444 = vmatpush.bf16.msra.mxu2 %v3551_v8  ;;  %v3531_v17 = vor.u32 %v4032_v14, %v3528_v15  ;;  %v4033_v20 = vld [vmem:[#allocation9 + $0xcc] sm:$0xf]  ;;  %473 = vmatpush.bf16.msra.mxu3 %v3555_v12  ;;  %v3535_v21 = vor.u32 %v4035_v19, %v3534_v18  ;;  %v3536_v22 = vld [vmem:[#allocation9 + $0xd8] sm:$0xf0]  ;;  %v3510_v23 = vld [vmem:[#allocation9 + $0xa0] sm:$0xf] }
  0x22   :  { %v4030_v24 = vld [vmem:[#allocation9 + $0xac] sm:$0xf0]  ;;  %v3539_v25 = vor.u32 %v4033_v20, %v3536_v22  ;;  %v4028_v26 = vld [vmem:[#allocation9 + $0xa4] sm:$0xf]  ;;  %v3512_v27 = vld [vmem:[#allocation9 + $0xb0] sm:$0xf0] }
  0x23   :  { %v3518_v28 = vld [vmem:[#allocation9 + $0xa8] sm:$0xf]  ;;  %387 = vmatpush.bf16.msra.mxu0 %v3527_v16  ;;  %v3511_v29 = vor.u32 %v4030_v24, %v3510_v23  ;;  %v4031_v30 = vld [vmem:[#allocation9 + $0xb4] sm:$0xf0]  ;;  %v4029_v31 = vld [vmem:[#allocation9 + $0xac] sm:$0xf]  ;;  %v3515_v33 = vor.u32 %v4028_v26, %v3512_v27 }
  0x24   :  { %v3520_v32 = vld [vmem:[#allocation9 + $0xb8] sm:$0xf0]  ;;  %416 = vmatpush.bf16.msra.mxu1 %v3531_v17  ;;  %v3519_v34 = vor.u32 %v4031_v30, %v3518_v28  ;;  %v3494_v35 = vld [vmem:[#allocation9 + $0x80] sm:$0xf]  ;;  %v4026_v36 = vld [vmem:[#allocation9 + $0x8c] sm:$0xf0] }
  0x25   :  { %445 = vmatpush.bf16.msra.mxu2 %v3535_v21  ;;  %v4024_v37 = vld [vmem:[#allocation9 + $0x84] sm:$0xf]  ;;  %474 = vmatpush.bf16.msra.mxu3 %v3539_v25  ;;  %v3523_v38 = vor.u32 %v4029_v31, %v3520_v32  ;;  %v3496_v39 = vld [vmem:[#allocation9 + $0x90] sm:$0xf0]  ;;  %v3502_v40 = vld [vmem:[#allocation9 + $0x88] sm:$0xf]  ;;  %v3495_v44 = vor.u32 %v4026_v36, %v3494_v35 }
  0x26   :  { %v4027_v41 = vld [vmem:[#allocation9 + $0x94] sm:$0xf0]  ;;  %v4025_v42 = vld [vmem:[#allocation9 + $0x8c] sm:$0xf]  ;;  %v3504_v43 = vld [vmem:[#allocation9 + $0x98] sm:$0xf0]  ;;  %v3499_v45 = vor.u32 %v4024_v37, %v3496_v39 }
  0x27   :  { %388 = vmatpush.bf16.msra.mxu0 %v3511_v29  ;;  %v3503_v46 = vor.u32 %v4027_v41, %v3502_v40  ;;  %v3478_v47 = vld [vmem:[#allocation9 + $0x60] sm:$0xf]  ;;  %v4022_v48 = vld [vmem:[#allocation9 + $0x6c] sm:$0xf0]  ;;  %v4020_v49 = vld [vmem:[#allocation9 + $0x64] sm:$0xf]  ;;  %v3507_v50 = vor.u32 %v4025_v42, %v3504_v43 }
  0x28   :  { %417 = vmatpush.bf16.msra.mxu1 %v3515_v33  ;;  %v3480_v51 = vld [vmem:[#allocation9 + $0x70] sm:$0xf0]  ;;  %v3486_v52 = vld [vmem:[#allocation9 + $0x68] sm:$0xf]  ;;  %v4023_v53 = vld [vmem:[#allocation9 + $0x74] sm:$0xf0]  ;;  %v3479_v56 = vor.u32 %v4022_v48, %v3478_v47 }
  0x29   :  { %446 = vmatpush.bf16.msra.mxu2 %v3519_v34  ;;  %475 = vmatpush.bf16.msra.mxu3 %v3523_v38  ;;  %v4021_v54 = vld [vmem:[#allocation9 + $0x6c] sm:$0xf]  ;;  %v3488_v55 = vld [vmem:[#allocation9 + $0x78] sm:$0xf0]  ;;  %v3483_v57 = vor.u32 %v4020_v49, %v3480_v51  ;;  %v3487_v58 = vor.u32 %v4023_v53, %v3486_v52  ;;  %v3462_v59 = vld [vmem:[#allocation9 + $0x40] sm:$0xf] }
  0x2a   :  { %v4018_v60 = vld [vmem:[#allocation9 + $0x4c] sm:$0xf0]  ;;  %v4016_v61 = vld [vmem:[#allocation9 + $0x44] sm:$0xf]  ;;  %v3491_v62 = vor.u32 %v4021_v54, %v3488_v55  ;;  %v3464_v63 = vld [vmem:[#allocation9 + $0x50] sm:$0xf0] }
  0x2b   :  { %389 = vmatpush.bf16.msra.mxu0 %v3495_v44  ;;  %v3470_v0 = vld [vmem:[#allocation9 + $0x48] sm:$0xf]  ;;  %v4019_v1 = vld [vmem:[#allocation9 + $0x54] sm:$0xf0]  ;;  %v4017_v2 = vld [vmem:[#allocation9 + $0x4c] sm:$0xf]  ;;  %v3463_v4 = vor.u32 %v4018_v60, %v3462_v59  ;;  %v3467_v5 = vor.u32 %v4016_v61, %v3464_v63 }
  0x2c   :  { %418 = vmatpush.bf16.msra.mxu1 %v3499_v45  ;;  %v3472_v3 = vld [vmem:[#allocation9 + $0x58] sm:$0xf0]  ;;  %v3471_v6 = vor.u32 %v4019_v1, %v3470_v0  ;;  %v3446_v7 = vld [vmem:[#allocation9 + $0x20] sm:$0xf]  ;;  %v4014_v8 = vld [vmem:[#allocation9 + $0x2c] sm:$0xf0] }
  0x2d   :  { %447 = vmatpush.bf16.msra.mxu2 %v3503_v46  ;;  %476 = vmatpush.bf16.msra.mxu3 %v3507_v50  ;;  %v4012_v9 = vld [vmem:[#allocation9 + $0x24] sm:$0xf]  ;;  %v3475_v10 = vor.u32 %v4017_v2, %v3472_v3  ;;  %v3448_v11 = vld [vmem:[#allocation9 + $0x30] sm:$0xf0]  ;;  %v3454_v12 = vld [vmem:[#allocation9 + $0x28] sm:$0xf]  ;;  %v3447_v16 = vor.u32 %v4014_v8, %v3446_v7 }
  0x2e   :  { %v4015_v13 = vld [vmem:[#allocation9 + $0x34] sm:$0xf0]  ;;  %v4013_v14 = vld [vmem:[#allocation9 + $0x2c] sm:$0xf]  ;;  %v3456_v15 = vld [vmem:[#allocation9 + $0x38] sm:$0xf0]  ;;  %v3451_v18 = vor.u32 %v4012_v9, %v3448_v11 }
  0x2f   :  { %390 = vmatpush.bf16.msra.mxu0 %v3479_v56  ;;  %v3430_v17 = vld [vmem:[#allocation9] sm:$0xf]  ;;  %v3455_v19 = vor.u32 %v4015_v13, %v3454_v12  ;;  %v4010_v20 = vld [vmem:[#allocation9 + $0xc] sm:$0xf0]  ;;  %v4008_v21 = vld [vmem:[#allocation9 + $0x4] sm:$0xf]  ;;  %v3459_v23 = vor.u32 %v4013_v14, %v3456_v15 }
  0x30   :  { %419 = vmatpush.bf16.msra.mxu1 %v3483_v57  ;;  %v3432_v22 = vld [vmem:[#allocation9 + $0x10] sm:$0xf0]  ;;  %v3438_v24 = vld [vmem:[#allocation9 + $0x8] sm:$0xf]  ;;  %v4011_v25 = vld [vmem:[#allocation9 + $0x14] sm:$0xf0]  ;;  %v3431_v30 = vor.u32 %v4010_v20, %v3430_v17 }
  0x31   :  { %448 = vmatpush.bf16.msra.mxu2 %v3487_v58  ;;  %477 = vmatpush.bf16.msra.mxu3 %v3491_v62  ;;  %v4009_v26 = vld [vmem:[#allocation9 + $0xc] sm:$0xf]  ;;  %v3440_v27 = vld [vmem:[#allocation9 + $0x18] sm:$0xf0]  ;;  %v3670_v28 = vld [vmem:[#allocation12 + $0xe0] sm:$0xf]  ;;  %v3435_v33 = vor.u32 %v4008_v21, %v3432_v22  ;;  %v3439_v34 = vor.u32 %v4011_v25, %v3438_v24 }
  0x32   :  { %v4070_v29 = vld [vmem:[#allocation12 + $0xec] sm:$0xf0]  ;;  %v4068_v31 = vld [vmem:[#allocation12 + $0xe4] sm:$0xf]  ;;  %v3672_v32 = vld [vmem:[#allocation12 + $0xf0] sm:$0xf0]  ;;  %v3443_v36 = vor.u32 %v4009_v26, %v3440_v27 }
  0x33   :  { %391 = vmatpush.bf16.msra.mxu0 %v3463_v4  ;;  %v4004_v35 = vld [vmem:[#allocation6] sm:$0xff]  ;;  %v4671_v37 = vor.u32 %v4070_v29, %v3670_v28  ;;  %v4069_v38 = vld [vmem:[#allocation12 + $0xec] sm:$0xf]  ;;  %v3678_v39 = vld [vmem:[#allocation12 + $0xe8] sm:$0xf]  ;;  %v4673_v41 = vor.u32 %v4068_v31, %v3672_v32  ;;  %s3389_s11 = sshll.u32 %s5770_s7, 4  ;;  %s3390_s11 = int_to_ptr.hbm [resolvable:$true] %s3389_s11 }
  0x34   :  { %420 = vmatpush.bf16.msra.mxu1 %v3467_v5  ;;  %v4071_v40 = vld [vmem:[#allocation12 + $0xf4] sm:$0xf0]  ;;  %v3680_v42 = vld [vmem:[#allocation12 + $0xf8] sm:$0xf0]  ;;  %v3654_v43 = vld [vmem:[#allocation12 + $0xc0] sm:$0xf] }
  0x35   :  { %449 = vmatpush.bf16.msra.mxu2 %v3471_v6  ;;  %478 = vmatpush.bf16.msra.mxu3 %v3475_v10  ;;  %v4066_v44 = vld [vmem:[#allocation12 + $0xcc] sm:$0xf0]  ;;  %v4064_v45 = vld [vmem:[#allocation12 + $0xc4] sm:$0xf]  ;;  %v3656_v46 = vld [vmem:[#allocation12 + $0xd0] sm:$0xf0]  ;;  %v4675_v47 = vor.u32 %v4071_v40, %v3678_v39  ;;  %v4678_v48 = vor.u32 %v4069_v38, %v3680_v42 }
  0x36   :  { %v4680_v49 = vor.u32 %v4066_v44, %v3654_v43  ;;  %v4065_v50 = vld [vmem:[#allocation12 + $0xcc] sm:$0xf]  ;;  %v3662_v51 = vld [vmem:[#allocation12 + $0xc8] sm:$0xf]  ;;  %v4067_v52 = vld [vmem:[#allocation12 + $0xd4] sm:$0xf0]  ;;  %v4683_v53 = vor.u32 %v4064_v45, %v3656_v46 }
  0x37   :  { %392 = vmatpush.bf16.msra.mxu0 %v3447_v16  ;;  %v3664_v54 = vld [vmem:[#allocation12 + $0xd8] sm:$0xf0]  ;;  %v3638_v55 = vld [vmem:[#allocation12 + $0xa0] sm:$0xf]  ;;  %v4062_v56 = vld [vmem:[#allocation12 + $0xac] sm:$0xf0]  ;;  %v4686_v59 = vor.u32 %v4067_v52, %v3662_v51 }
  0x38   :  { %421 = vmatpush.bf16.msra.mxu1 %v3451_v18  ;;  %v4060_v57 = vld [vmem:[#allocation12 + $0xa4] sm:$0xf]  ;;  %v3640_v58 = vld [vmem:[#allocation12 + $0xb0] sm:$0xf0]  ;;  %v4690_v60 = vor.u32 %v4065_v50, %v3664_v54  ;;  %v4692_v61 = vor.u32 %v4062_v56, %v3638_v55  ;;  %v4061_v62 = vld [vmem:[#allocation12 + $0xac] sm:$0xf] }
  0x39   :  { %450 = vmatpush.bf16.msra.mxu2 %v3455_v19  ;;  %479 = vmatpush.bf16.msra.mxu3 %v3459_v23  ;;  %v3646_v63 = vld [vmem:[#allocation12 + $0xa8] sm:$0xf]  ;;  %v4063_v0 = vld [vmem:[#allocation12 + $0xb4] sm:$0xf0]  ;;  %v4695_v1 = vor.u32 %v4060_v57, %v3640_v58  ;;  %v3648_v2 = vld [vmem:[#allocation12 + $0xb8] sm:$0xf0] }
  0x3a   :  { %v3622_v3 = vld [vmem:[#allocation12 + $0x80] sm:$0xf]  ;;  %v4058_v4 = vld [vmem:[#allocation12 + $0x8c] sm:$0xf0]  ;;  %v4056_v5 = vld [vmem:[#allocation12 + $0x84] sm:$0xf]  ;;  %v4698_v7 = vor.u32 %v4063_v0, %v3646_v63  ;;  %v4702_v8 = vor.u32 %v4061_v62, %v3648_v2 }
  0x3b   :  { %393 = vmatpush.bf16.msra.mxu0 %v3431_v30  ;;  %v3624_v6 = vld [vmem:[#allocation12 + $0x90] sm:$0xf0]  ;;  %v4704_v9 = vor.u32 %v4058_v4, %v3622_v3  ;;  %v4057_v10 = vld [vmem:[#allocation12 + $0x8c] sm:$0xf]  ;;  %v3630_v11 = vld [vmem:[#allocation12 + $0x88] sm:$0xf] }
  0x3c   :  { %422 = vmatpush.bf16.msra.mxu1 %v3435_v33  ;;  %v4059_v12 = vld [vmem:[#allocation12 + $0x94] sm:$0xf0]  ;;  %v4707_v13 = vor.u32 %v4056_v5, %v3624_v6  ;;  %v3632_v14 = vld [vmem:[#allocation12 + $0x98] sm:$0xf0]  ;;  %v3606_v15 = vld [vmem:[#allocation12 + $0x60] sm:$0xf] }
  0x3d   :  { %451 = vmatpush.bf16.msra.mxu2 %v3439_v34  ;;  %480 = vmatpush.bf16.msra.mxu3 %v3443_v36  ;;  %v4054_v16 = vld [vmem:[#allocation12 + $0x6c] sm:$0xf0]  ;;  %v4052_v17 = vld [vmem:[#allocation12 + $0x64] sm:$0xf]  ;;  %v3608_v18 = vld [vmem:[#allocation12 + $0x70] sm:$0xf0]  ;;  %v4710_v20 = vor.u32 %v4059_v12, %v3630_v11  ;;  %v4714_v21 = vor.u32 %v4057_v10, %v3632_v14 }
  0x3e   :  { %394 = vmatmul.bf16.vlgmr.msra.gmra.mxu0 %v4004_v35  ;;  %v4005_v19 = vld [vmem:[#allocation6 + $0x8] sm:$0xff]  ;;  %v4716_v22 = vor.u32 %v4054_v16, %v3606_v15  ;;  %v4055_v25 = vld [vmem:[#allocation12 + $0x74] sm:$0xf0]  ;;  %v4719_v26 = vor.u32 %v4052_v17, %v3608_v18  ;;  %v3616_v27 = vld [vmem:[#allocation12 + $0x78] sm:$0xf0]  ;;  %v5771_v14 = vmov 0  }
  0x3f   :  { %704 = vmatpush.bf16.msrb.mxu0 %v4671_v37  ;;  %423 = vmatmul.bf16.vlgmr.msra.gmra.mxu1 %v4004_v35  ;;  %v4053_v23 = vld [vmem:[#allocation12 + $0x6c] sm:$0xf]  ;;  %v3614_v24 = vld [vmem:[#allocation12 + $0x68] sm:$0xf]  ;;  %v3590_v28 = vld [vmem:[#allocation12 + $0x40] sm:$0xf] }
  0x40   :  { %717 = vmatpush.bf16.msrb.mxu1 %v4673_v41  ;;  %452 = vmatmul.bf16.vlgmr.msra.gmra.mxu2 %v4004_v35  ;;  %v4050_v29 = vld [vmem:[#allocation12 + $0x4c] sm:$0xf0]  ;;  %v4048_v30 = vld [vmem:[#allocation12 + $0x44] sm:$0xf]  ;;  %v3592_v31 = vld [vmem:[#allocation12 + $0x50] sm:$0xf0]  ;;  %v4722_v32 = vor.u32 %v4055_v25, %v3614_v24  ;;  %v4726_v33 = vor.u32 %v4053_v23, %v3616_v27 }
  0x41   :  { %481 = vmatmul.bf16.vlgmr.msra.gmra.mxu3 %v4004_v35  ;;  %730 = vmatpush.bf16.msrb.mxu2 %v4675_v47  ;;  %v4728_v34 = vor.u32 %v4050_v29, %v3590_v28  ;;  %v4731_v35 = vor.u32 %v4048_v30, %v3592_v31  ;;  %v4049_v36 = vld [vmem:[#allocation12 + $0x4c] sm:$0xf]  ;;  %v3600_v38 = vld [vmem:[#allocation12 + $0x58] sm:$0xf0]  ;;  %v3574_v39 = vld [vmem:[#allocation12 + $0x20] sm:$0xf] }
  0x42   :  { %743 = vmatpush.bf16.msrb.mxu3 %v4678_v48  ;;  %v4046_v40 = vld [vmem:[#allocation12 + $0x2c] sm:$0xf0]  ;;  %v4044_v42 = vld [vmem:[#allocation12 + $0x24] sm:$0xf]  ;;  %v4736_v43 = vor.u32 %v4049_v36, %v3600_v38  ;;  %v3576_v45 = vld [vmem:[#allocation12 + $0x30] sm:$0xf0] }
  0x43   :  { %705 = vmatpush.bf16.msrb.mxu0 %v4680_v49  ;;  %v4738_v44 = vor.u32 %v4046_v40, %v3574_v39  ;;  %v3598_v46 = vld [vmem:[#allocation12 + $0x48] sm:$0xf]  ;;  %v4051_v50 = vld [vmem:[#allocation12 + $0x54] sm:$0xf0]  ;;  %v4741_v51 = vor.u32 %v4044_v42, %v3576_v45  ;;  %v4045_v54 = vld [vmem:[#allocation12 + $0x2c] sm:$0xf] }
  0x44   :  { %718 = vmatpush.bf16.msrb.mxu1 %v4683_v53  ;;  %v4743_v52 = vor.u32 %v4051_v50, %v3598_v46  ;;  %v3584_v55 = vld [vmem:[#allocation12 + $0x38] sm:$0xf0]  ;;  %v3558_v56 = vld [vmem:[#allocation12] sm:$0xf]  ;;  %v4042_v57 = vld [vmem:[#allocation12 + $0xc] sm:$0xf0] }
  0x45   :  { %731 = vmatpush.bf16.msrb.mxu2 %v4686_v59  ;;  %v4040_v58 = vld [vmem:[#allocation12 + $0x4] sm:$0xf]  ;;  %v3560_v62 = vld [vmem:[#allocation12 + $0x10] sm:$0xf0]  ;;  %v3582_v63 = vld [vmem:[#allocation12 + $0x28] sm:$0xf]  ;;  %v4748_v2 = vor.u32 %v4045_v54, %v3584_v55  ;;  %v4750_v3 = vor.u32 %v4042_v57, %v3558_v56 }
  0x46   :  { %744 = vmatpush.bf16.msrb.mxu3 %v4690_v60  ;;  %v4047_v0 = vld [vmem:[#allocation12 + $0x34] sm:$0xf0]  ;;  %v3566_v5 = vld [vmem:[#allocation12 + $0x8] sm:$0xf]  ;;  %v4755_v10 = vor.u32 %v4040_v58, %v3560_v62  ;;  %v4041_v11 = vld [vmem:[#allocation12 + $0xc] sm:$0xf] }
  0x47   :  { %706 = vmatpush.bf16.msrb.mxu0 %v4692_v61  ;;  %v4752_v4 = vor.u32 %v4047_v0, %v3582_v63  ;;  %v4043_v6 = vld [vmem:[#allocation12 + $0x14] sm:$0xf0]  ;;  %v3568_v12 = vld [vmem:[#allocation12 + $0x18] sm:$0xf0]  ;;  %534 = vst [vmem:[#allocation4] sm:$0xf] %v5771_v14 }
  0x48   :  { %719 = vmatpush.bf16.msrb.mxu1 %v4695_v1  ;;  %v4759_v15 = vor.u32 %v4043_v6, %v3566_v5  ;;  %v4763_v16 = vor.u32 %v4041_v11, %v3568_v12  ;;  %v4006_v17 = vld [vmem:[#allocation6 + $0x10] sm:$0xff]  ;;  %v4007_v18 = vld [vmem:[#allocation6 + $0x18] sm:$0xff] }
  0x49   :  { %732 = vmatpush.bf16.msrb.mxu2 %v4698_v7  ;;  %v192_v30 = vld [vmem:[%s5768_s5] sm:$0xf]  ;;  %s4597_s5 = smov [#allocation17]  }
  0x4a   :  { %745 = vmatpush.bf16.msrb.mxu3 %v4702_v8  ;;  %v4841_v31 = vperm.slane %v192_v30, 0  ;;  %v4845_v38 = vperm.slane %v192_v30, 1  ;;  %v4855_v50 = vperm.slane %v192_v30, 2  ;;  %v4857_v54 = vperm.slane %v192_v30, 3  ;;  %s3387_s8 = sshll.u32 %s4597_s5, 4  ;;  %s3388_s8 = int_to_ptr.vmem [resolvable:$true] %s3387_s8 }
  0x4b   :  { %707 = vmatpush.bf16.msrb.mxu0 %v4704_v9 }
  0x4c   :  { %720 = vmatpush.bf16.msrb.mxu1 %v4707_v13 }
  0x4d   :  { %733 = vmatpush.bf16.msrb.mxu2 %v4710_v20 }
  0x4e   :  { %746 = vmatpush.bf16.msrb.mxu3 %v4714_v21  ;;  %399 = vmatmul.bf16.gmra.mxu0 %v4005_v19 }
  0x4f   :  { %708 = vmatpush.bf16.msrb.mxu0 %v4716_v22  ;;  %428 = vmatmul.bf16.gmra.mxu1 %v4005_v19 }
  0x50   :  { %721 = vmatpush.bf16.msrb.mxu1 %v4719_v26  ;;  %457 = vmatmul.bf16.gmra.mxu2 %v4005_v19 }
  0x51   :  { %486 = vmatmul.bf16.gmra.mxu3 %v4005_v19  ;;  %734 = vmatpush.bf16.msrb.mxu2 %v4722_v32  ;;  %v543_v19 = vld [vmem:[#allocation4] sm:$0xf] }
  0x52   :  { %747 = vmatpush.bf16.msrb.mxu3 %v4726_v33 }
  0x53   :  { %709 = vmatpush.bf16.msrb.mxu0 %v4728_v34 }
  0x54   :  { %722 = vmatpush.bf16.msrb.mxu1 %v4731_v35 }
  0x55   :  { %735 = vmatpush.bf16.msrb.mxu2 %v4743_v52 }
  0x56   :  { %748 = vmatpush.bf16.msrb.mxu3 %v4736_v43 }
  0x57   :  { %710 = vmatpush.bf16.msrb.mxu0 %v4738_v44 }
  0x58   :  { %723 = vmatpush.bf16.msrb.mxu1 %v4741_v51 }
  0x59   :  { %736 = vmatpush.bf16.msrb.mxu2 %v4752_v4 }
  0x5a   :  { %749 = vmatpush.bf16.msrb.mxu3 %v4748_v2 }
  0x5b   :  { %711 = vmatpush.bf16.msrb.mxu0 %v4750_v3 }
  0x5c   :  { %724 = vmatpush.bf16.msrb.mxu1 %v4755_v10 }
  0x5d   :  { %737 = vmatpush.bf16.msrb.mxu2 %v4759_v15 }
  0x5e   :  { %750 = vmatpush.bf16.msrb.mxu3 %v4763_v16  ;;  %404 = vmatmul.bf16.gmra.mxu0 %v4006_v17 }
  0x5f   :  { %836 = vmatpush.bf16.msra.mxu0 %v4671_v37  ;;  %433 = vmatmul.bf16.gmra.mxu1 %v4006_v17 }
  0x60   :  { %849 = vmatpush.bf16.msra.mxu1 %v4673_v41  ;;  %462 = vmatmul.bf16.gmra.mxu2 %v4006_v17 }
  0x61   :  { %862 = vmatpush.bf16.msra.mxu2 %v4675_v47  ;;  %491 = vmatmul.bf16.gmra.mxu3 %v4006_v17 }
  0x62   :  { %875 = vmatpush.bf16.msra.mxu3 %v4678_v48 }
  0x63   :  { %837 = vmatpush.bf16.msra.mxu0 %v4680_v49 }
  0x64   :  { %850 = vmatpush.bf16.msra.mxu1 %v4683_v53 }
  0x65   :  { %863 = vmatpush.bf16.msra.mxu2 %v4686_v59 }
  0x66   :  { %876 = vmatpush.bf16.msra.mxu3 %v4690_v60 }
  0x67   :  { %838 = vmatpush.bf16.msra.mxu0 %v4692_v61 }
  0x68   :  { %851 = vmatpush.bf16.msra.mxu1 %v4695_v1 }
  0x69   :  { %864 = vmatpush.bf16.msra.mxu2 %v4698_v7 }
  0x6a   :  { %877 = vmatpush.bf16.msra.mxu3 %v4702_v8 }
  0x6b   :  { %839 = vmatpush.bf16.msra.mxu0 %v4704_v9 }
  0x6c   :  { %852 = vmatpush.bf16.msra.mxu1 %v4707_v13 }
  0x6d   :  { %865 = vmatpush.bf16.msra.mxu2 %v4710_v20 }
  0x6e   :  { %878 = vmatpush.bf16.msra.mxu3 %v4714_v21  ;;  %409 = vmatmul.bf16.gmra.mxu0 %v4007_v18 }
  0x6f   :  { %840 = vmatpush.bf16.msra.mxu0 %v4716_v22  ;;  %438 = vmatmul.bf16.gmra.mxu1 %v4007_v18 }
  0x70   :  { %853 = vmatpush.bf16.msra.mxu1 %v4719_v26  ;;  %467 = vmatmul.bf16.gmra.mxu2 %v4007_v18 }
  0x71   :  { %866 = vmatpush.bf16.msra.mxu2 %v4722_v32  ;;  %496 = vmatmul.bf16.gmra.mxu3 %v4007_v18 }
  0x72   :  { %879 = vmatpush.bf16.msra.mxu3 %v4726_v33 }
  0x73   :  { %841 = vmatpush.bf16.msra.mxu0 %v4728_v34 }
  0x74   :  { %854 = vmatpush.bf16.msra.mxu1 %v4731_v35 }
  0x75   :  { %867 = vmatpush.bf16.msra.mxu2 %v4743_v52 }
  0x76   :  { %880 = vmatpush.bf16.msra.mxu3 %v4736_v43 }
  0x77   :  { %842 = vmatpush.bf16.msra.mxu0 %v4738_v44 }
  0x78   :  { %855 = vmatpush.bf16.msra.mxu1 %v4741_v51 }
  0x79   :  { %868 = vmatpush.bf16.msra.mxu2 %v4752_v4 }
  0x7a   :  { %881 = vmatpush.bf16.msra.mxu3 %v4748_v2 }
  0x7b   :  { %843 = vmatpush.bf16.msra.mxu0 %v4750_v3 }
  0x7c   :  { %856 = vmatpush.bf16.msra.mxu1 %v4755_v10 }
  0x7d   :  { %869 = vmatpush.bf16.msra.mxu2 %v4759_v15 }
  0x7e   :  { %882 = vmatpush.bf16.msra.mxu3 %v4763_v16  ;;  %712 = vmatmul.bf16.vlgmr.msrb.gmra.mxu0 %v543_v19 }
  0x7f   :  { %725 = vmatmul.bf16.vlgmr.msrb.gmra.mxu1 %v543_v19  ;;  %969 = vmatpush.bf16.msrb.mxu0 %v4671_v37 }
  0x80   :  { %738 = vmatmul.bf16.vlgmr.msrb.gmra.mxu2 %v543_v19  ;;  %982 = vmatpush.bf16.msrb.mxu1 %v4673_v41 }
  0x81   :  { %751 = vmatmul.bf16.vlgmr.msrb.gmra.mxu3 %v543_v19  ;;  %995 = vmatpush.bf16.msrb.mxu2 %v4675_v47 }
  0x82   :  { %1008 = vmatpush.bf16.msrb.mxu3 %v4678_v48 }
  0x83   :  { %970 = vmatpush.bf16.msrb.mxu0 %v4680_v49 }
  0x84   :  { %983 = vmatpush.bf16.msrb.mxu1 %v4683_v53 }
  0x85   :  { %996 = vmatpush.bf16.msrb.mxu2 %v4686_v59 }
  0x86   :  { %1009 = vmatpush.bf16.msrb.mxu3 %v4690_v60 }
  0x87   :  { %971 = vmatpush.bf16.msrb.mxu0 %v4692_v61 }
  0x88   :  { %984 = vmatpush.bf16.msrb.mxu1 %v4695_v1 }
  0x89   :  { %997 = vmatpush.bf16.msrb.mxu2 %v4698_v7 }
  0x8a   :  { %1010 = vmatpush.bf16.msrb.mxu3 %v4702_v8 }
  0x8b   :  { %972 = vmatpush.bf16.msrb.mxu0 %v4704_v9 }
  0x8c   :  { %985 = vmatpush.bf16.msrb.mxu1 %v4707_v13 }
  0x8d   :  { %998 = vmatpush.bf16.msrb.mxu2 %v4710_v20 }
  0x8e   :  { %1011 = vmatpush.bf16.msrb.mxu3 %v4714_v21 }
  0x8f   :  { %973 = vmatpush.bf16.msrb.mxu0 %v4716_v22 }
  0x90   :  { %986 = vmatpush.bf16.msrb.mxu1 %v4719_v26 }
  0x91   :  { %999 = vmatpush.bf16.msrb.mxu2 %v4722_v32 }
  0x92   :  { %1012 = vmatpush.bf16.msrb.mxu3 %v4726_v33 }
  0x93   :  { %974 = vmatpush.bf16.msrb.mxu0 %v4728_v34 }
  0x94   :  { %987 = vmatpush.bf16.msrb.mxu1 %v4731_v35 }
  0x95   :  { %1000 = vmatpush.bf16.msrb.mxu2 %v4743_v52 }
  0x96   :  { %1013 = vmatpush.bf16.msrb.mxu3 %v4736_v43 }
  0x97   :  { %975 = vmatpush.bf16.msrb.mxu0 %v4738_v44 }
  0x98   :  { %988 = vmatpush.bf16.msrb.mxu1 %v4741_v51 }
  0x99   :  { %1001 = vmatpush.bf16.msrb.mxu2 %v4752_v4 }
  0x9a   :  { %1014 = vmatpush.bf16.msrb.mxu3 %v4748_v2 }
  0x9b   :  { %976 = vmatpush.bf16.msrb.mxu0 %v4750_v3 }
  0x9c   :  { %989 = vmatpush.bf16.msrb.mxu1 %v4755_v10 }
  0x9d   :  { %1002 = vmatpush.bf16.msrb.mxu2 %v4759_v15 }
  0x9e   :  { %1015 = vmatpush.bf16.msrb.mxu3 %v4763_v16 }
  0xbb   :  { %v395_v23 = vpop.f32.mrf.mxu0 }
  0xbc   :  { %v424_v24 = vpop.f32.mrf.mxu1 }
  0xc3   :  { %v4832_v25 = vpop.f32.mrf.mxu2  ;;  %v4834_v28 = vpop.f32.mrf.mxu0 }
  0xc4   :  { %v482_v27 = vpop.f32.mrf.mxu3  ;;  %v4836_v29 = vpop.f32.mrf.mxu1 }
  0xcb   :  { %v4843_v36 = vpop.f32.mrf.mxu2  ;;  %v400_v40 = vpop.f32.mrf.mxu0 }
  0xcc   :  { %5774 = vst [vmem:[#allocation23_spill] sm:$0xff] %v4843_v36  ;;  %v4847_v39 = vpop.f32.mrf.mxu3  ;;  %v4850_v42 = vadd.f32 %v400_v40, %v4841_v31  ;;  %v429_v45 = vpop.f32.mrf.mxu1 }
  0xcd   :  { %v4853_v46 = vadd.f32 %v429_v45, %v4845_v38 }
  0xce   :  { %5775 = vst [vmem:[#allocation24_spill] sm:$0xff] %v4850_v42 }
  0xcf   :  { %5776 = vst [vmem:[#allocation25_spill] sm:$0xff] %v4853_v46 }
  0xd3   :  { %v458_v55 = vpop.f32.mrf.mxu2  ;;  %v4862_v58 = vpop.f32.mrf.mxu0 }
  0xd4   :  { %v4860_v56 = vadd.f32 %v458_v55, %v4855_v50  ;;  %v487_v57 = vpop.f32.mrf.mxu3  ;;  %5778 = vst [vmem:[#allocation27_spill] sm:$0xff] %v4862_v58  ;;  %v4867_v63 = vpop.f32.mrf.mxu1 }
  0xd5   :  { %v4865_v62 = vadd.f32 %v487_v57, %v4857_v54  ;;  %5780 = vst [vmem:[#allocation29_spill] sm:$0xff] %v4867_v63 }
  0xd6   :  { %5777 = vst [vmem:[#allocation26_spill] sm:$0xff] %v4860_v56 }
  0xd7   :  { %5779 = vst [vmem:[#allocation28_spill] sm:$0xff] %v4865_v62 }
  0xdb   :  { %v4869_v0 = vpop.f32.mrf.mxu2  ;;  %v405_v6 = vpop.f32.mrf.mxu0 }
  0xdc   :  { %5781 = vst [vmem:[#allocation30_spill] sm:$0xff] %v4869_v0  ;;  %v4871_v5 = vpop.f32.mrf.mxu3  ;;  %v4874_v11 = vadd.f32 %v405_v6, %v4841_v31  ;;  %v434_v12 = vpop.f32.mrf.mxu1 }
  0xdd   :  { %5782 = vst [vmem:[#allocation31_spill] sm:$0xff] %v4871_v5  ;;  %v4877_v17 = vadd.f32 %v434_v12, %v4845_v38 }
  0xde   :  { %5783 = vst [vmem:[#allocation32_spill] sm:$0xff] %v4874_v11 }
  0xdf   :  { %5784 = vst [vmem:[#allocation33_spill] sm:$0xff] %v4877_v17 }
  0xe3   :  { %v463_v18 = vpop.f32.mrf.mxu2  ;;  %v4882_v40 = vpop.f32.mrf.mxu0 }
  0xe4   :  { %v4880_v19 = vadd.f32 %v463_v18, %v4855_v50  ;;  %v492_v30 = vpop.f32.mrf.mxu3  ;;  %5786 = vst [vmem:[#allocation35_spill] sm:$0xff] %v4882_v40  ;;  %v4887_v55 = vpop.f32.mrf.mxu1 }
  0xe5   :  { %v4885_v45 = vadd.f32 %v492_v30, %v4857_v54  ;;  %5788 = vst [vmem:[#allocation37_spill] sm:$0xff] %v4887_v55 }
  0xe6   :  { %5785 = vst [vmem:[#allocation34_spill] sm:$0xff] %v4880_v19 }
  0xe7   :  { %5787 = vst [vmem:[#allocation36_spill] sm:$0xff] %v4885_v45 }
  0xeb   :  { %v4889_v57 = vpop.f32.mrf.mxu2  ;;  %v410_v14 = vpop.f32.mrf.mxu0 }
  0xec   :  { %5789 = vst [vmem:[#allocation38_spill] sm:$0xff] %v4889_v57  ;;  %v4891_v6 = vpop.f32.mrf.mxu3  ;;  %v4894_v12 = vadd.f32 %v410_v14, %v4841_v31  ;;  %v439_v17 = vpop.f32.mrf.mxu1 }
  0xed   :  { %5790 = vst [vmem:[#allocation39_spill] sm:$0xff] %v4891_v6  ;;  %v4897_v18 = vadd.f32 %v439_v17, %v4845_v38  ;;  %v396_v6 = vadd.f32 %v395_v23, %v4841_v31 }
  0xee   :  { %5791 = vst [vmem:[#allocation40_spill] sm:$0xff] %v4894_v12  ;;  %v425_v12 = vadd.f32 %v424_v24, %v4845_v38 }
  0xef   :  { %5792 = vst [vmem:[#allocation41_spill] sm:$0xff] %v4897_v18 }
  0xf3   :  { %v468_v19 = vpop.f32.mrf.mxu2  ;;  %v4902_v45 = vpop.f32.mrf.mxu0 }
  0xf4   :  { %v4900_v40 = vadd.f32 %v468_v19, %v4855_v50  ;;  %v497_v30 = vpop.f32.mrf.mxu3  ;;  %5794 = vst [vmem:[#allocation43_spill] sm:$0xff] %v4902_v45  ;;  %v4907_v57 = vpop.f32.mrf.mxu1 }
  0xf5   :  { %v4905_v55 = vadd.f32 %v497_v30, %v4857_v54  ;;  %5796 = vst [vmem:[#allocation45_spill] sm:$0xff] %v4907_v57  ;;  %v483_v30 = vadd.f32 %v482_v27, %v4857_v54 }
  0xf6   :  { %5793 = vst [vmem:[#allocation42_spill] sm:$0xff] %v4900_v40 }
  0xf7   :  { %5795 = vst [vmem:[#allocation44_spill] sm:$0xff] %v4905_v55 }
  0xfb   :  { %v4910_v14 = vpop.f32.mrf.mxu2  ;;  %v713_v18 = vpop.f32.mrf.mxu0 }
  0xfc   :  { %5797 = vst [vmem:[#allocation46_spill] sm:$0xff] %v4910_v14  ;;  %v4913_v17 = vpop.f32.mrf.mxu3  ;;  %v756_v11 = vadd.f32 %v713_v18, %v396_v6  ;;  %v726_v19 = vpop.f32.mrf.mxu1 }
  0xfd   :  { %5798 = vst [vmem:[#allocation47_spill] sm:$0xff] %v4913_v17  ;;  %v757_v40 = vadd.f32 %v726_v19, %v425_v12 }
  0xfe   :  { %v3684_v0 = vmul.f32 -1.442695, %v756_v11 }
  0xff   :  { %v3685_v5 = vmul.f32 -1.442695, %v757_v40 }
 0x100   :  { %4152 = vpow2.f32 %v3684_v0  ;;  %v454_v0 = vadd.f32 %v4832_v25, %v4855_v50 }
 0x101   :  { %4154 = vpow2.f32 %v3685_v5 }
 0x103   :  { %v739_v45 = vpop.f32.mrf.mxu2  ;;  %v715_v55 = vpop.f32.mrf.mxu0 }
 0x104   :  { %v752_v57 = vpop.f32.mrf.mxu3  ;;  %v728_v63 = vpop.f32.mrf.mxu1  ;;  %v758_v40 = vadd.f32 %v739_v45, %v454_v0 }
 0x105   :  { %v759_v23 = vadd.f32 %v752_v57, %v483_v30 }
 0x106   :  { %v4153_v14 = vpop.eup %4152 }
 0x107   :  { %v3686_v58 = vmul.f32 -1.442695, %v759_v23  ;;  %v4155_v24 = vpop.eup %4154  ;;  %v763_v56 = vadd.f32 1.0, %v4153_v14 }
 0x108   :  { %v782_v17 = vadd.f32 1.0, %v4155_v24 }
 0x109   :  { %4156 = vpow2.f32 %v3686_v58  ;;  %v775_v14 = vand.u32 2147483648, %v763_v56  ;;  %v773_v23 = vand.u32 2147483647, %v763_v56  ;;  %vm769_vm2 = vweird.f32 %v763_v56 }
 0x10a   :  { %4158 = vrcp.f32 %v763_v56  ;;  %v794_v58 = vand.u32 2147483648, %v782_v17  ;;  %vm788_vm3 = vweird.f32 %v782_v17 }
 0x10b   :  { %4160 = vrcp.f32 %v782_v17  ;;  %v741_v6 = vpop.f32.mrf.mxu2  ;;  %v776_v45 = vor.u32 1.1754944e-38, %v775_v14  ;;  %vm774_vm5 = vcmp.eq.f32.partialorder %v773_v23, 8.507059e+37 }
 0x10c   :  { %v754_v11 = vpop.f32.mrf.mxu3  ;;  %v792_v6 = vand.u32 2147483647, %v782_v17 }
 0x10e   :  { %vm793_vm7 = vcmp.eq.f32.partialorder %v792_v6, 8.507059e+37 }
 0x10f   :  { %v4157_v5 = vpop.eup %4156 }
 0x110   :  { %v4159_v27 = vpop.eup %4158  ;;  %v802_v12 = vadd.f32 1.0, %v4157_v5  ;;  %v795_v5 = vor.u32 1.1754944e-38, %v794_v58 }
 0x111   :  { %v4161_v55 = vpop.eup %4160  ;;  %v765_v57 = vmul.f32 %v4159_v27, %v763_v56  ;;  %vm770_vm0 = vweird.f32 %v4159_v27 }
 0x112   :  { %v784_v63 = vmul.f32 %v4161_v55, %v782_v17  ;;  %4162 = vrcp.f32 %v802_v12  ;;  %vm789_vm1 = vweird.f32 %v4161_v55  ;;  %vm771_vm4 = vmor %vm769_vm2, %vm770_vm0  ;;  %v814_v14 = vand.u32 2147483648, %v802_v12 }
 0x113   :  { %v766_v18 = vsub.f32 1.0, %v765_v57  ;;  %4164 = vtanh.f32 %v758_v40  ;;  %vm790_vm6 = vmor %vm788_vm3, %vm789_vm1  ;;  %vm808_vm9 = vweird.f32 %v802_v12 }
 0x114   :  { %v785_v19 = vsub.f32 1.0, %v784_v63  ;;  %v815_v23 = vor.u32 1.1754944e-38, %v814_v14 }
 0x115   :  { %v767_v30 = vmul.f32 %v4159_v27, %v766_v18 }
 0x116   :  { %v786_v24 = vmul.f32 %v4161_v55, %v785_v19 }
 0x117   :  { %v768_v25 = vadd.f32 %v4159_v27, %v767_v30 }
 0x118   :  { %v4163_v11 = vpop.eup %4162  ;;  %v787_v0 = vadd.f32 %v4161_v55, %v786_v24 }
 0x119   :  { %v772_v62 = vsel %vm771_vm4, %v4159_v27, %v768_v25  ;;  %v804_v57 = vmul.f32 %v4163_v11, %v802_v12  ;;  %v4165_v40 = vpop.eup %4164  ;;  %vm809_vm8 = vweird.f32 %v4163_v11  ;;  %v812_v27 = vand.u32 2147483647, %v802_v12 }
 0x11a   :  { %v777_v63 = vsel %vm774_vm5, %v776_v45, %v772_v62  ;;  %v791_v18 = vsel %vm790_vm6, %v4161_v55, %v787_v0  ;;  %vm810_vm10 = vmor %vm808_vm9, %vm809_vm8 }
 0x11b   :  { %v796_v46 = vsel %vm793_vm7, %v795_v5, %v791_v18  ;;  %v820_v19 = vmul.f32 %v4165_v40, %v777_v63  ;;  %v805_v42 = vsub.f32 1.0, %v804_v57  ;;  %vm813_vm11 = vcmp.eq.f32.partialorder %v812_v27, 8.507059e+37 }
 0x11c   :  { %v819_v36 = vmul.f32 0.0, %v796_v46  ;;  %v427_v46 = vadd.f32 %v4836_v29, %v4845_v38  ;;  %v485_v57 = vadd.f32 %v4847_v39, %v4857_v54 }
 0x11d   :  { %v806_v30 = vmul.f32 %v4163_v11, %v805_v42 }
 0x11e   :  { %v4918_v56 = vadd.f32 %v820_v19, %v819_v36  ;;  %v398_v36 = vadd.f32 %v4834_v28, %v4841_v31 }
 0x11f   :  { %v807_v17 = vadd.f32 %v4163_v11, %v806_v30 }
 0x120   :  { %4166 = vtanh.f32 %v4918_v56 }
 0x121   :  { %v811_v58 = vsel %vm810_vm10, %v4163_v11, %v807_v17 }
 0x122   :  { %v816_v55 = vsel %vm813_vm11, %v815_v23, %v811_v58 }
 0x126   :  { %v4167_v62 = vpop.eup %4166 }
 0x127   :  { %v823_v24 = vmul.f32 %v4167_v62, %v816_v55  ;;  %v5799_v55 = vld [vmem:[#allocation23_spill] sm:$0xff] }
 0x128   :  { %v456_v39 = vadd.f32 %v5799_v55, %v4855_v50 }
 0x129   :  { %v824_v6 = vpack.c.bf16 %v823_v24, %v823_v24 }
 0x12b   :  { %826 = vst [vmem:[#allocation4] sm:$0xf] %v824_v6 }
 0x12c   :  { %827 = vst [vmem:[#allocation3] sm:$0xf] %v824_v6 }
 0x132   :  { %v835_v42 = vld [vmem:[#allocation4] sm:$0xf] }
 0x133   :  { %844 = vmatmul.bf16.vlgmr.msra.gmra.mxu0 %v835_v42  ;;  %857 = vmatmul.bf16.vlgmr.msra.gmra.mxu1 %v835_v42 }
 0x134   :  { %870 = vmatmul.bf16.vlgmr.msra.gmra.mxu2 %v835_v42  ;;  %883 = vmatmul.bf16.vlgmr.msra.gmra.mxu3 %v835_v42 }
 0x135   :  { %1102 = vmatpush.bf16.msra.mxu0 %v4671_v37  ;;  %1115 = vmatpush.bf16.msra.mxu1 %v4673_v41 }
 0x136   :  { %1128 = vmatpush.bf16.msra.mxu2 %v4675_v47  ;;  %1141 = vmatpush.bf16.msra.mxu3 %v4678_v48 }
 0x139   :  { %1103 = vmatpush.bf16.msra.mxu0 %v4680_v49  ;;  %1116 = vmatpush.bf16.msra.mxu1 %v4683_v53 }
 0x13a   :  { %1129 = vmatpush.bf16.msra.mxu2 %v4686_v59  ;;  %1142 = vmatpush.bf16.msra.mxu3 %v4690_v60 }
 0x13d   :  { %1104 = vmatpush.bf16.msra.mxu0 %v4692_v61  ;;  %1117 = vmatpush.bf16.msra.mxu1 %v4695_v1 }
 0x13e   :  { %1130 = vmatpush.bf16.msra.mxu2 %v4698_v7  ;;  %1143 = vmatpush.bf16.msra.mxu3 %v4702_v8 }
 0x141   :  { %1105 = vmatpush.bf16.msra.mxu0 %v4704_v9  ;;  %1118 = vmatpush.bf16.msra.mxu1 %v4707_v13 }
 0x142   :  { %1131 = vmatpush.bf16.msra.mxu2 %v4710_v20  ;;  %1144 = vmatpush.bf16.msra.mxu3 %v4714_v21 }
 0x145   :  { %1106 = vmatpush.bf16.msra.mxu0 %v4716_v22  ;;  %1119 = vmatpush.bf16.msra.mxu1 %v4719_v26 }
 0x146   :  { %1132 = vmatpush.bf16.msra.mxu2 %v4722_v32  ;;  %1145 = vmatpush.bf16.msra.mxu3 %v4726_v33 }
 0x149   :  { %1107 = vmatpush.bf16.msra.mxu0 %v4728_v34  ;;  %1120 = vmatpush.bf16.msra.mxu1 %v4731_v35 }
 0x14a   :  { %1133 = vmatpush.bf16.msra.mxu2 %v4743_v52  ;;  %1146 = vmatpush.bf16.msra.mxu3 %v4736_v43 }
 0x14d   :  { %1108 = vmatpush.bf16.msra.mxu0 %v4738_v44  ;;  %1121 = vmatpush.bf16.msra.mxu1 %v4741_v51 }
 0x14e   :  { %1134 = vmatpush.bf16.msra.mxu2 %v4752_v4  ;;  %1147 = vmatpush.bf16.msra.mxu3 %v4748_v2 }
 0x151   :  { %1109 = vmatpush.bf16.msra.mxu0 %v4750_v3  ;;  %1122 = vmatpush.bf16.msra.mxu1 %v4755_v10 }
 0x152   :  { %1135 = vmatpush.bf16.msra.mxu2 %v4759_v15  ;;  %1148 = vmatpush.bf16.msra.mxu3 %v4763_v16 }
 0x1b0   :  { %v845_v12 = vpop.f32.mrf.mxu0  ;;  %v858_v25 = vpop.f32.mrf.mxu1 }
 0x1b1   :  { %v888_v11 = vadd.f32 %v845_v12, %v398_v36  ;;  %v889_v45 = vadd.f32 %v858_v25, %v427_v46 }
 0x1b3   :  { %v3687_v0 = vmul.f32 -1.442695, %v888_v11  ;;  %v3688_v5 = vmul.f32 -1.442695, %v889_v45 }
 0x1b5   :  { %4168 = vpow2.f32 %v3687_v0 }
 0x1b6   :  { %4170 = vpow2.f32 %v3688_v5 }
 0x1b7   :  { %v871_v40 = vpop.f32.mrf.mxu2  ;;  %v884_v63 = vpop.f32.mrf.mxu3 }
 0x1b8   :  { %v891_v18 = vadd.f32 %v884_v63, %v485_v57  ;;  %v847_v19 = vpop.f32.mrf.mxu0  ;;  %v860_v30 = vpop.f32.mrf.mxu1  ;;  %v890_v42 = vadd.f32 %v871_v40, %v456_v39 }
 0x1ba   :  { %v3689_v28 = vmul.f32 -1.442695, %v891_v18 }
 0x1bb   :  { %v4169_v17 = vpop.eup %4168 }
 0x1bc   :  { %v4171_v14 = vpop.eup %4170  ;;  %v895_v29 = vadd.f32 1.0, %v4169_v17  ;;  %4172 = vpow2.f32 %v3689_v28 }
 0x1bd   :  { %v914_v27 = vadd.f32 1.0, %v4171_v14 }
 0x1be   :  { %4174 = vrcp.f32 %v895_v29  ;;  %v907_v45 = vand.u32 2147483648, %v895_v29  ;;  %v905_v57 = vand.u32 2147483647, %v895_v29  ;;  %vm901_vm14 = vweird.f32 %v895_v29 }
 0x1bf   :  { %4176 = vrcp.f32 %v914_v27  ;;  %v873_v58 = vpop.f32.mrf.mxu2  ;;  %v886_v23 = vpop.f32.mrf.mxu3  ;;  %v926_v0 = vand.u32 2147483648, %v914_v27  ;;  %v924_v18 = vand.u32 2147483647, %v914_v27  ;;  %vm920_vm15 = vweird.f32 %v914_v27 }
 0x1c0   :  { %v908_v40 = vor.u32 1.1754944e-38, %v907_v45  ;;  %vm906_vm2 = vcmp.eq.f32.partialorder %v905_v57, 8.507059e+37 }
 0x1c1   :  { %v927_v14 = vor.u32 1.1754944e-38, %v926_v0  ;;  %vm925_vm3 = vcmp.eq.f32.partialorder %v924_v18, 8.507059e+37 }
 0x1c2   :  { %v4173_v62 = vpop.eup %4172 }
 0x1c3   :  { %v934_v24 = vadd.f32 1.0, %v4173_v62 }
 0x1c4   :  { %v4175_v6 = vpop.eup %4174 }
 0x1c5   :  { %v4177_v36 = vpop.eup %4176  ;;  %v897_v46 = vmul.f32 %v4175_v6, %v895_v29  ;;  %4178 = vrcp.f32 %v934_v24  ;;  %vm902_vm12 = vweird.f32 %v4175_v6  ;;  %vm940_vm5 = vweird.f32 %v934_v24 }
 0x1c6   :  { %v916_v12 = vmul.f32 %v4177_v36, %v914_v27  ;;  %4180 = vtanh.f32 %v890_v42  ;;  %vm921_vm13 = vweird.f32 %v4177_v36  ;;  %vm903_vm0 = vmor %vm901_vm14, %vm902_vm12 }
 0x1c7   :  { %v898_v25 = vsub.f32 1.0, %v897_v46  ;;  %vm922_vm1 = vmor %vm920_vm15, %vm921_vm13 }
 0x1c8   :  { %v917_v11 = vsub.f32 1.0, %v916_v12 }
 0x1c9   :  { %v899_v5 = vmul.f32 %v4175_v6, %v898_v25 }
 0x1ca   :  { %v918_v63 = vmul.f32 %v4177_v36, %v917_v11  ;;  %v946_v11 = vand.u32 2147483648, %v934_v24 }
 0x1cb   :  { %v4179_v19 = vpop.eup %4178  ;;  %v900_v30 = vadd.f32 %v4175_v6, %v899_v5 }
 0x1cc   :  { %v919_v28 = vadd.f32 %v4177_v36, %v918_v63  ;;  %v936_v17 = vmul.f32 %v4179_v19, %v934_v24  ;;  %v4181_v23 = vpop.eup %4180  ;;  %vm941_vm4 = vweird.f32 %v4179_v19  ;;  %v947_v0 = vor.u32 1.1754944e-38, %v946_v11 }
 0x1cd   :  { %v904_v58 = vsel %vm903_vm0, %v4175_v6, %v900_v30  ;;  %v944_v6 = vand.u32 2147483647, %v934_v24  ;;  %vm942_vm6 = vmor %vm940_vm5, %vm941_vm4 }
 0x1ce   :  { %v909_v62 = vsel %vm906_vm2, %v908_v40, %v904_v58  ;;  %v923_v55 = vsel %vm922_vm1, %v4177_v36, %v919_v28  ;;  %v937_v39 = vsub.f32 1.0, %v936_v17  ;;  %v5801_v40 = vld [vmem:[#allocation25_spill] sm:$0xff] }
 0x1cf   :  { %v928_v42 = vsel %vm925_vm3, %v927_v14, %v923_v55  ;;  %v952_v46 = vmul.f32 %v4181_v23, %v909_v62  ;;  %vm945_vm7 = vcmp.eq.f32.partialorder %v944_v6, 8.507059e+37  ;;  %v5802_v62 = vld [vmem:[#allocation28_spill] sm:$0xff] }
 0x1d0   :  { %v951_v12 = vmul.f32 %v928_v42, %v4918_v56  ;;  %v938_v25 = vmul.f32 %v4179_v19, %v937_v39 }
 0x1d2   :  { %v4962_v29 = vadd.f32 %v952_v46, %v951_v12  ;;  %v939_v27 = vadd.f32 %v4179_v19, %v938_v25 }
 0x1d4   :  { %4182 = vtanh.f32 %v4962_v29  ;;  %v943_v45 = vsel %vm942_vm6, %v4179_v19, %v939_v27  ;;  %v5800_v19 = vld [vmem:[#allocation24_spill] sm:$0xff] }
 0x1d5   :  { %v948_v5 = vsel %vm945_vm7, %v947_v0, %v943_v45 }
 0x1da   :  { %v4183_v36 = vpop.eup %4182 }
 0x1db   :  { %v955_v57 = vmul.f32 %v4183_v36, %v948_v5 }
 0x1dd   :  { %v956_v63 = vpack.c.bf16 %v955_v57, %v955_v57  ;;  %v5803_v57 = vld [vmem:[#allocation26_spill] sm:$0xff] }
 0x1df   :  { %958 = vst [vmem:[#allocation4] sm:$0xf] %v956_v63 }
 0x1e0   :  { %960 = vst [vmem:[#allocation3 + $0x4] sm:$0xf] %v956_v63 }
 0x1e6   :  { %v968_v56 = vld [vmem:[#allocation4] sm:$0xf] }
 0x1e7   :  { %977 = vmatmul.bf16.vlgmr.msrb.gmra.mxu0 %v968_v56  ;;  %990 = vmatmul.bf16.vlgmr.msrb.gmra.mxu1 %v968_v56 }
 0x1e8   :  { %1003 = vmatmul.bf16.vlgmr.msrb.gmra.mxu2 %v968_v56  ;;  %1016 = vmatmul.bf16.vlgmr.msrb.gmra.mxu3 %v968_v56 }
 0x1e9   :  { %1235 = vmatpush.bf16.msrb.mxu0 %v4671_v37  ;;  %1248 = vmatpush.bf16.msrb.mxu1 %v4673_v41 }
 0x1ea   :  { %1261 = vmatpush.bf16.msrb.mxu2 %v4675_v47  ;;  %1274 = vmatpush.bf16.msrb.mxu3 %v4678_v48 }
 0x1ed   :  { %1236 = vmatpush.bf16.msrb.mxu0 %v4680_v49  ;;  %1249 = vmatpush.bf16.msrb.mxu1 %v4683_v53 }
 0x1ee   :  { %1262 = vmatpush.bf16.msrb.mxu2 %v4686_v59  ;;  %1275 = vmatpush.bf16.msrb.mxu3 %v4690_v60 }
 0x1f1   :  { %1237 = vmatpush.bf16.msrb.mxu0 %v4692_v61  ;;  %1250 = vmatpush.bf16.msrb.mxu1 %v4695_v1 }
 0x1f2   :  { %1263 = vmatpush.bf16.msrb.mxu2 %v4698_v7  ;;  %1276 = vmatpush.bf16.msrb.mxu3 %v4702_v8 }
 0x1f5   :  { %1238 = vmatpush.bf16.msrb.mxu0 %v4704_v9  ;;  %1251 = vmatpush.bf16.msrb.mxu1 %v4707_v13 }
 0x1f6   :  { %1264 = vmatpush.bf16.msrb.mxu2 %v4710_v20  ;;  %1277 = vmatpush.bf16.msrb.mxu3 %v4714_v21 }
 0x1f9   :  { %1239 = vmatpush.bf16.msrb.mxu0 %v4716_v22  ;;  %1252 = vmatpush.bf16.msrb.mxu1 %v4719_v26 }
 0x1fa   :  { %1265 = vmatpush.bf16.msrb.mxu2 %v4722_v32  ;;  %1278 = vmatpush.bf16.msrb.mxu3 %v4726_v33 }
 0x1fd   :  { %1240 = vmatpush.bf16.msrb.mxu0 %v4728_v34  ;;  %1253 = vmatpush.bf16.msrb.mxu1 %v4731_v35 }
 0x1fe   :  { %1266 = vmatpush.bf16.msrb.mxu2 %v4743_v52  ;;  %1279 = vmatpush.bf16.msrb.mxu3 %v4736_v43 }
 0x201   :  { %1241 = vmatpush.bf16.msrb.mxu0 %v4738_v44  ;;  %1254 = vmatpush.bf16.msrb.mxu1 %v4741_v51 }
 0x202   :  { %1267 = vmatpush.bf16.msrb.mxu2 %v4752_v4  ;;  %1280 = vmatpush.bf16.msrb.mxu3 %v4748_v2 }
 0x205   :  { %1242 = vmatpush.bf16.msrb.mxu0 %v4750_v3  ;;  %1255 = vmatpush.bf16.msrb.mxu1 %v4755_v10 }
 0x206   :  { %1268 = vmatpush.bf16.msrb.mxu2 %v4759_v15  ;;  %1281 = vmatpush.bf16.msrb.mxu3 %v4763_v16 }
 0x264   :  { %v978_v24 = vpop.f32.mrf.mxu0  ;;  %v991_v18 = vpop.f32.mrf.mxu1 }
 0x265   :  { %v1021_v30 = vadd.f32 %v978_v24, %v5800_v19  ;;  %v1022_v28 = vadd.f32 %v991_v18, %v5801_v40 }
 0x267   :  { %v3690_v17 = vmul.f32 -1.442695, %v1021_v30  ;;  %v3691_v14 = vmul.f32 -1.442695, %v1022_v28 }
 0x269   :  { %4184 = vpow2.f32 %v3690_v17 }
 0x26a   :  { %4186 = vpow2.f32 %v3691_v14 }
 0x26b   :  { %v1004_v58 = vpop.f32.mrf.mxu2  ;;  %v1017_v23 = vpop.f32.mrf.mxu3 }
 0x26c   :  { %v1024_v55 = vadd.f32 %v1017_v23, %v5802_v62  ;;  %v980_v39 = vpop.f32.mrf.mxu0  ;;  %v993_v42 = vpop.f32.mrf.mxu1  ;;  %v1023_v63 = vadd.f32 %v1004_v58, %v5803_v57 }
 0x26e   :  { %v3692_v46 = vmul.f32 -1.442695, %v1024_v55 }
 0x26f   :  { %v4185_v12 = vpop.eup %4184 }
 0x270   :  { %v4187_v25 = vpop.eup %4186  ;;  %v1028_v27 = vadd.f32 1.0, %v4185_v12  ;;  %4188 = vpow2.f32 %v3692_v46 }
 0x271   :  { %v1047_v11 = vadd.f32 1.0, %v4187_v25 }
 0x272   :  { %4190 = vrcp.f32 %v1028_v27  ;;  %v1040_v40 = vand.u32 2147483648, %v1028_v27  ;;  %v1038_v14 = vand.u32 2147483647, %v1028_v27  ;;  %vm1034_vm10 = vweird.f32 %v1028_v27 }
 0x273   :  { %4192 = vrcp.f32 %v1047_v11  ;;  %v1006_v6 = vpop.f32.mrf.mxu2  ;;  %v1019_v45 = vpop.f32.mrf.mxu3  ;;  %v1059_v28 = vand.u32 2147483648, %v1047_v11  ;;  %v1057_v62 = vand.u32 2147483647, %v1047_v11  ;;  %vm1053_vm11 = vweird.f32 %v1047_v11 }
 0x274   :  { %v1041_v58 = vor.u32 1.1754944e-38, %v1040_v40  ;;  %vm1039_vm14 = vcmp.eq.f32.partialorder %v1038_v14, 8.507059e+37 }
 0x275   :  { %v1060_v12 = vor.u32 1.1754944e-38, %v1059_v28  ;;  %vm1058_vm15 = vcmp.eq.f32.partialorder %v1057_v62, 8.507059e+37 }
 0x276   :  { %v4189_v0 = vpop.eup %4188 }
 0x277   :  { %v1067_v36 = vadd.f32 1.0, %v4189_v0 }
 0x278   :  { %v4191_v5 = vpop.eup %4190 }
 0x279   :  { %v4193_v56 = vpop.eup %4192  ;;  %v1030_v24 = vmul.f32 %v4191_v5, %v1028_v27  ;;  %4194 = vrcp.f32 %v1067_v36  ;;  %vm1035_vm8 = vweird.f32 %v4191_v5  ;;  %vm1073_vm1 = vweird.f32 %v1067_v36 }
 0x27a   :  { %v1049_v18 = vmul.f32 %v4193_v56, %v1047_v11  ;;  %4196 = vtanh.f32 %v1023_v63  ;;  %vm1054_vm9 = vweird.f32 %v4193_v56  ;;  %vm1036_vm12 = vmor %vm1034_vm10, %vm1035_vm8 }
 0x27b   :  { %v1031_v19 = vsub.f32 1.0, %v1030_v24  ;;  %vm1055_vm13 = vmor %vm1053_vm11, %vm1054_vm9 }
 0x27c   :  { %v1050_v30 = vsub.f32 1.0, %v1049_v18 }
 0x27d   :  { %v1032_v17 = vmul.f32 %v4191_v5, %v1031_v19 }
 0x27e   :  { %v1051_v23 = vmul.f32 %v4193_v56, %v1050_v30  ;;  %v1079_v30 = vand.u32 2147483648, %v1067_v36 }
 0x27f   :  { %v4195_v55 = vpop.eup %4194  ;;  %v1033_v39 = vadd.f32 %v4191_v5, %v1032_v17 }
 0x280   :  { %v1052_v42 = vadd.f32 %v4193_v56, %v1051_v23  ;;  %v1069_v46 = vmul.f32 %v4195_v55, %v1067_v36  ;;  %v4197_v6 = vpop.eup %4196  ;;  %vm1074_vm0 = vweird.f32 %v4195_v55  ;;  %v1080_v28 = vor.u32 1.1754944e-38, %v1079_v30 }
 0x281   :  { %v1037_v25 = vsel %vm1036_vm12, %v4191_v5, %v1033_v39  ;;  %v1077_v5 = vand.u32 2147483647, %v1067_v36  ;;  %vm1075_vm2 = vmor %vm1073_vm1, %vm1074_vm0  ;;  %v5804_v36 = vld [vmem:[#allocation27_spill] sm:$0xff] }
 0x282   :  { %v1042_v45 = vsel %vm1039_vm14, %v1041_v58, %v1037_v25  ;;  %v1056_v0 = vsel %vm1055_vm13, %v4193_v56, %v1052_v42  ;;  %v1070_v57 = vsub.f32 1.0, %v1069_v46  ;;  %v403_v62 = vadd.f32 %v5804_v36, %v4841_v31 }
 0x283   :  { %v1061_v63 = vsel %vm1058_vm15, %v1060_v12, %v1056_v0  ;;  %v1085_v24 = vmul.f32 %v4197_v6, %v1042_v45  ;;  %vm1078_vm3 = vcmp.eq.f32.partialorder %v1077_v5, 8.507059e+37  ;;  %v5806_v45 = vld [vmem:[#allocation31_spill] sm:$0xff] }
 0x284   :  { %v1084_v18 = vmul.f32 %v1061_v63, %v4962_v29  ;;  %v1071_v19 = vmul.f32 %v4195_v55, %v1070_v57  ;;  %v490_v0 = vadd.f32 %v5806_v45, %v4857_v54 }
 0x286   :  { %v5002_v27 = vadd.f32 %v1085_v24, %v1084_v18  ;;  %v1072_v11 = vadd.f32 %v4195_v55, %v1071_v19 }
 0x288   :  { %4198 = vtanh.f32 %v5002_v27  ;;  %v1076_v40 = vsel %vm1075_vm2, %v4195_v55, %v1072_v11  ;;  %v5805_v55 = vld [vmem:[#allocation29_spill] sm:$0xff] }
 0x289   :  { %v1081_v17 = vsel %vm1078_vm3, %v1080_v28, %v1076_v40  ;;  %v432_v39 = vadd.f32 %v5805_v55, %v4845_v38 }
 0x28e   :  { %v4199_v56 = vpop.eup %4198 }
 0x28f   :  { %v1088_v14 = vmul.f32 %v4199_v56, %v1081_v17 }
 0x291   :  { %v1089_v23 = vpack.c.bf16 %v1088_v14, %v1088_v14 }
 0x293   :  { %1091 = vst [vmem:[#allocation4] sm:$0xf] %v1089_v23 }
 0x294   :  { %1093 = vst [vmem:[#allocation3 + $0x8] sm:$0xf] %v1089_v23  ;;  %v5807_v23 = vld [vmem:[#allocation30_spill] sm:$0xff] }
 0x29a   :  { %v1101_v29 = vld [vmem:[#allocation4] sm:$0xf] }
 0x29b   :  { %1110 = vmatmul.bf16.vlgmr.msra.gmra.mxu0 %v1101_v29  ;;  %1123 = vmatmul.bf16.vlgmr.msra.gmra.mxu1 %v1101_v29 }
 0x29c   :  { %1136 = vmatmul.bf16.vlgmr.msra.gmra.mxu2 %v1101_v29  ;;  %1149 = vmatmul.bf16.vlgmr.msra.gmra.mxu3 %v1101_v29  ;;  %v461_v29 = vadd.f32 %v5807_v23, %v4855_v50 }
 0x29d   :  { %1368 = vmatpush.bf16.msra.mxu0 %v4671_v37  ;;  %1381 = vmatpush.bf16.msra.mxu1 %v4673_v41 }
 0x29e   :  { %1394 = vmatpush.bf16.msra.mxu2 %v4675_v47  ;;  %1407 = vmatpush.bf16.msra.mxu3 %v4678_v48 }
 0x2a1   :  { %1369 = vmatpush.bf16.msra.mxu0 %v4680_v49  ;;  %1382 = vmatpush.bf16.msra.mxu1 %v4683_v53 }
 0x2a2   :  { %1395 = vmatpush.bf16.msra.mxu2 %v4686_v59  ;;  %1408 = vmatpush.bf16.msra.mxu3 %v4690_v60 }
 0x2a5   :  { %1370 = vmatpush.bf16.msra.mxu0 %v4692_v61  ;;  %1383 = vmatpush.bf16.msra.mxu1 %v4695_v1 }
 0x2a6   :  { %1396 = vmatpush.bf16.msra.mxu2 %v4698_v7  ;;  %1409 = vmatpush.bf16.msra.mxu3 %v4702_v8 }
 0x2a9   :  { %1371 = vmatpush.bf16.msra.mxu0 %v4704_v9  ;;  %1384 = vmatpush.bf16.msra.mxu1 %v4707_v13 }
 0x2aa   :  { %1397 = vmatpush.bf16.msra.mxu2 %v4710_v20  ;;  %1410 = vmatpush.bf16.msra.mxu3 %v4714_v21 }
 0x2ad   :  { %1372 = vmatpush.bf16.msra.mxu0 %v4716_v22  ;;  %1385 = vmatpush.bf16.msra.mxu1 %v4719_v26 }
 0x2ae   :  { %1398 = vmatpush.bf16.msra.mxu2 %v4722_v32  ;;  %1411 = vmatpush.bf16.msra.mxu3 %v4726_v33 }
 0x2b1   :  { %1373 = vmatpush.bf16.msra.mxu0 %v4728_v34  ;;  %1386 = vmatpush.bf16.msra.mxu1 %v4731_v35 }
 0x2b2   :  { %1399 = vmatpush.bf16.msra.mxu2 %v4743_v52  ;;  %1412 = vmatpush.bf16.msra.mxu3 %v4736_v43 }
 0x2b5   :  { %1374 = vmatpush.bf16.msra.mxu0 %v4738_v44  ;;  %1387 = vmatpush.bf16.msra.mxu1 %v4741_v51 }
 0x2b6   :  { %1400 = vmatpush.bf16.msra.mxu2 %v4752_v4  ;;  %1413 = vmatpush.bf16.msra.mxu3 %v4748_v2 }
 0x2b9   :  { %1375 = vmatpush.bf16.msra.mxu0 %v4750_v3  ;;  %1388 = vmatpush.bf16.msra.mxu1 %v4755_v10 }
 0x2ba   :  { %1401 = vmatpush.bf16.msra.mxu2 %v4759_v15  ;;  %1414 = vmatpush.bf16.msra.mxu3 %v4763_v16 }
 0x318   :  { %v1111_v58 = vpop.f32.mrf.mxu0  ;;  %v1124_v42 = vpop.f32.mrf.mxu1 }
 0x319   :  { %v1154_v46 = vadd.f32 %v1111_v58, %v403_v62  ;;  %v1155_v12 = vadd.f32 %v1124_v42, %v432_v39 }
 0x31b   :  { %v3693_v25 = vmul.f32 -1.442695, %v1154_v46  ;;  %v3694_v6 = vmul.f32 -1.442695, %v1155_v12 }
 0x31d   :  { %4200 = vpow2.f32 %v3693_v25 }
 0x31e   :  { %4202 = vpow2.f32 %v3694_v6 }
 0x31f   :  { %v1137_v57 = vpop.f32.mrf.mxu2  ;;  %v1150_v63 = vpop.f32.mrf.mxu3 }
 0x320   :  { %v1157_v24 = vadd.f32 %v1150_v63, %v490_v0  ;;  %v1113_v18 = vpop.f32.mrf.mxu0  ;;  %v1126_v19 = vpop.f32.mrf.mxu1  ;;  %v1156_v55 = vadd.f32 %v1137_v57, %v461_v29 }
 0x322   :  { %v3695_v11 = vmul.f32 -1.442695, %v1157_v24 }
 0x323   :  { %v4201_v30 = vpop.eup %4200 }
 0x324   :  { %v4203_v5 = vpop.eup %4202  ;;  %v1161_v40 = vadd.f32 1.0, %v4201_v30  ;;  %4204 = vpow2.f32 %v3695_v11 }
 0x325   :  { %v1180_v28 = vadd.f32 1.0, %v4203_v5 }
 0x326   :  { %4206 = vrcp.f32 %v1161_v40  ;;  %v1173_v25 = vand.u32 2147483648, %v1161_v40  ;;  %v1171_v0 = vand.u32 2147483647, %v1161_v40  ;;  %vm1167_vm6 = vweird.f32 %v1161_v40 }
 0x327   :  { %4208 = vrcp.f32 %v1180_v28  ;;  %v1139_v56 = vpop.f32.mrf.mxu2  ;;  %v1152_v17 = vpop.f32.mrf.mxu3  ;;  %v1192_v6 = vand.u32 2147483648, %v1180_v28  ;;  %v1190_v24 = vand.u32 2147483647, %v1180_v28  ;;  %vm1186_vm7 = vweird.f32 %v1180_v28 }
 0x328   :  { %v1174_v57 = vor.u32 1.1754944e-38, %v1173_v25  ;;  %vm1172_vm10 = vcmp.eq.f32.partialorder %v1171_v0, 8.507059e+37 }
 0x329   :  { %v1193_v5 = vor.u32 1.1754944e-38, %v1192_v6  ;;  %vm1191_vm11 = vcmp.eq.f32.partialorder %v1190_v24, 8.507059e+37 }
 0x32a   :  { %v4205_v14 = vpop.eup %4204 }
 0x32b   :  { %v1200_v36 = vadd.f32 1.0, %v4205_v14 }
 0x32c   :  { %v4207_v62 = vpop.eup %4206 }
 0x32d   :  { %v4209_v39 = vpop.eup %4208  ;;  %v1163_v58 = vmul.f32 %v4207_v62, %v1161_v40  ;;  %4210 = vrcp.f32 %v1200_v36  ;;  %vm1168_vm4 = vweird.f32 %v4207_v62  ;;  %vm1206_vm13 = vweird.f32 %v1200_v36 }
 0x32e   :  { %v1182_v42 = vmul.f32 %v4209_v39, %v1180_v28  ;;  %4212 = vtanh.f32 %v1156_v55  ;;  %vm1187_vm5 = vweird.f32 %v4209_v39  ;;  %vm1169_vm8 = vmor %vm1167_vm6, %vm1168_vm4 }
 0x32f   :  { %v1164_v46 = vsub.f32 1.0, %v1163_v58  ;;  %vm1188_vm9 = vmor %vm1186_vm7, %vm1187_vm5 }
 0x330   :  { %v1183_v12 = vsub.f32 1.0, %v1182_v42 }
 0x331   :  { %v1165_v45 = vmul.f32 %v4207_v62, %v1164_v46 }
 0x332   :  { %v1184_v63 = vmul.f32 %v4209_v39, %v1183_v12  ;;  %v1212_v12 = vand.u32 2147483648, %v1200_v36 }
 0x333   :  { %v4211_v18 = vpop.eup %4210  ;;  %v1166_v19 = vadd.f32 %v4207_v62, %v1165_v45 }
 0x334   :  { %v1185_v11 = vadd.f32 %v4209_v39, %v1184_v63  ;;  %v1202_v30 = vmul.f32 %v4211_v18, %v1200_v36  ;;  %v4213_v17 = vpop.eup %4212  ;;  %vm1207_vm12 = vweird.f32 %v4211_v18  ;;  %v1213_v6 = vor.u32 1.1754944e-38, %v1212_v12 }
 0x335   :  { %v1170_v56 = vsel %vm1169_vm8, %v4207_v62, %v1166_v19  ;;  %v1210_v62 = vand.u32 2147483647, %v1200_v36  ;;  %vm1208_vm14 = vmor %vm1206_vm13, %vm1207_vm12 }
 0x336   :  { %v1175_v14 = vsel %vm1172_vm10, %v1174_v57, %v1170_v56  ;;  %v1189_v23 = vsel %vm1188_vm9, %v4209_v39, %v1185_v11  ;;  %v1203_v29 = vsub.f32 1.0, %v1202_v30  ;;  %v5809_v57 = vld [vmem:[#allocation33_spill] sm:$0xff] }
 0x337   :  { %v1194_v55 = vsel %vm1191_vm11, %v1193_v5, %v1189_v23  ;;  %v1218_v58 = vmul.f32 %v4213_v17, %v1175_v14  ;;  %vm1211_vm15 = vcmp.eq.f32.partialorder %v1210_v62, 8.507059e+37  ;;  %v5810_v14 = vld [vmem:[#allocation36_spill] sm:$0xff] }
 0x338   :  { %v1217_v42 = vmul.f32 %v1194_v55, %v5002_v27  ;;  %v1204_v46 = vmul.f32 %v4211_v18, %v1203_v29 }
 0x33a   :  { %v5046_v40 = vadd.f32 %v1218_v58, %v1217_v42  ;;  %v1205_v28 = vadd.f32 %v4211_v18, %v1204_v46 }
 0x33c   :  { %4214 = vtanh.f32 %v5046_v40  ;;  %v1209_v25 = vsel %vm1208_vm14, %v4211_v18, %v1205_v28  ;;  %v5808_v18 = vld [vmem:[#allocation32_spill] sm:$0xff] }
 0x33d   :  { %v1214_v45 = vsel %vm1211_vm15, %v1213_v6, %v1209_v25 }
 0x342   :  { %v4215_v39 = vpop.eup %4214 }
 0x343   :  { %v1221_v0 = vmul.f32 %v4215_v39, %v1214_v45 }
 0x345   :  { %v1222_v63 = vpack.c.bf16 %v1221_v0, %v1221_v0  ;;  %v5811_v0 = vld [vmem:[#allocation34_spill] sm:$0xff] }
 0x347   :  { %1224 = vst [vmem:[#allocation4] sm:$0xf] %v1222_v63 }
 0x348   :  { %1226 = vst [vmem:[#allocation3 + $0xc] sm:$0xf] %v1222_v63 }
 0x34e   :  { %v1234_v27 = vld [vmem:[#allocation4] sm:$0xf] }
 0x34f   :  { %1243 = vmatmul.bf16.vlgmr.msrb.gmra.mxu0 %v1234_v27  ;;  %1256 = vmatmul.bf16.vlgmr.msrb.gmra.mxu1 %v1234_v27 }
 0x350   :  { %1269 = vmatmul.bf16.vlgmr.msrb.gmra.mxu2 %v1234_v27  ;;  %1282 = vmatmul.bf16.vlgmr.msrb.gmra.mxu3 %v1234_v27 }
 0x351   :  { %1501 = vmatpush.bf16.msrb.mxu0 %v4671_v37  ;;  %1514 = vmatpush.bf16.msrb.mxu1 %v4673_v41 }
 0x352   :  { %1527 = vmatpush.bf16.msrb.mxu2 %v4675_v47  ;;  %1540 = vmatpush.bf16.msrb.mxu3 %v4678_v48 }
 0x355   :  { %1502 = vmatpush.bf16.msrb.mxu0 %v4680_v49  ;;  %1515 = vmatpush.bf16.msrb.mxu1 %v4683_v53 }
 0x356   :  { %1528 = vmatpush.bf16.msrb.mxu2 %v4686_v59  ;;  %1541 = vmatpush.bf16.msrb.mxu3 %v4690_v60 }
 0x359   :  { %1503 = vmatpush.bf16.msrb.mxu0 %v4692_v61  ;;  %1516 = vmatpush.bf16.msrb.mxu1 %v4695_v1 }
 0x35a   :  { %1529 = vmatpush.bf16.msrb.mxu2 %v4698_v7  ;;  %1542 = vmatpush.bf16.msrb.mxu3 %v4702_v8 }
 0x35d   :  { %1504 = vmatpush.bf16.msrb.mxu0 %v4704_v9  ;;  %1517 = vmatpush.bf16.msrb.mxu1 %v4707_v13 }
 0x35e   :  { %1530 = vmatpush.bf16.msrb.mxu2 %v4710_v20  ;;  %1543 = vmatpush.bf16.msrb.mxu3 %v4714_v21 }
 0x361   :  { %1505 = vmatpush.bf16.msrb.mxu0 %v4716_v22  ;;  %1518 = vmatpush.bf16.msrb.mxu1 %v4719_v26 }
 0x362   :  { %1531 = vmatpush.bf16.msrb.mxu2 %v4722_v32  ;;  %1544 = vmatpush.bf16.msrb.mxu3 %v4726_v33 }
 0x365   :  { %1506 = vmatpush.bf16.msrb.mxu0 %v4728_v34  ;;  %1519 = vmatpush.bf16.msrb.mxu1 %v4731_v35 }
 0x366   :  { %1532 = vmatpush.bf16.msrb.mxu2 %v4743_v52  ;;  %1545 = vmatpush.bf16.msrb.mxu3 %v4736_v43 }
 0x369   :  { %1507 = vmatpush.bf16.msrb.mxu0 %v4738_v44  ;;  %1520 = vmatpush.bf16.msrb.mxu1 %v4741_v51 }
 0x36a   :  { %1533 = vmatpush.bf16.msrb.mxu2 %v4752_v4  ;;  %1546 = vmatpush.bf16.msrb.mxu3 %v4748_v2 }
 0x36d   :  { %1508 = vmatpush.bf16.msrb.mxu0 %v4750_v3  ;;  %1521 = vmatpush.bf16.msrb.mxu1 %v4755_v10 }
 0x36e   :  { %1534 = vmatpush.bf16.msrb.mxu2 %v4759_v15  ;;  %1547 = vmatpush.bf16.msrb.mxu3 %v4763_v16 }
 0x3cc   :  { %v1244_v36 = vpop.f32.mrf.mxu0  ;;  %v1257_v24 = vpop.f32.mrf.mxu1 }
 0x3cd   :  { %v1287_v19 = vadd.f32 %v1244_v36, %v5808_v18  ;;  %v1288_v11 = vadd.f32 %v1257_v24, %v5809_v57 }
 0x3cf   :  { %v3696_v30 = vmul.f32 -1.442695, %v1287_v19  ;;  %v3697_v5 = vmul.f32 -1.442695, %v1288_v11 }
 0x3d1   :  { %4216 = vpow2.f32 %v3696_v30 }
 0x3d2   :  { %4218 = vpow2.f32 %v3697_v5 }
 0x3d3   :  { %v1270_v56 = vpop.f32.mrf.mxu2  ;;  %v1283_v17 = vpop.f32.mrf.mxu3 }
 0x3d4   :  { %v1290_v23 = vadd.f32 %v1283_v17, %v5810_v14  ;;  %v1246_v29 = vpop.f32.mrf.mxu0  ;;  %v1259_v55 = vpop.f32.mrf.mxu1  ;;  %v1289_v63 = vadd.f32 %v1270_v56, %v5811_v0 }
 0x3d6   :  { %v3698_v58 = vmul.f32 -1.442695, %v1290_v23 }
 0x3d7   :  { %v4217_v42 = vpop.eup %4216 }
 0x3d8   :  { %v4219_v46 = vpop.eup %4218  ;;  %v1294_v28 = vadd.f32 1.0, %v4217_v42  ;;  %4220 = vpow2.f32 %v3698_v58 }
 0x3d9   :  { %v1313_v12 = vadd.f32 1.0, %v4219_v46 }
 0x3da   :  { %4222 = vrcp.f32 %v1294_v28  ;;  %v1306_v57 = vand.u32 2147483648, %v1294_v28  ;;  %v1304_v5 = vand.u32 2147483647, %v1294_v28  ;;  %vm1300_vm2 = vweird.f32 %v1294_v28 }
 0x3db   :  { %4224 = vrcp.f32 %v1313_v12  ;;  %v1272_v62 = vpop.f32.mrf.mxu2  ;;  %v1285_v25 = vpop.f32.mrf.mxu3  ;;  %v1325_v11 = vand.u32 2147483648, %v1313_v12  ;;  %v1323_v14 = vand.u32 2147483647, %v1313_v12  ;;  %vm1319_vm3 = vweird.f32 %v1313_v12 }
 0x3dc   :  { %v1307_v56 = vor.u32 1.1754944e-38, %v1306_v57  ;;  %vm1305_vm6 = vcmp.eq.f32.partialorder %v1304_v5, 8.507059e+37 }
 0x3dd   :  { %v1326_v42 = vor.u32 1.1754944e-38, %v1325_v11  ;;  %vm1324_vm7 = vcmp.eq.f32.partialorder %v1323_v14, 8.507059e+37 }
 0x3de   :  { %v4221_v6 = vpop.eup %4220 }
 0x3df   :  { %v1333_v39 = vadd.f32 1.0, %v4221_v6 }
 0x3e0   :  { %v4223_v45 = vpop.eup %4222 }
 0x3e1   :  { %v4225_v27 = vpop.eup %4224  ;;  %v1296_v36 = vmul.f32 %v4223_v45, %v1294_v28  ;;  %4226 = vrcp.f32 %v1333_v39  ;;  %vm1301_vm0 = vweird.f32 %v4223_v45  ;;  %vm1339_vm9 = vweird.f32 %v1333_v39 }
 0x3e2   :  { %v1315_v24 = vmul.f32 %v4225_v27, %v1313_v12  ;;  %4228 = vtanh.f32 %v1289_v63  ;;  %vm1320_vm1 = vweird.f32 %v4225_v27  ;;  %vm1302_vm4 = vmor %vm1300_vm2, %vm1301_vm0 }
 0x3e3   :  { %v1297_v18 = vsub.f32 1.0, %v1296_v36  ;;  %vm1321_vm5 = vmor %vm1319_vm3, %vm1320_vm1 }
 0x3e4   :  { %v1316_v19 = vsub.f32 1.0, %v1315_v24 }
 0x3e5   :  { %v1298_v30 = vmul.f32 %v4223_v45, %v1297_v18 }
 0x3e6   :  { %v1317_v17 = vmul.f32 %v4225_v27, %v1316_v19  ;;  %v1345_v19 = vand.u32 2147483648, %v1333_v39 }
 0x3e7   :  { %v4227_v23 = vpop.eup %4226  ;;  %v1299_v29 = vadd.f32 %v4223_v45, %v1298_v30 }
 0x3e8   :  { %v1318_v55 = vadd.f32 %v4225_v27, %v1317_v17  ;;  %v1335_v58 = vmul.f32 %v4227_v23, %v1333_v39  ;;  %v4229_v62 = vpop.eup %4228  ;;  %vm1340_vm8 = vweird.f32 %v4227_v23  ;;  %v1346_v11 = vor.u32 1.1754944e-38, %v1345_v19 }
 0x3e9   :  { %v1303_v46 = vsel %vm1302_vm4, %v4223_v45, %v1299_v29  ;;  %v1343_v45 = vand.u32 2147483647, %v1333_v39  ;;  %vm1341_vm10 = vmor %vm1339_vm9, %vm1340_vm8 }
 0x3ea   :  { %v1308_v25 = vsel %vm1305_vm6, %v1307_v56, %v1303_v46  ;;  %v1322_v6 = vsel %vm1321_vm5, %v4225_v27, %v1318_v55  ;;  %v1336_v0 = vsub.f32 1.0, %v1335_v58 }
 0x3eb   :  { %v1327_v63 = vsel %vm1324_vm7, %v1326_v42, %v1322_v6  ;;  %v1351_v36 = vmul.f32 %v4229_v62, %v1308_v25  ;;  %vm1344_vm11 = vcmp.eq.f32.partialorder %v1343_v45, 8.507059e+37 }
 0x3ec   :  { %v1350_v24 = vmul.f32 %v1327_v63, %v5046_v40  ;;  %v1337_v18 = vmul.f32 %v4227_v23, %v1336_v0 }
 0x3ee   :  { %v5086_v28 = vadd.f32 %v1351_v36, %v1350_v24  ;;  %v1338_v12 = vadd.f32 %v4227_v23, %v1337_v18 }
 0x3f0   :  { %4230 = vtanh.f32 %v5086_v28  ;;  %v1342_v57 = vsel %vm1341_vm10, %v4227_v23, %v1338_v12 }
 0x3f1   :  { %v1347_v30 = vsel %vm1344_vm11, %v1346_v11, %v1342_v57 }
 0x3f6   :  { %v4231_v27 = vpop.eup %4230 }
 0x3f7   :  { %v1354_v5 = vmul.f32 %v4231_v27, %v1347_v30 }
 0x3f9   :  { %v1355_v17 = vpack.c.bf16 %v1354_v5, %v1354_v5 }
 0x3fb   :  { %1357 = vst [vmem:[#allocation4] sm:$0xf] %v1355_v17 }
 0x3fc   :  { %1359 = vst [vmem:[#allocation3 + $0x10] sm:$0xf] %v1355_v17 }
 0x402   :  { %v1367_v40 = vld [vmem:[#allocation4] sm:$0xf] }
 0x403   :  { %1376 = vmatmul.bf16.vlgmr.msra.gmra.mxu0 %v1367_v40  ;;  %1389 = vmatmul.bf16.vlgmr.msra.gmra.mxu1 %v1367_v40 }
 0x404   :  { %1402 = vmatmul.bf16.vlgmr.msra.gmra.mxu2 %v1367_v40  ;;  %1415 = vmatmul.bf16.vlgmr.msra.gmra.mxu3 %v1367_v40 }
 0x405   :  { %1634 = vmatpush.bf16.msra.mxu0 %v4671_v37  ;;  %1647 = vmatpush.bf16.msra.mxu1 %v4673_v41  ;;  %v5812_v37 = vld [vmem:[#allocation35_spill] sm:$0xff] }
 0x406   :  { %1660 = vmatpush.bf16.msra.mxu2 %v4675_v47  ;;  %1673 = vmatpush.bf16.msra.mxu3 %v4678_v48  ;;  %v408_v41 = vadd.f32 %v5812_v37, %v4841_v31  ;;  %v5813_v47 = vld [vmem:[#allocation37_spill] sm:$0xff] }
 0x407   :  { %v437_v48 = vadd.f32 %v5813_v47, %v4845_v38 }
 0x409   :  { %1635 = vmatpush.bf16.msra.mxu0 %v4680_v49  ;;  %1648 = vmatpush.bf16.msra.mxu1 %v4683_v53 }
 0x40a   :  { %1661 = vmatpush.bf16.msra.mxu2 %v4686_v59  ;;  %1674 = vmatpush.bf16.msra.mxu3 %v4690_v60 }
 0x40d   :  { %1636 = vmatpush.bf16.msra.mxu0 %v4692_v61  ;;  %1649 = vmatpush.bf16.msra.mxu1 %v4695_v1 }
 0x40e   :  { %1662 = vmatpush.bf16.msra.mxu2 %v4698_v7  ;;  %1675 = vmatpush.bf16.msra.mxu3 %v4702_v8  ;;  %v5814_v7 = vld [vmem:[#allocation39_spill] sm:$0xff] }
 0x40f   :  { %v495_v8 = vadd.f32 %v5814_v7, %v4857_v54 }
 0x411   :  { %1637 = vmatpush.bf16.msra.mxu0 %v4704_v9  ;;  %1650 = vmatpush.bf16.msra.mxu1 %v4707_v13 }
 0x412   :  { %1663 = vmatpush.bf16.msra.mxu2 %v4710_v20  ;;  %1676 = vmatpush.bf16.msra.mxu3 %v4714_v21 }
 0x415   :  { %1638 = vmatpush.bf16.msra.mxu0 %v4716_v22  ;;  %1651 = vmatpush.bf16.msra.mxu1 %v4719_v26 }
 0x416   :  { %1664 = vmatpush.bf16.msra.mxu2 %v4722_v32  ;;  %1677 = vmatpush.bf16.msra.mxu3 %v4726_v33 }
 0x419   :  { %1639 = vmatpush.bf16.msra.mxu0 %v4728_v34  ;;  %1652 = vmatpush.bf16.msra.mxu1 %v4731_v35 }
 0x41a   :  { %1665 = vmatpush.bf16.msra.mxu2 %v4743_v52  ;;  %1678 = vmatpush.bf16.msra.mxu3 %v4736_v43  ;;  %v5815_v52 = vld [vmem:[#allocation38_spill] sm:$0xff] }
 0x41d   :  { %1640 = vmatpush.bf16.msra.mxu0 %v4738_v44  ;;  %1653 = vmatpush.bf16.msra.mxu1 %v4741_v51 }
 0x41e   :  { %1666 = vmatpush.bf16.msra.mxu2 %v4752_v4  ;;  %1679 = vmatpush.bf16.msra.mxu3 %v4748_v2  ;;  %v466_v2 = vadd.f32 %v5815_v52, %v4855_v50 }
 0x421   :  { %1641 = vmatpush.bf16.msra.mxu0 %v4750_v3  ;;  %1654 = vmatpush.bf16.msra.mxu1 %v4755_v10 }
 0x422   :  { %1667 = vmatpush.bf16.msra.mxu2 %v4759_v15  ;;  %1680 = vmatpush.bf16.msra.mxu3 %v4763_v16 }
 0x480   :  { %v1377_v49 = vpop.f32.mrf.mxu0  ;;  %v1390_v53 = vpop.f32.mrf.mxu1 }
 0x481   :  { %v1420_v59 = vadd.f32 %v1377_v49, %v408_v41  ;;  %v1421_v60 = vadd.f32 %v1390_v53, %v437_v48 }
 0x483   :  { %v3699_v61 = vmul.f32 -1.442695, %v1420_v59  ;;  %v3700_v1 = vmul.f32 -1.442695, %v1421_v60 }
 0x485   :  { %4232 = vpow2.f32 %v3699_v61 }
 0x486   :  { %4234 = vpow2.f32 %v3700_v1  ;;  %v5816_v1 = vld [vmem:[#allocation40_spill] sm:$0xff] }
 0x487   :  { %v1403_v9 = vpop.f32.mrf.mxu2  ;;  %v1416_v13 = vpop.f32.mrf.mxu3 }
 0x488   :  { %v1423_v20 = vadd.f32 %v1416_v13, %v495_v8  ;;  %v1379_v21 = vpop.f32.mrf.mxu0  ;;  %v1392_v22 = vpop.f32.mrf.mxu1  ;;  %v1422_v10 = vadd.f32 %v1403_v9, %v466_v2  ;;  %v5817_v8 = vld [vmem:[#allocation41_spill] sm:$0xff] }
 0x489   :  { %v3838_v21 = vld [vmem:[#allocation11 + $0xe0] sm:$0xf]  ;;  %v4102_v22 = vld [vmem:[#allocation11 + $0xec] sm:$0xf0] }
 0x48a   :  { %v3701_v26 = vmul.f32 -1.442695, %v1423_v20 }
 0x48b   :  { %v4233_v32 = vpop.eup %4232 }
 0x48c   :  { %v4235_v33 = vpop.eup %4234  ;;  %v1427_v34 = vadd.f32 1.0, %v4233_v32  ;;  %4236 = vpow2.f32 %v3701_v26  ;;  %v4100_v26 = vld [vmem:[#allocation11 + $0xe4] sm:$0xf] }
 0x48d   :  { %v1446_v35 = vadd.f32 1.0, %v4235_v33 }
 0x48e   :  { %4238 = vrcp.f32 %v1427_v34  ;;  %v1439_v29 = vand.u32 2147483648, %v1427_v34  ;;  %v1437_v58 = vand.u32 2147483647, %v1427_v34  ;;  %vm1433_vm14 = vweird.f32 %v1427_v34 }
 0x48f   :  { %4240 = vrcp.f32 %v1446_v35  ;;  %v1405_v43 = vpop.f32.mrf.mxu2  ;;  %v1418_v44 = vpop.f32.mrf.mxu3  ;;  %v1458_v56 = vand.u32 2147483648, %v1446_v35  ;;  %v1456_v46 = vand.u32 2147483647, %v1446_v35  ;;  %vm1452_vm15 = vweird.f32 %v1446_v35 }
 0x490   :  { %v1440_v6 = vor.u32 1.1754944e-38, %v1439_v29  ;;  %vm1438_vm2 = vcmp.eq.f32.partialorder %v1437_v58, 8.507059e+37  ;;  %v3846_v43 = vld [vmem:[#allocation11 + $0xe8] sm:$0xf]  ;;  %v4103_v44 = vld [vmem:[#allocation11 + $0xf4] sm:$0xf0] }
 0x491   :  { %v1459_v36 = vor.u32 1.1754944e-38, %v1458_v56  ;;  %vm1457_vm3 = vcmp.eq.f32.partialorder %v1456_v46, 8.507059e+37  ;;  %v4098_v29 = vld [vmem:[#allocation11 + $0xcc] sm:$0xf0]  ;;  %v4096_v58 = vld [vmem:[#allocation11 + $0xc4] sm:$0xf] }
 0x492   :  { %v4237_v51 = vpop.eup %4236  ;;  %v3830_v46 = vld [vmem:[#allocation11 + $0xc8] sm:$0xf] }
 0x493   :  { %v1466_v3 = vadd.f32 1.0, %v4237_v51  ;;  %v5818_v51 = vld [vmem:[#allocation44_spill] sm:$0xff] }
 0x494   :  { %v4239_v4 = vpop.eup %4238 }
 0x495   :  { %v4241_v15 = vpop.eup %4240  ;;  %v1429_v16 = vmul.f32 %v4239_v4, %v1427_v34  ;;  %4242 = vrcp.f32 %v1466_v3  ;;  %vm1434_vm12 = vweird.f32 %v4239_v4  ;;  %v1478_v40 = vand.u32 2147483648, %v1466_v3 }
 0x496   :  { %v1448_v39 = vmul.f32 %v4241_v15, %v1446_v35  ;;  %4244 = vtanh.f32 %v1422_v10  ;;  %vm1453_vm13 = vweird.f32 %v4241_v15  ;;  %vm1435_vm0 = vmor %vm1433_vm14, %vm1434_vm12  ;;  %vm1472_vm5 = vweird.f32 %v1466_v3  ;;  %v3840_v35 = vld [vmem:[#allocation11 + $0xf0] sm:$0xf0] }
 0x497   :  { %v1430_v14 = vsub.f32 1.0, %v1429_v16  ;;  %vm1454_vm1 = vmor %vm1452_vm15, %vm1453_vm13  ;;  %v1476_v37 = vand.u32 2147483647, %v1466_v3  ;;  %v1479_v47 = vor.u32 1.1754944e-38, %v1478_v40  ;;  %v3839_v34 = vor.u32 %v4102_v22, %v3838_v21  ;;  %v3848_v16 = vld [vmem:[#allocation11 + $0xf8] sm:$0xf0] }
 0x498   :  { %v1449_v23 = vsub.f32 1.0, %v1448_v39  ;;  %v3847_v10 = vor.u32 %v4103_v44, %v3846_v43  ;;  %v4089_v43 = vld [vmem:[#allocation11 + $0x8c] sm:$0xf]  ;;  %v3800_v44 = vld [vmem:[#allocation11 + $0x98] sm:$0xf0] }
 0x499   :  { %v1431_v55 = vmul.f32 %v4239_v4, %v1430_v14  ;;  %vm1477_vm7 = vcmp.eq.f32.partialorder %v1476_v37, 8.507059e+37  ;;  %v4092_v37 = vld [vmem:[#allocation11 + $0xa4] sm:$0xf] }
 0x49a   :  { %v1450_v42 = vmul.f32 %v4241_v15, %v1449_v23  ;;  %v3822_v23 = vld [vmem:[#allocation11 + $0xc0] sm:$0xf] }
 0x49b   :  { %v4243_v62 = vpop.eup %4242  ;;  %v1432_v25 = vadd.f32 %v4239_v4, %v1431_v55  ;;  %v3823_v55 = vor.u32 %v4098_v29, %v3822_v23 }
 0x49c   :  { %v1451_v0 = vadd.f32 %v4241_v15, %v1450_v42  ;;  %v1468_v63 = vmul.f32 %v4243_v62, %v1466_v3  ;;  %v4245_v18 = vpop.eup %4244  ;;  %vm1473_vm4 = vweird.f32 %v4243_v62  ;;  %v3824_v42 = vld [vmem:[#allocation11 + $0xd0] sm:$0xf0] }
 0x49d   :  { %v1436_v24 = vsel %vm1435_vm0, %v4239_v4, %v1432_v25  ;;  %vm1474_vm6 = vmor %vm1472_vm5, %vm1473_vm4  ;;  %v3843_v4 = vor.u32 %v4100_v26, %v3840_v35  ;;  %v3792_v26 = vld [vmem:[#allocation11 + $0x90] sm:$0xf0] }
 0x49e   :  { %v1441_v12 = vsel %vm1438_vm2, %v1440_v6, %v1436_v24  ;;  %v1455_v19 = vsel %vm1454_vm1, %v4241_v15, %v1451_v0  ;;  %v1469_v45 = vsub.f32 1.0, %v1468_v63  ;;  %v4101_v15 = vld [vmem:[#allocation11 + $0xec] sm:$0xf]  ;;  %v3827_v6 = vor.u32 %v4096_v58, %v3824_v42  ;;  %v4099_v0 = vld [vmem:[#allocation11 + $0xd4] sm:$0xf0] }
 0x49f   :  { %v1460_v57 = vsel %vm1457_vm3, %v1459_v36, %v1455_v19  ;;  %v1484_v11 = vmul.f32 %v4245_v18, %v1441_v12  ;;  %v3851_v39 = vor.u32 %v4101_v15, %v3848_v16  ;;  %v3831_v36 = vor.u32 %v4099_v0, %v3830_v46  ;;  %v4097_v24 = vld [vmem:[#allocation11 + $0xcc] sm:$0xf]  ;;  %v3832_v18 = vld [vmem:[#allocation11 + $0xd8] sm:$0xf0]  ;;  %v3806_v12 = vld [vmem:[#allocation11 + $0xa0] sm:$0xf] }
 0x4a0   :  { %v1483_v27 = vmul.f32 %v1460_v57, %v5086_v28  ;;  %v1470_v30 = vmul.f32 %v4243_v62, %v1469_v45  ;;  %v4094_v57 = vld [vmem:[#allocation11 + $0xac] sm:$0xf0]  ;;  %v3803_v16 = vor.u32 %v4089_v43, %v3800_v44  ;;  %v3776_v42 = vld [vmem:[#allocation11 + $0x70] sm:$0xf0]  ;;  %v4085_v0 = vld [vmem:[#allocation11 + $0x6c] sm:$0xf] }
 0x4a1   :  { %v3807_v40 = vor.u32 %v4094_v57, %v3806_v12  ;;  %v3784_v12 = vld [vmem:[#allocation11 + $0x78] sm:$0xf0]  ;;  %v4079_v43 = vld [vmem:[#allocation11 + $0x34] sm:$0xf0]  ;;  %v4077_v44 = vld [vmem:[#allocation11 + $0x2c] sm:$0xf] }
 0x4a2   :  { %v5130_v5 = vadd.f32 %v1484_v11, %v1483_v27  ;;  %v1471_v17 = vadd.f32 %v4243_v62, %v1470_v30  ;;  %v5819_v11 = vld [vmem:[#allocation42_spill] sm:$0xff] }
 0x4a4   :  { %4246 = vtanh.f32 %v5130_v5  ;;  %v1475_v41 = vsel %vm1474_vm6, %v4243_v62, %v1471_v17  ;;  %v3835_v17 = vor.u32 %v4097_v24, %v3832_v18 }
 0x4a5   :  { %v1480_v49 = vsel %vm1477_vm7, %v1479_v47, %v1475_v41  ;;  %v3808_v41 = vld [vmem:[#allocation11 + $0xb0] sm:$0xf0] }
 0x4aa   :  { %v4247_v48 = vpop.eup %4246 }
 0x4ab   :  { %v1487_v53 = vmul.f32 %v4247_v48, %v1480_v49  ;;  %v3811_v48 = vor.u32 %v4092_v37, %v3808_v41  ;;  %v3814_v49 = vld [vmem:[#allocation11 + $0xa8] sm:$0xf] }
 0x4ac   :  { %v3766_v37 = vld [vmem:[#allocation11 + $0x48] sm:$0xf] }
 0x4ad   :  { %v1488_v59 = vpack.c.bf16 %v1487_v53, %v1487_v53  ;;  %v4095_v53 = vld [vmem:[#allocation11 + $0xb4] sm:$0xf0] }
 0x4af   :  { %1490 = vst [vmem:[#allocation4] sm:$0xf] %v1488_v59 }
 0x4b0   :  { %1492 = vst [vmem:[#allocation3 + $0x14] sm:$0xf] %v1488_v59 }
 0x4b6   :  { %v1500_v28 = vld [vmem:[#allocation4] sm:$0xf] }
 0x4b7   :  { %1509 = vmatmul.bf16.vlgmr.msrb.gmra.mxu0 %v1500_v28  ;;  %1522 = vmatmul.bf16.vlgmr.msrb.gmra.mxu1 %v1500_v28 }
 0x4b8   :  { %1535 = vmatmul.bf16.vlgmr.msrb.gmra.mxu2 %v1500_v28  ;;  %1548 = vmatmul.bf16.vlgmr.msrb.gmra.mxu3 %v1500_v28  ;;  %v3815_v28 = vor.u32 %v4095_v53, %v3814_v49  ;;  %v4083_v49 = vld [vmem:[#allocation11 + $0x54] sm:$0xf0]  ;;  %v4081_v53 = vld [vmem:[#allocation11 + $0x4c] sm:$0xf] }
 0x4b9   :  { %2025 = vmatpush.bf16.msrb.mxu0 %v3839_v34  ;;  %2054 = vmatpush.bf16.msrb.mxu1 %v3843_v4 }
 0x4ba   :  { %2083 = vmatpush.bf16.msrb.mxu2 %v3847_v10  ;;  %2112 = vmatpush.bf16.msrb.mxu3 %v3851_v39  ;;  %v4086_v39 = vld [vmem:[#allocation11 + $0x6c] sm:$0xf0] }
 0x4bd   :  { %2026 = vmatpush.bf16.msrb.mxu0 %v3823_v55  ;;  %2055 = vmatpush.bf16.msrb.mxu1 %v3827_v6  ;;  %v4087_v6 = vld [vmem:[#allocation11 + $0x74] sm:$0xf0] }
 0x4be   :  { %2084 = vmatpush.bf16.msrb.mxu2 %v3831_v36  ;;  %2113 = vmatpush.bf16.msrb.mxu3 %v3835_v17  ;;  %v4080_v17 = vld [vmem:[#allocation11 + $0x44] sm:$0xf] }
 0x4c1   :  { %2027 = vmatpush.bf16.msrb.mxu0 %v3807_v40  ;;  %2056 = vmatpush.bf16.msrb.mxu1 %v3811_v48  ;;  %v3760_v40 = vld [vmem:[#allocation11 + $0x50] sm:$0xf0] }
 0x4c2   :  { %2085 = vmatpush.bf16.msrb.mxu2 %v3815_v28  ;;  %v3763_v48 = vor.u32 %v4080_v17, %v3760_v40  ;;  %v5827_v17 = vld [vmem:[#allocation45_spill] sm:$0xff] }
 0x4c3   :  { %v442_v40 = vadd.f32 %v5827_v17, %v4845_v38 }
 0x534   :  { %v1510_v60 = vpop.f32.mrf.mxu0  ;;  %v1523_v61 = vpop.f32.mrf.mxu1 }
 0x535   :  { %v1553_v7 = vadd.f32 %v1510_v60, %v5816_v1  ;;  %v1554_v9 = vadd.f32 %v1523_v61, %v5817_v8  ;;  %v4093_v60 = vld [vmem:[#allocation11 + $0xac] sm:$0xf]  ;;  %v3816_v61 = vld [vmem:[#allocation11 + $0xb8] sm:$0xf0]  ;;  %v3790_v1 = vld [vmem:[#allocation11 + $0x80] sm:$0xf] }
 0x537   :  { %v3702_v13 = vmul.f32 -1.442695, %v1553_v7  ;;  %v3703_v20 = vmul.f32 -1.442695, %v1554_v9  ;;  %v3819_v9 = vor.u32 %v4093_v60, %v3816_v61 }
 0x539   :  { %4248 = vpow2.f32 %v3702_v13  ;;  %v4090_v13 = vld [vmem:[#allocation11 + $0x8c] sm:$0xf0]  ;;  %2114 = vmatpush.bf16.msrb.mxu3 %v3819_v9 }
 0x53a   :  { %4250 = vpow2.f32 %v3703_v20  ;;  %v4088_v20 = vld [vmem:[#allocation11 + $0x84] sm:$0xf]  ;;  %v3791_v22 = vor.u32 %v4090_v13, %v3790_v1  ;;  %v3742_v1 = vld [vmem:[#allocation11 + $0x20] sm:$0xf] }
 0x53b   :  { %v1536_v32 = vpop.f32.mrf.mxu2  ;;  %v1549_v33 = vpop.f32.mrf.mxu3  ;;  %v3795_v10 = vor.u32 %v4088_v20, %v3792_v26  ;;  %v4076_v26 = vld [vmem:[#allocation11 + $0x24] sm:$0xf] }
 0x53c   :  { %v1556_v52 = vadd.f32 %v1549_v33, %v5818_v51  ;;  %v1512_v2 = vpop.f32.mrf.mxu0  ;;  %v1525_v3 = vpop.f32.mrf.mxu1  ;;  %v1555_v27 = vadd.f32 %v1536_v32, %v5819_v11  ;;  %v3798_v32 = vld [vmem:[#allocation11 + $0x88] sm:$0xf]  ;;  %v4091_v33 = vld [vmem:[#allocation11 + $0x94] sm:$0xf0]  ;;  %2028 = vmatpush.bf16.msrb.mxu0 %v3791_v22 }
 0x53d   :  { %v3774_v3 = vld [vmem:[#allocation11 + $0x60] sm:$0xf]  ;;  %v3799_v15 = vor.u32 %v4091_v33, %v3798_v32  ;;  %2057 = vmatpush.bf16.msrb.mxu1 %v3795_v10  ;;  %2115 = vmatpush.bf16.msrb.mxu3 %v3803_v16 }
 0x53e   :  { %v3704_v14 = vmul.f32 -1.442695, %v1556_v52  ;;  %v3775_v58 = vor.u32 %v4086_v39, %v3774_v3  ;;  %v3726_v3 = vld [vmem:[#allocation11] sm:$0xf] }
 0x53f   :  { %v4249_v56 = vpop.eup %4248  ;;  %2086 = vmatpush.bf16.msrb.mxu2 %v3799_v15  ;;  %v4072_v15 = vld [vmem:[#allocation11 + $0x4] sm:$0xf] }
 0x540   :  { %v4251_v62 = vpop.eup %4250  ;;  %v5136_v25 = vadd.f32 1.0, %v4249_v56  ;;  %4252 = vpow2.f32 %v3704_v14  ;;  %v4084_v14 = vld [vmem:[#allocation11 + $0x64] sm:$0xf]  ;;  %2029 = vmatpush.bf16.msrb.mxu0 %v3775_v58  ;;  %v4075_v56 = vld [vmem:[#allocation11 + $0x14] sm:$0xf0] }
 0x541   :  { %v5138_v63 = vadd.f32 1.0, %v4251_v62  ;;  %v3779_v62 = vor.u32 %v4084_v14, %v3776_v42  ;;  %v3736_v58 = vld [vmem:[#allocation11 + $0x18] sm:$0xf0] }
 0x542   :  { %4254 = vrcp.f32 %v5136_v25  ;;  %v1570_v30 = vand.u32 2147483647, %v5136_v25  ;;  %v1572_v47 = vand.u32 2147483648, %v5136_v25  ;;  %vm1566_vm9 = vweird.f32 %v5136_v25 }
 0x543   :  { %4256 = vrcp.f32 %v5138_v63  ;;  %v1538_v19 = vpop.f32.mrf.mxu2  ;;  %v1551_v45 = vpop.f32.mrf.mxu3  ;;  %v1591_v7 = vand.u32 2147483648, %v5138_v63  ;;  %v1589_v2 = vand.u32 2147483647, %v5138_v63  ;;  %vm1585_vm13 = vweird.f32 %v5138_v63  ;;  %2058 = vmatpush.bf16.msrb.mxu1 %v3779_v62 }
 0x544   :  { %4258 = vtanh.f32 %v1555_v27  ;;  %vm5159_vm10 = vcmp.eq.f32.partialorder %v1570_v30, 8.507059e+37  ;;  %v1573_v55 = vor.u32 1.1754944e-38, %v1572_v47  ;;  %v3758_v19 = vld [vmem:[#allocation11 + $0x40] sm:$0xf]  ;;  %v4082_v45 = vld [vmem:[#allocation11 + $0x4c] sm:$0xf0]  ;;  %v3787_v27 = vor.u32 %v4085_v0, %v3784_v12 }
 0x545   :  { %v1592_v29 = vor.u32 1.1754944e-38, %v1591_v7  ;;  %v3759_v30 = vor.u32 %v4082_v45, %v3758_v19  ;;  %vm1590_vm15 = vcmp.eq.f32.partialorder %v1589_v2, 8.507059e+37  ;;  %v4078_v7 = vld [vmem:[#allocation11 + $0x2c] sm:$0xf0]  ;;  %v3752_v2 = vld [vmem:[#allocation11 + $0x38] sm:$0xf0] }
 0x546   :  { %v4253_v59 = vpop.eup %4252  ;;  %2116 = vmatpush.bf16.msrb.mxu3 %v3787_v27  ;;  %v3743_v22 = vor.u32 %v4078_v7, %v3742_v1  ;;  %v3755_v39 = vor.u32 %v4077_v44, %v3752_v2  ;;  %v4136_v45 = vld [vmem:[#allocation3] sm:$0xff]  ;;  %v5826_v27 = vld [vmem:[#allocation43_spill] sm:$0xff]  ;;  %v4134_v1 = vld [vmem:[#allocation14 + $0xec] sm:$0xf0] }
 0x547   :  { %v5146_v8 = vadd.f32 1.0, %v4253_v59  ;;  %v3768_v59 = vld [vmem:[#allocation11 + $0x58] sm:$0xf0]  ;;  %2030 = vmatpush.bf16.msrb.mxu0 %v3759_v30  ;;  %2059 = vmatpush.bf16.msrb.mxu1 %v3763_v48  ;;  %v413_v30 = vadd.f32 %v5826_v27, %v4841_v31  ;;  %v4132_v7 = vld [vmem:[#allocation14 + $0xe4] sm:$0xf] }
 0x548   :  { %v5148_v21 = vpop.eup %4254  ;;  %v3771_v61 = vor.u32 %v4081_v53, %v3768_v59  ;;  %v5828_v59 = vld [vmem:[#allocation47_spill] sm:$0xff]  ;;  %v4122_v27 = vld [vmem:[#allocation14 + $0x8c] sm:$0xf0] }
 0x549   :  { %v5150_v34 = vpop.eup %4256  ;;  %v1562_v35 = vmul.f32 %v5148_v21, %v5136_v25  ;;  %vm1567_vm8 = vweird.f32 %v5148_v21  ;;  %4260 = vrcp.f32 %v5146_v8  ;;  %v3782_v25 = vld [vmem:[#allocation11 + $0x68] sm:$0xf]  ;;  %v1611_v42 = vand.u32 2147483648, %v5146_v8  ;;  %v4128_v2 = vld [vmem:[#allocation14 + $0xc4] sm:$0xf] }
 0x54a   :  { %v1581_v51 = vmul.f32 %v5150_v34, %v5138_v63  ;;  %vm5166_vm11 = vmor %vm1566_vm9, %vm1567_vm8  ;;  %v4259_v36 = vpop.eup %4258  ;;  %vm1586_vm12 = vweird.f32 %v5150_v34  ;;  %v3783_v18 = vor.u32 %v4087_v6, %v3782_v25  ;;  %v3767_v63 = vor.u32 %v4083_v49, %v3766_v37  ;;  %2117 = vmatpush.bf16.msrb.mxu3 %v3771_v61  ;;  %v3966_v61 = vld [vmem:[#allocation14 + $0xe0] sm:$0xf] }
 0x54b   :  { %v1563_v4 = vsub.f32 1.0, %v1562_v35  ;;  %vm5182_vm14 = vmor %vm1585_vm13, %vm1586_vm12  ;;  %v3750_v35 = vld [vmem:[#allocation11 + $0x28] sm:$0xf]  ;;  %2031 = vmatpush.bf16.msrb.mxu0 %v3743_v22  ;;  %vm1605_vm1 = vweird.f32 %v5146_v8  ;;  %v500_v28 = vadd.f32 %v5828_v59, %v4857_v54  ;;  %v5211_v38 = vor.u32 %v4134_v1, %v3966_v61  ;;  %v4133_v22 = vld [vmem:[#allocation14 + $0xec] sm:$0xf] }
 0x54c   :  { %v1582_v23 = vsub.f32 1.0, %v1581_v51  ;;  %2087 = vmatpush.bf16.msrb.mxu2 %v3783_v18  ;;  %v3751_v10 = vor.u32 %v4079_v43, %v3750_v35  ;;  %v4135_v54 = vld [vmem:[#allocation14 + $0xf4] sm:$0xf0]  ;;  %v3928_v59 = vld [vmem:[#allocation14 + $0x98] sm:$0xf0] }
 0x54d   :  { %v1564_v46 = vmul.f32 %v5148_v21, %v1563_v4  ;;  %v4074_v4 = vld [vmem:[#allocation11 + $0xc] sm:$0xf0]  ;;  %v4127_v61 = vld [vmem:[#allocation14 + $0xb4] sm:$0xf0]  ;;  %v3902_v1 = vld [vmem:[#allocation14 + $0x60] sm:$0xf] }
 0x54e   :  { %v1583_v24 = vmul.f32 %v5150_v34, %v1582_v23  ;;  %v3727_v14 = vor.u32 %v4074_v4, %v3726_v3  ;;  %v3728_v23 = vld [vmem:[#allocation11 + $0x10] sm:$0xf0]  ;;  %2118 = vmatpush.bf16.msrb.mxu3 %v3755_v39 }
 0x54f   :  { %v5173_v57 = vpop.eup %4260  ;;  %v1565_v11 = vadd.f32 %v5148_v21, %v1564_v46  ;;  %v1609_v46 = vand.u32 2147483647, %v5146_v8  ;;  %v3731_v62 = vor.u32 %v4072_v15, %v3728_v23  ;;  %v4129_v15 = vld [vmem:[#allocation14 + $0xcc] sm:$0xf]  ;;  %v3960_v23 = vld [vmem:[#allocation14 + $0xd8] sm:$0xf0] }
 0x550   :  { %v1584_v41 = vadd.f32 %v5150_v34, %v1583_v24  ;;  %v1601_v47 = vmul.f32 %v5173_v57, %v5146_v8  ;;  %2088 = vmatpush.bf16.msrb.mxu2 %v3767_v63  ;;  %vm1606_vm0 = vweird.f32 %v5173_v57  ;;  %2032 = vmatpush.bf16.msrb.mxu0 %v3727_v14 }
 0x551   :  { %v1569_v60 = vsel %vm5166_vm11, %v5148_v21, %v1565_v11  ;;  %v3744_v21 = vld [vmem:[#allocation11 + $0x30] sm:$0xf0]  ;;  %vm1607_vm2 = vmor %vm1605_vm1, %vm1606_vm0  ;;  %vm1610_vm3 = vcmp.eq.f32.partialorder %v1609_v46, 8.507059e+37  ;;  %v4138_v11 = vld [vmem:[#allocation3 + $0x10] sm:$0xff] }
 0x552   :  { %v1574_v9 = vsel %vm5159_vm10, %v1573_v55, %v1569_v60  ;;  %v1588_v13 = vsel %vm5182_vm14, %v5150_v34, %v1584_v41  ;;  %v1602_v20 = vsub.f32 1.0, %v1601_v47  ;;  %v3747_v34 = vor.u32 %v4076_v26, %v3744_v21  ;;  %v4073_v55 = vld [vmem:[#allocation11 + $0xc] sm:$0xf]  ;;  %v3976_v26 = vld [vmem:[#allocation14 + $0xf8] sm:$0xf0] }
 0x553   :  { %v1593_v32 = vsel %vm1590_vm15, %v1592_v29, %v1588_v13  ;;  %v1617_v33 = vmul.f32 %v4259_v36, %v1574_v9  ;;  %v3734_v29 = vld [vmem:[#allocation11 + $0x8] sm:$0xf]  ;;  %v3739_v6 = vor.u32 %v4073_v55, %v3736_v58  ;;  %v1612_v36 = vor.u32 1.1754944e-38, %v1611_v42  ;;  %v3934_v58 = vld [vmem:[#allocation14 + $0xa0] sm:$0xf] }
 0x554   :  { %v1616_v51 = vmul.f32 %v1593_v32, %v5130_v5  ;;  %v1603_v52 = vmul.f32 %v5173_v57, %v1602_v20  ;;  %2060 = vmatpush.bf16.msrb.mxu1 %v3747_v34  ;;  %2089 = vmatpush.bf16.msrb.mxu2 %v3751_v10  ;;  %v3735_v25 = vor.u32 %v4075_v56, %v3734_v29  ;;  %v3968_v20 = vld [vmem:[#allocation14 + $0xf0] sm:$0xf0]  ;;  %v3958_v29 = vld [vmem:[#allocation14 + $0xc8] sm:$0xf]  ;;  %v4131_v56 = vld [vmem:[#allocation14 + $0xd4] sm:$0xf0] }
 0x555   :  { %2119 = vmatpush.bf16.msrb.mxu3 %v3739_v6  ;;  %v5213_v21 = vor.u32 %v4132_v7, %v3968_v20  ;;  %v5215_v32 = vor.u32 %v4133_v22, %v3976_v26  ;;  %v3952_v10 = vld [vmem:[#allocation14 + $0xd0] sm:$0xf0]  ;;  %v5829_v42 = vld [vmem:[#allocation46_spill] sm:$0xff]  ;;  %v4126_v6 = vld [vmem:[#allocation14 + $0xac] sm:$0xf0] }
 0x556   :  { %v5196_v16 = vadd.f32 %v1617_v33, %v1616_v51  ;;  %v1604_v5 = vadd.f32 %v5173_v57, %v1603_v52  ;;  %v3974_v33 = vld [vmem:[#allocation14 + $0xe8] sm:$0xf]  ;;  %v3950_v51 = vld [vmem:[#allocation14 + $0xc0] sm:$0xf]  ;;  %v4130_v52 = vld [vmem:[#allocation14 + $0xcc] sm:$0xf0]  ;;  %v5229_v14 = vor.u32 %v4128_v2, %v3952_v10  ;;  %v471_v46 = vadd.f32 %v5829_v42, %v4855_v50 }
 0x557   :  { %v5218_v43 = vor.u32 %v4135_v54, %v3974_v33  ;;  %v5224_v34 = vor.u32 %v4130_v52, %v3950_v51  ;;  %v3944_v50 = vld [vmem:[#allocation14 + $0xb8] sm:$0xf0]  ;;  %v4118_v7 = vld [vmem:[#allocation14 + $0x6c] sm:$0xf0]  ;;  %v3904_v54 = vld [vmem:[#allocation14 + $0x70] sm:$0xf0] }
 0x558   :  { %4262 = vtanh.f32 %v5196_v16  ;;  %v1608_v0 = vsel %vm1607_vm2, %v5173_v57, %v1604_v5  ;;  %2061 = vmatpush.bf16.msrb.mxu1 %v3731_v62  ;;  %2090 = vmatpush.bf16.msrb.mxu2 %v3735_v25  ;;  %v4137_v57 = vld [vmem:[#allocation3 + $0x8] sm:$0xff]  ;;  %v5238_v25 = vor.u32 %v4129_v15, %v3960_v23  ;;  %v4123_v23 = vld [vmem:[#allocation14 + $0x94] sm:$0xf0]  ;;  %v4114_v42 = vld [vmem:[#allocation14 + $0x4c] sm:$0xf0] }
 0x559   :  { %v1613_v18 = vsel %vm1610_vm3, %v1612_v36, %v1608_v0  ;;  %v4124_v0 = vld [vmem:[#allocation14 + $0xa4] sm:$0xf]  ;;  %v5240_v36 = vor.u32 %v4131_v56, %v3958_v29  ;;  %v3926_v15 = vld [vmem:[#allocation14 + $0x88] sm:$0xf]  ;;  %v3886_v29 = vld [vmem:[#allocation14 + $0x40] sm:$0xf] }
 0x55e   :  { %v4263_v24 = vpop.eup %4262 }
 0x55f   :  { %v1620_v12 = vmul.f32 %v4263_v24, %v1613_v18  ;;  %v3936_v18 = vld [vmem:[#allocation14 + $0xb0] sm:$0xf0] }
 0x561   :  { %v1621_v19 = vpack.c.bf16 %v1620_v12, %v1620_v12  ;;  %v4125_v12 = vld [vmem:[#allocation14 + $0xac] sm:$0xf] }
 0x563   :  { %1623 = vst [vmem:[#allocation4] sm:$0xf] %v1621_v19 }
 0x564   :  { %1625 = vst [vmem:[#allocation3 + $0x18] sm:$0xf] %v1621_v19 }
 0x56a   :  { %v1633_v8 = vld [vmem:[#allocation4] sm:$0xf] }
 0x56b   :  { %1642 = vmatmul.bf16.vlgmr.msra.gmra.mxu0 %v1633_v8  ;;  %1655 = vmatmul.bf16.vlgmr.msra.gmra.mxu1 %v1633_v8 }
 0x56c   :  { %1668 = vmatmul.bf16.vlgmr.msra.gmra.mxu2 %v1633_v8  ;;  %1681 = vmatmul.bf16.vlgmr.msra.gmra.mxu3 %v1633_v8 }
 0x56d   :  { %2340 = vmatpush.bf16.msra.mxu0 %v5211_v38  ;;  %2353 = vmatpush.bf16.msra.mxu1 %v5213_v21 }
 0x56e   :  { %2379 = vmatpush.bf16.msra.mxu3 %v5215_v32  ;;  %2366 = vmatpush.bf16.msra.mxu2 %v5218_v43 }
 0x571   :  { %2341 = vmatpush.bf16.msra.mxu0 %v5224_v34  ;;  %2354 = vmatpush.bf16.msra.mxu1 %v5229_v14 }
 0x572   :  { %2380 = vmatpush.bf16.msra.mxu3 %v5238_v25  ;;  %2367 = vmatpush.bf16.msra.mxu2 %v5240_v36 }
 0x57b   :  { %2033 = vmatmul.bf16.vlgmr.msrb.gmra.mxu0 %v4136_v45  ;;  %2062 = vmatmul.bf16.vlgmr.msrb.gmra.mxu1 %v4136_v45 }
 0x57c   :  { %2091 = vmatmul.bf16.vlgmr.msrb.gmra.mxu2 %v4136_v45  ;;  %2120 = vmatmul.bf16.vlgmr.msrb.gmra.mxu3 %v4136_v45  ;;  %v5244_v45 = vor.u32 %v4126_v6, %v3934_v58  ;;  %v5300_v58 = vor.u32 %v4123_v23, %v3926_v15  ;;  %v4104_v15 = vld [vmem:[#allocation14 + $0x4] sm:$0xf] }
 0x57e   :  { %2342 = vmatpush.bf16.msra.mxu0 %v5244_v45 }
 0x58b   :  { %2038 = vmatmul.bf16.gmra.mxu0 %v4137_v57  ;;  %2067 = vmatmul.bf16.gmra.mxu1 %v4137_v57 }
 0x58c   :  { %2096 = vmatmul.bf16.gmra.mxu2 %v4137_v57  ;;  %2125 = vmatmul.bf16.gmra.mxu3 %v4137_v57  ;;  %v5246_v57 = vor.u32 %v4124_v0, %v3936_v18  ;;  %v3896_v18 = vld [vmem:[#allocation14 + $0x58] sm:$0xf0] }
 0x58e   :  { %2355 = vmatpush.bf16.msra.mxu1 %v5246_v57 }
 0x59b   :  { %2043 = vmatmul.bf16.gmra.mxu0 %v4138_v11  ;;  %2072 = vmatmul.bf16.gmra.mxu1 %v4138_v11 }
 0x59c   :  { %2101 = vmatmul.bf16.gmra.mxu2 %v4138_v11  ;;  %2130 = vmatmul.bf16.gmra.mxu3 %v4138_v11  ;;  %v3918_v11 = vld [vmem:[#allocation14 + $0x80] sm:$0xf] }
 0x5e8   :  { %v1643_v37 = vpop.f32.mrf.mxu0  ;;  %v1656_v41 = vpop.f32.mrf.mxu1 }
 0x5e9   :  { %v1686_v47 = vadd.f32 %v1643_v37, %v413_v30  ;;  %v1687_v48 = vadd.f32 %v1656_v41, %v442_v40  ;;  %v5252_v40 = vor.u32 %v4125_v12, %v3944_v50  ;;  %v4120_v37 = vld [vmem:[#allocation14 + $0x84] sm:$0xf]  ;;  %v3920_v41 = vld [vmem:[#allocation14 + $0x90] sm:$0xf0]  ;;  %v3910_v12 = vld [vmem:[#allocation14 + $0x68] sm:$0xf] }
 0x5eb   :  { %v3705_v49 = vmul.f32 -1.442695, %v1686_v47  ;;  %v3706_v53 = vmul.f32 -1.442695, %v1687_v48  ;;  %v5258_v48 = vor.u32 %v4122_v27, %v3918_v11  ;;  %2381 = vmatpush.bf16.msra.mxu3 %v5252_v40  ;;  %v5321_v27 = vor.u32 %v4114_v42, %v3886_v29  ;;  %v3856_v29 = vld [vmem:[#allocation14 + $0x10] sm:$0xf0] }
 0x5ec   :  { %v4111_v42 = vld [vmem:[#allocation14 + $0x34] sm:$0xf0] }
 0x5ed   :  { %4264 = vpow2.f32 %v3705_v49  ;;  %v5260_v49 = vor.u32 %v4120_v37, %v3920_v41  ;;  %2343 = vmatpush.bf16.msra.mxu0 %v5258_v48  ;;  %v3870_v37 = vld [vmem:[#allocation14 + $0x20] sm:$0xf]  ;;  %v4107_v11 = vld [vmem:[#allocation14 + $0x14] sm:$0xf0] }
 0x5ee   :  { %4266 = vpow2.f32 %v3706_v53  ;;  %v4121_v53 = vld [vmem:[#allocation14 + $0x8c] sm:$0xf] }
 0x5ef   :  { %v1669_v60 = vpop.f32.mrf.mxu2  ;;  %v1682_v63 = vpop.f32.mrf.mxu3  ;;  %v5277_v26 = vor.u32 %v4121_v53, %v3928_v59  ;;  %2356 = vmatpush.bf16.msra.mxu1 %v5260_v49 }
 0x5f0   :  { %v1689_v31 = vadd.f32 %v1682_v63, %v500_v28  ;;  %v1645_v9 = vpop.f32.mrf.mxu0  ;;  %v1658_v13 = vpop.f32.mrf.mxu1  ;;  %v1688_v8 = vadd.f32 %v1669_v60, %v471_v46  ;;  %v3942_v28 = vld [vmem:[#allocation14 + $0xa8] sm:$0xf]  ;;  %v4112_v46 = vld [vmem:[#allocation14 + $0x44] sm:$0xf] }
 0x5f1   :  { %v4116_v13 = vld [vmem:[#allocation14 + $0x64] sm:$0xf]  ;;  %v5279_v33 = vor.u32 %v4127_v61, %v3942_v28  ;;  %2382 = vmatpush.bf16.msra.mxu3 %v5277_v26  ;;  %v4110_v28 = vld [vmem:[#allocation14 + $0x2c] sm:$0xf0]  ;;  %v3872_v61 = vld [vmem:[#allocation14 + $0x30] sm:$0xf0] }
 0x5f2   :  { %v3707_v35 = vmul.f32 -1.442695, %v1689_v31 }
 0x5f3   :  { %v4265_v44 = vpop.eup %4264  ;;  %2368 = vmatpush.bf16.msra.mxu2 %v5279_v33 }
 0x5f4   :  { %v4267_v3 = vpop.eup %4266  ;;  %v5222_v4 = vadd.f32 1.0, %v4265_v44  ;;  %4268 = vpow2.f32 %v3707_v35  ;;  %v4117_v35 = vld [vmem:[#allocation14 + $0x6c] sm:$0xf] }
 0x5f5   :  { %v5227_v39 = vadd.f32 1.0, %v4267_v3  ;;  %v5289_v3 = vor.u32 %v4118_v7, %v3902_v1 }
 0x5f6   :  { %4270 = vrcp.f32 %v5222_v4  ;;  %v1703_v62 = vand.u32 2147483647, %v5222_v4  ;;  %v1705_v24 = vand.u32 2147483648, %v5222_v4  ;;  %vm1699_vm5 = vweird.f32 %v5222_v4 }
 0x5f7   :  { %4272 = vrcp.f32 %v5227_v39  ;;  %v1671_v5 = vpop.f32.mrf.mxu2  ;;  %v1684_v55 = vpop.f32.mrf.mxu3  ;;  %v1724_v30 = vand.u32 2147483648, %v5227_v39  ;;  %v1722_v9 = vand.u32 2147483647, %v5227_v39  ;;  %vm1718_vm9 = vweird.f32 %v5227_v39  ;;  %2344 = vmatpush.bf16.msra.mxu0 %v5289_v3  ;;  %2369 = vmatpush.bf16.msra.mxu2 %v5300_v58 }
 0x5f8   :  { %vm5273_vm6 = vcmp.eq.f32.partialorder %v1703_v62, 8.507059e+37  ;;  %v1706_v2 = vor.u32 1.1754944e-38, %v1705_v24  ;;  %v5296_v5 = vor.u32 %v4116_v13, %v3904_v54  ;;  %v3888_v62 = vld [vmem:[#allocation14 + $0x50] sm:$0xf0]  ;;  %v4113_v24 = vld [vmem:[#allocation14 + $0x4c] sm:$0xf] }
 0x5f9   :  { %v1725_v51 = vor.u32 1.1754944e-38, %v1724_v30  ;;  %vm5313_vm11 = vcmp.eq.f32.partialorder %v1722_v9, 8.507059e+37  ;;  %v4119_v30 = vld [vmem:[#allocation14 + $0x74] sm:$0xf0]  ;;  %v5327_v53 = vor.u32 %v4112_v46, %v3888_v62  ;;  %v3894_v9 = vld [vmem:[#allocation14 + $0x48] sm:$0xf] }
 0x5fa   :  { %v4269_v19 = vpop.eup %4268  ;;  %2357 = vmatpush.bf16.msra.mxu1 %v5296_v5  ;;  %v5329_v59 = vor.u32 %v4119_v30, %v3910_v12  ;;  %v4115_v13 = vld [vmem:[#allocation14 + $0x54] sm:$0xf0]  ;;  %v4105_v62 = vld [vmem:[#allocation14 + $0xc] sm:$0xf] }
 0x5fb   :  { %v5250_v17 = vadd.f32 1.0, %v4269_v19  ;;  %2345 = vmatpush.bf16.msra.mxu0 %v5321_v27 }
 0x5fc   :  { %v5254_v47 = vpop.eup %4270  ;;  %2370 = vmatpush.bf16.msra.mxu2 %v5329_v59 }
 0x5fd   :  { %v5262_v60 = vpop.eup %4272  ;;  %v1695_v63 = vmul.f32 %v5254_v47, %v5222_v4  ;;  %vm1700_vm4 = vweird.f32 %v5254_v47  ;;  %4274 = vrcp.f32 %v5250_v17  ;;  %v3912_v4 = vld [vmem:[#allocation14 + $0x78] sm:$0xf0]  ;;  %vm1738_vm13 = vweird.f32 %v5250_v17 }
 0x5fe   :  { %v1714_v31 = vmul.f32 %v5262_v60, %v5227_v39  ;;  %4276 = vtanh.f32 %v1688_v8  ;;  %vm5283_vm7 = vmor %vm1699_vm5, %vm1700_vm4  ;;  %vm1719_vm8 = vweird.f32 %v5262_v60  ;;  %v5298_v55 = vor.u32 %v4117_v35, %v3912_v4  ;;  %v4109_v35 = vld [vmem:[#allocation14 + $0x2c] sm:$0xf]  ;;  %2358 = vmatpush.bf16.msra.mxu1 %v5327_v53 }
 0x5ff   :  { %v1696_v20 = vsub.f32 1.0, %v1695_v63  ;;  %vm5308_vm10 = vmor %vm1718_vm9, %vm1719_vm8  ;;  %v4108_v63 = vld [vmem:[#allocation14 + $0x24] sm:$0xf]  ;;  %v5350_v4 = vor.u32 %v4115_v13, %v3894_v9  ;;  %v1742_v12 = vand.u32 2147483647, %v5250_v17  ;;  %v2063_v9 = vpop.f32.mrf.mxu1  ;;  %v2092_v13 = vpop.f32.mrf.mxu2 }
 0x600   :  { %v1715_v44 = vsub.f32 1.0, %v1714_v31  ;;  %2383 = vmatpush.bf16.msra.mxu3 %v5298_v55 }
 0x601   :  { %v1697_v10 = vmul.f32 %v5254_v47, %v1696_v20  ;;  %2371 = vmatpush.bf16.msra.mxu2 %v5350_v4  ;;  %vm1743_vm15 = vcmp.eq.f32.partialorder %v1742_v12, 8.507059e+37 }
 0x602   :  { %v1716_v56 = vmul.f32 %v5262_v60, %v1715_v44  ;;  %v3880_v44 = vld [vmem:[#allocation14 + $0x38] sm:$0xf0] }
 0x603   :  { %v5302_v6 = vpop.eup %4274  ;;  %v1698_v0 = vadd.f32 %v5254_v47, %v1697_v10  ;;  %v4106_v10 = vld [vmem:[#allocation14 + $0xc] sm:$0xf0] }
 0x604   :  { %v4277_v19 = vpop.eup %4276  ;;  %v1717_v50 = vadd.f32 %v5262_v60, %v1716_v56  ;;  %v1734_v39 = vmul.f32 %v5302_v6, %v5250_v17  ;;  %v3878_v56 = vld [vmem:[#allocation14 + $0x28] sm:$0xf]  ;;  %vm1739_vm12 = vweird.f32 %v5302_v6 }
 0x605   :  { %v1702_v41 = vsel %vm5283_vm7, %v5254_v47, %v1698_v0  ;;  %v5337_v47 = vor.u32 %v4113_v24, %v3896_v18  ;;  %v3864_v0 = vld [vmem:[#allocation14 + $0x18] sm:$0xf0]  ;;  %v1744_v24 = vand.u32 2147483648, %v5250_v17  ;;  %v5367_v8 = vor.u32 %v4111_v42, %v3878_v56  ;;  %vm1740_vm14 = vmor %vm1738_vm13, %vm1739_vm12 }
 0x606   :  { %v1707_v1 = vsel %vm5273_vm6, %v1706_v2, %v1702_v41  ;;  %v1721_v7 = vsel %vm5308_vm10, %v5262_v60, %v1717_v50  ;;  %v1735_v31 = vsub.f32 1.0, %v1734_v39  ;;  %v5344_v60 = vor.u32 %v4110_v28, %v3870_v37  ;;  %v3862_v50 = vld [vmem:[#allocation14 + $0x8] sm:$0xf] }
 0x607   :  { %v1726_v20 = vsel %vm5313_vm11, %v1725_v51, %v1721_v7  ;;  %v1750_v54 = vmul.f32 %v4277_v19, %v1707_v1  ;;  %v5348_v2 = vor.u32 %v4108_v63, %v3872_v61  ;;  %v3854_v51 = vld [vmem:[#allocation14] sm:$0xf]  ;;  %2384 = vmatpush.bf16.msra.mxu3 %v5337_v47  ;;  %v5365_v19 = vor.u32 %v4104_v15, %v3856_v29 }
 0x608   :  { %v1749_v22 = vmul.f32 %v1726_v20, %v5196_v16  ;;  %v1736_v52 = vmul.f32 %v5302_v6, %v1735_v31  ;;  %v5353_v16 = vor.u32 %v4109_v35, %v3880_v44  ;;  %2346 = vmatpush.bf16.msra.mxu0 %v5344_v60  ;;  %v5359_v18 = vor.u32 %v4106_v10, %v3854_v51  ;;  %v2034_v31 = vpop.f32.mrf.mxu0  ;;  %v2121_v20 = vpop.f32.mrf.mxu3 }
 0x609   :  { %2359 = vmatpush.bf16.msra.mxu1 %v5348_v2  ;;  %v5370_v39 = vor.u32 %v4105_v62, %v3864_v0  ;;  %v1745_v37 = vor.u32 1.1754944e-38, %v1744_v24  ;;  %2372 = vmatpush.bf16.msra.mxu2 %v5367_v8  ;;  %v5376_v17 = vor.u32 %v4107_v11, %v3862_v50  ;;  %v5838_v61 = vmov 0   ;;  %v5447_v35 = vpop.f32.mrf.mxu1  ;;  %v5449_v44 = vpop.f32.mrf.mxu2 }
 0x60a   :  { %v1751_v23 = vadd.f32 %v1750_v54, %v1749_v22  ;;  %v1737_v46 = vadd.f32 %v5302_v6, %v1736_v52  ;;  %5839 = vst [vmem:[#allocation23_spill] sm:$0xff] %v5449_v44 }
 0x60b   :  { %2385 = vmatpush.bf16.msra.mxu3 %v5353_v16 }
 0x60c   :  { %4278 = vtanh.f32 %v1751_v23  ;;  %v1741_v30 = vsel %vm1740_vm14, %v5302_v6, %v1737_v46  ;;  %2347 = vmatpush.bf16.msra.mxu0 %v5359_v18 }
 0x60d   :  { %2360 = vmatpush.bf16.msra.mxu1 %v5365_v19  ;;  %v1746_v28 = vsel %vm1743_vm15, %v1745_v37, %v1741_v30  ;;  %2373 = vmatpush.bf16.msra.mxu2 %v5376_v17 }
 0x60f   :  { %2386 = vmatpush.bf16.msra.mxu3 %v5370_v39 }
 0x610   :  { %2469 = vmatpush.bf16.msrb.mxu0 %v5211_v38  ;;  %v5445_v54 = vpop.f32.mrf.mxu0  ;;  %v5451_v22 = vpop.f32.mrf.mxu3 }
 0x611   :  { %2482 = vmatpush.bf16.msrb.mxu1 %v5213_v21  ;;  %2495 = vmatpush.bf16.msrb.mxu2 %v5218_v43  ;;  %v5455_v51 = vpop.f32.mrf.mxu1  ;;  %v5457_v10 = vpop.f32.mrf.mxu2 }
 0x612   :  { %v4279_v41 = vpop.eup %4278  ;;  %5841 = vst [vmem:[#allocation25_spill] sm:$0xff] %v5455_v51 }
 0x613   :  { %v1753_v63 = vmul.f32 %v4279_v41, %v1746_v28  ;;  %2508 = vmatpush.bf16.msrb.mxu3 %v5215_v32  ;;  %5842 = vst [vmem:[#allocation28_spill] sm:$0xff] %v5457_v10 }
 0x614   :  { %2470 = vmatpush.bf16.msrb.mxu0 %v5224_v34 }
 0x615   :  { %v1754_v6 = vpack.c.bf16 %v1753_v63, %v1753_v63  ;;  %2483 = vmatpush.bf16.msrb.mxu1 %v5229_v14  ;;  %2496 = vmatpush.bf16.msrb.mxu2 %v5240_v36 }
 0x617   :  { %1756 = vst [vmem:[#allocation4] sm:$0xf] %v1754_v6  ;;  %2509 = vmatpush.bf16.msrb.mxu3 %v5238_v25 }
 0x618   :  { %1758 = vst [vmem:[#allocation3 + $0x1c] sm:$0xf] %v1754_v6  ;;  %2471 = vmatpush.bf16.msrb.mxu0 %v5244_v45  ;;  %v5453_v52 = vpop.f32.mrf.mxu0  ;;  %v5459_v15 = vpop.f32.mrf.mxu3  ;;  %v1823_v6 = vld [vmem:[#allocation15] sm:$0xf] }
 0x619   :  { %2173 = vst [vmem:[#allocation4] sm:$0xf] %v5838_v61  ;;  %2484 = vmatpush.bf16.msrb.mxu1 %v5246_v57  ;;  %2497 = vmatpush.bf16.msrb.mxu2 %v5279_v33  ;;  %v5463_v29 = vpop.f32.mrf.mxu1  ;;  %v5465_v56 = vpop.f32.mrf.mxu2 }
 0x61a   :  { %5840 = vst [vmem:[#allocation24_spill] sm:$0xff] %v5453_v52 }
 0x61b   :  { %2510 = vmatpush.bf16.msrb.mxu3 %v5252_v40  ;;  %5843 = vst [vmem:[#allocation26_spill] sm:$0xff] %v5459_v15 }
 0x61c   :  { %2472 = vmatpush.bf16.msrb.mxu0 %v5258_v48  ;;  %5845 = vst [vmem:[#allocation29_spill] sm:$0xff] %v5463_v29 }
 0x61d   :  { %2485 = vmatpush.bf16.msrb.mxu1 %v5260_v49  ;;  %2498 = vmatpush.bf16.msrb.mxu2 %v5300_v58  ;;  %5846 = vst [vmem:[#allocation31_spill] sm:$0xff] %v5465_v56 }
 0x61f   :  { %v4139_v1 = vld [vmem:[#allocation3 + $0x18] sm:$0xff]  ;;  %2511 = vmatpush.bf16.msrb.mxu3 %v5277_v26 }
 0x620   :  { %2048 = vmatmul.bf16.gmra.mxu0 %v4139_v1  ;;  %2077 = vmatmul.bf16.gmra.mxu1 %v4139_v1  ;;  %v2179_v7 = vld [vmem:[#allocation4] sm:$0xf]  ;;  %v5461_v23 = vpop.f32.mrf.mxu0  ;;  %v5467_v42 = vpop.f32.mrf.mxu3 }
 0x621   :  { %2106 = vmatmul.bf16.gmra.mxu2 %v4139_v1  ;;  %2135 = vmatmul.bf16.gmra.mxu3 %v4139_v1  ;;  %5844 = vst [vmem:[#allocation27_spill] sm:$0xff] %v5461_v23  ;;  %v5471_v62 = vpop.f32.mrf.mxu1  ;;  %v5473_v0 = vpop.f32.mrf.mxu2 }
 0x622   :  { %2473 = vmatpush.bf16.msrb.mxu0 %v5289_v3  ;;  %2486 = vmatpush.bf16.msrb.mxu1 %v5296_v5  ;;  %5847 = vst [vmem:[#allocation30_spill] sm:$0xff] %v5467_v42 }
 0x623   :  { %2512 = vmatpush.bf16.msrb.mxu3 %v5298_v55  ;;  %2499 = vmatpush.bf16.msrb.mxu2 %v5329_v59  ;;  %5849 = vst [vmem:[#allocation33_spill] sm:$0xff] %v5471_v62 }
 0x624   :  { %5850 = vst [vmem:[#allocation36_spill] sm:$0xff] %v5473_v0 }
 0x626   :  { %2474 = vmatpush.bf16.msrb.mxu0 %v5321_v27  ;;  %2487 = vmatpush.bf16.msrb.mxu1 %v5327_v53 }
 0x627   :  { %2513 = vmatpush.bf16.msrb.mxu3 %v5337_v47  ;;  %2500 = vmatpush.bf16.msrb.mxu2 %v5350_v4 }
 0x628   :  { %v5469_v46 = vpop.f32.mrf.mxu0  ;;  %v5475_v24 = vpop.f32.mrf.mxu3 }
 0x629   :  { %5848 = vst [vmem:[#allocation32_spill] sm:$0xff] %v5469_v46  ;;  %v5479_v50 = vpop.f32.mrf.mxu1  ;;  %v5481_v11 = vpop.f32.mrf.mxu2 }
 0x62a   :  { %2475 = vmatpush.bf16.msrb.mxu0 %v5344_v60  ;;  %2488 = vmatpush.bf16.msrb.mxu1 %v5348_v2  ;;  %5851 = vst [vmem:[#allocation34_spill] sm:$0xff] %v5475_v24  ;;  %v5507_v24 = vperm.slane %v1823_v6, 3 }
 0x62b   :  { %2514 = vmatpush.bf16.msrb.mxu3 %v5353_v16  ;;  %2501 = vmatpush.bf16.msrb.mxu2 %v5367_v8  ;;  %5853 = vst [vmem:[#allocation37_spill] sm:$0xff] %v5479_v50  ;;  %v5499_v50 = vperm.slane %v1823_v6, 1 }
 0x62c   :  { %5854 = vst [vmem:[#allocation39_spill] sm:$0xff] %v5481_v11  ;;  %v2122_v62 = vadd.f32 %v2121_v20, %v5507_v24 }
 0x62e   :  { %2476 = vmatpush.bf16.msrb.mxu0 %v5359_v18  ;;  %2489 = vmatpush.bf16.msrb.mxu1 %v5365_v19 }
 0x62f   :  { %2515 = vmatpush.bf16.msrb.mxu3 %v5370_v39  ;;  %2502 = vmatpush.bf16.msrb.mxu2 %v5376_v17 }
 0x630   :  { %2348 = vmatmul.bf16.vlgmr.msra.gmra.mxu0 %v2179_v7  ;;  %2361 = vmatmul.bf16.vlgmr.msra.gmra.mxu1 %v2179_v7  ;;  %v5477_v12 = vpop.f32.mrf.mxu0  ;;  %v5483_v30 = vpop.f32.mrf.mxu3 }
 0x631   :  { %2374 = vmatmul.bf16.vlgmr.msra.gmra.mxu2 %v2179_v7  ;;  %2387 = vmatmul.bf16.vlgmr.msra.gmra.mxu3 %v2179_v7  ;;  %5852 = vst [vmem:[#allocation35_spill] sm:$0xff] %v5477_v12  ;;  %v5497_v7 = vperm.slane %v1823_v6, 0 }
 0x632   :  { %2598 = vmatpush.bf16.msra.mxu0 %v5211_v38  ;;  %2611 = vmatpush.bf16.msra.mxu1 %v5213_v21  ;;  %5855 = vst [vmem:[#allocation38_spill] sm:$0xff] %v5483_v30  ;;  %v2064_v30 = vadd.f32 %v2063_v9, %v5499_v50 }
 0x633   :  { %2624 = vmatpush.bf16.msra.mxu2 %v5218_v43  ;;  %2637 = vmatpush.bf16.msra.mxu3 %v5215_v32  ;;  %v2035_v11 = vadd.f32 %v2034_v31, %v5497_v7 }
 0x636   :  { %2599 = vmatpush.bf16.msra.mxu0 %v5224_v34  ;;  %2612 = vmatpush.bf16.msra.mxu1 %v5229_v14 }
 0x637   :  { %2625 = vmatpush.bf16.msra.mxu2 %v5240_v36  ;;  %2638 = vmatpush.bf16.msra.mxu3 %v5238_v25 }
 0x63a   :  { %2600 = vmatpush.bf16.msra.mxu0 %v5244_v45  ;;  %2613 = vmatpush.bf16.msra.mxu1 %v5246_v57 }
 0x63b   :  { %2626 = vmatpush.bf16.msra.mxu2 %v5279_v33  ;;  %2639 = vmatpush.bf16.msra.mxu3 %v5252_v40 }
 0x63e   :  { %2601 = vmatpush.bf16.msra.mxu0 %v5258_v48  ;;  %2614 = vmatpush.bf16.msra.mxu1 %v5260_v49 }
 0x63f   :  { %2627 = vmatpush.bf16.msra.mxu2 %v5300_v58  ;;  %2640 = vmatpush.bf16.msra.mxu3 %v5277_v26 }
 0x642   :  { %2602 = vmatpush.bf16.msra.mxu0 %v5289_v3  ;;  %2615 = vmatpush.bf16.msra.mxu1 %v5296_v5 }
 0x643   :  { %2628 = vmatpush.bf16.msra.mxu2 %v5329_v59  ;;  %2641 = vmatpush.bf16.msra.mxu3 %v5298_v55 }
 0x646   :  { %2603 = vmatpush.bf16.msra.mxu0 %v5321_v27  ;;  %2616 = vmatpush.bf16.msra.mxu1 %v5327_v53 }
 0x647   :  { %2629 = vmatpush.bf16.msra.mxu2 %v5350_v4  ;;  %2642 = vmatpush.bf16.msra.mxu3 %v5337_v47 }
 0x64a   :  { %2604 = vmatpush.bf16.msra.mxu0 %v5344_v60  ;;  %2617 = vmatpush.bf16.msra.mxu1 %v5348_v2 }
 0x64b   :  { %2630 = vmatpush.bf16.msra.mxu2 %v5367_v8  ;;  %2643 = vmatpush.bf16.msra.mxu3 %v5353_v16 }
 0x64e   :  { %2605 = vmatpush.bf16.msra.mxu0 %v5359_v18  ;;  %2618 = vmatpush.bf16.msra.mxu1 %v5365_v19 }
 0x64f   :  { %2631 = vmatpush.bf16.msra.mxu2 %v5376_v17  ;;  %2644 = vmatpush.bf16.msra.mxu3 %v5370_v39 }
 0x69d   :  { %v5485_v37 = vpop.f32.mrf.mxu0  ;;  %v5487_v41 = vpop.f32.mrf.mxu1 }
 0x69e   :  { %5856 = vst [vmem:[#allocation40_spill] sm:$0xff] %v5485_v37 }
 0x69f   :  { %5857 = vst [vmem:[#allocation41_spill] sm:$0xff] %v5487_v41 }
 0x6a4   :  { %v5489_v28 = vpop.f32.mrf.mxu2  ;;  %v5491_v63 = vpop.f32.mrf.mxu3 }
 0x6a5   :  { %5858 = vst [vmem:[#allocation44_spill] sm:$0xff] %v5489_v28  ;;  %v5493_v61 = vpop.f32.mrf.mxu0  ;;  %v5495_v1 = vpop.f32.mrf.mxu1 }
 0x6a6   :  { %5859 = vst [vmem:[#allocation42_spill] sm:$0xff] %v5491_v63 }
 0x6a7   :  { %5860 = vst [vmem:[#allocation43_spill] sm:$0xff] %v5493_v61 }
 0x6a8   :  { %5861 = vst [vmem:[#allocation45_spill] sm:$0xff] %v5495_v1 }
 0x6ac   :  { %v5503_v37 = vpop.f32.mrf.mxu2  ;;  %v5505_v41 = vpop.f32.mrf.mxu3 }
 0x6ad   :  { %5862 = vst [vmem:[#allocation47_spill] sm:$0xff] %v5503_v37  ;;  %v2349_v28 = vpop.f32.mrf.mxu0  ;;  %v2362_v12 = vpop.f32.mrf.mxu1 }
 0x6ae   :  { %5863 = vst [vmem:[#allocation46_spill] sm:$0xff] %v5505_v41  ;;  %v2392_v63 = vadd.f32 %v2349_v28, %v2035_v11  ;;  %v2393_v0 = vadd.f32 %v2362_v12, %v2064_v30  ;;  %v5510_v12 = vperm.slane %v1823_v6, 2 }
 0x6b0   :  { %v3980_v61 = vmul.f32 -1.442695, %v2392_v63  ;;  %v3981_v1 = vmul.f32 -1.442695, %v2393_v0  ;;  %5864 = vst [vmem:[#allocation48_spill] sm:$0xff] %v5510_v12  ;;  %v2093_v20 = vadd.f32 %v2092_v13, %v5510_v12 }
 0x6b2   :  { %4280 = vpow2.f32 %v3980_v61 }
 0x6b3   :  { %4282 = vpow2.f32 %v3981_v1 }
 0x6b4   :  { %v2375_v46 = vpop.f32.mrf.mxu2  ;;  %v2388_v31 = vpop.f32.mrf.mxu3 }
 0x6b5   :  { %v2395_v56 = vadd.f32 %v2388_v31, %v2122_v62  ;;  %v2351_v9 = vpop.f32.mrf.mxu0  ;;  %v2364_v42 = vpop.f32.mrf.mxu1  ;;  %v2394_v62 = vadd.f32 %v2375_v46, %v2093_v20 }
 0x6b7   :  { %v3982_v37 = vmul.f32 -1.442695, %v2395_v56 }
 0x6b8   :  { %v4281_v29 = vpop.eup %4280 }
 0x6b9   :  { %v4283_v41 = vpop.eup %4282  ;;  %v2399_v23 = vadd.f32 1.0, %v4281_v29  ;;  %4284 = vpow2.f32 %v3982_v37 }
 0x6ba   :  { %v2418_v11 = vadd.f32 1.0, %v4283_v41 }
 0x6bb   :  { %4286 = vrcp.f32 %v2399_v23  ;;  %v2411_v37 = vand.u32 2147483648, %v2399_v23  ;;  %v2409_v9 = vand.u32 2147483647, %v2399_v23  ;;  %vm2405_vm2 = vweird.f32 %v2399_v23 }
 0x6bc   :  { %4288 = vrcp.f32 %v2418_v11  ;;  %v2390_v0 = vpop.f32.mrf.mxu3  ;;  %v2377_v30 = vpop.f32.mrf.mxu2  ;;  %v2430_v41 = vand.u32 2147483648, %v2418_v11  ;;  %vm2424_vm3 = vweird.f32 %v2418_v11 }
 0x6bd   :  { %v2428_v30 = vand.u32 2147483647, %v2418_v11  ;;  %v2412_v46 = vor.u32 1.1754944e-38, %v2411_v37  ;;  %vm2410_vm5 = vcmp.eq.f32.partialorder %v2409_v9, 8.507059e+37 }
 0x6be   :  { %v2431_v15 = vor.u32 1.1754944e-38, %v2430_v41 }
 0x6bf   :  { %v4285_v28 = vpop.eup %4284  ;;  %vm2429_vm7 = vcmp.eq.f32.partialorder %v2428_v30, 8.507059e+37 }
 0x6c0   :  { %v2438_v63 = vadd.f32 1.0, %v4285_v28 }
 0x6c1   :  { %v4287_v61 = vpop.eup %4286 }
 0x6c2   :  { %v4289_v1 = vpop.eup %4288  ;;  %v2401_v42 = vmul.f32 %v4287_v61, %v2399_v23  ;;  %4290 = vrcp.f32 %v2438_v63  ;;  %vm2406_vm0 = vweird.f32 %v4287_v61  ;;  %vm2444_vm9 = vweird.f32 %v2438_v63 }
 0x6c3   :  { %v2420_v56 = vmul.f32 %v4289_v1, %v2418_v11  ;;  %4292 = vtanh.f32 %v2394_v62  ;;  %vm2425_vm1 = vweird.f32 %v4289_v1  ;;  %vm2407_vm4 = vmor %vm2405_vm2, %vm2406_vm0  ;;  %v2450_v11 = vand.u32 2147483648, %v2438_v63 }
 0x6c4   :  { %v2402_v31 = vsub.f32 1.0, %v2401_v42  ;;  %vm2426_vm6 = vmor %vm2424_vm3, %vm2425_vm1 }
 0x6c5   :  { %v2421_v29 = vsub.f32 1.0, %v2420_v56  ;;  %v2451_v41 = vor.u32 1.1754944e-38, %v2450_v11 }
 0x6c6   :  { %v2403_v6 = vmul.f32 %v4287_v61, %v2402_v31 }
 0x6c7   :  { %v2422_v0 = vmul.f32 %v4289_v1, %v2421_v29 }
 0x6c8   :  { %v4291_v10 = vpop.eup %4290  ;;  %v2404_v13 = vadd.f32 %v4287_v61, %v2403_v6 }
 0x6c9   :  { %v2423_v28 = vadd.f32 %v4289_v1, %v2422_v0  ;;  %v2440_v20 = vmul.f32 %v4291_v10, %v2438_v63  ;;  %v4293_v62 = vpop.eup %4292  ;;  %vm2445_vm8 = vweird.f32 %v4291_v10 }
 0x6ca   :  { %v2408_v42 = vsel %vm2407_vm4, %v4287_v61, %v2404_v13  ;;  %v2448_v61 = vand.u32 2147483647, %v2438_v63  ;;  %vm2446_vm10 = vmor %vm2444_vm9, %vm2445_vm8 }
 0x6cb   :  { %v2413_v56 = vsel %vm2410_vm5, %v2412_v46, %v2408_v42  ;;  %v2427_v31 = vsel %vm2426_vm6, %v4289_v1, %v2423_v28  ;;  %v2441_v51 = vsub.f32 1.0, %v2440_v20  ;;  %v2124_v28 = vadd.f32 %v5451_v22, %v5507_v24 }
 0x6cc   :  { %v2432_v29 = vsel %vm2429_vm7, %v2431_v15, %v2427_v31  ;;  %v2456_v52 = vmul.f32 %v4293_v62, %v2413_v56  ;;  %vm2449_vm11 = vcmp.eq.f32.partialorder %v2448_v61, 8.507059e+37 }
 0x6cd   :  { %v2455_v44 = vmul.f32 0.0, %v2432_v29  ;;  %v2442_v12 = vmul.f32 %v4291_v10, %v2441_v51 }
 0x6cf   :  { %v5513_v6 = vadd.f32 %v2456_v52, %v2455_v44  ;;  %v2443_v23 = vadd.f32 %v4291_v10, %v2442_v12  ;;  %v2037_v44 = vadd.f32 %v5445_v54, %v5497_v7  ;;  %v2066_v52 = vadd.f32 %v5447_v35, %v5499_v50 }
 0x6d1   :  { %4294 = vtanh.f32 %v5513_v6  ;;  %v2447_v37 = vsel %vm2446_vm10, %v4291_v10, %v2443_v23 }
 0x6d2   :  { %v2452_v9 = vsel %vm2449_vm11, %v2451_v41, %v2447_v37 }
 0x6d7   :  { %v4295_v1 = vpop.eup %4294 }
 0x6d8   :  { %v2459_v0 = vmul.f32 %v4295_v1, %v2452_v9  ;;  %v5865_v1 = vld [vmem:[#allocation48_spill] sm:$0xff]  ;;  %v5866_v9 = vld [vmem:[#allocation23_spill] sm:$0xff] }
 0x6d9   :  { %v2095_v22 = vadd.f32 %v5866_v9, %v5865_v1 }
 0x6da   :  { %v2460_v15 = vpack.c.bf16 %v2459_v0, %v2459_v0 }
 0x6dc   :  { %2463 = vst [vmem:[#allocation3] sm:$0xf] %v2460_v15 }
 0x6dd   :  { %2462 = vst [vmem:[#allocation4] sm:$0xf] %v2460_v15 }
 0x6e4   :  { %v2468_v51 = vld [vmem:[#allocation4] sm:$0xf] }
 0x6e5   :  { %2477 = vmatmul.bf16.vlgmr.msrb.gmra.mxu0 %v2468_v51  ;;  %2490 = vmatmul.bf16.vlgmr.msrb.gmra.mxu1 %v2468_v51 }
 0x6e6   :  { %2503 = vmatmul.bf16.vlgmr.msrb.gmra.mxu2 %v2468_v51  ;;  %2516 = vmatmul.bf16.vlgmr.msrb.gmra.mxu3 %v2468_v51 }
 0x6e7   :  { %2727 = vmatpush.bf16.msrb.mxu0 %v5211_v38  ;;  %2740 = vmatpush.bf16.msrb.mxu1 %v5213_v21 }
 0x6e8   :  { %2753 = vmatpush.bf16.msrb.mxu2 %v5218_v43  ;;  %2766 = vmatpush.bf16.msrb.mxu3 %v5215_v32 }
 0x6eb   :  { %2728 = vmatpush.bf16.msrb.mxu0 %v5224_v34  ;;  %2741 = vmatpush.bf16.msrb.mxu1 %v5229_v14 }
 0x6ec   :  { %2754 = vmatpush.bf16.msrb.mxu2 %v5240_v36  ;;  %2767 = vmatpush.bf16.msrb.mxu3 %v5238_v25 }
 0x6ef   :  { %2729 = vmatpush.bf16.msrb.mxu0 %v5244_v45  ;;  %2742 = vmatpush.bf16.msrb.mxu1 %v5246_v57 }
 0x6f0   :  { %2755 = vmatpush.bf16.msrb.mxu2 %v5279_v33  ;;  %2768 = vmatpush.bf16.msrb.mxu3 %v5252_v40 }
 0x6f3   :  { %2730 = vmatpush.bf16.msrb.mxu0 %v5258_v48  ;;  %2743 = vmatpush.bf16.msrb.mxu1 %v5260_v49 }
 0x6f4   :  { %2756 = vmatpush.bf16.msrb.mxu2 %v5300_v58  ;;  %2769 = vmatpush.bf16.msrb.mxu3 %v5277_v26 }
 0x6f7   :  { %2731 = vmatpush.bf16.msrb.mxu0 %v5289_v3  ;;  %2744 = vmatpush.bf16.msrb.mxu1 %v5296_v5 }
 0x6f8   :  { %2757 = vmatpush.bf16.msrb.mxu2 %v5329_v59  ;;  %2770 = vmatpush.bf16.msrb.mxu3 %v5298_v55 }
 0x6fb   :  { %2732 = vmatpush.bf16.msrb.mxu0 %v5321_v27  ;;  %2745 = vmatpush.bf16.msrb.mxu1 %v5327_v53 }
 0x6fc   :  { %2758 = vmatpush.bf16.msrb.mxu2 %v5350_v4  ;;  %2771 = vmatpush.bf16.msrb.mxu3 %v5337_v47 }
 0x6ff   :  { %2733 = vmatpush.bf16.msrb.mxu0 %v5344_v60  ;;  %2746 = vmatpush.bf16.msrb.mxu1 %v5348_v2 }
 0x700   :  { %2759 = vmatpush.bf16.msrb.mxu2 %v5367_v8  ;;  %2772 = vmatpush.bf16.msrb.mxu3 %v5353_v16 }
 0x703   :  { %2734 = vmatpush.bf16.msrb.mxu0 %v5359_v18  ;;  %2747 = vmatpush.bf16.msrb.mxu1 %v5365_v19 }
 0x704   :  { %2760 = vmatpush.bf16.msrb.mxu2 %v5376_v17  ;;  %2773 = vmatpush.bf16.msrb.mxu3 %v5370_v39 }
 0x762   :  { %v2478_v10 = vpop.f32.mrf.mxu0  ;;  %v2491_v12 = vpop.f32.mrf.mxu1 }
 0x763   :  { %v2521_v63 = vadd.f32 %v2478_v10, %v2037_v44  ;;  %v2522_v30 = vadd.f32 %v2491_v12, %v2066_v52 }
 0x765   :  { %v3983_v13 = vmul.f32 -1.442695, %v2521_v63  ;;  %v3984_v46 = vmul.f32 -1.442695, %v2522_v30 }
 0x767   :  { %4296 = vpow2.f32 %v3983_v13 }
 0x768   :  { %4298 = vpow2.f32 %v3984_v46 }
 0x769   :  { %v2504_v20 = vpop.f32.mrf.mxu2  ;;  %v2517_v42 = vpop.f32.mrf.mxu3 }
 0x76a   :  { %v2524_v62 = vadd.f32 %v2517_v42, %v2124_v28  ;;  %v2480_v56 = vpop.f32.mrf.mxu0  ;;  %v2493_v31 = vpop.f32.mrf.mxu1  ;;  %v2523_v51 = vadd.f32 %v2504_v20, %v2095_v22 }
 0x76c   :  { %v3985_v54 = vmul.f32 -1.442695, %v2524_v62 }
 0x76d   :  { %v4297_v29 = vpop.eup %4296 }
 0x76e   :  { %v4299_v23 = vpop.eup %4298  ;;  %v2528_v35 = vadd.f32 1.0, %v4297_v29  ;;  %4300 = vpow2.f32 %v3985_v54 }
 0x76f   :  { %v2547_v11 = vadd.f32 1.0, %v4299_v23 }
 0x770   :  { %4302 = vrcp.f32 %v2528_v35  ;;  %v2540_v30 = vand.u32 2147483648, %v2528_v35  ;;  %v2538_v28 = vand.u32 2147483647, %v2528_v35  ;;  %vm2534_vm14 = vweird.f32 %v2528_v35 }
 0x771   :  { %4304 = vrcp.f32 %v2547_v11  ;;  %v2506_v61 = vpop.f32.mrf.mxu2  ;;  %v2519_v37 = vpop.f32.mrf.mxu3  ;;  %v2559_v13 = vand.u32 2147483648, %v2547_v11  ;;  %v2557_v62 = vand.u32 2147483647, %v2547_v11  ;;  %vm2553_vm15 = vweird.f32 %v2547_v11 }
 0x772   :  { %v2541_v20 = vor.u32 1.1754944e-38, %v2540_v30  ;;  %vm2539_vm2 = vcmp.eq.f32.partialorder %v2538_v28, 8.507059e+37 }
 0x773   :  { %v2560_v23 = vor.u32 1.1754944e-38, %v2559_v13  ;;  %vm2558_vm3 = vcmp.eq.f32.partialorder %v2557_v62, 8.507059e+37 }
 0x774   :  { %v4301_v41 = vpop.eup %4300 }
 0x775   :  { %v2567_v0 = vadd.f32 1.0, %v4301_v41 }
 0x776   :  { %v4303_v15 = vpop.eup %4302 }
 0x777   :  { %v4305_v44 = vpop.eup %4304  ;;  %v2530_v52 = vmul.f32 %v4303_v15, %v2528_v35  ;;  %4306 = vrcp.f32 %v2567_v0  ;;  %vm2535_vm12 = vweird.f32 %v4303_v15  ;;  %vm2573_vm5 = vweird.f32 %v2567_v0 }
 0x778   :  { %v2549_v10 = vmul.f32 %v4305_v44, %v2547_v11  ;;  %4308 = vtanh.f32 %v2523_v51  ;;  %vm2554_vm13 = vweird.f32 %v4305_v44  ;;  %vm2536_vm0 = vmor %vm2534_vm14, %vm2535_vm12 }
 0x779   :  { %v2531_v12 = vsub.f32 1.0, %v2530_v52  ;;  %vm2555_vm1 = vmor %vm2553_vm15, %vm2554_vm13 }
 0x77a   :  { %v2550_v63 = vsub.f32 1.0, %v2549_v10 }
 0x77b   :  { %v2532_v46 = vmul.f32 %v4303_v15, %v2531_v12 }
 0x77c   :  { %v2551_v42 = vmul.f32 %v4305_v44, %v2550_v63  ;;  %v2579_v63 = vand.u32 2147483648, %v2567_v0 }
 0x77d   :  { %v4307_v56 = vpop.eup %4306  ;;  %v2533_v31 = vadd.f32 %v4303_v15, %v2532_v46 }
 0x77e   :  { %v2552_v54 = vadd.f32 %v4305_v44, %v2551_v42  ;;  %v2569_v29 = vmul.f32 %v4307_v56, %v2567_v0  ;;  %v4309_v37 = vpop.eup %4308  ;;  %vm2574_vm4 = vweird.f32 %v4307_v56  ;;  %v2580_v13 = vor.u32 1.1754944e-38, %v2579_v63 }
 0x77f   :  { %v2537_v61 = vsel %vm2536_vm0, %v4303_v15, %v2533_v31  ;;  %v2577_v15 = vand.u32 2147483647, %v2567_v0  ;;  %vm2575_vm6 = vmor %vm2573_vm5, %vm2574_vm4  ;;  %v5867_v0 = vld [vmem:[#allocation24_spill] sm:$0xff]  ;;  %v5868_v31 = vld [vmem:[#allocation25_spill] sm:$0xff] }
 0x780   :  { %v2542_v41 = vsel %vm2539_vm2, %v2541_v20, %v2537_v61  ;;  %v2556_v9 = vsel %vm2555_vm1, %v4305_v44, %v2552_v54  ;;  %v2570_v22 = vsub.f32 1.0, %v2569_v29  ;;  %v2069_v20 = vadd.f32 %v5868_v31, %v5499_v50 }
 0x781   :  { %v2561_v51 = vsel %vm2558_vm3, %v2560_v23, %v2556_v9  ;;  %v2585_v52 = vmul.f32 %v4309_v37, %v2542_v41  ;;  %vm2578_vm7 = vcmp.eq.f32.partialorder %v2577_v15, 8.507059e+37  ;;  %v5869_v9 = vld [vmem:[#allocation26_spill] sm:$0xff] }
 0x782   :  { %v2584_v10 = vmul.f32 %v2561_v51, %v5513_v6  ;;  %v2571_v12 = vmul.f32 %v4307_v56, %v2570_v22  ;;  %v2127_v22 = vadd.f32 %v5869_v9, %v5507_v24 }
 0x784   :  { %v5557_v35 = vadd.f32 %v2585_v52, %v2584_v10  ;;  %v2572_v11 = vadd.f32 %v4307_v56, %v2571_v12 }
 0x786   :  { %4310 = vtanh.f32 %v5557_v35  ;;  %v2576_v30 = vsel %vm2575_vm6, %v4307_v56, %v2572_v11  ;;  %v2040_v56 = vadd.f32 %v5867_v0, %v5497_v7 }
 0x787   :  { %v2581_v46 = vsel %vm2578_vm7, %v2580_v13, %v2576_v30 }
 0x78c   :  { %v4311_v44 = vpop.eup %4310 }
 0x78d   :  { %v2588_v28 = vmul.f32 %v4311_v44, %v2581_v46 }
 0x78f   :  { %v2589_v42 = vpack.c.bf16 %v2588_v28, %v2588_v28 }
 0x791   :  { %2592 = vst [vmem:[#allocation3 + $0x4] sm:$0xf] %v2589_v42 }
 0x792   :  { %2591 = vst [vmem:[#allocation4] sm:$0xf] %v2589_v42 }
 0x798   :  { %v3367_v6 = vld [vmem:[#allocation3] sm:$0xff]  }
 0x799   :  { %v2597_v62 = vld [vmem:[#allocation4] sm:$0xf]  ;;  %3375 = vst [vmem:[#allocation17] sm:$0xff] %v3367_v6   ;;  %v5870_v6 = vld [vmem:[#allocation28_spill] sm:$0xff] }
 0x79a   :  { %2606 = vmatmul.bf16.vlgmr.msra.gmra.mxu0 %v2597_v62  ;;  %2619 = vmatmul.bf16.vlgmr.msra.gmra.mxu1 %v2597_v62 }
 0x79b   :  { %2632 = vmatmul.bf16.vlgmr.msra.gmra.mxu2 %v2597_v62  ;;  %2645 = vmatmul.bf16.vlgmr.msra.gmra.mxu3 %v2597_v62  ;;  %v2098_v62 = vadd.f32 %v5870_v6, %v5865_v1 }
 0x79c   :  { %2856 = vmatpush.bf16.msra.mxu0 %v5211_v38  ;;  %2869 = vmatpush.bf16.msra.mxu1 %v5213_v21 }
 0x79d   :  { %2882 = vmatpush.bf16.msra.mxu2 %v5218_v43  ;;  %2895 = vmatpush.bf16.msra.mxu3 %v5215_v32 }
 0x7a0   :  { %2857 = vmatpush.bf16.msra.mxu0 %v5224_v34  ;;  %2870 = vmatpush.bf16.msra.mxu1 %v5229_v14 }
 0x7a1   :  { %2883 = vmatpush.bf16.msra.mxu2 %v5240_v36  ;;  %2896 = vmatpush.bf16.msra.mxu3 %v5238_v25 }
 0x7a4   :  { %2858 = vmatpush.bf16.msra.mxu0 %v5244_v45  ;;  %2871 = vmatpush.bf16.msra.mxu1 %v5246_v57 }
 0x7a5   :  { %2884 = vmatpush.bf16.msra.mxu2 %v5279_v33  ;;  %2897 = vmatpush.bf16.msra.mxu3 %v5252_v40 }
 0x7a8   :  { %2859 = vmatpush.bf16.msra.mxu0 %v5258_v48  ;;  %2872 = vmatpush.bf16.msra.mxu1 %v5260_v49 }
 0x7a9   :  { %2885 = vmatpush.bf16.msra.mxu2 %v5300_v58  ;;  %2898 = vmatpush.bf16.msra.mxu3 %v5277_v26 }
 0x7ac   :  { %2860 = vmatpush.bf16.msra.mxu0 %v5289_v3  ;;  %2873 = vmatpush.bf16.msra.mxu1 %v5296_v5 }
 0x7ad   :  { %2886 = vmatpush.bf16.msra.mxu2 %v5329_v59  ;;  %2899 = vmatpush.bf16.msra.mxu3 %v5298_v55 }
 0x7b0   :  { %2861 = vmatpush.bf16.msra.mxu0 %v5321_v27  ;;  %2874 = vmatpush.bf16.msra.mxu1 %v5327_v53 }
 0x7b1   :  { %2887 = vmatpush.bf16.msra.mxu2 %v5350_v4  ;;  %2900 = vmatpush.bf16.msra.mxu3 %v5337_v47 }
 0x7b4   :  { %2862 = vmatpush.bf16.msra.mxu0 %v5344_v60  ;;  %2875 = vmatpush.bf16.msra.mxu1 %v5348_v2 }
 0x7b5   :  { %2888 = vmatpush.bf16.msra.mxu2 %v5367_v8  ;;  %2901 = vmatpush.bf16.msra.mxu3 %v5353_v16 }
 0x7b8   :  { %2863 = vmatpush.bf16.msra.mxu0 %v5359_v18  ;;  %2876 = vmatpush.bf16.msra.mxu1 %v5365_v19 }
 0x7b9   :  { %2889 = vmatpush.bf16.msra.mxu2 %v5376_v17  ;;  %2902 = vmatpush.bf16.msra.mxu3 %v5370_v39 }
 0x817   :  { %v2607_v54 = vpop.f32.mrf.mxu0  ;;  %v2620_v29 = vpop.f32.mrf.mxu1 }
 0x818   :  { %v2650_v23 = vadd.f32 %v2607_v54, %v2040_v56  ;;  %v2651_v61 = vadd.f32 %v2620_v29, %v2069_v20 }
 0x81a   :  { %v3986_v37 = vmul.f32 -1.442695, %v2650_v23  ;;  %v3987_v41 = vmul.f32 -1.442695, %v2651_v61 }
 0x81c   :  { %4312 = vpow2.f32 %v3986_v37 }
 0x81d   :  { %4314 = vpow2.f32 %v3987_v41 }
 0x81e   :  { %v2633_v51 = vpop.f32.mrf.mxu2  ;;  %v2646_v52 = vpop.f32.mrf.mxu3 }
 0x81f   :  { %v2653_v10 = vadd.f32 %v2646_v52, %v2127_v22  ;;  %v2609_v12 = vpop.f32.mrf.mxu0  ;;  %v2622_v11 = vpop.f32.mrf.mxu1  ;;  %v2652_v31 = vadd.f32 %v2633_v51, %v2098_v62 }
 0x821   :  { %v3988_v63 = vmul.f32 -1.442695, %v2653_v10 }
 0x822   :  { %v4313_v15 = vpop.eup %4312 }
 0x823   :  { %v4315_v30 = vpop.eup %4314  ;;  %v2657_v13 = vadd.f32 1.0, %v4313_v15  ;;  %4316 = vpow2.f32 %v3988_v63 }
 0x824   :  { %v2676_v44 = vadd.f32 1.0, %v4315_v30 }
 0x825   :  { %4318 = vrcp.f32 %v2657_v13  ;;  %v2669_v37 = vand.u32 2147483648, %v2657_v13  ;;  %v2667_v22 = vand.u32 2147483647, %v2657_v13  ;;  %vm2663_vm10 = vweird.f32 %v2657_v13 }
 0x826   :  { %4320 = vrcp.f32 %v2676_v44  ;;  %v2635_v46 = vpop.f32.mrf.mxu2  ;;  %v2648_v28 = vpop.f32.mrf.mxu3  ;;  %v2688_v41 = vand.u32 2147483648, %v2676_v44  ;;  %v2686_v10 = vand.u32 2147483647, %v2676_v44  ;;  %vm2682_vm11 = vweird.f32 %v2676_v44 }
 0x827   :  { %v2670_v51 = vor.u32 1.1754944e-38, %v2669_v37  ;;  %vm2668_vm14 = vcmp.eq.f32.partialorder %v2667_v22, 8.507059e+37 }
 0x828   :  { %v2689_v30 = vor.u32 1.1754944e-38, %v2688_v41  ;;  %vm2687_vm15 = vcmp.eq.f32.partialorder %v2686_v10, 8.507059e+37 }
 0x829   :  { %v4317_v42 = vpop.eup %4316 }
 0x82a   :  { %v2696_v0 = vadd.f32 1.0, %v4317_v42 }
 0x82b   :  { %v4319_v56 = vpop.eup %4318 }
 0x82c   :  { %v4321_v20 = vpop.eup %4320  ;;  %v2659_v54 = vmul.f32 %v4319_v56, %v2657_v13  ;;  %4322 = vrcp.f32 %v2696_v0  ;;  %vm2664_vm8 = vweird.f32 %v4319_v56  ;;  %vm2702_vm1 = vweird.f32 %v2696_v0 }
 0x82d   :  { %v2678_v29 = vmul.f32 %v4321_v20, %v2676_v44  ;;  %4324 = vtanh.f32 %v2652_v31  ;;  %vm2683_vm9 = vweird.f32 %v4321_v20  ;;  %vm2665_vm12 = vmor %vm2663_vm10, %vm2664_vm8 }
 0x82e   :  { %v2660_v23 = vsub.f32 1.0, %v2659_v54  ;;  %vm2684_vm13 = vmor %vm2682_vm11, %vm2683_vm9 }
 0x82f   :  { %v2679_v61 = vsub.f32 1.0, %v2678_v29 }
 0x830   :  { %v2661_v9 = vmul.f32 %v4319_v56, %v2660_v23 }
 0x831   :  { %v2680_v52 = vmul.f32 %v4321_v20, %v2679_v61  ;;  %v2708_v61 = vand.u32 2147483648, %v2696_v0 }
 0x832   :  { %v4323_v12 = vpop.eup %4322  ;;  %v2662_v11 = vadd.f32 %v4319_v56, %v2661_v9 }
 0x833   :  { %v2681_v63 = vadd.f32 %v4321_v20, %v2680_v52  ;;  %v2698_v15 = vmul.f32 %v4323_v12, %v2696_v0  ;;  %v4325_v28 = vpop.eup %4324  ;;  %vm2703_vm0 = vweird.f32 %v4323_v12  ;;  %v2709_v41 = vor.u32 1.1754944e-38, %v2708_v61 }
 0x834   :  { %v2666_v46 = vsel %vm2665_vm12, %v4319_v56, %v2662_v11  ;;  %v2706_v56 = vand.u32 2147483647, %v2696_v0  ;;  %vm2704_vm2 = vmor %vm2702_vm1, %vm2703_vm0  ;;  %v5871_v0 = vld [vmem:[#allocation27_spill] sm:$0xff] }
 0x835   :  { %v2671_v42 = vsel %vm2668_vm14, %v2670_v51, %v2666_v46  ;;  %v2685_v6 = vsel %vm2684_vm13, %v4321_v20, %v2681_v63  ;;  %v2699_v62 = vsub.f32 1.0, %v2698_v15  ;;  %v2042_v10 = vadd.f32 %v5871_v0, %v5497_v7 }
 0x836   :  { %v2690_v31 = vsel %vm2687_vm15, %v2689_v30, %v2685_v6  ;;  %v2714_v54 = vmul.f32 %v4325_v28, %v2671_v42  ;;  %vm2707_vm3 = vcmp.eq.f32.partialorder %v2706_v56, 8.507059e+37  ;;  %v5873_v42 = vld [vmem:[#allocation30_spill] sm:$0xff] }
 0x837   :  { %v2713_v29 = vmul.f32 %v2690_v31, %v5557_v35  ;;  %v2700_v23 = vmul.f32 %v4323_v12, %v2699_v62  ;;  %v2129_v6 = vadd.f32 %v5873_v42, %v5507_v24 }
 0x839   :  { %v5601_v13 = vadd.f32 %v2714_v54, %v2713_v29  ;;  %v2701_v44 = vadd.f32 %v4323_v12, %v2700_v23 }
 0x83b   :  { %4326 = vtanh.f32 %v5601_v13  ;;  %v2705_v37 = vsel %vm2704_vm2, %v4323_v12, %v2701_v44  ;;  %v5872_v12 = vld [vmem:[#allocation29_spill] sm:$0xff] }
 0x83c   :  { %v2710_v9 = vsel %vm2707_vm3, %v2709_v41, %v2705_v37  ;;  %v2071_v11 = vadd.f32 %v5872_v12, %v5499_v50 }
 0x841   :  { %v4327_v20 = vpop.eup %4326 }
 0x842   :  { %v2717_v22 = vmul.f32 %v4327_v20, %v2710_v9 }
 0x844   :  { %v2718_v52 = vpack.c.bf16 %v2717_v22, %v2717_v22 }
 0x846   :  { %2721 = vst [vmem:[#allocation3 + $0x8] sm:$0xf] %v2718_v52 }
 0x847   :  { %2720 = vst [vmem:[#allocation4] sm:$0xf] %v2718_v52  ;;  %v5874_v52 = vld [vmem:[#allocation31_spill] sm:$0xff] }
 0x84e   :  { %v2726_v35 = vld [vmem:[#allocation4] sm:$0xf] }
 0x84f   :  { %2735 = vmatmul.bf16.vlgmr.msrb.gmra.mxu0 %v2726_v35  ;;  %2748 = vmatmul.bf16.vlgmr.msrb.gmra.mxu1 %v2726_v35 }
 0x850   :  { %2761 = vmatmul.bf16.vlgmr.msrb.gmra.mxu2 %v2726_v35  ;;  %2774 = vmatmul.bf16.vlgmr.msrb.gmra.mxu3 %v2726_v35  ;;  %v2100_v35 = vadd.f32 %v5874_v52, %v5865_v1 }
 0x851   :  { %2985 = vmatpush.bf16.msrb.mxu0 %v5211_v38  ;;  %2998 = vmatpush.bf16.msrb.mxu1 %v5213_v21 }
 0x852   :  { %3011 = vmatpush.bf16.msrb.mxu2 %v5218_v43  ;;  %3024 = vmatpush.bf16.msrb.mxu3 %v5215_v32 }
 0x855   :  { %2986 = vmatpush.bf16.msrb.mxu0 %v5224_v34  ;;  %2999 = vmatpush.bf16.msrb.mxu1 %v5229_v14 }
 0x856   :  { %3012 = vmatpush.bf16.msrb.mxu2 %v5240_v36  ;;  %3025 = vmatpush.bf16.msrb.mxu3 %v5238_v25 }
 0x859   :  { %2987 = vmatpush.bf16.msrb.mxu0 %v5244_v45  ;;  %3000 = vmatpush.bf16.msrb.mxu1 %v5246_v57 }
 0x85a   :  { %3013 = vmatpush.bf16.msrb.mxu2 %v5279_v33  ;;  %3026 = vmatpush.bf16.msrb.mxu3 %v5252_v40 }
 0x85d   :  { %2988 = vmatpush.bf16.msrb.mxu0 %v5258_v48  ;;  %3001 = vmatpush.bf16.msrb.mxu1 %v5260_v49 }
 0x85e   :  { %3014 = vmatpush.bf16.msrb.mxu2 %v5300_v58  ;;  %3027 = vmatpush.bf16.msrb.mxu3 %v5277_v26 }
 0x861   :  { %2989 = vmatpush.bf16.msrb.mxu0 %v5289_v3  ;;  %3002 = vmatpush.bf16.msrb.mxu1 %v5296_v5 }
 0x862   :  { %3015 = vmatpush.bf16.msrb.mxu2 %v5329_v59  ;;  %3028 = vmatpush.bf16.msrb.mxu3 %v5298_v55 }
 0x865   :  { %2990 = vmatpush.bf16.msrb.mxu0 %v5321_v27  ;;  %3003 = vmatpush.bf16.msrb.mxu1 %v5327_v53 }
 0x866   :  { %3016 = vmatpush.bf16.msrb.mxu2 %v5350_v4  ;;  %3029 = vmatpush.bf16.msrb.mxu3 %v5337_v47 }
 0x869   :  { %2991 = vmatpush.bf16.msrb.mxu0 %v5344_v60  ;;  %3004 = vmatpush.bf16.msrb.mxu1 %v5348_v2 }
 0x86a   :  { %3017 = vmatpush.bf16.msrb.mxu2 %v5367_v8  ;;  %3030 = vmatpush.bf16.msrb.mxu3 %v5353_v16 }
 0x86d   :  { %2992 = vmatpush.bf16.msrb.mxu0 %v5359_v18  ;;  %3005 = vmatpush.bf16.msrb.mxu1 %v5365_v19 }
 0x86e   :  { %3018 = vmatpush.bf16.msrb.mxu2 %v5376_v17  ;;  %3031 = vmatpush.bf16.msrb.mxu3 %v5370_v39 }
 0x8cc   :  { %v2736_v51 = vpop.f32.mrf.mxu0  ;;  %v2749_v63 = vpop.f32.mrf.mxu1 }
 0x8cd   :  { %v2779_v15 = vadd.f32 %v2736_v51, %v2042_v10  ;;  %v2780_v30 = vadd.f32 %v2749_v63, %v2071_v11 }
 0x8cf   :  { %v3989_v46 = vmul.f32 -1.442695, %v2779_v15  ;;  %v3990_v28 = vmul.f32 -1.442695, %v2780_v30 }
 0x8d1   :  { %4328 = vpow2.f32 %v3989_v46 }
 0x8d2   :  { %4330 = vpow2.f32 %v3990_v28 }
 0x8d3   :  { %v2762_v62 = vpop.f32.mrf.mxu2  ;;  %v2775_v31 = vpop.f32.mrf.mxu3 }
 0x8d4   :  { %v2782_v54 = vadd.f32 %v2775_v31, %v2129_v6  ;;  %v2738_v29 = vpop.f32.mrf.mxu0  ;;  %v2751_v23 = vpop.f32.mrf.mxu1  ;;  %v2781_v12 = vadd.f32 %v2762_v62, %v2100_v35 }
 0x8d6   :  { %v3991_v44 = vmul.f32 -1.442695, %v2782_v54 }
 0x8d7   :  { %v4329_v61 = vpop.eup %4328 }
 0x8d8   :  { %v4331_v56 = vpop.eup %4330  ;;  %v2786_v37 = vadd.f32 1.0, %v4329_v61  ;;  %4332 = vpow2.f32 %v3991_v44 }
 0x8d9   :  { %v2805_v41 = vadd.f32 1.0, %v4331_v56 }
 0x8da   :  { %4334 = vrcp.f32 %v2786_v37  ;;  %v2798_v46 = vand.u32 2147483648, %v2786_v37  ;;  %v2796_v6 = vand.u32 2147483647, %v2786_v37  ;;  %vm2792_vm6 = vweird.f32 %v2786_v37 }
 0x8db   :  { %4336 = vrcp.f32 %v2805_v41  ;;  %v2764_v20 = vpop.f32.mrf.mxu2  ;;  %v2777_v9 = vpop.f32.mrf.mxu3  ;;  %v2817_v28 = vand.u32 2147483648, %v2805_v41  ;;  %v2815_v54 = vand.u32 2147483647, %v2805_v41  ;;  %vm2811_vm7 = vweird.f32 %v2805_v41 }
 0x8dc   :  { %v2799_v62 = vor.u32 1.1754944e-38, %v2798_v46  ;;  %vm2797_vm10 = vcmp.eq.f32.partialorder %v2796_v6, 8.507059e+37 }
 0x8dd   :  { %v2818_v56 = vor.u32 1.1754944e-38, %v2817_v28  ;;  %vm2816_vm11 = vcmp.eq.f32.partialorder %v2815_v54, 8.507059e+37 }
 0x8de   :  { %v4333_v22 = vpop.eup %4332 }
 0x8df   :  { %v2825_v0 = vadd.f32 1.0, %v4333_v22 }
 0x8e0   :  { %v4335_v10 = vpop.eup %4334 }
 0x8e1   :  { %v4337_v11 = vpop.eup %4336  ;;  %v2788_v51 = vmul.f32 %v4335_v10, %v2786_v37  ;;  %4338 = vrcp.f32 %v2825_v0  ;;  %vm2793_vm4 = vweird.f32 %v4335_v10  ;;  %vm2831_vm13 = vweird.f32 %v2825_v0 }
 0x8e2   :  { %v2807_v63 = vmul.f32 %v4337_v11, %v2805_v41  ;;  %4340 = vtanh.f32 %v2781_v12  ;;  %vm2812_vm5 = vweird.f32 %v4337_v11  ;;  %vm2794_vm8 = vmor %vm2792_vm6, %vm2793_vm4 }
 0x8e3   :  { %v2789_v15 = vsub.f32 1.0, %v2788_v51  ;;  %vm2813_vm9 = vmor %vm2811_vm7, %vm2812_vm5 }
 0x8e4   :  { %v2808_v30 = vsub.f32 1.0, %v2807_v63 }
 0x8e5   :  { %v2790_v42 = vmul.f32 %v4335_v10, %v2789_v15 }
 0x8e6   :  { %v2809_v31 = vmul.f32 %v4337_v11, %v2808_v30  ;;  %v2837_v30 = vand.u32 2147483648, %v2825_v0 }
 0x8e7   :  { %v4339_v29 = vpop.eup %4338  ;;  %v2791_v23 = vadd.f32 %v4335_v10, %v2790_v42 }
 0x8e8   :  { %v2810_v44 = vadd.f32 %v4337_v11, %v2809_v31  ;;  %v2827_v61 = vmul.f32 %v4339_v29, %v2825_v0  ;;  %v4341_v9 = vpop.eup %4340  ;;  %vm2832_vm12 = vweird.f32 %v4339_v29  ;;  %v2838_v28 = vor.u32 1.1754944e-38, %v2837_v30 }
 0x8e9   :  { %v2795_v20 = vsel %vm2794_vm8, %v4335_v10, %v2791_v23  ;;  %v2835_v10 = vand.u32 2147483647, %v2825_v0  ;;  %vm2833_vm14 = vmor %vm2831_vm13, %vm2832_vm12  ;;  %v5875_v0 = vld [vmem:[#allocation32_spill] sm:$0xff]  ;;  %v5876_v23 = vld [vmem:[#allocation33_spill] sm:$0xff] }
 0x8ea   :  { %v2800_v22 = vsel %vm2797_vm10, %v2799_v62, %v2795_v20  ;;  %v2814_v52 = vsel %vm2813_vm9, %v4337_v11, %v2810_v44  ;;  %v2828_v35 = vsub.f32 1.0, %v2827_v61  ;;  %v2074_v62 = vadd.f32 %v5876_v23, %v5499_v50 }
 0x8eb   :  { %v2819_v12 = vsel %vm2816_vm11, %v2818_v56, %v2814_v52  ;;  %v2843_v51 = vmul.f32 %v4341_v9, %v2800_v22  ;;  %vm2836_vm15 = vcmp.eq.f32.partialorder %v2835_v10, 8.507059e+37  ;;  %v5877_v52 = vld [vmem:[#allocation34_spill] sm:$0xff] }
 0x8ec   :  { %v2842_v63 = vmul.f32 %v2819_v12, %v5601_v13  ;;  %v2829_v15 = vmul.f32 %v4339_v29, %v2828_v35  ;;  %v2132_v35 = vadd.f32 %v5877_v52, %v5507_v24 }
 0x8ee   :  { %v5645_v37 = vadd.f32 %v2843_v51, %v2842_v63  ;;  %v2830_v41 = vadd.f32 %v4339_v29, %v2829_v15 }
 0x8f0   :  { %4342 = vtanh.f32 %v5645_v37  ;;  %v2834_v46 = vsel %vm2833_vm14, %v4339_v29, %v2830_v41  ;;  %v2045_v29 = vadd.f32 %v5875_v0, %v5497_v7 }
 0x8f1   :  { %v2839_v42 = vsel %vm2836_vm15, %v2838_v28, %v2834_v46 }
 0x8f6   :  { %v4343_v11 = vpop.eup %4342 }
 0x8f7   :  { %v2846_v6 = vmul.f32 %v4343_v11, %v2839_v42 }
 0x8f9   :  { %v2847_v31 = vpack.c.bf16 %v2846_v6, %v2846_v6 }
 0x8fb   :  { %2850 = vst [vmem:[#allocation3 + $0xc] sm:$0xf] %v2847_v31 }
 0x8fc   :  { %2849 = vst [vmem:[#allocation4] sm:$0xf] %v2847_v31 }
 0x902   :  { %v3369_v13 = vld [vmem:[#allocation3 + $0x8] sm:$0xff]  }
 0x903   :  { %v2855_v54 = vld [vmem:[#allocation4] sm:$0xf]  ;;  %3377 = vst [vmem:[#allocation17 + $0x8] sm:$0xff] %v3369_v13   ;;  %v5878_v13 = vld [vmem:[#allocation36_spill] sm:$0xff] }
 0x904   :  { %2864 = vmatmul.bf16.vlgmr.msra.gmra.mxu0 %v2855_v54  ;;  %2877 = vmatmul.bf16.vlgmr.msra.gmra.mxu1 %v2855_v54 }
 0x905   :  { %2890 = vmatmul.bf16.vlgmr.msra.gmra.mxu2 %v2855_v54  ;;  %2903 = vmatmul.bf16.vlgmr.msra.gmra.mxu3 %v2855_v54  ;;  %v2103_v54 = vadd.f32 %v5878_v13, %v5865_v1 }
 0x906   :  { %3114 = vmatpush.bf16.msra.mxu0 %v5211_v38  ;;  %3127 = vmatpush.bf16.msra.mxu1 %v5213_v21 }
 0x907   :  { %3140 = vmatpush.bf16.msra.mxu2 %v5218_v43  ;;  %3153 = vmatpush.bf16.msra.mxu3 %v5215_v32 }
 0x90a   :  { %3115 = vmatpush.bf16.msra.mxu0 %v5224_v34  ;;  %3128 = vmatpush.bf16.msra.mxu1 %v5229_v14 }
 0x90b   :  { %3141 = vmatpush.bf16.msra.mxu2 %v5240_v36  ;;  %3154 = vmatpush.bf16.msra.mxu3 %v5238_v25 }
 0x90e   :  { %3116 = vmatpush.bf16.msra.mxu0 %v5244_v45  ;;  %3129 = vmatpush.bf16.msra.mxu1 %v5246_v57 }
 0x90f   :  { %3142 = vmatpush.bf16.msra.mxu2 %v5279_v33  ;;  %3155 = vmatpush.bf16.msra.mxu3 %v5252_v40 }
 0x912   :  { %3117 = vmatpush.bf16.msra.mxu0 %v5258_v48  ;;  %3130 = vmatpush.bf16.msra.mxu1 %v5260_v49 }
 0x913   :  { %3143 = vmatpush.bf16.msra.mxu2 %v5300_v58  ;;  %3156 = vmatpush.bf16.msra.mxu3 %v5277_v26 }
 0x916   :  { %3118 = vmatpush.bf16.msra.mxu0 %v5289_v3  ;;  %3131 = vmatpush.bf16.msra.mxu1 %v5296_v5 }
 0x917   :  { %3144 = vmatpush.bf16.msra.mxu2 %v5329_v59  ;;  %3157 = vmatpush.bf16.msra.mxu3 %v5298_v55 }
 0x91a   :  { %3119 = vmatpush.bf16.msra.mxu0 %v5321_v27  ;;  %3132 = vmatpush.bf16.msra.mxu1 %v5327_v53 }
 0x91b   :  { %3145 = vmatpush.bf16.msra.mxu2 %v5350_v4  ;;  %3158 = vmatpush.bf16.msra.mxu3 %v5337_v47 }
 0x91e   :  { %3120 = vmatpush.bf16.msra.mxu0 %v5344_v60  ;;  %3133 = vmatpush.bf16.msra.mxu1 %v5348_v2 }
 0x91f   :  { %3146 = vmatpush.bf16.msra.mxu2 %v5367_v8  ;;  %3159 = vmatpush.bf16.msra.mxu3 %v5353_v16 }
 0x922   :  { %3121 = vmatpush.bf16.msra.mxu0 %v5359_v18  ;;  %3134 = vmatpush.bf16.msra.mxu1 %v5365_v19 }
 0x923   :  { %3147 = vmatpush.bf16.msra.mxu2 %v5376_v17  ;;  %3160 = vmatpush.bf16.msra.mxu3 %v5370_v39 }
 0x981   :  { %v2865_v44 = vpop.f32.mrf.mxu0  ;;  %v2878_v61 = vpop.f32.mrf.mxu1 }
 0x982   :  { %v2908_v56 = vadd.f32 %v2865_v44, %v2045_v29  ;;  %v2909_v20 = vadd.f32 %v2878_v61, %v2074_v62 }
 0x984   :  { %v3992_v9 = vmul.f32 -1.442695, %v2908_v56  ;;  %v3993_v22 = vmul.f32 -1.442695, %v2909_v20 }
 0x986   :  { %4344 = vpow2.f32 %v3992_v9 }
 0x987   :  { %4346 = vpow2.f32 %v3993_v22 }
 0x988   :  { %v2891_v12 = vpop.f32.mrf.mxu2  ;;  %v2904_v51 = vpop.f32.mrf.mxu3 }
 0x989   :  { %v2911_v63 = vadd.f32 %v2904_v51, %v2132_v35  ;;  %v2867_v15 = vpop.f32.mrf.mxu0  ;;  %v2880_v41 = vpop.f32.mrf.mxu1  ;;  %v2910_v23 = vadd.f32 %v2891_v12, %v2103_v54 }
 0x98b   :  { %v3994_v30 = vmul.f32 -1.442695, %v2911_v63 }
 0x98c   :  { %v4345_v10 = vpop.eup %4344 }
 0x98d   :  { %v4347_v46 = vpop.eup %4346  ;;  %v2915_v28 = vadd.f32 1.0, %v4345_v10  ;;  %4348 = vpow2.f32 %v3994_v30 }
 0x98e   :  { %v2934_v11 = vadd.f32 1.0, %v4347_v46 }
 0x98f   :  { %4350 = vrcp.f32 %v2915_v28  ;;  %v2927_v9 = vand.u32 2147483648, %v2915_v28  ;;  %v2925_v35 = vand.u32 2147483647, %v2915_v28  ;;  %vm2921_vm2 = vweird.f32 %v2915_v28 }
 0x990   :  { %4352 = vrcp.f32 %v2934_v11  ;;  %v2893_v42 = vpop.f32.mrf.mxu2  ;;  %v2906_v6 = vpop.f32.mrf.mxu3  ;;  %v2946_v22 = vand.u32 2147483648, %v2934_v11  ;;  %v2944_v63 = vand.u32 2147483647, %v2934_v11  ;;  %vm2940_vm3 = vweird.f32 %v2934_v11 }
 0x991   :  { %v2928_v12 = vor.u32 1.1754944e-38, %v2927_v9  ;;  %vm2926_vm6 = vcmp.eq.f32.partialorder %v2925_v35, 8.507059e+37 }
 0x992   :  { %v2947_v46 = vor.u32 1.1754944e-38, %v2946_v22  ;;  %vm2945_vm7 = vcmp.eq.f32.partialorder %v2944_v63, 8.507059e+37 }
 0x993   :  { %v4349_v31 = vpop.eup %4348 }
 0x994   :  { %v2954_v0 = vadd.f32 1.0, %v4349_v31 }
 0x995   :  { %v4351_v29 = vpop.eup %4350 }
 0x996   :  { %v4353_v62 = vpop.eup %4352  ;;  %v2917_v44 = vmul.f32 %v4351_v29, %v2915_v28  ;;  %4354 = vrcp.f32 %v2954_v0  ;;  %vm2922_vm0 = vweird.f32 %v4351_v29  ;;  %vm2960_vm9 = vweird.f32 %v2954_v0 }
 0x997   :  { %v2936_v61 = vmul.f32 %v4353_v62, %v2934_v11  ;;  %4356 = vtanh.f32 %v2910_v23  ;;  %vm2941_vm1 = vweird.f32 %v4353_v62  ;;  %vm2923_vm4 = vmor %vm2921_vm2, %vm2922_vm0 }
 0x998   :  { %v2918_v56 = vsub.f32 1.0, %v2917_v44  ;;  %vm2942_vm5 = vmor %vm2940_vm3, %vm2941_vm1 }
 0x999   :  { %v2937_v20 = vsub.f32 1.0, %v2936_v61 }
 0x99a   :  { %v2919_v52 = vmul.f32 %v4351_v29, %v2918_v56 }
 0x99b   :  { %v2938_v51 = vmul.f32 %v4353_v62, %v2937_v20  ;;  %v2966_v20 = vand.u32 2147483648, %v2954_v0 }
 0x99c   :  { %v4355_v15 = vpop.eup %4354  ;;  %v2920_v41 = vadd.f32 %v4351_v29, %v2919_v52 }
 0x99d   :  { %v2939_v30 = vadd.f32 %v4353_v62, %v2938_v51  ;;  %v2956_v10 = vmul.f32 %v4355_v15, %v2954_v0  ;;  %v4357_v6 = vpop.eup %4356  ;;  %vm2961_vm8 = vweird.f32 %v4355_v15  ;;  %v2967_v22 = vor.u32 1.1754944e-38, %v2966_v20 }
 0x99e   :  { %v2924_v42 = vsel %vm2923_vm4, %v4351_v29, %v2920_v41  ;;  %v2964_v29 = vand.u32 2147483647, %v2954_v0  ;;  %vm2962_vm10 = vmor %vm2960_vm9, %vm2961_vm8 }
 0x99f   :  { %v2929_v31 = vsel %vm2926_vm6, %v2928_v12, %v2924_v42  ;;  %v2943_v13 = vsel %vm2942_vm5, %v4353_v62, %v2939_v30  ;;  %v2957_v54 = vsub.f32 1.0, %v2956_v10 }
 0x9a0   :  { %v2948_v23 = vsel %vm2945_vm7, %v2947_v46, %v2943_v13  ;;  %v2972_v44 = vmul.f32 %v4357_v6, %v2929_v31  ;;  %vm2965_vm11 = vcmp.eq.f32.partialorder %v2964_v29, 8.507059e+37 }
 0x9a1   :  { %v2971_v61 = vmul.f32 %v2948_v23, %v5645_v37  ;;  %v2958_v56 = vmul.f32 %v4355_v15, %v2957_v54 }
 0x9a3   :  { %v5689_v28 = vadd.f32 %v2972_v44, %v2971_v61  ;;  %v2959_v11 = vadd.f32 %v4355_v15, %v2958_v56 }
 0x9a5   :  { %4358 = vtanh.f32 %v5689_v28  ;;  %v2963_v9 = vsel %vm2962_vm10, %v4355_v15, %v2959_v11 }
 0x9a6   :  { %v2968_v52 = vsel %vm2965_vm11, %v2967_v22, %v2963_v9 }
 0x9ab   :  { %v4359_v62 = vpop.eup %4358 }
 0x9ac   :  { %v2975_v35 = vmul.f32 %v4359_v62, %v2968_v52 }
 0x9ae   :  { %v2976_v51 = vpack.c.bf16 %v2975_v35, %v2975_v35 }
 0x9b0   :  { %2979 = vst [vmem:[#allocation3 + $0x10] sm:$0xf] %v2976_v51 }
 0x9b1   :  { %2978 = vst [vmem:[#allocation4] sm:$0xf] %v2976_v51 }
 0x9b8   :  { %v2984_v37 = vld [vmem:[#allocation4] sm:$0xf] }
 0x9b9   :  { %2993 = vmatmul.bf16.vlgmr.msrb.gmra.mxu0 %v2984_v37  ;;  %3006 = vmatmul.bf16.vlgmr.msrb.gmra.mxu1 %v2984_v37 }
 0x9ba   :  { %3019 = vmatmul.bf16.vlgmr.msrb.gmra.mxu2 %v2984_v37  ;;  %3032 = vmatmul.bf16.vlgmr.msrb.gmra.mxu3 %v2984_v37 }
 0x9bb   :  { %3243 = vmatpush.bf16.msrb.mxu0 %v5211_v38  ;;  %3256 = vmatpush.bf16.msrb.mxu1 %v5213_v21  ;;  %v5879_v38 = vld [vmem:[#allocation35_spill] sm:$0xff] }
 0x9bc   :  { %3269 = vmatpush.bf16.msrb.mxu2 %v5218_v43  ;;  %3282 = vmatpush.bf16.msrb.mxu3 %v5215_v32  ;;  %v2047_v21 = vadd.f32 %v5879_v38, %v5497_v7  ;;  %v5880_v32 = vld [vmem:[#allocation37_spill] sm:$0xff] }
 0x9bd   :  { %v2076_v43 = vadd.f32 %v5880_v32, %v5499_v50 }
 0x9bf   :  { %3244 = vmatpush.bf16.msrb.mxu0 %v5224_v34  ;;  %3257 = vmatpush.bf16.msrb.mxu1 %v5229_v14 }
 0x9c0   :  { %3270 = vmatpush.bf16.msrb.mxu2 %v5240_v36  ;;  %3283 = vmatpush.bf16.msrb.mxu3 %v5238_v25 }
 0x9c3   :  { %3245 = vmatpush.bf16.msrb.mxu0 %v5244_v45  ;;  %3258 = vmatpush.bf16.msrb.mxu1 %v5246_v57 }
 0x9c4   :  { %3271 = vmatpush.bf16.msrb.mxu2 %v5279_v33  ;;  %3284 = vmatpush.bf16.msrb.mxu3 %v5252_v40  ;;  %v5881_v40 = vld [vmem:[#allocation38_spill] sm:$0xff] }
 0x9c7   :  { %3246 = vmatpush.bf16.msrb.mxu0 %v5258_v48  ;;  %3259 = vmatpush.bf16.msrb.mxu1 %v5260_v49  ;;  %v2134_v48 = vadd.f32 %v5881_v40, %v5507_v24  ;;  %v5884_v40 = vld [vmem:[#allocation41_spill] sm:$0xff] }
 0x9c8   :  { %3272 = vmatpush.bf16.msrb.mxu2 %v5300_v58  ;;  %3285 = vmatpush.bf16.msrb.mxu3 %v5277_v26 }
 0x9cb   :  { %3247 = vmatpush.bf16.msrb.mxu0 %v5289_v3  ;;  %3260 = vmatpush.bf16.msrb.mxu1 %v5296_v5 }
 0x9cc   :  { %3273 = vmatpush.bf16.msrb.mxu2 %v5329_v59  ;;  %3286 = vmatpush.bf16.msrb.mxu3 %v5298_v55 }
 0x9cf   :  { %3248 = vmatpush.bf16.msrb.mxu0 %v5321_v27  ;;  %3261 = vmatpush.bf16.msrb.mxu1 %v5327_v53 }
 0x9d0   :  { %3274 = vmatpush.bf16.msrb.mxu2 %v5350_v4  ;;  %3287 = vmatpush.bf16.msrb.mxu3 %v5337_v47  ;;  %v5882_v4 = vld [vmem:[#allocation39_spill] sm:$0xff] }
 0x9d3   :  { %3249 = vmatpush.bf16.msrb.mxu0 %v5344_v60  ;;  %3262 = vmatpush.bf16.msrb.mxu1 %v5348_v2 }
 0x9d4   :  { %3275 = vmatpush.bf16.msrb.mxu2 %v5367_v8  ;;  %3288 = vmatpush.bf16.msrb.mxu3 %v5353_v16  ;;  %v2105_v16 = vadd.f32 %v5882_v4, %v5865_v1 }
 0x9d7   :  { %3250 = vmatpush.bf16.msrb.mxu0 %v5359_v18  ;;  %3263 = vmatpush.bf16.msrb.mxu1 %v5365_v19 }
 0x9d8   :  { %3276 = vmatpush.bf16.msrb.mxu2 %v5376_v17  ;;  %3289 = vmatpush.bf16.msrb.mxu3 %v5370_v39 }
 0xa36   :  { %v2994_v34 = vpop.f32.mrf.mxu0  ;;  %v3007_v14 = vpop.f32.mrf.mxu1 }
 0xa37   :  { %v3037_v25 = vadd.f32 %v2994_v34, %v2047_v21  ;;  %v3038_v36 = vadd.f32 %v3007_v14, %v2076_v43 }
 0xa39   :  { %v3995_v45 = vmul.f32 -1.442695, %v3037_v25  ;;  %v3996_v57 = vmul.f32 -1.442695, %v3038_v36 }
 0xa3b   :  { %4360 = vpow2.f32 %v3995_v45  ;;  %v5883_v45 = vld [vmem:[#allocation40_spill] sm:$0xff] }
 0xa3c   :  { %4362 = vpow2.f32 %v3996_v57  ;;  %v2050_v57 = vadd.f32 %v5883_v45, %v5497_v7 }
 0xa3d   :  { %v3020_v49 = vpop.f32.mrf.mxu2  ;;  %v3033_v26 = vpop.f32.mrf.mxu3 }
 0xa3e   :  { %v3040_v33 = vadd.f32 %v3033_v26, %v2134_v48  ;;  %v2996_v3 = vpop.f32.mrf.mxu0  ;;  %v3009_v5 = vpop.f32.mrf.mxu1  ;;  %v3039_v8 = vadd.f32 %v3020_v49, %v2105_v16  ;;  %v2079_v48 = vadd.f32 %v5884_v40, %v5499_v50 }
 0xa40   :  { %v3997_v55 = vmul.f32 -1.442695, %v3040_v33 }
 0xa41   :  { %v4361_v58 = vpop.eup %4360 }
 0xa42   :  { %v4363_v27 = vpop.eup %4362  ;;  %v3044_v53 = vadd.f32 1.0, %v4361_v58  ;;  %4364 = vpow2.f32 %v3997_v55  ;;  %v5885_v58 = vld [vmem:[#allocation42_spill] sm:$0xff] }
 0xa43   :  { %v3063_v59 = vadd.f32 1.0, %v4363_v27  ;;  %v2137_v27 = vadd.f32 %v5885_v58, %v5507_v24 }
 0xa44   :  { %4366 = vrcp.f32 %v3044_v53  ;;  %v3056_v41 = vand.u32 2147483648, %v3044_v53  ;;  %v3054_v10 = vand.u32 2147483647, %v3044_v53  ;;  %vm3050_vm14 = vweird.f32 %v3044_v53 }
 0xa45   :  { %4368 = vrcp.f32 %v3063_v59  ;;  %v3022_v47 = vpop.f32.mrf.mxu2  ;;  %v3035_v60 = vpop.f32.mrf.mxu3  ;;  %v3075_v12 = vand.u32 2147483648, %v3063_v59  ;;  %v3073_v42 = vand.u32 2147483647, %v3063_v59  ;;  %vm3069_vm15 = vweird.f32 %v3063_v59 }
 0xa46   :  { %v3057_v13 = vor.u32 1.1754944e-38, %v3056_v41  ;;  %vm3055_vm2 = vcmp.eq.f32.partialorder %v3054_v10, 8.507059e+37 }
 0xa47   :  { %v3076_v44 = vor.u32 1.1754944e-38, %v3075_v12  ;;  %vm3074_vm3 = vcmp.eq.f32.partialorder %v3073_v42, 8.507059e+37 }
 0xa48   :  { %v4365_v2 = vpop.eup %4364 }
 0xa49   :  { %v3083_v18 = vadd.f32 1.0, %v4365_v2 }
 0xa4a   :  { %v4367_v19 = vpop.eup %4366 }
 0xa4b   :  { %v4369_v39 = vpop.eup %4368  ;;  %v3046_v17 = vmul.f32 %v4367_v19, %v3044_v53  ;;  %4370 = vrcp.f32 %v3083_v18  ;;  %vm3051_vm12 = vweird.f32 %v4367_v19  ;;  %v3095_v37 = vand.u32 2147483648, %v3083_v18 }
 0xa4c   :  { %v3065_v0 = vmul.f32 %v4369_v39, %v3063_v59  ;;  %4372 = vtanh.f32 %v3039_v8  ;;  %vm3070_vm13 = vweird.f32 %v4369_v39  ;;  %vm3052_vm0 = vmor %vm3050_vm14, %vm3051_vm12  ;;  %vm3089_vm5 = vweird.f32 %v3083_v18 }
 0xa4d   :  { %v3047_v63 = vsub.f32 1.0, %v3046_v17  ;;  %vm3071_vm1 = vmor %vm3069_vm15, %vm3070_vm13  ;;  %v3093_v38 = vand.u32 2147483647, %v3083_v18  ;;  %v3096_v32 = vor.u32 1.1754944e-38, %v3095_v37 }
 0xa4e   :  { %v3066_v15 = vsub.f32 1.0, %v3065_v0 }
 0xa4f   :  { %v3048_v30 = vmul.f32 %v4367_v19, %v3047_v63  ;;  %vm3094_vm7 = vcmp.eq.f32.partialorder %v3093_v38, 8.507059e+37  ;;  %v5886_v63 = vld [vmem:[#allocation44_spill] sm:$0xff] }
 0xa50   :  { %v3067_v46 = vmul.f32 %v4369_v39, %v3066_v15  ;;  %v2108_v15 = vadd.f32 %v5886_v63, %v5865_v1 }
 0xa51   :  { %v4371_v6 = vpop.eup %4370  ;;  %v3049_v31 = vadd.f32 %v4367_v19, %v3048_v30 }
 0xa52   :  { %v3068_v54 = vadd.f32 %v4369_v39, %v3067_v46  ;;  %v3085_v23 = vmul.f32 %v4371_v6, %v3083_v18  ;;  %v4373_v56 = vpop.eup %4372  ;;  %vm3090_vm4 = vweird.f32 %v4371_v6 }
 0xa53   :  { %v3053_v61 = vsel %vm3052_vm0, %v4367_v19, %v3049_v31  ;;  %vm3091_vm6 = vmor %vm3089_vm5, %vm3090_vm4 }
 0xa54   :  { %v3058_v11 = vsel %vm3055_vm2, %v3057_v13, %v3053_v61  ;;  %v3072_v20 = vsel %vm3071_vm1, %v4369_v39, %v3068_v54  ;;  %v3086_v29 = vsub.f32 1.0, %v3085_v23 }
 0xa55   :  { %v3077_v9 = vsel %vm3074_vm3, %v3076_v44, %v3072_v20  ;;  %v3101_v22 = vmul.f32 %v4373_v56, %v3058_v11 }
 0xa56   :  { %v3100_v62 = vmul.f32 %v3077_v9, %v5689_v28  ;;  %v3087_v52 = vmul.f32 %v4371_v6, %v3086_v29 }
 0xa58   :  { %v5733_v35 = vadd.f32 %v3101_v22, %v3100_v62  ;;  %v3088_v51 = vadd.f32 %v4371_v6, %v3087_v52 }
 0xa5a   :  { %4374 = vtanh.f32 %v5733_v35  ;;  %v3092_v21 = vsel %vm3091_vm6, %v4371_v6, %v3088_v51 }
 0xa5b   :  { %v3097_v34 = vsel %vm3094_vm7, %v3096_v32, %v3092_v21 }
 0xa60   :  { %v4375_v43 = vpop.eup %4374 }
 0xa61   :  { %v3104_v14 = vmul.f32 %v4375_v43, %v3097_v34 }
 0xa63   :  { %v3105_v25 = vpack.c.bf16 %v3104_v14, %v3104_v14 }
 0xa65   :  { %3108 = vst [vmem:[#allocation3 + $0x14] sm:$0xf] %v3105_v25 }
 0xa66   :  { %3107 = vst [vmem:[#allocation4] sm:$0xf] %v3105_v25 }
 0xa6c   :  { %v3371_v28 = vld [vmem:[#allocation3 + $0x10] sm:$0xff]  }
 0xa6d   :  { %v3113_v36 = vld [vmem:[#allocation4] sm:$0xf]  ;;  %3379 = vst [vmem:[#allocation17 + $0x10] sm:$0xff] %v3371_v28  }
 0xa6e   :  { %3122 = vmatmul.bf16.vlgmr.msra.gmra.mxu0 %v3113_v36  ;;  %3135 = vmatmul.bf16.vlgmr.msra.gmra.mxu1 %v3113_v36 }
 0xa6f   :  { %3148 = vmatmul.bf16.vlgmr.msra.gmra.mxu2 %v3113_v36  ;;  %3161 = vmatmul.bf16.vlgmr.msra.gmra.mxu3 %v3113_v36 }
 0xaeb   :  { %v3123_v49 = vpop.f32.mrf.mxu0  ;;  %v3136_v26 = vpop.f32.mrf.mxu1 }
 0xaec   :  { %v3166_v33 = vadd.f32 %v3123_v49, %v2050_v57  ;;  %v3167_v3 = vadd.f32 %v3136_v26, %v2079_v48 }
 0xaee   :  { %v3998_v5 = vmul.f32 -1.442695, %v3166_v33  ;;  %v3999_v55 = vmul.f32 -1.442695, %v3167_v3  ;;  %v5887_v3 = vld [vmem:[#allocation43_spill] sm:$0xff] }
 0xaf0   :  { %4376 = vpow2.f32 %v3998_v5  ;;  %v2052_v5 = vadd.f32 %v5887_v3, %v5497_v7 }
 0xaf1   :  { %4378 = vpow2.f32 %v3999_v55  ;;  %v5888_v55 = vld [vmem:[#allocation45_spill] sm:$0xff] }
 0xaf2   :  { %v3149_v53 = vpop.f32.mrf.mxu2  ;;  %v3162_v59 = vpop.f32.mrf.mxu3  ;;  %v2081_v58 = vadd.f32 %v5888_v55, %v5499_v50 }
 0xaf3   :  { %v3169_v47 = vadd.f32 %v3162_v59, %v2137_v27  ;;  %v3125_v60 = vpop.f32.mrf.mxu0  ;;  %v3138_v2 = vpop.f32.mrf.mxu1  ;;  %v3168_v30 = vadd.f32 %v3149_v53, %v2108_v15 }
 0xaf5   :  { %v4000_v4 = vmul.f32 -1.442695, %v3169_v47 }
 0xaf6   :  { %v4377_v16 = vpop.eup %4376 }
 0xaf7   :  { %v4379_v18 = vpop.eup %4378  ;;  %v3173_v19 = vadd.f32 1.0, %v4377_v16  ;;  %4380 = vpow2.f32 %v4000_v4  ;;  %v5889_v4 = vld [vmem:[#allocation46_spill] sm:$0xff] }
 0xaf8   :  { %v3192_v8 = vadd.f32 1.0, %v4379_v18  ;;  %v2139_v16 = vadd.f32 %v5889_v4, %v5507_v24 }
 0xaf9   :  { %4382 = vrcp.f32 %v3173_v19  ;;  %v3185_v13 = vand.u32 2147483648, %v3173_v19  ;;  %v3183_v44 = vand.u32 2147483647, %v3173_v19  ;;  %vm3179_vm10 = vweird.f32 %v3173_v19 }
 0xafa   :  { %4384 = vrcp.f32 %v3192_v8  ;;  %v3151_v39 = vpop.f32.mrf.mxu2  ;;  %v3164_v17 = vpop.f32.mrf.mxu3  ;;  %v3204_v54 = vand.u32 2147483648, %v3192_v8  ;;  %v3202_v56 = vand.u32 2147483647, %v3192_v8  ;;  %vm3198_vm11 = vweird.f32 %v3192_v8 }
 0xafb   :  { %v3186_v29 = vor.u32 1.1754944e-38, %v3185_v13  ;;  %vm3184_vm14 = vcmp.eq.f32.partialorder %v3183_v44, 8.507059e+37 }
 0xafc   :  { %v3205_v62 = vor.u32 1.1754944e-38, %v3204_v54  ;;  %vm3203_vm15 = vcmp.eq.f32.partialorder %v3202_v56, 8.507059e+37 }
 0xafd   :  { %v4381_v0 = vpop.eup %4380 }
 0xafe   :  { %v3212_v41 = vadd.f32 1.0, %v4381_v0 }
 0xaff   :  { %v4383_v12 = vpop.eup %4382 }
 0xb00   :  { %v4385_v10 = vpop.eup %4384  ;;  %v3175_v46 = vmul.f32 %v4383_v12, %v3173_v19  ;;  %4386 = vrcp.f32 %v3212_v41  ;;  %vm3180_vm8 = vweird.f32 %v4383_v12  ;;  %v3224_v36 = vand.u32 2147483648, %v3212_v41 }
 0xb01   :  { %v3194_v42 = vmul.f32 %v4385_v10, %v3192_v8  ;;  %4388 = vtanh.f32 %v3168_v30  ;;  %vm3199_vm9 = vweird.f32 %v4385_v10  ;;  %vm3181_vm12 = vmor %vm3179_vm10, %vm3180_vm8  ;;  %vm3218_vm1 = vweird.f32 %v3212_v41 }
 0xb02   :  { %v3176_v6 = vsub.f32 1.0, %v3175_v46  ;;  %vm3200_vm13 = vmor %vm3198_vm11, %vm3199_vm9  ;;  %v3222_v45 = vand.u32 2147483647, %v3212_v41  ;;  %v3225_v40 = vor.u32 1.1754944e-38, %v3224_v36 }
 0xb03   :  { %v3195_v31 = vsub.f32 1.0, %v3194_v42 }
 0xb04   :  { %v3177_v23 = vmul.f32 %v4383_v12, %v3176_v6  ;;  %vm3223_vm3 = vcmp.eq.f32.partialorder %v3222_v45, 8.507059e+37 }
 0xb05   :  { %v3196_v61 = vmul.f32 %v4385_v10, %v3195_v31 }
 0xb06   :  { %v4387_v11 = vpop.eup %4386  ;;  %v3178_v20 = vadd.f32 %v4383_v12, %v3177_v23 }
 0xb07   :  { %v3197_v9 = vadd.f32 %v4385_v10, %v3196_v61  ;;  %v3214_v22 = vmul.f32 %v4387_v11, %v3212_v41  ;;  %v4389_v51 = vpop.eup %4388  ;;  %vm3219_vm0 = vweird.f32 %v4387_v11 }
 0xb08   :  { %v3182_v52 = vsel %vm3181_vm12, %v4383_v12, %v3178_v20  ;;  %vm3220_vm2 = vmor %vm3218_vm1, %vm3219_vm0 }
 0xb09   :  { %v3187_v37 = vsel %vm3184_vm14, %v3186_v29, %v3182_v52  ;;  %v3201_v38 = vsel %vm3200_vm13, %v4385_v10, %v3197_v9  ;;  %v3215_v21 = vsub.f32 1.0, %v3214_v22  ;;  %v5890_v10 = vld [vmem:[#allocation47_spill] sm:$0xff] }
 0xb0a   :  { %v3206_v32 = vsel %vm3203_vm15, %v3205_v62, %v3201_v38  ;;  %v3230_v43 = vmul.f32 %v4389_v51, %v3187_v37  ;;  %v2110_v24 = vadd.f32 %v5890_v10, %v5865_v1 }
 0xb0b   :  { %v3229_v34 = vmul.f32 %v3206_v32, %v5733_v35  ;;  %v3216_v14 = vmul.f32 %v4387_v11, %v3215_v21 }
 0xb0d   :  { %v5745_v25 = vadd.f32 %v3230_v43, %v3229_v34  ;;  %v3217_v28 = vadd.f32 %v4387_v11, %v3216_v14 }
 0xb0f   :  { %4390 = vtanh.f32 %v5745_v25  ;;  %v3221_v57 = vsel %vm3220_vm2, %v4387_v11, %v3217_v28 }
 0xb10   :  { %v3226_v49 = vsel %vm3223_vm3, %v3225_v40, %v3221_v57 }
 0xb15   :  { %v4391_v48 = vpop.eup %4390 }
 0xb16   :  { %v3233_v26 = vmul.f32 %v4391_v48, %v3226_v49 }
 0xb18   :  { %v3234_v33 = vpack.c.bf16 %v3233_v26, %v3233_v26 }
 0xb1a   :  { %3237 = vst [vmem:[#allocation3 + $0x18] sm:$0xf] %v3234_v33 }
 0xb1b   :  { %3236 = vst [vmem:[#allocation4] sm:$0xf] %v3234_v33 }
 0xb22   :  { %v3242_v35 = vld [vmem:[#allocation4] sm:$0xf] }
 0xb23   :  { %3251 = vmatmul.bf16.vlgmr.msrb.gmra.mxu0 %v3242_v35  ;;  %3264 = vmatmul.bf16.vlgmr.msrb.gmra.mxu1 %v3242_v35 }
 0xb24   :  { %3277 = vmatmul.bf16.vlgmr.msrb.gmra.mxu2 %v3242_v35  ;;  %3290 = vmatmul.bf16.vlgmr.msrb.gmra.mxu3 %v3242_v35 }
 0xba0   :  { %v3252_v27 = vpop.f32.mrf.mxu0  ;;  %v3265_v53 = vpop.f32.mrf.mxu1 }
 0xba1   :  { %v3295_v59 = vadd.f32 %v3252_v27, %v2052_v5  ;;  %v3296_v47 = vadd.f32 %v3265_v53, %v2081_v58 }
 0xba3   :  { %v4001_v60 = vmul.f32 -1.442695, %v3295_v59  ;;  %v4002_v2 = vmul.f32 -1.442695, %v3296_v47 }
 0xba5   :  { %4392 = vpow2.f32 %v4001_v60 }
 0xba6   :  { %4394 = vpow2.f32 %v4002_v2 }
 0xba7   :  { %v3278_v18 = vpop.f32.mrf.mxu2  ;;  %v3291_v19 = vpop.f32.mrf.mxu3 }
 0xba8   :  { %v3298_v8 = vadd.f32 %v3291_v19, %v2139_v16  ;;  %v3254_v39 = vpop.f32.mrf.mxu0  ;;  %v3267_v17 = vpop.f32.mrf.mxu1  ;;  %v3297_v6 = vadd.f32 %v3278_v18, %v2110_v24 }
 0xbaa   :  { %v4003_v7 = vmul.f32 -1.442695, %v3298_v8 }
 0xbab   :  { %v4393_v0 = vpop.eup %4392 }
 0xbac   :  { %v4395_v63 = vpop.eup %4394  ;;  %v3302_v50 = vadd.f32 1.0, %v4393_v0  ;;  %4396 = vpow2.f32 %v4003_v7 }
 0xbad   :  { %v3321_v15 = vadd.f32 1.0, %v4395_v63 }
 0xbae   :  { %4398 = vrcp.f32 %v3302_v50  ;;  %v3314_v61 = vand.u32 2147483648, %v3302_v50  ;;  %v3312_v20 = vand.u32 2147483647, %v3302_v50  ;;  %vm3308_vm6 = vweird.f32 %v3302_v50 }
 0xbaf   :  { %4400 = vrcp.f32 %v3321_v15  ;;  %v3280_v41 = vpop.f32.mrf.mxu2  ;;  %v3293_v12 = vpop.f32.mrf.mxu3  ;;  %v3333_v56 = vand.u32 2147483648, %v3321_v15  ;;  %v3331_v9 = vand.u32 2147483647, %v3321_v15  ;;  %vm3327_vm7 = vweird.f32 %v3321_v15 }
 0xbb0   :  { %v3315_v62 = vor.u32 1.1754944e-38, %v3314_v61  ;;  %vm3313_vm10 = vcmp.eq.f32.partialorder %v3312_v20, 8.507059e+37 }
 0xbb1   :  { %v3334_v37 = vor.u32 1.1754944e-38, %v3333_v56  ;;  %vm3332_vm11 = vcmp.eq.f32.partialorder %v3331_v9, 8.507059e+37 }
 0xbb2   :  { %v4397_v30 = vpop.eup %4396 }
 0xbb3   :  { %v3341_v46 = vadd.f32 1.0, %v4397_v30 }
 0xbb4   :  { %v4399_v42 = vpop.eup %4398 }
 0xbb5   :  { %v4401_v31 = vpop.eup %4400  ;;  %v3304_v13 = vmul.f32 %v4399_v42, %v3302_v50  ;;  %4402 = vrcp.f32 %v3341_v46  ;;  %vm3309_vm4 = vweird.f32 %v4399_v42  ;;  %v3353_v48 = vand.u32 2147483648, %v3341_v46 }
 0xbb6   :  { %v3323_v54 = vmul.f32 %v4401_v31, %v3321_v15  ;;  %4404 = vtanh.f32 %v3297_v6  ;;  %vm3328_vm5 = vweird.f32 %v4401_v31  ;;  %vm3310_vm8 = vmor %vm3308_vm6, %vm3309_vm4  ;;  %vm3347_vm13 = vweird.f32 %v3341_v46 }
 0xbb7   :  { %v3305_v23 = vsub.f32 1.0, %v3304_v13  ;;  %vm3329_vm9 = vmor %vm3327_vm7, %vm3328_vm5  ;;  %v3351_v49 = vand.u32 2147483647, %v3341_v46  ;;  %v3354_v33 = vor.u32 1.1754944e-38, %v3353_v48 }
 0xbb8   :  { %v3324_v44 = vsub.f32 1.0, %v3323_v54 }
 0xbb9   :  { %v3306_v11 = vmul.f32 %v4399_v42, %v3305_v23  ;;  %vm3352_vm15 = vcmp.eq.f32.partialorder %v3351_v49, 8.507059e+37 }
 0xbba   :  { %v3325_v29 = vmul.f32 %v4401_v31, %v3324_v44 }
 0xbbb   :  { %v4403_v22 = vpop.eup %4402  ;;  %v3307_v1 = vadd.f32 %v4399_v42, %v3306_v11 }
 0xbbc   :  { %v3326_v52 = vadd.f32 %v4401_v31, %v3325_v29  ;;  %v3343_v51 = vmul.f32 %v4403_v22, %v3341_v46  ;;  %v4405_v21 = vpop.eup %4404  ;;  %vm3348_vm12 = vweird.f32 %v4403_v22 }
 0xbbd   :  { %v3311_v38 = vsel %vm3310_vm8, %v4399_v42, %v3307_v1  ;;  %vm3349_vm14 = vmor %vm3347_vm13, %vm3348_vm12 }
 0xbbe   :  { %v3316_v32 = vsel %vm3313_vm10, %v3315_v62, %v3311_v38  ;;  %v3330_v43 = vsel %vm3329_vm9, %v4401_v31, %v3326_v52  ;;  %v3344_v34 = vsub.f32 1.0, %v3343_v51 }
 0xbbf   :  { %v3335_v14 = vsel %vm3332_vm11, %v3334_v37, %v3330_v43  ;;  %v3359_v28 = vmul.f32 %v4405_v21, %v3316_v32 }
 0xbc0   :  { %v3358_v36 = vmul.f32 %v3335_v14, %v5745_v25  ;;  %v3345_v45 = vmul.f32 %v4403_v22, %v3344_v34 }
 0xbc2   :  { %v3360_v57 = vadd.f32 %v3359_v28, %v3358_v36  ;;  %v3346_v40 = vadd.f32 %v4403_v22, %v3345_v45 }
 0xbc4   :  { %4406 = vtanh.f32 %v3360_v57  ;;  %v3350_v26 = vsel %vm3349_vm14, %v4403_v22, %v3346_v40 }
 0xbc5   :  { %v3355_v3 = vsel %vm3352_vm15, %v3354_v33, %v3350_v26 }
 0xbca   :  { %v4407_v35 = vpop.eup %4406 }
 0xbcb   :  { %v3362_v5 = vmul.f32 %v4407_v35, %v3355_v3 }
 0xbcd   :  { %v3363_v55 = vpack.c.bf16 %v3362_v5, %v3362_v5 }
 0xbcf   :  { %3365 = vst [vmem:[#allocation4] sm:$0xf] %v3363_v55 }
 0xbd0   :  { %3366 = vst [vmem:[#allocation3 + $0x1c] sm:$0xf] %v3363_v55 }
 0xbd7   :  { %v3373_v25 = vld [vmem:[#allocation3 + $0x18] sm:$0xff]  }
 0xbd8   :  { %3381 = vst [vmem:[#allocation17 + $0x18] sm:$0xff] %v3373_v25  }
 0xbd9   :  { %3395 = dma.vmem_to_hbm [thread:$0]  %s3388_s8, 512, %s3390_s11, [#allocation8], %s4591_s19, %s4591_s19, %s4592_s20  }
 0xbda   :  { %4584 = dma.done.wait [#allocation8], 512  }
 0xbdb   :  { %4585 = vsyncadd [#allocation8], 4294966784 }
 0xbdc   :  { %3400 = vsyncpa [#allocation7], 1 }
 0xbdd   :  { %3401 = vsyncpa [#allocation10], 1 }
 0xbde   :  { %3402 = vsyncpa [#allocation13], 1 }
 0xbdf   :  { %3403 = vsyncpa [#allocation16], 1 }
 0xbe0   :  { %3404 = vsyncpa [#allocation8], 1 }

</bundles_post_ra>
